<compile_context>
chip_gen: v7x
topology: tpu7x:2x2x1
jax: 0.10.0
libtpu: 0.0.40
codegen_flags: <defaults>
</compile_context>

<pallas_src>
from typing import NamedTuple, Optional

import jax
import jax.numpy as jnp
from jax.experimental import pallas as pl
from jax.experimental.pallas import tpu as pltpu


# ----------------------------------------------------------------------------
# helpers
# ----------------------------------------------------------------------------
def _round_up(x, m):
    return (x + m - 1) // m * m


class Src(NamedTuple):
    """Activation (NHWC, bf16) with an optional pending per-channel affine
    (the lazily applied BatchNorm normalize: x * scale + shift)."""
    data: jax.Array
    scale: Optional[jax.Array] = None
    shift: Optional[jax.Array] = None


# ----------------------------------------------------------------------------
# fused (affine -> act_in -> matmul (+skip source) -> bias -> act_out) kernel
# ----------------------------------------------------------------------------
def _make_matmul_kernel(n_src, has_affine, has_bias, act_in, act_out):
    def kernel(*refs):
        idx = 0
        srcs = []
        for s in range(n_src):
            x_ref, w_ref = refs[idx], refs[idx + 1]
            idx += 2
            if has_affine[s]:
                sc_ref, sh_ref = refs[idx], refs[idx + 1]
                idx += 2
            else:
                sc_ref = sh_ref = None
            srcs.append((x_ref, w_ref, sc_ref, sh_ref))
        b_ref = None
        if has_bias:
            b_ref = refs[idx]
            idx += 1
        o_ref, acc_ref = refs[idx], refs[idx + 1]

        k = pl.program_id(1)

        @pl.when(k == 0)
        def _():
            acc_ref[...] = jnp.zeros_like(acc_ref)

        for x_ref, w_ref, sc_ref, sh_ref in srcs:
            x = x_ref[...].astype(jnp.float32)
            if sc_ref is not None:                       # folded BatchNorm apply
                x = x * sc_ref[...] + sh_ref[...]
            if act_in == "leaky_relu":
                x = jnp.where(x > 0, x, 0.2 * x)
            elif act_in == "relu":
                x = jnp.maximum(x, 0.0)
            acc_ref[...] += jnp.dot(x.astype(jnp.bfloat16), w_ref[...],
                                    preferred_element_type=jnp.float32)

        @pl.when(k == pl.num_programs(1) - 1)
        def _():
            y = acc_ref[...]
            if has_bias:
                y = y + b_ref[...]
            if act_out == "sigmoid":
                y = 1.0 / (1.0 + jnp.exp(-y))
            o_ref[...] = y.astype(o_ref.dtype)

    return kernel


def fused_matmul(entries, bias=None, act_in="none", act_out="none",
                 out_dtype=jnp.bfloat16):
    """entries: list of (x2d (M,K_s), w2d (K_s,Cout), scale|None, shift|None).
    Computes act_out( sum_s act_in(x_s*scale_s+shift_s) @ w_s  (+ bias) )."""
    M = entries[0][0].shape[0]
    cout = entries[0][1].shape[1]
    kmax = max(e[0].shape[1] for e in entries)

    n_chunks = -(-M // 512)                      # keep M tiles <= 512 rows
    tm = _round_up(-(-M // n_chunks), 8)
    mp = _round_up(M, tm)
    kp = _round_up(kmax, 128)
    tk = 512 if kp % 512 == 0 else (256 if kp % 256 == 0 else 128)
    cp = _round_up(cout, 128)                    # lane-dense output stores
    nm, nk = mp // tm, kp // tk

    operands, in_specs, has_affine = [], [], []
    for x2d, w2d, scale, shift in entries:
        m0, k0 = x2d.shape
        assert m0 == M and w2d.shape[1] == cout
        operands.append(jnp.pad(x2d.astype(jnp.bfloat16),
                                ((0, mp - M), (0, kp - k0))))
        operands.append(jnp.pad(w2d.astype(jnp.bfloat16),
                                ((0, kp - k0), (0, cp - cout))))
        in_specs.append(pl.BlockSpec((tm, tk), lambda m, k: (m, k)))
        in_specs.append(pl.BlockSpec((tk, cp), lambda m, k: (k, 0)))
        aff = scale is not None
        has_affine.append(aff)
        if aff:
            operands.append(jnp.pad(scale.astype(jnp.float32), (0, kp - k0),
                                    constant_values=1.0).reshape(1, kp))
            operands.append(jnp.pad(shift.astype(jnp.float32),
                                    (0, kp - k0)).reshape(1, kp))
            in_specs += [pl.BlockSpec((1, tk), lambda m, k: (0, k))] * 2

    has_bias = bias is not None
    if has_bias:
        operands.append(jnp.pad(bias.astype(jnp.float32),
                                (0, cp - cout)).reshape(1, cp))
        in_specs.append(pl.BlockSpec((1, cp), lambda m, k: (0, 0)))

    kernel = _make_matmul_kernel(len(entries), tuple(has_affine), has_bias,
                                 act_in, act_out)
    in_bytes = sum(int(o.size) * o.dtype.itemsize for o in operands)
    out_bytes = mp * cp * jnp.dtype(out_dtype).itemsize
    y = pl.pallas_call(
        kernel,
        grid=(nm, nk),
        in_specs=in_specs,
        out_specs=pl.BlockSpec((tm, cp), lambda m, k: (m, 0)),
        out_shape=jax.ShapeDtypeStruct((mp, cp), out_dtype),
        scratch_shapes=[pltpu.VMEM((tm, cp), jnp.float32)],
        compiler_params=pltpu.CompilerParams(
            dimension_semantics=("parallel", "arbitrary"),
            vmem_limit_bytes=32 * 1024 * 1024),
        cost_estimate=pl.CostEstimate(
            flops=2 * mp * kp * cp * len(entries),
            transcendentals=mp * cp if act_out == "sigmoid" else 0,
            bytes_accessed=in_bytes + out_bytes),
    )(*operands)
    return y[:M, :cout]


# ----------------------------------------------------------------------------
# BatchNorm2d (training-mode batch statistics) as a tiled Pallas reduction;
# the normalize-apply is folded into the consumer conv's prologue.
# TODO(synk): eval-mode (running stats) path is not implemented.
# ----------------------------------------------------------------------------
def _bn_stats_kernel(x_ref, s_out, ss_out, s_acc, ss_acc):
    @pl.when(pl.program_id(0) == 0)
    def _():
        s_acc[...] = jnp.zeros_like(s_acc)
        ss_acc[...] = jnp.zeros_like(ss_acc)

    x = x_ref[...].astype(jnp.float32)
    s_acc[...] += jnp.sum(x, axis=0, keepdims=True)
    ss_acc[...] += jnp.sum(x * x, axis=0, keepdims=True)

    @pl.when(pl.program_id(0) == pl.num_programs(0) - 1)
    def _():
        s_out[...] = s_acc[...]
        ss_out[...] = ss_acc[...]


def bn_fold(x_nhwc, gamma, beta, eps=1e-5):
    n, h, w, c = x_nhwc.shape
    m = n * h * w
    tm = min(1024, _round_up(m, 8))
    mp = _round_up(m, tm)
    x2d = jnp.pad(x_nhwc.reshape(m, c), ((0, mp - m), (0, 0)))
    s, ss = pl.pallas_call(
        _bn_stats_kernel,
        grid=(mp // tm,),
        in_specs=[pl.BlockSpec((tm, c), lambda i: (i, 0))],
        out_specs=[pl.BlockSpec((1, c), lambda i: (0, 0))] * 2,
        out_shape=[jax.ShapeDtypeStruct((1, c), jnp.float32)] * 2,
        scratch_shapes=[pltpu.VMEM((1, c), jnp.float32)] * 2,
        compiler_params=pltpu.CompilerParams(
            dimension_semantics=("arbitrary",),
            vmem_limit_bytes=32 * 1024 * 1024),
    )(x2d)
    mean = s[0] / m
    var = jnp.maximum(ss[0] / m - mean * mean, 0.0)      # biased variance
    scale = gamma * jax.lax.rsqrt(var + eps)
    shift = beta - mean * scale
    return scale, shift


# ----------------------------------------------------------------------------
# convolution wrappers (patch/layout glue in XLA; hot path in the Pallas kernel)
# ----------------------------------------------------------------------------
def _pad_hw(src, p):
    """Spatial zero-padding that stays exact under the fused prologue: the pad
    value is -shift/scale so the folded affine maps the ring to 0 and
    act(0) == 0 (matching PyTorch, which pads act(BN(x)) with zeros)."""
    x, scale, shift = src
    n, h, w, c = x.shape
    if scale is None:
        return jnp.pad(x, ((0, 0), (p, p), (p, p), (0, 0)))
    safe = jnp.where(scale != 0, scale, 1.0)
    pad_val = jnp.where(scale != 0, -shift / safe, 0.0).astype(x.dtype)
    xp = jnp.broadcast_to(pad_val, (n, h + 2 * p, w + 2 * p, c))
    return xp.at[:, p:p + h, p:p + w, :].set(x)


def _patches(xp, k, stride):
    """(N,Hp,Wp,C) -> (N,Ho,Wo,k*k*C); tap order (dy, dx, C)."""
    n, hp, wp, c = xp.shape
    ho = (hp - k) // stride + 1
    wo = (wp - k) // stride + 1
    cols = []
    for dy in range(k):
        for dx in range(k):
            cols.append(xp[:, dy:dy + stride * ho:stride,
                           dx:dx + stride * wo:stride, :])
    return jnp.concatenate(cols, axis=-1)


def pointwise_conv(srcs, wm, bias, act_in, act_out="none",
                   out_dtype=jnp.bfloat16):
    """1x1 Conv / ConvTranspose over the (virtual) concat of `srcs`.
    wm: (sum of source channels, Cout) — rows split per source."""
    n, h, w, _ = srcs[0].data.shape
    entries, off = [], 0
    for s in srcs:
        c = s.data.shape[-1]
        entries.append((s.data.reshape(-1, c), wm[off:off + c],
                        s.scale, s.shift))
        off += c
    y = fused_matmul(entries, bias, act_in, act_out, out_dtype)
    return y.reshape(n, h, w, -1)


def conv4x4_s2(src, w, act_in="leaky_relu"):
    """Conv2d(k=4, s=2, p=1, bias=False); w: (Cout, Cin, 4, 4) PyTorch layout.
    Folded-BN affine + activation fused into the matmul prologue.
    # TODO(synk): the 4x im2col slab is still materialized in HBM; an in-kernel
    # strided patch gather would remove that round trip."""
    x, scale, shift = src
    n, h, ww, c = x.shape
    cout = w.shape[0]
    p = _patches(_pad_hw(src, 1), 4, 2)                    # (n, h/2, w/2, 16c)
    wm = jnp.transpose(w, (2, 3, 1, 0)).reshape(16 * c, cout)
    sc = jnp.tile(scale, 16) if scale is not None else None
    sh = jnp.tile(shift, 16) if shift is not None else None
    y = fused_matmul([(p.reshape(-1, 16 * c), wm, sc, sh)], None, act_in, "none")
    return y.reshape(n, h // 2, ww // 2, cout)


def convT4x4_s2(srcs, w, act_in="relu"):
    """ConvTranspose2d(k=4, s=2, p=1, bias=False) over the (virtual) concat of
    `srcs`; w: (Cin_total, Cout, 4, 4) PyTorch layout.  Sub-pixel decomposition:
    each of the 4 output phases is a 2x2-tap stride-1 conv (stacked phase
    weights -> one matmul), so the MXU never touches a 75%-zero dilated tensor."""
    n, h, ww, _ = srcs[0].data.shape
    cout = w.shape[1]
    entries, off = [], 0
    for s in srcs:
        c = s.data.shape[-1]
        ws = w[off:off + c]
        off += c
        p = _patches(_pad_hw(s, 1), 2, 1)                  # (n, h+1, w+1, 4c)
        phase_cols = []
        for ry in range(2):
            for rx in range(2):
                rows = [ws[:, :, (3 - ry) - 2 * a, (3 - rx) - 2 * b]
                        for a in range(2) for b in range(2)]
                phase_cols.append(jnp.concatenate(rows, axis=0))   # (4c, cout)
        wstk = jnp.concatenate(phase_cols, axis=1)                 # (4c, 4cout)
        sc = jnp.tile(s.scale, 4) if s.scale is not None else None
        sh = jnp.tile(s.shift, 4) if s.shift is not None else None
        entries.append((p.reshape(-1, 4 * c), wstk, sc, sh))
    y = fused_matmul(entries, None, act_in, "none")
    y = y.reshape(n, h + 1, ww + 1, 4, cout)
    out = jnp.zeros((n, 2 * h, 2 * ww, cout), jnp.bfloat16)
    for ry in range(2):
        for rx in range(2):
            out = out.at[:, ry::2, rx::2, :].set(
                y[:, ry:ry + h, rx:rx + ww, 2 * ry + rx, :])
    return out


# ----------------------------------------------------------------------------
# parameters (deterministic, matching the PyTorch module's shapes)
# ----------------------------------------------------------------------------
def init_params(key, input_nc, output_nc, num_downs, ngf):
    def nrm(k, shape, scale=0.05):
        return scale * jax.random.normal(k, shape, jnp.float32)

    keys = iter(jax.random.split(key, 8 + 8 * num_downs))
    params = {}

    c_in = ngf * (2 ** num_downs)                 # innermost block (keep_size)
    params["inner"] = {
        "down_w": nrm(next(keys), (c_in, c_in, 1, 1)),      # Conv2d 1x1, no bias
        "up_w": nrm(next(keys), (c_in, c_in, 1, 1)),        # ConvT 1x1, bias=True
        "up_b": nrm(next(keys), (c_in,)),
        "bn_g": jnp.ones((c_in,), jnp.float32),
        "bn_b": jnp.zeros((c_in,), jnp.float32),
    }

    # params["mid"][0] is adjacent to the innermost block, [-1] to the outermost.
    params["mid"] = []
    for k in range(num_downs, 0, -1):
        c = ngf * (2 ** (k - 1))                  # outer_nc; inner_nc = 2*c
        params["mid"].append({
            "down_w": nrm(next(keys), (2 * c, c, 4, 4)),    # Conv2d 4x4 s2, no bias
            "dn_g": jnp.ones((2 * c,), jnp.float32),
            "dn_b": jnp.zeros((2 * c,), jnp.float32),
            "up_w": nrm(next(keys), (4 * c, c, 4, 4)),      # ConvT 4x4 s2, no bias
            "up_g": jnp.ones((c,), jnp.float32),
            "up_b": jnp.zeros((c,), jnp.float32),
        })

    params["outer"] = {
        "down_w": nrm(next(keys), (ngf, input_nc, 1, 1)),   # Conv2d 1x1, no bias
        "up_w": nrm(next(keys), (2 * ngf, output_nc, 1, 1)),  # ConvT 1x1, bias=True
        "up_b": nrm(next(keys), (output_nc,)),
    }
    return params


# ----------------------------------------------------------------------------
# forward pass (mirrors UnetSkipConnectionBlock composition; skip concats and
# BatchNorm applies are virtual — folded into the consumer conv kernels)
# ----------------------------------------------------------------------------
def unet_forward(params, x_nchw):
    x = jnp.transpose(x_nchw, (0, 2, 3, 1)).astype(jnp.bfloat16)   # NCHW -> NHWC

    def inner_fwd(h):
        p = params["inner"]
        d = pointwise_conv([h], jnp.transpose(p["down_w"][:, :, 0, 0]),
                           None, act_in="leaky_relu")
        u = pointwise_conv([Src(d)], p["up_w"][:, :, 0, 0], p["up_b"],
                           act_in="relu")
        return [h, Src(u, *bn_fold(u, p["bn_g"], p["bn_b"]))]

    def mid_fwd(h, idx):
        p = params["mid"][idx]
        d = conv4x4_s2(h, p["down_w"], act_in="leaky_relu")
        d_src = Src(d, *bn_fold(d, p["dn_g"], p["dn_b"]))
        s = inner_fwd(d_src) if idx == 0 else mid_fwd(d_src, idx - 1)
        u = convT4x4_s2(s, p["up_w"], act_in="relu")
        return [h, Src(u, *bn_fold(u, p["up_g"], p["up_b"]))]

    po = params["outer"]
    h0 = pointwise_conv([Src(x)], jnp.transpose(po["down_w"][:, :, 0, 0]),
                        None, act_in="none")
    h0_src = Src(h0)
    s = mid_fwd(h0_src, len(params["mid"]) - 1) if params["mid"] \
        else inner_fwd(h0_src)
    out = pointwise_conv(s, po["up_w"][:, :, 0, 0], po["up_b"],
                         act_in="relu", act_out="sigmoid",
                         out_dtype=jnp.float32)
    return jnp.transpose(out, (0, 3, 1, 2))                        # NHWC -> NCHW


# ----------------------------------------------------------------------------
if __name__ == "__main__":
    # CustomUnetGenerator(input_nc=4, output_nc=3, num_downs=2, ngf=8)
    input_nc, output_nc, num_downs, ngf = 4, 3, 2, 8
    N, H, W = 2, 16, 16

    key = jax.random.PRNGKey(0)
    pkey, xkey = jax.random.split(key)
    params = init_params(pkey, input_nc, output_nc, num_downs, ngf)
    x = jax.random.normal(xkey, (N, input_nc, H, W), jnp.float32)

    fwd = jax.jit(unet_forward)
    out = jax.block_until_ready(fwd(params, x))

    assert out.shape == (N, output_nc, H, W), out.shape
    assert bool(jnp.all(jnp.isfinite(out)))
    assert bool(jnp.all((out >= 0.0) & (out <= 1.0)))   # sigmoid output range
    print("KERNEL_OK")
</pallas_src>

<mosaic_0001>
module attributes {stable_mosaic.version = 11 : i64} {
  func.func @kernel(%arg0: i32, %arg1: i32, %arg2: memref<512x128xbf16, #tpu.memory_space<vmem>>, %arg3: memref<128x128xbf16, #tpu.memory_space<vmem>>, %arg4: memref<512x128xbf16, #tpu.memory_space<vmem>>, %arg5: memref<512x128xf32, #tpu.memory_space<vmem>>) attributes {dimension_semantics = [#tpu.dimension_semantics<parallel>, #tpu.dimension_semantics<arbitrary>], iteration_bounds = array<i64: 1, 1>, scalar_prefetch = 0 : i64, scratch_operands = 1 : i64, tpu.core_type = #tpu.core_type<tc>, window_params = [{transform_indices = @transform_0, window_bounds = array<i64: 512, 128>}, {transform_indices = @transform_1, window_bounds = array<i64: 128, 128>}, {transform_indices = @transform_2, window_bounds = array<i64: 512, 128>}]} {
    %c0_i32 = arith.constant 0 : i32
    %0 = arith.cmpi eq, %arg1, %c0_i32 : i32
    %1 = arith.extui %0 : i1 to i32
    %c0_i32_0 = arith.constant 0 : i32
    %2 = arith.cmpi ne, %1, %c0_i32_0 : i32
    scf.if %2 {
      %cst_10 = arith.constant 0.000000e+00 : f32
      %14 = vector.broadcast %cst_10 : f32 to vector<512x128xf32>
      %c0_11 = arith.constant 0 : index
      %c0_12 = arith.constant 0 : index
      %15 = vector.load %arg5[%c0_11, %c0_12] : memref<512x128xf32, #tpu.memory_space<vmem>>, vector<512x128xf32>
      tpu.vector_store %arg5[%c0_11, %c0_12], %14 {strides = array<i32>} : memref<512x128xf32, #tpu.memory_space<vmem>>, vector<512x128xf32>,
    } else {
    }
    %c0 = arith.constant 0 : index
    %c0_1 = arith.constant 0 : index
    %3 = vector.load %arg2[%c0, %c0_1] : memref<512x128xbf16, #tpu.memory_space<vmem>>, vector<512x128xbf16>
    %4 = arith.extf %3 : vector<512x128xbf16> to vector<512x128xf32>
    %c0_2 = arith.constant 0 : index
    %c0_3 = arith.constant 0 : index
    %5 = vector.load %arg5[%c0_2, %c0_3] : memref<512x128xf32, #tpu.memory_space<vmem>>, vector<512x128xf32>
    %6 = arith.truncf %4 : vector<512x128xf32> to vector<512x128xbf16>
    %c0_4 = arith.constant 0 : index
    %c0_5 = arith.constant 0 : index
    %7 = vector.load %arg3[%c0_4, %c0_5] : memref<128x128xbf16, #tpu.memory_space<vmem>>, vector<128x128xbf16>
    %cst = arith.constant dense<0.000000e+00> : vector<512x128xf32>
    %8 = tpu.matmul %6, %7, %cst {dimension_numbers = #tpu.dot_dimension_numbers<[1], [0], [0], [1], [0, 0, 1, 1], [], []>} : vector<512x128xbf16>, vector<128x128xbf16>, vector<512x128xf32> -> vector<512x128xf32>
    %9 = arith.addf %5, %8 : vector<512x128xf32>
    %c0_6 = arith.constant 0 : index
    %c0_7 = arith.constant 0 : index
    %10 = vector.load %arg5[%c0_6, %c0_7] : memref<512x128xf32, #tpu.memory_space<vmem>>, vector<512x128xf32>
    tpu.vector_store %arg5[%c0_6, %c0_7], %9 {strides = array<i32>} : memref<512x128xf32, #tpu.memory_space<vmem>>, vector<512x128xf32>,
    %c0_i32_8 = arith.constant 0 : i32
    %11 = arith.cmpi eq, %arg1, %c0_i32_8 : i32
    %12 = arith.extui %11 : i1 to i32
    %c0_i32_9 = arith.constant 0 : i32
    %13 = arith.cmpi ne, %12, %c0_i32_9 : i32
    scf.if %13 {
      %c0_10 = arith.constant 0 : index
      %c0_11 = arith.constant 0 : index
      %14 = vector.load %arg5[%c0_10, %c0_11] : memref<512x128xf32, #tpu.memory_space<vmem>>, vector<512x128xf32>
      %15 = arith.truncf %14 : vector<512x128xf32> to vector<512x128xbf16>
      %c0_12 = arith.constant 0 : index
      %c0_13 = arith.constant 0 : index
      %16 = vector.load %arg4[%c0_12, %c0_13] : memref<512x128xbf16, #tpu.memory_space<vmem>>, vector<512x128xbf16>
      tpu.vector_store %arg4[%c0_12, %c0_13], %15 {strides = array<i32>} : memref<512x128xbf16, #tpu.memory_space<vmem>>, vector<512x128xbf16>,
    } else {
    }
    return
  }
  func.func @transform_0(%arg0: i32, %arg1: i32) -> (i32, i32) {
    %c0_i32 = arith.constant 0 : i32
    return %arg0, %arg1 : i32, i32
  }
  func.func @transform_1(%arg0: i32, %arg1: i32) -> (i32, i32) {
    %c0_i32 = arith.constant 0 : i32
    %c0_i32_0 = arith.constant 0 : i32
    return %arg1, %c0_i32 : i32, i32
  }
  func.func @transform_2(%arg0: i32, %arg1: i32) -> (i32, i32) {
    %c0_i32 = arith.constant 0 : i32
    %c0_i32_0 = arith.constant 0 : i32
    return %arg0, %c0_i32 : i32, i32
  }
}

module attributes {stable_mosaic.version = 11 : i64} {
  func.func @_bn_stats_kernel(%arg0: i32, %arg1: memref<128x16xbf16, #tpu.memory_space<vmem>>, %arg2: memref<1x16xf32, #tpu.memory_space<vmem>>, %arg3: memref<1x16xf32, #tpu.memory_space<vmem>>, %arg4: memref<1x16xf32, #tpu.memory_space<vmem>>, %arg5: memref<1x16xf32, #tpu.memory_space<vmem>>) attributes {dimension_semantics = [#tpu.dimension_semantics<arbitrary>], iteration_bounds = array<i64: 1>, scalar_prefetch = 0 : i64, scratch_operands = 2 : i64, tpu.core_type = #tpu.core_type<tc>, window_params = [{transform_indices = @transform_0, window_bounds = array<i64: 128, 16>}, {pipeline_mode = #tpu.pipeline_mode<synchronous>, transform_indices = @transform_1, window_bounds = array<i64: 1, 16>}, {pipeline_mode = #tpu.pipeline_mode<synchronous>, transform_indices = @transform_2, window_bounds = array<i64: 1, 16>}]} {
    %c0_i32 = arith.constant 0 : i32
    %0 = arith.cmpi eq, %arg0, %c0_i32 : i32
    %1 = arith.extui %0 : i1 to i32
    %c0_i32_0 = arith.constant 0 : i32
    %2 = arith.cmpi ne, %1, %c0_i32_0 : i32
    scf.if %2 {
      %cst_13 = arith.constant 0.000000e+00 : f32
      %19 = vector.broadcast %cst_13 : f32 to vector<1x16xf32>
      %c0_14 = arith.constant 0 : index
      %c0_15 = arith.constant 0 : index
      %20 = vector.load %arg4[%c0_14, %c0_15] : memref<1x16xf32, #tpu.memory_space<vmem>>, vector<1x16xf32>
      tpu.vector_store %arg4[%c0_14, %c0_15], %19 {strides = array<i32>} : memref<1x16xf32, #tpu.memory_space<vmem>>, vector<1x16xf32>,
      %cst_16 = arith.constant 0.000000e+00 : f32
      %21 = vector.broadcast %cst_16 : f32 to vector<1x16xf32>
      %c0_17 = arith.constant 0 : index
      %c0_18 = arith.constant 0 : index
      %22 = vector.load %arg5[%c0_17, %c0_18] : memref<1x16xf32, #tpu.memory_space<vmem>>, vector<1x16xf32>
      tpu.vector_store %arg5[%c0_17, %c0_18], %21 {strides = array<i32>} : memref<1x16xf32, #tpu.memory_space<vmem>>, vector<1x16xf32>,
    } else {
    }
    %c0 = arith.constant 0 : index
    %c0_1 = arith.constant 0 : index
    %3 = vector.load %arg1[%c0, %c0_1] : memref<128x16xbf16, #tpu.memory_space<vmem>>, vector<128x16xbf16>
    %4 = arith.extf %3 : vector<128x16xbf16> to vector<128x16xf32>
    %c0_2 = arith.constant 0 : index
    %c0_3 = arith.constant 0 : index
    %5 = vector.load %arg4[%c0_2, %c0_3] : memref<1x16xf32, #tpu.memory_space<vmem>>, vector<1x16xf32>
    %cst = arith.constant dense<0.000000e+00> : vector<16xf32>
    %6 = vector.multi_reduction <add>, %4, %cst [0] : vector<128x16xf32> to vector<16xf32>
    %7 = vector.shape_cast %6 : vector<16xf32> to vector<1x16xf32>
    %8 = arith.addf %5, %7 : vector<1x16xf32>
    %c0_4 = arith.constant 0 : index
    %c0_5 = arith.constant 0 : index
    %9 = vector.load %arg4[%c0_4, %c0_5] : memref<1x16xf32, #tpu.memory_space<vmem>>, vector<1x16xf32>
    tpu.vector_store %arg4[%c0_4, %c0_5], %8 {strides = array<i32>} : memref<1x16xf32, #tpu.memory_space<vmem>>, vector<1x16xf32>,
    %c0_6 = arith.constant 0 : index
    %c0_7 = arith.constant 0 : index
    %10 = vector.load %arg5[%c0_6, %c0_7] : memref<1x16xf32, #tpu.memory_space<vmem>>, vector<1x16xf32>
    %11 = arith.mulf %4, %4 : vector<128x16xf32>
    %cst_8 = arith.constant dense<0.000000e+00> : vector<16xf32>
    %12 = vector.multi_reduction <add>, %11, %cst_8 [0] : vector<128x16xf32> to vector<16xf32>
    %13 = vector.shape_cast %12 : vector<16xf32> to vector<1x16xf32>
    %14 = arith.addf %10, %13 : vector<1x16xf32>
    %c0_9 = arith.constant 0 : index
    %c0_10 = arith.constant 0 : index
    %15 = vector.load %arg5[%c0_9, %c0_10] : memref<1x16xf32, #tpu.memory_space<vmem>>, vector<1x16xf32>
    tpu.vector_store %arg5[%c0_9, %c0_10], %14 {strides = array<i32>} : memref<1x16xf32, #tpu.memory_space<vmem>>, vector<1x16xf32>,
    %c0_i32_11 = arith.constant 0 : i32
    %16 = arith.cmpi eq, %arg0, %c0_i32_11 : i32
    %17 = arith.extui %16 : i1 to i32
    %c0_i32_12 = arith.constant 0 : i32
    %18 = arith.cmpi ne, %17, %c0_i32_12 : i32
    scf.if %18 {
      %c0_13 = arith.constant 0 : index
      %c0_14 = arith.constant 0 : index
      %19 = vector.load %arg4[%c0_13, %c0_14] : memref<1x16xf32, #tpu.memory_space<vmem>>, vector<1x16xf32>
      %c0_15 = arith.constant 0 : index
      %c0_16 = arith.constant 0 : index
      %20 = vector.load %arg2[%c0_15, %c0_16] : memref<1x16xf32, #tpu.memory_space<vmem>>, vector<1x16xf32>
      tpu.vector_store %arg2[%c0_15, %c0_16], %19 {strides = array<i32>} : memref<1x16xf32, #tpu.memory_space<vmem>>, vector<1x16xf32>,
      %c0_17 = arith.constant 0 : index
      %c0_18 = arith.constant 0 : index
      %21 = vector.load %arg5[%c0_17, %c0_18] : memref<1x16xf32, #tpu.memory_space<vmem>>, vector<1x16xf32>
      %c0_19 = arith.constant 0 : index
      %c0_20 = arith.constant 0 : index
      %22 = vector.load %arg3[%c0_19, %c0_20] : memref<1x16xf32, #tpu.memory_space<vmem>>, vector<1x16xf32>
      tpu.vector_store %arg3[%c0_19, %c0_20], %21 {strides = array<i32>} : memref<1x16xf32, #tpu.memory_space<vmem>>, vector<1x16xf32>,
    } else {
    }
    return
  }
  func.func @transform_0(%arg0: i32) -> (i32, i32) {
    %c0_i32 = arith.constant 0 : i32
    %c0_i32_0 = arith.constant 0 : i32
    return %arg0, %c0_i32 : i32, i32
  }
  func.func @transform_1(%arg0: i32) -> (i32, i32) {
    %c0_i32 = arith.constant 0 : i32
    %c0_i32_0 = arith.constant 0 : i32
    %c0_i32_1 = arith.constant 0 : i32
    return %c0_i32, %c0_i32_0 : i32, i32
  }
  func.func @transform_2(%arg0: i32) -> (i32, i32) {
    %c0_i32 = arith.constant 0 : i32
    %c0_i32_0 = arith.constant 0 : i32
    %c0_i32_1 = arith.constant 0 : i32
    return %c0_i32, %c0_i32_0 : i32, i32
  }
}

module attributes {stable_mosaic.version = 11 : i64} {
  func.func @kernel(%arg0: i32, %arg1: i32, %arg2: memref<128x128xbf16, #tpu.memory_space<vmem>>, %arg3: memref<128x128xbf16, #tpu.memory_space<vmem>>, %arg4: memref<128x128xbf16, #tpu.memory_space<vmem>>, %arg5: memref<128x128xf32, #tpu.memory_space<vmem>>) attributes {dimension_semantics = [#tpu.dimension_semantics<parallel>, #tpu.dimension_semantics<arbitrary>], iteration_bounds = array<i64: 1, 1>, scalar_prefetch = 0 : i64, scratch_operands = 1 : i64, tpu.core_type = #tpu.core_type<tc>, window_params = [{transform_indices = @transform_0, window_bounds = array<i64: 128, 128>}, {transform_indices = @transform_1, window_bounds = array<i64: 128, 128>}, {transform_indices = @transform_2, window_bounds = array<i64: 128, 128>}]} {
    %c0_i32 = arith.constant 0 : i32
    %0 = arith.cmpi eq, %arg1, %c0_i32 : i32
    %1 = arith.extui %0 : i1 to i32
    %c0_i32_0 = arith.constant 0 : i32
    %2 = arith.cmpi ne, %1, %c0_i32_0 : i32
    scf.if %2 {
      %cst_12 = arith.constant 0.000000e+00 : f32
      %19 = vector.broadcast %cst_12 : f32 to vector<128x128xf32>
      %c0_13 = arith.constant 0 : index
      %c0_14 = arith.constant 0 : index
      %20 = vector.load %arg5[%c0_13, %c0_14] : memref<128x128xf32, #tpu.memory_space<vmem>>, vector<128x128xf32>
      tpu.vector_store %arg5[%c0_13, %c0_14], %19 {strides = array<i32>} : memref<128x128xf32, #tpu.memory_space<vmem>>, vector<128x128xf32>,
    } else {
    }
    %c0 = arith.constant 0 : index
    %c0_1 = arith.constant 0 : index
    %3 = vector.load %arg2[%c0, %c0_1] : memref<128x128xbf16, #tpu.memory_space<vmem>>, vector<128x128xbf16>
    %4 = arith.extf %3 : vector<128x128xbf16> to vector<128x128xf32>
    %cst = arith.constant 0.000000e+00 : f32
    %5 = vector.broadcast %cst : f32 to vector<128x128xf32>
    %6 = arith.cmpf ogt, %4, %5 : vector<128x128xf32>
    %cst_2 = arith.constant 2.000000e-01 : f32
    %7 = vector.broadcast %cst_2 : f32 to vector<128x128xf32>
    %8 = arith.mulf %7, %4 : vector<128x128xf32>
    %9 = arith.select %6, %4, %8 : vector<128x128xi1>, vector<128x128xf32>
    %c0_3 = arith.constant 0 : index
    %c0_4 = arith.constant 0 : index
    %10 = vector.load %arg5[%c0_3, %c0_4] : memref<128x128xf32, #tpu.memory_space<vmem>>, vector<128x128xf32>
    %11 = arith.truncf %9 : vector<128x128xf32> to vector<128x128xbf16>
    %c0_5 = arith.constant 0 : index
    %c0_6 = arith.constant 0 : index
    %12 = vector.load %arg3[%c0_5, %c0_6] : memref<128x128xbf16, #tpu.memory_space<vmem>>, vector<128x128xbf16>
    %cst_7 = arith.constant dense<0.000000e+00> : vector<128x128xf32>
    %13 = tpu.matmul %11, %12, %cst_7 {dimension_numbers = #tpu.dot_dimension_numbers<[1], [0], [0], [1], [0, 0, 1, 1], [], []>} : vector<128x128xbf16>, vector<128x128xbf16>, vector<128x128xf32> -> vector<128x128xf32>
    %14 = arith.addf %10, %13 : vector<128x128xf32>
    %c0_8 = arith.constant 0 : index
    %c0_9 = arith.constant 0 : index
    %15 = vector.load %arg5[%c0_8, %c0_9] : memref<128x128xf32, #tpu.memory_space<vmem>>, vector<128x128xf32>
    tpu.vector_store %arg5[%c0_8, %c0_9], %14 {strides = array<i32>} : memref<128x128xf32, #tpu.memory_space<vmem>>, vector<128x128xf32>,
    %c0_i32_10 = arith.constant 0 : i32
    %16 = arith.cmpi eq, %arg1, %c0_i32_10 : i32
    %17 = arith.extui %16 : i1 to i32
    %c0_i32_11 = arith.constant 0 : i32
    %18 = arith.cmpi ne, %17, %c0_i32_11 : i32
    scf.if %18 {
      %c0_12 = arith.constant 0 : index
      %c0_13 = arith.constant 0 : index
      %19 = vector.load %arg5[%c0_12, %c0_13] : memref<128x128xf32, #tpu.memory_space<vmem>>, vector<128x128xf32>
      %20 = arith.truncf %19 : vector<128x128xf32> to vector<128x128xbf16>
      %c0_14 = arith.constant 0 : index
      %c0_15 = arith.constant 0 : index
      %21 = vector.load %arg4[%c0_14, %c0_15] : memref<128x128xbf16, #tpu.memory_space<vmem>>, vector<128x128xbf16>
      tpu.vector_store %arg4[%c0_14, %c0_15], %20 {strides = array<i32>} : memref<128x128xbf16, #tpu.memory_space<vmem>>, vector<128x128xbf16>,
    } else {
    }
    return
  }
  func.func @transform_0(%arg0: i32, %arg1: i32) -> (i32, i32) {
    %c0_i32 = arith.constant 0 : i32
    return %arg0, %arg1 : i32, i32
  }
  func.func @transform_1(%arg0: i32, %arg1: i32) -> (i32, i32) {
    %c0_i32 = arith.constant 0 : i32
    %c0_i32_0 = arith.constant 0 : i32
    return %arg1, %c0_i32 : i32, i32
  }
  func.func @transform_2(%arg0: i32, %arg1: i32) -> (i32, i32) {
    %c0_i32 = arith.constant 0 : i32
    %c0_i32_0 = arith.constant 0 : i32
    return %arg0, %c0_i32 : i32, i32
  }
}

module attributes {stable_mosaic.version = 11 : i64} {
  func.func @_bn_stats_kernel(%arg0: i32, %arg1: memref<32x32xbf16, #tpu.memory_space<vmem>>, %arg2: memref<1x32xf32, #tpu.memory_space<vmem>>, %arg3: memref<1x32xf32, #tpu.memory_space<vmem>>, %arg4: memref<1x32xf32, #tpu.memory_space<vmem>>, %arg5: memref<1x32xf32, #tpu.memory_space<vmem>>) attributes {dimension_semantics = [#tpu.dimension_semantics<arbitrary>], iteration_bounds = array<i64: 1>, scalar_prefetch = 0 : i64, scratch_operands = 2 : i64, tpu.core_type = #tpu.core_type<tc>, window_params = [{transform_indices = @transform_0, window_bounds = array<i64: 32, 32>}, {pipeline_mode = #tpu.pipeline_mode<synchronous>, transform_indices = @transform_1, window_bounds = array<i64: 1, 32>}, {pipeline_mode = #tpu.pipeline_mode<synchronous>, transform_indices = @transform_2, window_bounds = array<i64: 1, 32>}]} {
    %c0_i32 = arith.constant 0 : i32
    %0 = arith.cmpi eq, %arg0, %c0_i32 : i32
    %1 = arith.extui %0 : i1 to i32
    %c0_i32_0 = arith.constant 0 : i32
    %2 = arith.cmpi ne, %1, %c0_i32_0 : i32
    scf.if %2 {
      %cst_13 = arith.constant 0.000000e+00 : f32
      %19 = vector.broadcast %cst_13 : f32 to vector<1x32xf32>
      %c0_14 = arith.constant 0 : index
      %c0_15 = arith.constant 0 : index
      %20 = vector.load %arg4[%c0_14, %c0_15] : memref<1x32xf32, #tpu.memory_space<vmem>>, vector<1x32xf32>
      tpu.vector_store %arg4[%c0_14, %c0_15], %19 {strides = array<i32>} : memref<1x32xf32, #tpu.memory_space<vmem>>, vector<1x32xf32>,
      %cst_16 = arith.constant 0.000000e+00 : f32
      %21 = vector.broadcast %cst_16 : f32 to vector<1x32xf32>
      %c0_17 = arith.constant 0 : index
      %c0_18 = arith.constant 0 : index
      %22 = vector.load %arg5[%c0_17, %c0_18] : memref<1x32xf32, #tpu.memory_space<vmem>>, vector<1x32xf32>
      tpu.vector_store %arg5[%c0_17, %c0_18], %21 {strides = array<i32>} : memref<1x32xf32, #tpu.memory_space<vmem>>, vector<1x32xf32>,
    } else {
    }
    %c0 = arith.constant 0 : index
    %c0_1 = arith.constant 0 : index
    %3 = vector.load %arg1[%c0, %c0_1] : memref<32x32xbf16, #tpu.memory_space<vmem>>, vector<32x32xbf16>
    %4 = arith.extf %3 : vector<32x32xbf16> to vector<32x32xf32>
    %c0_2 = arith.constant 0 : index
    %c0_3 = arith.constant 0 : index
    %5 = vector.load %arg4[%c0_2, %c0_3] : memref<1x32xf32, #tpu.memory_space<vmem>>, vector<1x32xf32>
    %cst = arith.constant dense<0.000000e+00> : vector<32xf32>
    %6 = vector.multi_reduction <add>, %4, %cst [0] : vector<32x32xf32> to vector<32xf32>
    %7 = vector.shape_cast %6 : vector<32xf32> to vector<1x32xf32>
    %8 = arith.addf %5, %7 : vector<1x32xf32>
    %c0_4 = arith.constant 0 : index
    %c0_5 = arith.constant 0 : index
    %9 = vector.load %arg4[%c0_4, %c0_5] : memref<1x32xf32, #tpu.memory_space<vmem>>, vector<1x32xf32>
    tpu.vector_store %arg4[%c0_4, %c0_5], %8 {strides = array<i32>} : memref<1x32xf32, #tpu.memory_space<vmem>>, vector<1x32xf32>,
    %c0_6 = arith.constant 0 : index
    %c0_7 = arith.constant 0 : index
    %10 = vector.load %arg5[%c0_6, %c0_7] : memref<1x32xf32, #tpu.memory_space<vmem>>, vector<1x32xf32>
    %11 = arith.mulf %4, %4 : vector<32x32xf32>
    %cst_8 = arith.constant dense<0.000000e+00> : vector<32xf32>
    %12 = vector.multi_reduction <add>, %11, %cst_8 [0] : vector<32x32xf32> to vector<32xf32>
    %13 = vector.shape_cast %12 : vector<32xf32> to vector<1x32xf32>
    %14 = arith.addf %10, %13 : vector<1x32xf32>
    %c0_9 = arith.constant 0 : index
    %c0_10 = arith.constant 0 : index
    %15 = vector.load %arg5[%c0_9, %c0_10] : memref<1x32xf32, #tpu.memory_space<vmem>>, vector<1x32xf32>
    tpu.vector_store %arg5[%c0_9, %c0_10], %14 {strides = array<i32>} : memref<1x32xf32, #tpu.memory_space<vmem>>, vector<1x32xf32>,
    %c0_i32_11 = arith.constant 0 : i32
    %16 = arith.cmpi eq, %arg0, %c0_i32_11 : i32
    %17 = arith.extui %16 : i1 to i32
    %c0_i32_12 = arith.constant 0 : i32
    %18 = arith.cmpi ne, %17, %c0_i32_12 : i32
    scf.if %18 {
      %c0_13 = arith.constant 0 : index
      %c0_14 = arith.constant 0 : index
      %19 = vector.load %arg4[%c0_13, %c0_14] : memref<1x32xf32, #tpu.memory_space<vmem>>, vector<1x32xf32>
      %c0_15 = arith.constant 0 : index
      %c0_16 = arith.constant 0 : index
      %20 = vector.load %arg2[%c0_15, %c0_16] : memref<1x32xf32, #tpu.memory_space<vmem>>, vector<1x32xf32>
      tpu.vector_store %arg2[%c0_15, %c0_16], %19 {strides = array<i32>} : memref<1x32xf32, #tpu.memory_space<vmem>>, vector<1x32xf32>,
      %c0_17 = arith.constant 0 : index
      %c0_18 = arith.constant 0 : index
      %21 = vector.load %arg5[%c0_17, %c0_18] : memref<1x32xf32, #tpu.memory_space<vmem>>, vector<1x32xf32>
      %c0_19 = arith.constant 0 : index
      %c0_20 = arith.constant 0 : index
      %22 = vector.load %arg3[%c0_19, %c0_20] : memref<1x32xf32, #tpu.memory_space<vmem>>, vector<1x32xf32>
      tpu.vector_store %arg3[%c0_19, %c0_20], %21 {strides = array<i32>} : memref<1x32xf32, #tpu.memory_space<vmem>>, vector<1x32xf32>,
    } else {
    }
    return
  }
  func.func @transform_0(%arg0: i32) -> (i32, i32) {
    %c0_i32 = arith.constant 0 : i32
    %c0_i32_0 = arith.constant 0 : i32
    return %arg0, %c0_i32 : i32, i32
  }
  func.func @transform_1(%arg0: i32) -> (i32, i32) {
    %c0_i32 = arith.constant 0 : i32
    %c0_i32_0 = arith.constant 0 : i32
    %c0_i32_1 = arith.constant 0 : i32
    return %c0_i32, %c0_i32_0 : i32, i32
  }
  func.func @transform_2(%arg0: i32) -> (i32, i32) {
    %c0_i32 = arith.constant 0 : i32
    %c0_i32_0 = arith.constant 0 : i32
    %c0_i32_1 = arith.constant 0 : i32
    return %c0_i32, %c0_i32_0 : i32, i32
  }
}

module attributes {stable_mosaic.version = 11 : i64} {
  func.func @kernel(%arg0: i32, %arg1: i32, %arg2: memref<32x256xbf16, #tpu.memory_space<vmem>>, %arg3: memref<256x128xbf16, #tpu.memory_space<vmem>>, %arg4: memref<1x256xf32, #tpu.memory_space<vmem>>, %arg5: memref<1x256xf32, #tpu.memory_space<vmem>>, %arg6: memref<32x128xbf16, #tpu.memory_space<vmem>>, %arg7: memref<32x128xf32, #tpu.memory_space<vmem>>) attributes {dimension_semantics = [#tpu.dimension_semantics<parallel>, #tpu.dimension_semantics<arbitrary>], iteration_bounds = array<i64: 1, 1>, scalar_prefetch = 0 : i64, scratch_operands = 1 : i64, tpu.core_type = #tpu.core_type<tc>, window_params = [{transform_indices = @transform_0, window_bounds = array<i64: 32, 256>}, {transform_indices = @transform_1, window_bounds = array<i64: 256, 128>}, {transform_indices = @transform_2, window_bounds = array<i64: 1, 256>}, {transform_indices = @transform_3, window_bounds = array<i64: 1, 256>}, {transform_indices = @transform_4, window_bounds = array<i64: 32, 128>}]} {
    %c0_i32 = arith.constant 0 : i32
    %0 = arith.cmpi eq, %arg1, %c0_i32 : i32
    %1 = arith.extui %0 : i1 to i32
    %c0_i32_0 = arith.constant 0 : i32
    %2 = arith.cmpi ne, %1, %c0_i32_0 : i32
    scf.if %2 {
      %cst_16 = arith.constant 0.000000e+00 : f32
      %25 = vector.broadcast %cst_16 : f32 to vector<32x128xf32>
      %c0_17 = arith.constant 0 : index
      %c0_18 = arith.constant 0 : index
      %26 = vector.load %arg7[%c0_17, %c0_18] : memref<32x128xf32, #tpu.memory_space<vmem>>, vector<32x128xf32>
      tpu.vector_store %arg7[%c0_17, %c0_18], %25 {strides = array<i32>} : memref<32x128xf32, #tpu.memory_space<vmem>>, vector<32x128xf32>,
    } else {
    }
    %c0 = arith.constant 0 : index
    %c0_1 = arith.constant 0 : index
    %3 = vector.load %arg2[%c0, %c0_1] : memref<32x256xbf16, #tpu.memory_space<vmem>>, vector<32x256xbf16>
    %4 = arith.extf %3 : vector<32x256xbf16> to vector<32x256xf32>
    %c0_2 = arith.constant 0 : index
    %c0_3 = arith.constant 0 : index
    %5 = vector.load %arg4[%c0_2, %c0_3] : memref<1x256xf32, #tpu.memory_space<vmem>>, vector<1x256xf32>
    %6 = vector.broadcast %5 : vector<1x256xf32> to vector<32x256xf32>
    %7 = arith.mulf %4, %6 : vector<32x256xf32>
    %c0_4 = arith.constant 0 : index
    %c0_5 = arith.constant 0 : index
    %8 = vector.load %arg5[%c0_4, %c0_5] : memref<1x256xf32, #tpu.memory_space<vmem>>, vector<1x256xf32>
    %9 = vector.broadcast %8 : vector<1x256xf32> to vector<32x256xf32>
    %10 = arith.addf %7, %9 : vector<32x256xf32>
    %cst = arith.constant 0.000000e+00 : f32
    %11 = vector.broadcast %cst : f32 to vector<32x256xf32>
    %12 = arith.cmpf ogt, %10, %11 : vector<32x256xf32>
    %cst_6 = arith.constant 2.000000e-01 : f32
    %13 = vector.broadcast %cst_6 : f32 to vector<32x256xf32>
    %14 = arith.mulf %13, %10 : vector<32x256xf32>
    %15 = arith.select %12, %10, %14 : vector<32x256xi1>, vector<32x256xf32>
    %c0_7 = arith.constant 0 : index
    %c0_8 = arith.constant 0 : index
    %16 = vector.load %arg7[%c0_7, %c0_8] : memref<32x128xf32, #tpu.memory_space<vmem>>, vector<32x128xf32>
    %17 = arith.truncf %15 : vector<32x256xf32> to vector<32x256xbf16>
    %c0_9 = arith.constant 0 : index
    %c0_10 = arith.constant 0 : index
    %18 = vector.load %arg3[%c0_9, %c0_10] : memref<256x128xbf16, #tpu.memory_space<vmem>>, vector<256x128xbf16>
    %cst_11 = arith.constant dense<0.000000e+00> : vector<32x128xf32>
    %19 = tpu.matmul %17, %18, %cst_11 {dimension_numbers = #tpu.dot_dimension_numbers<[1], [0], [0], [1], [0, 0, 1, 1], [], []>} : vector<32x256xbf16>, vector<256x128xbf16>, vector<32x128xf32> -> vector<32x128xf32>
    %20 = arith.addf %16, %19 : vector<32x128xf32>
    %c0_12 = arith.constant 0 : index
    %c0_13 = arith.constant 0 : index
    %21 = vector.load %arg7[%c0_12, %c0_13] : memref<32x128xf32, #tpu.memory_space<vmem>>, vector<32x128xf32>
    tpu.vector_store %arg7[%c0_12, %c0_13], %20 {strides = array<i32>} : memref<32x128xf32, #tpu.memory_space<vmem>>, vector<32x128xf32>,
    %c0_i32_14 = arith.constant 0 : i32
    %22 = arith.cmpi eq, %arg1, %c0_i32_14 : i32
    %23 = arith.extui %22 : i1 to i32
    %c0_i32_15 = arith.constant 0 : i32
    %24 = arith.cmpi ne, %23, %c0_i32_15 : i32
    scf.if %24 {
      %c0_16 = arith.constant 0 : index
      %c0_17 = arith.constant 0 : index
      %25 = vector.load %arg7[%c0_16, %c0_17] : memref<32x128xf32, #tpu.memory_space<vmem>>, vector<32x128xf32>
      %26 = arith.truncf %25 : vector<32x128xf32> to vector<32x128xbf16>
      %c0_18 = arith.constant 0 : index
      %c0_19 = arith.constant 0 : index
      %27 = vector.load %arg6[%c0_18, %c0_19] : memref<32x128xbf16, #tpu.memory_space<vmem>>, vector<32x128xbf16>
      tpu.vector_store %arg6[%c0_18, %c0_19], %26 {strides = array<i32>} : memref<32x128xbf16, #tpu.memory_space<vmem>>, vector<32x128xbf16>,
    } else {
    }
    return
  }
  func.func @transform_0(%arg0: i32, %arg1: i32) -> (i32, i32) {
    %c0_i32 = arith.constant 0 : i32
    return %arg0, %arg1 : i32, i32
  }
  func.func @transform_1(%arg0: i32, %arg1: i32) -> (i32, i32) {
    %c0_i32 = arith.constant 0 : i32
    %c0_i32_0 = arith.constant 0 : i32
    return %arg1, %c0_i32 : i32, i32
  }
  func.func @transform_2(%arg0: i32, %arg1: i32) -> (i32, i32) {
    %c0_i32 = arith.constant 0 : i32
    %c0_i32_0 = arith.constant 0 : i32
    return %c0_i32, %arg1 : i32, i32
  }
  func.func @transform_3(%arg0: i32, %arg1: i32) -> (i32, i32) {
    %c0_i32 = arith.constant 0 : i32
    %c0_i32_0 = arith.constant 0 : i32
    return %c0_i32, %arg1 : i32, i32
  }
  func.func @transform_4(%arg0: i32, %arg1: i32) -> (i32, i32) {
    %c0_i32 = arith.constant 0 : i32
    %c0_i32_0 = arith.constant 0 : i32
    return %arg0, %c0_i32 : i32, i32
  }
}

module attributes {stable_mosaic.version = 11 : i64} {
  func.func @kernel(%arg0: i32, %arg1: i32, %arg2: memref<32x128xbf16, #tpu.memory_space<vmem>>, %arg3: memref<128x128xbf16, #tpu.memory_space<vmem>>, %arg4: memref<1x128xf32, #tpu.memory_space<vmem>>, %arg5: memref<32x128xbf16, #tpu.memory_space<vmem>>, %arg6: memref<32x128xf32, #tpu.memory_space<vmem>>) attributes {dimension_semantics = [#tpu.dimension_semantics<parallel>, #tpu.dimension_semantics<arbitrary>], iteration_bounds = array<i64: 1, 1>, scalar_prefetch = 0 : i64, scratch_operands = 1 : i64, tpu.core_type = #tpu.core_type<tc>, window_params = [{transform_indices = @transform_0, window_bounds = array<i64: 32, 128>}, {transform_indices = @transform_1, window_bounds = array<i64: 128, 128>}, {pipeline_mode = #tpu.pipeline_mode<synchronous>, transform_indices = @transform_2, window_bounds = array<i64: 1, 128>}, {transform_indices = @transform_3, window_bounds = array<i64: 32, 128>}]} {
    %c0_i32 = arith.constant 0 : i32
    %0 = arith.cmpi eq, %arg1, %c0_i32 : i32
    %1 = arith.extui %0 : i1 to i32
    %c0_i32_0 = arith.constant 0 : i32
    %2 = arith.cmpi ne, %1, %c0_i32_0 : i32
    scf.if %2 {
      %cst_11 = arith.constant 0.000000e+00 : f32
      %16 = vector.broadcast %cst_11 : f32 to vector<32x128xf32>
      %c0_12 = arith.constant 0 : index
      %c0_13 = arith.constant 0 : index
      %17 = vector.load %arg6[%c0_12, %c0_13] : memref<32x128xf32, #tpu.memory_space<vmem>>, vector<32x128xf32>
      tpu.vector_store %arg6[%c0_12, %c0_13], %16 {strides = array<i32>} : memref<32x128xf32, #tpu.memory_space<vmem>>, vector<32x128xf32>,
    } else {
    }
    %c0 = arith.constant 0 : index
    %c0_1 = arith.constant 0 : index
    %3 = vector.load %arg2[%c0, %c0_1] : memref<32x128xbf16, #tpu.memory_space<vmem>>, vector<32x128xbf16>
    %4 = arith.extf %3 : vector<32x128xbf16> to vector<32x128xf32>
    %cst = arith.constant 0.000000e+00 : f32
    %5 = vector.broadcast %cst : f32 to vector<32x128xf32>
    %6 = arith.maximumf %4, %5 : vector<32x128xf32>
    %c0_2 = arith.constant 0 : index
    %c0_3 = arith.constant 0 : index
    %7 = vector.load %arg6[%c0_2, %c0_3] : memref<32x128xf32, #tpu.memory_space<vmem>>, vector<32x128xf32>
    %8 = arith.truncf %6 : vector<32x128xf32> to vector<32x128xbf16>
    %c0_4 = arith.constant 0 : index
    %c0_5 = arith.constant 0 : index
    %9 = vector.load %arg3[%c0_4, %c0_5] : memref<128x128xbf16, #tpu.memory_space<vmem>>, vector<128x128xbf16>
    %cst_6 = arith.constant dense<0.000000e+00> : vector<32x128xf32>
    %10 = tpu.matmul %8, %9, %cst_6 {dimension_numbers = #tpu.dot_dimension_numbers<[1], [0], [0], [1], [0, 0, 1, 1], [], []>} : vector<32x128xbf16>, vector<128x128xbf16>, vector<32x128xf32> -> vector<32x128xf32>
    %11 = arith.addf %7, %10 : vector<32x128xf32>
    %c0_7 = arith.constant 0 : index
    %c0_8 = arith.constant 0 : index
    %12 = vector.load %arg6[%c0_7, %c0_8] : memref<32x128xf32, #tpu.memory_space<vmem>>, vector<32x128xf32>
    tpu.vector_store %arg6[%c0_7, %c0_8], %11 {strides = array<i32>} : memref<32x128xf32, #tpu.memory_space<vmem>>, vector<32x128xf32>,
    %c0_i32_9 = arith.constant 0 : i32
    %13 = arith.cmpi eq, %arg1, %c0_i32_9 : i32
    %14 = arith.extui %13 : i1 to i32
    %c0_i32_10 = arith.constant 0 : i32
    %15 = arith.cmpi ne, %14, %c0_i32_10 : i32
    scf.if %15 {
      %c0_11 = arith.constant 0 : index
      %c0_12 = arith.constant 0 : index
      %16 = vector.load %arg6[%c0_11, %c0_12] : memref<32x128xf32, #tpu.memory_space<vmem>>, vector<32x128xf32>
      %c0_13 = arith.constant 0 : index
      %c0_14 = arith.constant 0 : index
      %17 = vector.load %arg4[%c0_13, %c0_14] : memref<1x128xf32, #tpu.memory_space<vmem>>, vector<1x128xf32>
      %18 = vector.broadcast %17 : vector<1x128xf32> to vector<32x128xf32>
      %19 = arith.addf %16, %18 : vector<32x128xf32>
      %20 = arith.truncf %19 : vector<32x128xf32> to vector<32x128xbf16>
      %c0_15 = arith.constant 0 : index
      %c0_16 = arith.constant 0 : index
      %21 = vector.load %arg5[%c0_15, %c0_16] : memref<32x128xbf16, #tpu.memory_space<vmem>>, vector<32x128xbf16>
      tpu.vector_store %arg5[%c0_15, %c0_16], %20 {strides = array<i32>} : memref<32x128xbf16, #tpu.memory_space<vmem>>, vector<32x128xbf16>,
    } else {
    }
    return
  }
  func.func @transform_0(%arg0: i32, %arg1: i32) -> (i32, i32) {
    %c0_i32 = arith.constant 0 : i32
    return %arg0, %arg1 : i32, i32
  }
  func.func @transform_1(%arg0: i32, %arg1: i32) -> (i32, i32) {
    %c0_i32 = arith.constant 0 : i32
    %c0_i32_0 = arith.constant 0 : i32
    return %arg1, %c0_i32 : i32, i32
  }
  func.func @transform_2(%arg0: i32, %arg1: i32) -> (i32, i32) {
    %c0_i32 = arith.constant 0 : i32
    %c0_i32_0 = arith.constant 0 : i32
    %c0_i32_1 = arith.constant 0 : i32
    return %c0_i32, %c0_i32_0 : i32, i32
  }
  func.func @transform_3(%arg0: i32, %arg1: i32) -> (i32, i32) {
    %c0_i32 = arith.constant 0 : i32
    %c0_i32_0 = arith.constant 0 : i32
    return %arg0, %c0_i32 : i32, i32
  }
}

module attributes {stable_mosaic.version = 11 : i64} {
  func.func @kernel(%arg0: i32, %arg1: i32, %arg2: memref<32x128xbf16, #tpu.memory_space<vmem>>, %arg3: memref<128x128xbf16, #tpu.memory_space<vmem>>, %arg4: memref<1x128xf32, #tpu.memory_space<vmem>>, %arg5: memref<1x128xf32, #tpu.memory_space<vmem>>, %arg6: memref<32x128xbf16, #tpu.memory_space<vmem>>, %arg7: memref<32x128xf32, #tpu.memory_space<vmem>>) attributes {dimension_semantics = [#tpu.dimension_semantics<parallel>, #tpu.dimension_semantics<arbitrary>], iteration_bounds = array<i64: 1, 1>, scalar_prefetch = 0 : i64, scratch_operands = 1 : i64, tpu.core_type = #tpu.core_type<tc>, window_params = [{transform_indices = @transform_0, window_bounds = array<i64: 32, 128>}, {transform_indices = @transform_1, window_bounds = array<i64: 128, 128>}, {transform_indices = @transform_2, window_bounds = array<i64: 1, 128>}, {transform_indices = @transform_3, window_bounds = array<i64: 1, 128>}, {transform_indices = @transform_4, window_bounds = array<i64: 32, 128>}]} {
    %c0_i32 = arith.constant 0 : i32
    %0 = arith.cmpi eq, %arg1, %c0_i32 : i32
    %1 = arith.extui %0 : i1 to i32
    %c0_i32_0 = arith.constant 0 : i32
    %2 = arith.cmpi ne, %1, %c0_i32_0 : i32
    scf.if %2 {
      %cst_16 = arith.constant 0.000000e+00 : f32
      %25 = vector.broadcast %cst_16 : f32 to vector<32x128xf32>
      %c0_17 = arith.constant 0 : index
      %c0_18 = arith.constant 0 : index
      %26 = vector.load %arg7[%c0_17, %c0_18] : memref<32x128xf32, #tpu.memory_space<vmem>>, vector<32x128xf32>
      tpu.vector_store %arg7[%c0_17, %c0_18], %25 {strides = array<i32>} : memref<32x128xf32, #tpu.memory_space<vmem>>, vector<32x128xf32>,
    } else {
    }
    %c0 = arith.constant 0 : index
    %c0_1 = arith.constant 0 : index
    %3 = vector.load %arg2[%c0, %c0_1] : memref<32x128xbf16, #tpu.memory_space<vmem>>, vector<32x128xbf16>
    %4 = arith.extf %3 : vector<32x128xbf16> to vector<32x128xf32>
    %c0_2 = arith.constant 0 : index
    %c0_3 = arith.constant 0 : index
    %5 = vector.load %arg4[%c0_2, %c0_3] : memref<1x128xf32, #tpu.memory_space<vmem>>, vector<1x128xf32>
    %6 = vector.broadcast %5 : vector<1x128xf32> to vector<32x128xf32>
    %7 = arith.mulf %4, %6 : vector<32x128xf32>
    %c0_4 = arith.constant 0 : index
    %c0_5 = arith.constant 0 : index
    %8 = vector.load %arg5[%c0_4, %c0_5] : memref<1x128xf32, #tpu.memory_space<vmem>>, vector<1x128xf32>
    %9 = vector.broadcast %8 : vector<1x128xf32> to vector<32x128xf32>
    %10 = arith.addf %7, %9 : vector<32x128xf32>
    %cst = arith.constant 0.000000e+00 : f32
    %11 = vector.broadcast %cst : f32 to vector<32x128xf32>
    %12 = arith.cmpf ogt, %10, %11 : vector<32x128xf32>
    %cst_6 = arith.constant 2.000000e-01 : f32
    %13 = vector.broadcast %cst_6 : f32 to vector<32x128xf32>
    %14 = arith.mulf %13, %10 : vector<32x128xf32>
    %15 = arith.select %12, %10, %14 : vector<32x128xi1>, vector<32x128xf32>
    %c0_7 = arith.constant 0 : index
    %c0_8 = arith.constant 0 : index
    %16 = vector.load %arg7[%c0_7, %c0_8] : memref<32x128xf32, #tpu.memory_space<vmem>>, vector<32x128xf32>
    %17 = arith.truncf %15 : vector<32x128xf32> to vector<32x128xbf16>
    %c0_9 = arith.constant 0 : index
    %c0_10 = arith.constant 0 : index
    %18 = vector.load %arg3[%c0_9, %c0_10] : memref<128x128xbf16, #tpu.memory_space<vmem>>, vector<128x128xbf16>
    %cst_11 = arith.constant dense<0.000000e+00> : vector<32x128xf32>
    %19 = tpu.matmul %17, %18, %cst_11 {dimension_numbers = #tpu.dot_dimension_numbers<[1], [0], [0], [1], [0, 0, 1, 1], [], []>} : vector<32x128xbf16>, vector<128x128xbf16>, vector<32x128xf32> -> vector<32x128xf32>
    %20 = arith.addf %16, %19 : vector<32x128xf32>
    %c0_12 = arith.constant 0 : index
    %c0_13 = arith.constant 0 : index
    %21 = vector.load %arg7[%c0_12, %c0_13] : memref<32x128xf32, #tpu.memory_space<vmem>>, vector<32x128xf32>
    tpu.vector_store %arg7[%c0_12, %c0_13], %20 {strides = array<i32>} : memref<32x128xf32, #tpu.memory_space<vmem>>, vector<32x128xf32>,
    %c0_i32_14 = arith.constant 0 : i32
    %22 = arith.cmpi eq, %arg1, %c0_i32_14 : i32
    %23 = arith.extui %22 : i1 to i32
    %c0_i32_15 = arith.constant 0 : i32
    %24 = arith.cmpi ne, %23, %c0_i32_15 : i32
    scf.if %24 {
      %c0_16 = arith.constant 0 : index
      %c0_17 = arith.constant 0 : index
      %25 = vector.load %arg7[%c0_16, %c0_17] : memref<32x128xf32, #tpu.memory_space<vmem>>, vector<32x128xf32>
      %26 = arith.truncf %25 : vector<32x128xf32> to vector<32x128xbf16>
      %c0_18 = arith.constant 0 : index
      %c0_19 = arith.constant 0 : index
      %27 = vector.load %arg6[%c0_18, %c0_19] : memref<32x128xbf16, #tpu.memory_space<vmem>>, vector<32x128xbf16>
      tpu.vector_store %arg6[%c0_18, %c0_19], %26 {strides = array<i32>} : memref<32x128xbf16, #tpu.memory_space<vmem>>, vector<32x128xbf16>,
    } else {
    }
    return
  }
  func.func @transform_0(%arg0: i32, %arg1: i32) -> (i32, i32) {
    %c0_i32 = arith.constant 0 : i32
    return %arg0, %arg1 : i32, i32
  }
  func.func @transform_1(%arg0: i32, %arg1: i32) -> (i32, i32) {
    %c0_i32 = arith.constant 0 : i32
    %c0_i32_0 = arith.constant 0 : i32
    return %arg1, %c0_i32 : i32, i32
  }
  func.func @transform_2(%arg0: i32, %arg1: i32) -> (i32, i32) {
    %c0_i32 = arith.constant 0 : i32
    %c0_i32_0 = arith.constant 0 : i32
    return %c0_i32, %arg1 : i32, i32
  }
  func.func @transform_3(%arg0: i32, %arg1: i32) -> (i32, i32) {
    %c0_i32 = arith.constant 0 : i32
    %c0_i32_0 = arith.constant 0 : i32
    return %c0_i32, %arg1 : i32, i32
  }
  func.func @transform_4(%arg0: i32, %arg1: i32) -> (i32, i32) {
    %c0_i32 = arith.constant 0 : i32
    %c0_i32_0 = arith.constant 0 : i32
    return %arg0, %c0_i32 : i32, i32
  }
}

module attributes {stable_mosaic.version = 11 : i64} {
  func.func @kernel(%arg0: i32, %arg1: i32, %arg2: memref<56x128xbf16, #tpu.memory_space<vmem>>, %arg3: memref<128x128xbf16, #tpu.memory_space<vmem>>, %arg4: memref<1x128xf32, #tpu.memory_space<vmem>>, %arg5: memref<1x128xf32, #tpu.memory_space<vmem>>, %arg6: memref<56x128xbf16, #tpu.memory_space<vmem>>, %arg7: memref<128x128xbf16, #tpu.memory_space<vmem>>, %arg8: memref<1x128xf32, #tpu.memory_space<vmem>>, %arg9: memref<1x128xf32, #tpu.memory_space<vmem>>, %arg10: memref<56x128xbf16, #tpu.memory_space<vmem>>, %arg11: memref<56x128xf32, #tpu.memory_space<vmem>>) attributes {dimension_semantics = [#tpu.dimension_semantics<parallel>, #tpu.dimension_semantics<arbitrary>], iteration_bounds = array<i64: 1, 1>, scalar_prefetch = 0 : i64, scratch_operands = 1 : i64, tpu.core_type = #tpu.core_type<tc>, window_params = [{transform_indices = @transform_0, window_bounds = array<i64: 56, 128>}, {transform_indices = @transform_1, window_bounds = array<i64: 128, 128>}, {transform_indices = @transform_2, window_bounds = array<i64: 1, 128>}, {transform_indices = @transform_3, window_bounds = array<i64: 1, 128>}, {transform_indices = @transform_4, window_bounds = array<i64: 56, 128>}, {transform_indices = @transform_5, window_bounds = array<i64: 128, 128>}, {transform_indices = @transform_6, window_bounds = array<i64: 1, 128>}, {transform_indices = @transform_7, window_bounds = array<i64: 1, 128>}, {transform_indices = @transform_8, window_bounds = array<i64: 56, 128>}]} {
    %c0_i32 = arith.constant 0 : i32
    %0 = arith.cmpi eq, %arg1, %c0_i32 : i32
    %1 = arith.extui %0 : i1 to i32
    %c0_i32_0 = arith.constant 0 : i32
    %2 = arith.cmpi ne, %1, %c0_i32_0 : i32
    scf.if %2 {
      %cst_29 = arith.constant 0.000000e+00 : f32
      %38 = vector.broadcast %cst_29 : f32 to vector<56x128xf32>
      %c0_30 = arith.constant 0 : index
      %c0_31 = arith.constant 0 : index
      %39 = vector.load %arg11[%c0_30, %c0_31] : memref<56x128xf32, #tpu.memory_space<vmem>>, vector<56x128xf32>
      tpu.vector_store %arg11[%c0_30, %c0_31], %38 {strides = array<i32>} : memref<56x128xf32, #tpu.memory_space<vmem>>, vector<56x128xf32>,
    } else {
    }
    %c0 = arith.constant 0 : index
    %c0_1 = arith.constant 0 : index
    %3 = vector.load %arg2[%c0, %c0_1] : memref<56x128xbf16, #tpu.memory_space<vmem>>, vector<56x128xbf16>
    %4 = arith.extf %3 : vector<56x128xbf16> to vector<56x128xf32>
    %c0_2 = arith.constant 0 : index
    %c0_3 = arith.constant 0 : index
    %5 = vector.load %arg4[%c0_2, %c0_3] : memref<1x128xf32, #tpu.memory_space<vmem>>, vector<1x128xf32>
    %6 = vector.broadcast %5 : vector<1x128xf32> to vector<56x128xf32>
    %7 = arith.mulf %4, %6 : vector<56x128xf32>
    %c0_4 = arith.constant 0 : index
    %c0_5 = arith.constant 0 : index
    %8 = vector.load %arg5[%c0_4, %c0_5] : memref<1x128xf32, #tpu.memory_space<vmem>>, vector<1x128xf32>
    %9 = vector.broadcast %8 : vector<1x128xf32> to vector<56x128xf32>
    %10 = arith.addf %7, %9 : vector<56x128xf32>
    %cst = arith.constant 0.000000e+00 : f32
    %11 = vector.broadcast %cst : f32 to vector<56x128xf32>
    %12 = arith.maximumf %10, %11 : vector<56x128xf32>
    %c0_6 = arith.constant 0 : index
    %c0_7 = arith.constant 0 : index
    %13 = vector.load %arg11[%c0_6, %c0_7] : memref<56x128xf32, #tpu.memory_space<vmem>>, vector<56x128xf32>
    %14 = arith.truncf %12 : vector<56x128xf32> to vector<56x128xbf16>
    %c0_8 = arith.constant 0 : index
    %c0_9 = arith.constant 0 : index
    %15 = vector.load %arg3[%c0_8, %c0_9] : memref<128x128xbf16, #tpu.memory_space<vmem>>, vector<128x128xbf16>
    %cst_10 = arith.constant dense<0.000000e+00> : vector<56x128xf32>
    %16 = tpu.matmul %14, %15, %cst_10 {dimension_numbers = #tpu.dot_dimension_numbers<[1], [0], [0], [1], [0, 0, 1, 1], [], []>} : vector<56x128xbf16>, vector<128x128xbf16>, vector<56x128xf32> -> vector<56x128xf32>
    %17 = arith.addf %13, %16 : vector<56x128xf32>
    %c0_11 = arith.constant 0 : index
    %c0_12 = arith.constant 0 : index
    %18 = vector.load %arg11[%c0_11, %c0_12] : memref<56x128xf32, #tpu.memory_space<vmem>>, vector<56x128xf32>
    tpu.vector_store %arg11[%c0_11, %c0_12], %17 {strides = array<i32>} : memref<56x128xf32, #tpu.memory_space<vmem>>, vector<56x128xf32>,
    %c0_13 = arith.constant 0 : index
    %c0_14 = arith.constant 0 : index
    %19 = vector.load %arg6[%c0_13, %c0_14] : memref<56x128xbf16, #tpu.memory_space<vmem>>, vector<56x128xbf16>
    %20 = arith.extf %19 : vector<56x128xbf16> to vector<56x128xf32>
    %c0_15 = arith.constant 0 : index
    %c0_16 = arith.constant 0 : index
    %21 = vector.load %arg8[%c0_15, %c0_16] : memref<1x128xf32, #tpu.memory_space<vmem>>, vector<1x128xf32>
    %22 = vector.broadcast %21 : vector<1x128xf32> to vector<56x128xf32>
    %23 = arith.mulf %20, %22 : vector<56x128xf32>
    %c0_17 = arith.constant 0 : index
    %c0_18 = arith.constant 0 : index
    %24 = vector.load %arg9[%c0_17, %c0_18] : memref<1x128xf32, #tpu.memory_space<vmem>>, vector<1x128xf32>
    %25 = vector.broadcast %24 : vector<1x128xf32> to vector<56x128xf32>
    %26 = arith.addf %23, %25 : vector<56x128xf32>
    %cst_19 = arith.constant 0.000000e+00 : f32
    %27 = vector.broadcast %cst_19 : f32 to vector<56x128xf32>
    %28 = arith.maximumf %26, %27 : vector<56x128xf32>
    %c0_20 = arith.constant 0 : index
    %c0_21 = arith.constant 0 : index
    %29 = vector.load %arg11[%c0_20, %c0_21] : memref<56x128xf32, #tpu.memory_space<vmem>>, vector<56x128xf32>
    %30 = arith.truncf %28 : vector<56x128xf32> to vector<56x128xbf16>
    %c0_22 = arith.constant 0 : index
    %c0_23 = arith.constant 0 : index
    %31 = vector.load %arg7[%c0_22, %c0_23] : memref<128x128xbf16, #tpu.memory_space<vmem>>, vector<128x128xbf16>
    %cst_24 = arith.constant dense<0.000000e+00> : vector<56x128xf32>
    %32 = tpu.matmul %30, %31, %cst_24 {dimension_numbers = #tpu.dot_dimension_numbers<[1], [0], [0], [1], [0, 0, 1, 1], [], []>} : vector<56x128xbf16>, vector<128x128xbf16>, vector<56x128xf32> -> vector<56x128xf32>
    %33 = arith.addf %29, %32 : vector<56x128xf32>
    %c0_25 = arith.constant 0 : index
    %c0_26 = arith.constant 0 : index
    %34 = vector.load %arg11[%c0_25, %c0_26] : memref<56x128xf32, #tpu.memory_space<vmem>>, vector<56x128xf32>
    tpu.vector_store %arg11[%c0_25, %c0_26], %33 {strides = array<i32>} : memref<56x128xf32, #tpu.memory_space<vmem>>, vector<56x128xf32>,
    %c0_i32_27 = arith.constant 0 : i32
    %35 = arith.cmpi eq, %arg1, %c0_i32_27 : i32
    %36 = arith.extui %35 : i1 to i32
    %c0_i32_28 = arith.constant 0 : i32
    %37 = arith.cmpi ne, %36, %c0_i32_28 : i32
    scf.if %37 {
      %c0_29 = arith.constant 0 : index
      %c0_30 = arith.constant 0 : index
      %38 = vector.load %arg11[%c0_29, %c0_30] : memref<56x128xf32, #tpu.memory_space<vmem>>, vector<56x128xf32>
      %39 = arith.truncf %38 : vector<56x128xf32> to vector<56x128xbf16>
      %c0_31 = arith.constant 0 : index
      %c0_32 = arith.constant 0 : index
      %40 = vector.load %arg10[%c0_31, %c0_32] : memref<56x128xbf16, #tpu.memory_space<vmem>>, vector<56x128xbf16>
      tpu.vector_store %arg10[%c0_31, %c0_32], %39 {strides = array<i32>} : memref<56x128xbf16, #tpu.memory_space<vmem>>, vector<56x128xbf16>,
    } else {
    }
    return
  }
  func.func @transform_0(%arg0: i32, %arg1: i32) -> (i32, i32) {
    %c0_i32 = arith.constant 0 : i32
    return %arg0, %arg1 : i32, i32
  }
  func.func @transform_1(%arg0: i32, %arg1: i32) -> (i32, i32) {
    %c0_i32 = arith.constant 0 : i32
    %c0_i32_0 = arith.constant 0 : i32
    return %arg1, %c0_i32 : i32, i32
  }
  func.func @transform_2(%arg0: i32, %arg1: i32) -> (i32, i32) {
    %c0_i32 = arith.constant 0 : i32
    %c0_i32_0 = arith.constant 0 : i32
    return %c0_i32, %arg1 : i32, i32
  }
  func.func @transform_3(%arg0: i32, %arg1: i32) -> (i32, i32) {
    %c0_i32 = arith.constant 0 : i32
    %c0_i32_0 = arith.constant 0 : i32
    return %c0_i32, %arg1 : i32, i32
  }
  func.func @transform_4(%arg0: i32, %arg1: i32) -> (i32, i32) {
    %c0_i32 = arith.constant 0 : i32
    return %arg0, %arg1 : i32, i32
  }
  func.func @transform_5(%arg0: i32, %arg1: i32) -> (i32, i32) {
    %c0_i32 = arith.constant 0 : i32
    %c0_i32_0 = arith.constant 0 : i32
    return %arg1, %c0_i32 : i32, i32
  }
  func.func @transform_6(%arg0: i32, %arg1: i32) -> (i32, i32) {
    %c0_i32 = arith.constant 0 : i32
    %c0_i32_0 = arith.constant 0 : i32
    return %c0_i32, %arg1 : i32, i32
  }
  func.func @transform_7(%arg0: i32, %arg1: i32) -> (i32, i32) {
    %c0_i32 = arith.constant 0 : i32
    %c0_i32_0 = arith.constant 0 : i32
    return %c0_i32, %arg1 : i32, i32
  }
  func.func @transform_8(%arg0: i32, %arg1: i32) -> (i32, i32) {
    %c0_i32 = arith.constant 0 : i32
    %c0_i32_0 = arith.constant 0 : i32
    return %arg0, %c0_i32 : i32, i32
  }
}

module attributes {stable_mosaic.version = 11 : i64} {
  func.func @kernel(%arg0: i32, %arg1: i32, %arg2: memref<168x128xbf16, #tpu.memory_space<vmem>>, %arg3: memref<128x128xbf16, #tpu.memory_space<vmem>>, %arg4: memref<1x128xf32, #tpu.memory_space<vmem>>, %arg5: memref<1x128xf32, #tpu.memory_space<vmem>>, %arg6: memref<168x128xbf16, #tpu.memory_space<vmem>>, %arg7: memref<128x128xbf16, #tpu.memory_space<vmem>>, %arg8: memref<1x128xf32, #tpu.memory_space<vmem>>, %arg9: memref<1x128xf32, #tpu.memory_space<vmem>>, %arg10: memref<168x128xbf16, #tpu.memory_space<vmem>>, %arg11: memref<168x128xf32, #tpu.memory_space<vmem>>) attributes {dimension_semantics = [#tpu.dimension_semantics<parallel>, #tpu.dimension_semantics<arbitrary>], iteration_bounds = array<i64: 1, 1>, scalar_prefetch = 0 : i64, scratch_operands = 1 : i64, tpu.core_type = #tpu.core_type<tc>, window_params = [{transform_indices = @transform_0, window_bounds = array<i64: 168, 128>}, {transform_indices = @transform_1, window_bounds = array<i64: 128, 128>}, {transform_indices = @transform_2, window_bounds = array<i64: 1, 128>}, {transform_indices = @transform_3, window_bounds = array<i64: 1, 128>}, {transform_indices = @transform_4, window_bounds = array<i64: 168, 128>}, {transform_indices = @transform_5, window_bounds = array<i64: 128, 128>}, {transform_indices = @transform_6, window_bounds = array<i64: 1, 128>}, {transform_indices = @transform_7, window_bounds = array<i64: 1, 128>}, {transform_indices = @transform_8, window_bounds = array<i64: 168, 128>}]} {
    %c0_i32 = arith.constant 0 : i32
    %0 = arith.cmpi eq, %arg1, %c0_i32 : i32
    %1 = arith.extui %0 : i1 to i32
    %c0_i32_0 = arith.constant 0 : i32
    %2 = arith.cmpi ne, %1, %c0_i32_0 : i32
    scf.if %2 {
      %cst_29 = arith.constant 0.000000e+00 : f32
      %38 = vector.broadcast %cst_29 : f32 to vector<168x128xf32>
      %c0_30 = arith.constant 0 : index
      %c0_31 = arith.constant 0 : index
      %39 = vector.load %arg11[%c0_30, %c0_31] : memref<168x128xf32, #tpu.memory_space<vmem>>, vector<168x128xf32>
      tpu.vector_store %arg11[%c0_30, %c0_31], %38 {strides = array<i32>} : memref<168x128xf32, #tpu.memory_space<vmem>>, vector<168x128xf32>,
    } else {
    }
    %c0 = arith.constant 0 : index
    %c0_1 = arith.constant 0 : index
    %3 = vector.load %arg2[%c0, %c0_1] : memref<168x128xbf16, #tpu.memory_space<vmem>>, vector<168x128xbf16>
    %4 = arith.extf %3 : vector<168x128xbf16> to vector<168x128xf32>
    %c0_2 = arith.constant 0 : index
    %c0_3 = arith.constant 0 : index
    %5 = vector.load %arg4[%c0_2, %c0_3] : memref<1x128xf32, #tpu.memory_space<vmem>>, vector<1x128xf32>
    %6 = vector.broadcast %5 : vector<1x128xf32> to vector<168x128xf32>
    %7 = arith.mulf %4, %6 : vector<168x128xf32>
    %c0_4 = arith.constant 0 : index
    %c0_5 = arith.constant 0 : index
    %8 = vector.load %arg5[%c0_4, %c0_5] : memref<1x128xf32, #tpu.memory_space<vmem>>, vector<1x128xf32>
    %9 = vector.broadcast %8 : vector<1x128xf32> to vector<168x128xf32>
    %10 = arith.addf %7, %9 : vector<168x128xf32>
    %cst = arith.constant 0.000000e+00 : f32
    %11 = vector.broadcast %cst : f32 to vector<168x128xf32>
    %12 = arith.maximumf %10, %11 : vector<168x128xf32>
    %c0_6 = arith.constant 0 : index
    %c0_7 = arith.constant 0 : index
    %13 = vector.load %arg11[%c0_6, %c0_7] : memref<168x128xf32, #tpu.memory_space<vmem>>, vector<168x128xf32>
    %14 = arith.truncf %12 : vector<168x128xf32> to vector<168x128xbf16>
    %c0_8 = arith.constant 0 : index
    %c0_9 = arith.constant 0 : index
    %15 = vector.load %arg3[%c0_8, %c0_9] : memref<128x128xbf16, #tpu.memory_space<vmem>>, vector<128x128xbf16>
    %cst_10 = arith.constant dense<0.000000e+00> : vector<168x128xf32>
    %16 = tpu.matmul %14, %15, %cst_10 {dimension_numbers = #tpu.dot_dimension_numbers<[1], [0], [0], [1], [0, 0, 1, 1], [], []>} : vector<168x128xbf16>, vector<128x128xbf16>, vector<168x128xf32> -> vector<168x128xf32>
    %17 = arith.addf %13, %16 : vector<168x128xf32>
    %c0_11 = arith.constant 0 : index
    %c0_12 = arith.constant 0 : index
    %18 = vector.load %arg11[%c0_11, %c0_12] : memref<168x128xf32, #tpu.memory_space<vmem>>, vector<168x128xf32>
    tpu.vector_store %arg11[%c0_11, %c0_12], %17 {strides = array<i32>} : memref<168x128xf32, #tpu.memory_space<vmem>>, vector<168x128xf32>,
    %c0_13 = arith.constant 0 : index
    %c0_14 = arith.constant 0 : index
    %19 = vector.load %arg6[%c0_13, %c0_14] : memref<168x128xbf16, #tpu.memory_space<vmem>>, vector<168x128xbf16>
    %20 = arith.extf %19 : vector<168x128xbf16> to vector<168x128xf32>
    %c0_15 = arith.constant 0 : index
    %c0_16 = arith.constant 0 : index
    %21 = vector.load %arg8[%c0_15, %c0_16] : memref<1x128xf32, #tpu.memory_space<vmem>>, vector<1x128xf32>
    %22 = vector.broadcast %21 : vector<1x128xf32> to vector<168x128xf32>
    %23 = arith.mulf %20, %22 : vector<168x128xf32>
    %c0_17 = arith.constant 0 : index
    %c0_18 = arith.constant 0 : index
    %24 = vector.load %arg9[%c0_17, %c0_18] : memref<1x128xf32, #tpu.memory_space<vmem>>, vector<1x128xf32>
    %25 = vector.broadcast %24 : vector<1x128xf32> to vector<168x128xf32>
    %26 = arith.addf %23, %25 : vector<168x128xf32>
    %cst_19 = arith.constant 0.000000e+00 : f32
    %27 = vector.broadcast %cst_19 : f32 to vector<168x128xf32>
    %28 = arith.maximumf %26, %27 : vector<168x128xf32>
    %c0_20 = arith.constant 0 : index
    %c0_21 = arith.constant 0 : index
    %29 = vector.load %arg11[%c0_20, %c0_21] : memref<168x128xf32, #tpu.memory_space<vmem>>, vector<168x128xf32>
    %30 = arith.truncf %28 : vector<168x128xf32> to vector<168x128xbf16>
    %c0_22 = arith.constant 0 : index
    %c0_23 = arith.constant 0 : index
    %31 = vector.load %arg7[%c0_22, %c0_23] : memref<128x128xbf16, #tpu.memory_space<vmem>>, vector<128x128xbf16>
    %cst_24 = arith.constant dense<0.000000e+00> : vector<168x128xf32>
    %32 = tpu.matmul %30, %31, %cst_24 {dimension_numbers = #tpu.dot_dimension_numbers<[1], [0], [0], [1], [0, 0, 1, 1], [], []>} : vector<168x128xbf16>, vector<128x128xbf16>, vector<168x128xf32> -> vector<168x128xf32>
    %33 = arith.addf %29, %32 : vector<168x128xf32>
    %c0_25 = arith.constant 0 : index
    %c0_26 = arith.constant 0 : index
    %34 = vector.load %arg11[%c0_25, %c0_26] : memref<168x128xf32, #tpu.memory_space<vmem>>, vector<168x128xf32>
    tpu.vector_store %arg11[%c0_25, %c0_26], %33 {strides = array<i32>} : memref<168x128xf32, #tpu.memory_space<vmem>>, vector<168x128xf32>,
    %c0_i32_27 = arith.constant 0 : i32
    %35 = arith.cmpi eq, %arg1, %c0_i32_27 : i32
    %36 = arith.extui %35 : i1 to i32
    %c0_i32_28 = arith.constant 0 : i32
    %37 = arith.cmpi ne, %36, %c0_i32_28 : i32
    scf.if %37 {
      %c0_29 = arith.constant 0 : index
      %c0_30 = arith.constant 0 : index
      %38 = vector.load %arg11[%c0_29, %c0_30] : memref<168x128xf32, #tpu.memory_space<vmem>>, vector<168x128xf32>
      %39 = arith.truncf %38 : vector<168x128xf32> to vector<168x128xbf16>
      %c0_31 = arith.constant 0 : index
      %c0_32 = arith.constant 0 : index
      %40 = vector.load %arg10[%c0_31, %c0_32] : memref<168x128xbf16, #tpu.memory_space<vmem>>, vector<168x128xbf16>
      tpu.vector_store %arg10[%c0_31, %c0_32], %39 {strides = array<i32>} : memref<168x128xbf16, #tpu.memory_space<vmem>>, vector<168x128xbf16>,
    } else {
    }
    return
  }
  func.func @transform_0(%arg0: i32, %arg1: i32) -> (i32, i32) {
    %c0_i32 = arith.constant 0 : i32
    return %arg0, %arg1 : i32, i32
  }
  func.func @transform_1(%arg0: i32, %arg1: i32) -> (i32, i32) {
    %c0_i32 = arith.constant 0 : i32
    %c0_i32_0 = arith.constant 0 : i32
    return %arg1, %c0_i32 : i32, i32
  }
  func.func @transform_2(%arg0: i32, %arg1: i32) -> (i32, i32) {
    %c0_i32 = arith.constant 0 : i32
    %c0_i32_0 = arith.constant 0 : i32
    return %c0_i32, %arg1 : i32, i32
  }
  func.func @transform_3(%arg0: i32, %arg1: i32) -> (i32, i32) {
    %c0_i32 = arith.constant 0 : i32
    %c0_i32_0 = arith.constant 0 : i32
    return %c0_i32, %arg1 : i32, i32
  }
  func.func @transform_4(%arg0: i32, %arg1: i32) -> (i32, i32) {
    %c0_i32 = arith.constant 0 : i32
    return %arg0, %arg1 : i32, i32
  }
  func.func @transform_5(%arg0: i32, %arg1: i32) -> (i32, i32) {
    %c0_i32 = arith.constant 0 : i32
    %c0_i32_0 = arith.constant 0 : i32
    return %arg1, %c0_i32 : i32, i32
  }
  func.func @transform_6(%arg0: i32, %arg1: i32) -> (i32, i32) {
    %c0_i32 = arith.constant 0 : i32
    %c0_i32_0 = arith.constant 0 : i32
    return %c0_i32, %arg1 : i32, i32
  }
  func.func @transform_7(%arg0: i32, %arg1: i32) -> (i32, i32) {
    %c0_i32 = arith.constant 0 : i32
    %c0_i32_0 = arith.constant 0 : i32
    return %c0_i32, %arg1 : i32, i32
  }
  func.func @transform_8(%arg0: i32, %arg1: i32) -> (i32, i32) {
    %c0_i32 = arith.constant 0 : i32
    %c0_i32_0 = arith.constant 0 : i32
    return %arg0, %c0_i32 : i32, i32
  }
}

module attributes {stable_mosaic.version = 11 : i64} {
  func.func @_bn_stats_kernel(%arg0: i32, %arg1: memref<512x8xbf16, #tpu.memory_space<vmem>>, %arg2: memref<1x8xf32, #tpu.memory_space<vmem>>, %arg3: memref<1x8xf32, #tpu.memory_space<vmem>>, %arg4: memref<1x8xf32, #tpu.memory_space<vmem>>, %arg5: memref<1x8xf32, #tpu.memory_space<vmem>>) attributes {dimension_semantics = [#tpu.dimension_semantics<arbitrary>], iteration_bounds = array<i64: 1>, scalar_prefetch = 0 : i64, scratch_operands = 2 : i64, tpu.core_type = #tpu.core_type<tc>, window_params = [{transform_indices = @transform_0, window_bounds = array<i64: 512, 8>}, {pipeline_mode = #tpu.pipeline_mode<synchronous>, transform_indices = @transform_1, window_bounds = array<i64: 1, 8>}, {pipeline_mode = #tpu.pipeline_mode<synchronous>, transform_indices = @transform_2, window_bounds = array<i64: 1, 8>}]} {
    %c0_i32 = arith.constant 0 : i32
    %0 = arith.cmpi eq, %arg0, %c0_i32 : i32
    %1 = arith.extui %0 : i1 to i32
    %c0_i32_0 = arith.constant 0 : i32
    %2 = arith.cmpi ne, %1, %c0_i32_0 : i32
    scf.if %2 {
      %cst_13 = arith.constant 0.000000e+00 : f32
      %19 = vector.broadcast %cst_13 : f32 to vector<1x8xf32>
      %c0_14 = arith.constant 0 : index
      %c0_15 = arith.constant 0 : index
      %20 = vector.load %arg4[%c0_14, %c0_15] : memref<1x8xf32, #tpu.memory_space<vmem>>, vector<1x8xf32>
      tpu.vector_store %arg4[%c0_14, %c0_15], %19 {strides = array<i32>} : memref<1x8xf32, #tpu.memory_space<vmem>>, vector<1x8xf32>,
      %cst_16 = arith.constant 0.000000e+00 : f32
      %21 = vector.broadcast %cst_16 : f32 to vector<1x8xf32>
      %c0_17 = arith.constant 0 : index
      %c0_18 = arith.constant 0 : index
      %22 = vector.load %arg5[%c0_17, %c0_18] : memref<1x8xf32, #tpu.memory_space<vmem>>, vector<1x8xf32>
      tpu.vector_store %arg5[%c0_17, %c0_18], %21 {strides = array<i32>} : memref<1x8xf32, #tpu.memory_space<vmem>>, vector<1x8xf32>,
    } else {
    }
    %c0 = arith.constant 0 : index
    %c0_1 = arith.constant 0 : index
    %3 = vector.load %arg1[%c0, %c0_1] : memref<512x8xbf16, #tpu.memory_space<vmem>>, vector<512x8xbf16>
    %4 = arith.extf %3 : vector<512x8xbf16> to vector<512x8xf32>
    %c0_2 = arith.constant 0 : index
    %c0_3 = arith.constant 0 : index
    %5 = vector.load %arg4[%c0_2, %c0_3] : memref<1x8xf32, #tpu.memory_space<vmem>>, vector<1x8xf32>
    %cst = arith.constant dense<0.000000e+00> : vector<8xf32>
    %6 = vector.multi_reduction <add>, %4, %cst [0] : vector<512x8xf32> to vector<8xf32>
    %7 = vector.shape_cast %6 : vector<8xf32> to vector<1x8xf32>
    %8 = arith.addf %5, %7 : vector<1x8xf32>
    %c0_4 = arith.constant 0 : index
    %c0_5 = arith.constant 0 : index
    %9 = vector.load %arg4[%c0_4, %c0_5] : memref<1x8xf32, #tpu.memory_space<vmem>>, vector<1x8xf32>
    tpu.vector_store %arg4[%c0_4, %c0_5], %8 {strides = array<i32>} : memref<1x8xf32, #tpu.memory_space<vmem>>, vector<1x8xf32>,
    %c0_6 = arith.constant 0 : index
    %c0_7 = arith.constant 0 : index
    %10 = vector.load %arg5[%c0_6, %c0_7] : memref<1x8xf32, #tpu.memory_space<vmem>>, vector<1x8xf32>
    %11 = arith.mulf %4, %4 : vector<512x8xf32>
    %cst_8 = arith.constant dense<0.000000e+00> : vector<8xf32>
    %12 = vector.multi_reduction <add>, %11, %cst_8 [0] : vector<512x8xf32> to vector<8xf32>
    %13 = vector.shape_cast %12 : vector<8xf32> to vector<1x8xf32>
    %14 = arith.addf %10, %13 : vector<1x8xf32>
    %c0_9 = arith.constant 0 : index
    %c0_10 = arith.constant 0 : index
    %15 = vector.load %arg5[%c0_9, %c0_10] : memref<1x8xf32, #tpu.memory_space<vmem>>, vector<1x8xf32>
    tpu.vector_store %arg5[%c0_9, %c0_10], %14 {strides = array<i32>} : memref<1x8xf32, #tpu.memory_space<vmem>>, vector<1x8xf32>,
    %c0_i32_11 = arith.constant 0 : i32
    %16 = arith.cmpi eq, %arg0, %c0_i32_11 : i32
    %17 = arith.extui %16 : i1 to i32
    %c0_i32_12 = arith.constant 0 : i32
    %18 = arith.cmpi ne, %17, %c0_i32_12 : i32
    scf.if %18 {
      %c0_13 = arith.constant 0 : index
      %c0_14 = arith.constant 0 : index
      %19 = vector.load %arg4[%c0_13, %c0_14] : memref<1x8xf32, #tpu.memory_space<vmem>>, vector<1x8xf32>
      %c0_15 = arith.constant 0 : index
      %c0_16 = arith.constant 0 : index
      %20 = vector.load %arg2[%c0_15, %c0_16] : memref<1x8xf32, #tpu.memory_space<vmem>>, vector<1x8xf32>
      tpu.vector_store %arg2[%c0_15, %c0_16], %19 {strides = array<i32>} : memref<1x8xf32, #tpu.memory_space<vmem>>, vector<1x8xf32>,
      %c0_17 = arith.constant 0 : index
      %c0_18 = arith.constant 0 : index
      %21 = vector.load %arg5[%c0_17, %c0_18] : memref<1x8xf32, #tpu.memory_space<vmem>>, vector<1x8xf32>
      %c0_19 = arith.constant 0 : index
      %c0_20 = arith.constant 0 : index
      %22 = vector.load %arg3[%c0_19, %c0_20] : memref<1x8xf32, #tpu.memory_space<vmem>>, vector<1x8xf32>
      tpu.vector_store %arg3[%c0_19, %c0_20], %21 {strides = array<i32>} : memref<1x8xf32, #tpu.memory_space<vmem>>, vector<1x8xf32>,
    } else {
    }
    return
  }
  func.func @transform_0(%arg0: i32) -> (i32, i32) {
    %c0_i32 = arith.constant 0 : i32
    %c0_i32_0 = arith.constant 0 : i32
    return %arg0, %c0_i32 : i32, i32
  }
  func.func @transform_1(%arg0: i32) -> (i32, i32) {
    %c0_i32 = arith.constant 0 : i32
    %c0_i32_0 = arith.constant 0 : i32
    %c0_i32_1 = arith.constant 0 : i32
    return %c0_i32, %c0_i32_0 : i32, i32
  }
  func.func @transform_2(%arg0: i32) -> (i32, i32) {
    %c0_i32 = arith.constant 0 : i32
    %c0_i32_0 = arith.constant 0 : i32
    %c0_i32_1 = arith.constant 0 : i32
    return %c0_i32, %c0_i32_0 : i32, i32
  }
}

module attributes {stable_mosaic.version = 11 : i64} {
  func.func @kernel(%arg0: i32, %arg1: i32, %arg2: memref<512x128xbf16, #tpu.memory_space<vmem>>, %arg3: memref<128x128xbf16, #tpu.memory_space<vmem>>, %arg4: memref<512x128xbf16, #tpu.memory_space<vmem>>, %arg5: memref<128x128xbf16, #tpu.memory_space<vmem>>, %arg6: memref<1x128xf32, #tpu.memory_space<vmem>>, %arg7: memref<1x128xf32, #tpu.memory_space<vmem>>, %arg8: memref<1x128xf32, #tpu.memory_space<vmem>>, %arg9: memref<512x128xf32, #tpu.memory_space<vmem>>, %arg10: memref<512x128xf32, #tpu.memory_space<vmem>>) attributes {dimension_semantics = [#tpu.dimension_semantics<parallel>, #tpu.dimension_semantics<arbitrary>], iteration_bounds = array<i64: 1, 1>, scalar_prefetch = 0 : i64, scratch_operands = 1 : i64, tpu.core_type = #tpu.core_type<tc>, window_params = [{transform_indices = @transform_0, window_bounds = array<i64: 512, 128>}, {transform_indices = @transform_1, window_bounds = array<i64: 128, 128>}, {transform_indices = @transform_2, window_bounds = array<i64: 512, 128>}, {transform_indices = @transform_3, window_bounds = array<i64: 128, 128>}, {transform_indices = @transform_4, window_bounds = array<i64: 1, 128>}, {transform_indices = @transform_5, window_bounds = array<i64: 1, 128>}, {pipeline_mode = #tpu.pipeline_mode<synchronous>, transform_indices = @transform_6, window_bounds = array<i64: 1, 128>}, {transform_indices = @transform_7, window_bounds = array<i64: 512, 128>}]} {
    %c0_i32 = arith.constant 0 : i32
    %0 = arith.cmpi eq, %arg1, %c0_i32 : i32
    %1 = arith.extui %0 : i1 to i32
    %c0_i32_0 = arith.constant 0 : i32
    %2 = arith.cmpi ne, %1, %c0_i32_0 : i32
    scf.if %2 {
      %cst_25 = arith.constant 0.000000e+00 : f32
      %32 = vector.broadcast %cst_25 : f32 to vector<512x128xf32>
      %c0_26 = arith.constant 0 : index
      %c0_27 = arith.constant 0 : index
      %33 = vector.load %arg10[%c0_26, %c0_27] : memref<512x128xf32, #tpu.memory_space<vmem>>, vector<512x128xf32>
      tpu.vector_store %arg10[%c0_26, %c0_27], %32 {strides = array<i32>} : memref<512x128xf32, #tpu.memory_space<vmem>>, vector<512x128xf32>,
    } else {
    }
    %c0 = arith.constant 0 : index
    %c0_1 = arith.constant 0 : index
    %3 = vector.load %arg2[%c0, %c0_1] : memref<512x128xbf16, #tpu.memory_space<vmem>>, vector<512x128xbf16>
    %4 = arith.extf %3 : vector<512x128xbf16> to vector<512x128xf32>
    %cst = arith.constant 0.000000e+00 : f32
    %5 = vector.broadcast %cst : f32 to vector<512x128xf32>
    %6 = arith.maximumf %4, %5 : vector<512x128xf32>
    %c0_2 = arith.constant 0 : index
    %c0_3 = arith.constant 0 : index
    %7 = vector.load %arg10[%c0_2, %c0_3] : memref<512x128xf32, #tpu.memory_space<vmem>>, vector<512x128xf32>
    %8 = arith.truncf %6 : vector<512x128xf32> to vector<512x128xbf16>
    %c0_4 = arith.constant 0 : index
    %c0_5 = arith.constant 0 : index
    %9 = vector.load %arg3[%c0_4, %c0_5] : memref<128x128xbf16, #tpu.memory_space<vmem>>, vector<128x128xbf16>
    %cst_6 = arith.constant dense<0.000000e+00> : vector<512x128xf32>
    %10 = tpu.matmul %8, %9, %cst_6 {dimension_numbers = #tpu.dot_dimension_numbers<[1], [0], [0], [1], [0, 0, 1, 1], [], []>} : vector<512x128xbf16>, vector<128x128xbf16>, vector<512x128xf32> -> vector<512x128xf32>
    %11 = arith.addf %7, %10 : vector<512x128xf32>
    %c0_7 = arith.constant 0 : index
    %c0_8 = arith.constant 0 : index
    %12 = vector.load %arg10[%c0_7, %c0_8] : memref<512x128xf32, #tpu.memory_space<vmem>>, vector<512x128xf32>
    tpu.vector_store %arg10[%c0_7, %c0_8], %11 {strides = array<i32>} : memref<512x128xf32, #tpu.memory_space<vmem>>, vector<512x128xf32>,
    %c0_9 = arith.constant 0 : index
    %c0_10 = arith.constant 0 : index
    %13 = vector.load %arg4[%c0_9, %c0_10] : memref<512x128xbf16, #tpu.memory_space<vmem>>, vector<512x128xbf16>
    %14 = arith.extf %13 : vector<512x128xbf16> to vector<512x128xf32>
    %c0_11 = arith.constant 0 : index
    %c0_12 = arith.constant 0 : index
    %15 = vector.load %arg6[%c0_11, %c0_12] : memref<1x128xf32, #tpu.memory_space<vmem>>, vector<1x128xf32>
    %16 = vector.broadcast %15 : vector<1x128xf32> to vector<512x128xf32>
    %17 = arith.mulf %14, %16 : vector<512x128xf32>
    %c0_13 = arith.constant 0 : index
    %c0_14 = arith.constant 0 : index
    %18 = vector.load %arg7[%c0_13, %c0_14] : memref<1x128xf32, #tpu.memory_space<vmem>>, vector<1x128xf32>
    %19 = vector.broadcast %18 : vector<1x128xf32> to vector<512x128xf32>
    %20 = arith.addf %17, %19 : vector<512x128xf32>
    %cst_15 = arith.constant 0.000000e+00 : f32
    %21 = vector.broadcast %cst_15 : f32 to vector<512x128xf32>
    %22 = arith.maximumf %20, %21 : vector<512x128xf32>
    %c0_16 = arith.constant 0 : index
    %c0_17 = arith.constant 0 : index
    %23 = vector.load %arg10[%c0_16, %c0_17] : memref<512x128xf32, #tpu.memory_space<vmem>>, vector<512x128xf32>
    %24 = arith.truncf %22 : vector<512x128xf32> to vector<512x128xbf16>
    %c0_18 = arith.constant 0 : index
    %c0_19 = arith.constant 0 : index
    %25 = vector.load %arg5[%c0_18, %c0_19] : memref<128x128xbf16, #tpu.memory_space<vmem>>, vector<128x128xbf16>
    %cst_20 = arith.constant dense<0.000000e+00> : vector<512x128xf32>
    %26 = tpu.matmul %24, %25, %cst_20 {dimension_numbers = #tpu.dot_dimension_numbers<[1], [0], [0], [1], [0, 0, 1, 1], [], []>} : vector<512x128xbf16>, vector<128x128xbf16>, vector<512x128xf32> -> vector<512x128xf32>
    %27 = arith.addf %23, %26 : vector<512x128xf32>
    %c0_21 = arith.constant 0 : index
    %c0_22 = arith.constant 0 : index
    %28 = vector.load %arg10[%c0_21, %c0_22] : memref<512x128xf32, #tpu.memory_space<vmem>>, vector<512x128xf32>
    tpu.vector_store %arg10[%c0_21, %c0_22], %27 {strides = array<i32>} : memref<512x128xf32, #tpu.memory_space<vmem>>, vector<512x128xf32>,
    %c0_i32_23 = arith.constant 0 : i32
    %29 = arith.cmpi eq, %arg1, %c0_i32_23 : i32
    %30 = arith.extui %29 : i1 to i32
    %c0_i32_24 = arith.constant 0 : i32
    %31 = arith.cmpi ne, %30, %c0_i32_24 : i32
    scf.if %31 {
      %c0_25 = arith.constant 0 : index
      %c0_26 = arith.constant 0 : index
      %32 = vector.load %arg10[%c0_25, %c0_26] : memref<512x128xf32, #tpu.memory_space<vmem>>, vector<512x128xf32>
      %c0_27 = arith.constant 0 : index
      %c0_28 = arith.constant 0 : index
      %33 = vector.load %arg8[%c0_27, %c0_28] : memref<1x128xf32, #tpu.memory_space<vmem>>, vector<1x128xf32>
      %34 = vector.broadcast %33 : vector<1x128xf32> to vector<512x128xf32>
      %35 = arith.addf %32, %34 : vector<512x128xf32>
      %cst_29 = arith.constant 0.000000e+00 : f32
      %36 = vector.broadcast %cst_29 : f32 to vector<512x128xf32>
      %37 = arith.subf %36, %35 : vector<512x128xf32>
      %38 = math.exp %37 : vector<512x128xf32>
      %cst_30 = arith.constant 1.000000e+00 : f32
      %39 = vector.broadcast %cst_30 : f32 to vector<512x128xf32>
      %40 = arith.addf %39, %38 : vector<512x128xf32>
      %cst_31 = arith.constant 1.000000e+00 : f32
      %41 = vector.broadcast %cst_31 : f32 to vector<512x128xf32>
      %42 = arith.divf %41, %40 : vector<512x128xf32>
      %c0_32 = arith.constant 0 : index
      %c0_33 = arith.constant 0 : index
      %43 = vector.load %arg9[%c0_32, %c0_33] : memref<512x128xf32, #tpu.memory_space<vmem>>, vector<512x128xf32>
      tpu.vector_store %arg9[%c0_32, %c0_33], %42 {strides = array<i32>} : memref<512x128xf32, #tpu.memory_space<vmem>>, vector<512x128xf32>,
    } else {
    }
    return
  }
  func.func @transform_0(%arg0: i32, %arg1: i32) -> (i32, i32) {
    %c0_i32 = arith.constant 0 : i32
    return %arg0, %arg1 : i32, i32
  }
  func.func @transform_1(%arg0: i32, %arg1: i32) -> (i32, i32) {
    %c0_i32 = arith.constant 0 : i32
    %c0_i32_0 = arith.constant 0 : i32
    return %arg1, %c0_i32 : i32, i32
  }
  func.func @transform_2(%arg0: i32, %arg1: i32) -> (i32, i32) {
    %c0_i32 = arith.constant 0 : i32
    return %arg0, %arg1 : i32, i32
  }
  func.func @transform_3(%arg0: i32, %arg1: i32) -> (i32, i32) {
    %c0_i32 = arith.constant 0 : i32
    %c0_i32_0 = arith.constant 0 : i32
    return %arg1, %c0_i32 : i32, i32
  }
  func.func @transform_4(%arg0: i32, %arg1: i32) -> (i32, i32) {
    %c0_i32 = arith.constant 0 : i32
    %c0_i32_0 = arith.constant 0 : i32
    return %c0_i32, %arg1 : i32, i32
  }
  func.func @transform_5(%arg0: i32, %arg1: i32) -> (i32, i32) {
    %c0_i32 = arith.constant 0 : i32
    %c0_i32_0 = arith.constant 0 : i32
    return %c0_i32, %arg1 : i32, i32
  }
  func.func @transform_6(%arg0: i32, %arg1: i32) -> (i32, i32) {
    %c0_i32 = arith.constant 0 : i32
    %c0_i32_0 = arith.constant 0 : i32
    %c0_i32_1 = arith.constant 0 : i32
    return %c0_i32, %c0_i32_0 : i32, i32
  }
  func.func @transform_7(%arg0: i32, %arg1: i32) -> (i32, i32) {
    %c0_i32 = arith.constant 0 : i32
    %c0_i32_0 = arith.constant 0 : i32
    return %arg0, %c0_i32 : i32, i32
  }
}

</mosaic_0001>

<bundles_post_ra>
// kernel: unet_forward.15
= control target key start
LH: loop header
LB: loop body
LE: loop exit
PB: predicated region body
PF: predicated region fallthrough
CT: control target
= control target key end

     0   :  { %vm14_vm0 = vcmask 122880   ;;  %v202_v0 = vmov 0.0   ;;  %vm50_vm1 = vcmask 130048   ;;  %s286_s0 = inlined_call_operand.vmem [shape: bf16[128,16], index: 0, kind: input, shape index: {}]   ;;  %s287_s1 = inlined_call_operand.vmem [shape: f32[1,16], index: 1, kind: output, shape index: {0}]   ;;  %s288_s2 = inlined_call_operand.vmem [shape: f32[1,16], index: 2, kind: output, shape index: {1}]  }
   0x1   :  { %15 = vst.msk [vmem:[#allocation2] sm:$0x1] %vm14_vm0, %v202_v0  ;;  %16 = vst.msk [vmem:[#allocation3] sm:$0x1] %vm14_vm0, %v202_v0  ;;  %v163_v1 = vld [vmem:[%s286_s0] sm:$0xff]   ;;  %v194_v2 = vld [vmem:[%s286_s0 + $0x8] sm:$0xff]  }
   0x2   :  { %v164_v3 = vunpack.c.l.bf16 %v163_v1  ;;  %v165_v4 = vunpack.c.h.bf16 %v163_v1  ;;  %v168_v5 = vunpack.c.l.bf16 %v194_v2  ;;  %v195_v6 = vld [vmem:[%s286_s0 + $0x10] sm:$0xff]   ;;  %v169_v7 = vunpack.c.h.bf16 %v194_v2  ;;  %v196_v14 = vld [vmem:[%s286_s0 + $0x18] sm:$0xff]   ;;  %v197_v24 = vld [vmem:[%s286_s0 + $0x20] sm:$0xff]  }
   0x3   :  { %v172_v12 = vunpack.c.l.bf16 %v195_v6  ;;  %v173_v16 = vunpack.c.h.bf16 %v195_v6  ;;  %v176_v22 = vunpack.c.l.bf16 %v196_v14  ;;  %v177_v27 = vunpack.c.h.bf16 %v196_v14  ;;  %v198_v37 = vld [vmem:[%s286_s0 + $0x28] sm:$0xff]   ;;  %v199_v50 = vld [vmem:[%s286_s0 + $0x30] sm:$0xff]   ;;  %v200_v63 = vld [vmem:[%s286_s0 + $0x38] sm:$0xff]  }
   0x4   :  { %v51_v8 = vsel %vm50_vm1, %v164_v3, 0.0  ;;  %v52_v9 = vsel %vm50_vm1, %v165_v4, 0.0  ;;  %v54_v10 = vsel %vm50_vm1, %v168_v5, 0.0  ;;  %v56_v13 = vsel %vm50_vm1, %v169_v7, 0.0 }
   0x5   :  { %v53_v11 = vadd.f32 %v52_v9, %v51_v8  ;;  %v58_v17 = vsel %vm50_vm1, %v172_v12, 0.0  ;;  %v92_v19 = vmul.f32 %v164_v3, %v164_v3  ;;  %v93_v20 = vmul.f32 %v165_v4, %v165_v4 }
   0x6   :  { %v94_v21 = vmul.f32 %v168_v5, %v168_v5  ;;  %v60_v23 = vsel %vm50_vm1, %v173_v16, 0.0  ;;  %v95_v26 = vmul.f32 %v169_v7, %v169_v7  ;;  %v62_v28 = vsel %vm50_vm1, %v176_v22, 0.0 }
   0x7   :  { %v55_v15 = vadd.f32 %v54_v10, %v53_v11  ;;  %v96_v29 = vmul.f32 %v172_v12, %v172_v12  ;;  %v108_v31 = vsel %vm50_vm1, %v92_v19, 0.0  ;;  %v109_v32 = vsel %vm50_vm1, %v93_v20, 0.0 }
   0x8   :  { %v111_v33 = vsel %vm50_vm1, %v94_v21, 0.0  ;;  %v180_v34 = vunpack.c.l.bf16 %v197_v24  ;;  %v64_v35 = vsel %vm50_vm1, %v177_v27, 0.0  ;;  %v110_v36 = vadd.f32 %v109_v32, %v108_v31 }
   0x9   :  { %v57_v18 = vadd.f32 %v56_v13, %v55_v15  ;;  %v97_v39 = vmul.f32 %v173_v16, %v173_v16  ;;  %v113_v40 = vsel %vm50_vm1, %v95_v26, 0.0  ;;  %v181_v41 = vunpack.c.h.bf16 %v197_v24 }
   0xa   :  { %v66_v42 = vsel %vm50_vm1, %v180_v34, 0.0  ;;  %v112_v43 = vadd.f32 %v111_v33, %v110_v36  ;;  %v98_v45 = vmul.f32 %v176_v22, %v176_v22  ;;  %v115_v46 = vsel %vm50_vm1, %v96_v29, 0.0 }
   0xb   :  { %v59_v25 = vadd.f32 %v58_v17, %v57_v18  ;;  %v184_v47 = vunpack.c.l.bf16 %v198_v37  ;;  %v68_v48 = vsel %vm50_vm1, %v181_v41, 0.0  ;;  %v99_v52 = vmul.f32 %v177_v27, %v177_v27 }
   0xc   :  { %v114_v49 = vadd.f32 %v113_v40, %v112_v43  ;;  %v117_v53 = vsel %vm50_vm1, %v97_v39, 0.0  ;;  %v185_v54 = vunpack.c.h.bf16 %v198_v37  ;;  %v100_v58 = vmul.f32 %v180_v34, %v180_v34 }
   0xd   :  { %v61_v30 = vadd.f32 %v60_v23, %v59_v25  ;;  %v70_v55 = vsel %vm50_vm1, %v184_v47, 0.0  ;;  %v119_v59 = vsel %vm50_vm1, %v98_v45, 0.0  ;;  %v188_v60 = vunpack.c.l.bf16 %v199_v50 }
   0xe   :  { %v116_v56 = vadd.f32 %v115_v46, %v114_v49  ;;  %v72_v61 = vsel %vm50_vm1, %v185_v54, 0.0  ;;  %v101_v1 = vmul.f32 %v181_v41, %v181_v41  ;;  %v121_v2 = vsel %vm50_vm1, %v99_v52, 0.0  ;;  %v91_v52 = vld [vmem:[#allocation3] sm:$0x1] }
   0xf   :  { %v63_v38 = vadd.f32 %v62_v28, %v61_v30  ;;  %v189_v3 = vunpack.c.h.bf16 %v199_v50  ;;  %v74_v4 = vsel %vm50_vm1, %v188_v60, 0.0  ;;  %v102_v7 = vmul.f32 %v184_v47, %v184_v47 }
  0x10   :  { %v118_v62 = vadd.f32 %v117_v53, %v116_v56  ;;  %v123_v8 = vsel %vm50_vm1, %v100_v58, 0.0  ;;  %v192_v9 = vunpack.c.l.bf16 %v200_v63  ;;  %v103_v13 = vmul.f32 %v185_v54, %v185_v54 }
  0x11   :  { %v65_v44 = vadd.f32 %v64_v35, %v63_v38  ;;  %v76_v10 = vsel %vm50_vm1, %v189_v3, 0.0  ;;  %v125_v14 = vsel %vm50_vm1, %v101_v1, 0.0  ;;  %v193_v15 = vunpack.c.h.bf16 %v200_v63 }
  0x12   :  { %v120_v5 = vadd.f32 %v119_v59, %v118_v62  ;;  %v78_v16 = vsel %vm50_vm1, %v192_v9, 0.0  ;;  %v104_v19 = vmul.f32 %v188_v60, %v188_v60  ;;  %v127_v20 = vsel %vm50_vm1, %v102_v7, 0.0 }
  0x13   :  { %v67_v51 = vadd.f32 %v66_v42, %v65_v44  ;;  %v80_v21 = vsel %vm50_vm1, %v193_v15, 0.0  ;;  %v105_v24 = vmul.f32 %v189_v3, %v189_v3  ;;  %v129_v25 = vsel %vm50_vm1, %v103_v13, 0.0  ;;  %v49_v44 = vld [vmem:[#allocation2] sm:$0x1] }
  0x14   :  { %v122_v11 = vadd.f32 %v121_v2, %v120_v5  ;;  %v106_v28 = vmul.f32 %v192_v9, %v192_v9  ;;  %v131_v29 = vsel %vm50_vm1, %v104_v19, 0.0  ;;  %v107_v32 = vmul.f32 %v193_v15, %v193_v15 }
  0x15   :  { %v69_v57 = vadd.f32 %v68_v48, %v67_v51  ;;  %v133_v33 = vsel %vm50_vm1, %v105_v24, 0.0 }
  0x16   :  { %v124_v17 = vadd.f32 %v123_v8, %v122_v11  ;;  %v135_v36 = vsel %vm50_vm1, %v106_v28, 0.0  ;;  %v137_v39 = vsel %vm50_vm1, %v107_v32, 0.0 }
  0x17   :  { %v71_v0 = vadd.f32 %v70_v55, %v69_v57 }
  0x18   :  { %v126_v22 = vadd.f32 %v125_v14, %v124_v17 }
  0x19   :  { %v73_v6 = vadd.f32 %v72_v61, %v71_v0 }
  0x1a   :  { %v128_v26 = vadd.f32 %v127_v20, %v126_v22 }
  0x1b   :  { %v75_v12 = vadd.f32 %v74_v4, %v73_v6 }
  0x1c   :  { %v130_v30 = vadd.f32 %v129_v25, %v128_v26 }
  0x1d   :  { %v77_v18 = vadd.f32 %v76_v10, %v75_v12 }
  0x1e   :  { %v132_v34 = vadd.f32 %v131_v29, %v130_v30 }
  0x1f   :  { %v79_v23 = vadd.f32 %v78_v16, %v77_v18 }
  0x20   :  { %v134_v37 = vadd.f32 %v133_v33, %v132_v34 }
  0x21   :  { %v81_v27 = vadd.f32 %v80_v21, %v79_v23 }
  0x22   :  { %v136_v40 = vadd.f32 %v135_v36, %v134_v37 }
  0x23   :  { %v82_v31 = vrot.slane %v81_v27, 4 }
  0x24   :  { %v138_v42 = vadd.f32 %v137_v39, %v136_v40 }
  0x25   :  { %v83_v35 = vadd.f32 %v82_v31, %v81_v27 }
  0x26   :  { %v139_v45 = vrot.slane %v138_v42, 4 }
  0x27   :  { %v84_v38 = vrot.slane %v83_v35, 2 }
  0x28   :  { %v140_v47 = vadd.f32 %v139_v45, %v138_v42 }
  0x29   :  { %v85_v41 = vadd.f32 %v84_v38, %v83_v35 }
  0x2a   :  { %v141_v49 = vrot.slane %v140_v47, 2 }
  0x2b   :  { %v86_v43 = vrot.slane %v85_v41, 1 }
  0x2c   :  { %v142_v50 = vadd.f32 %v141_v49, %v140_v47 }
  0x2d   :  { %v87_v46 = vadd.f32 %v86_v43, %v85_v41 }
  0x2e   :  { %v143_v51 = vrot.slane %v142_v50, 1 }
  0x2f   :  { %v88_v48 = vadd.f32 %v87_v46, %v49_v44 }
  0x30   :  { %v144_v53 = vadd.f32 %v143_v51, %v142_v50 }
  0x31   :  { %90 = vst.msk [vmem:[#allocation2] sm:$0x1] %vm14_vm0, %v88_v48 }
  0x32   :  { %v145_v54 = vadd.f32 %v144_v53, %v91_v52 }
  0x34   :  { %146 = vst.msk [vmem:[#allocation3] sm:$0x1] %vm14_vm0, %v145_v54 }
  0x38   :  { %v150_v55 = vld [vmem:[#allocation2] sm:$0x1] }
  0x39   :  { %151 = vst.msk [vmem:[%s287_s1] sm:$0x1] %vm14_vm0, %v150_v55 }
  0x3b   :  { %v152_v56 = vld [vmem:[#allocation3] sm:$0x1] }
  0x3c   :  { %153 = vst.msk [vmem:[%s288_s2] sm:$0x1] %vm14_vm0, %v152_v56 }

// kernel: unet_forward.13
= control target key start
LH: loop header
LB: loop body
LE: loop exit
PB: predicated region body
PF: predicated region fallthrough
CT: control target
= control target key end

     0   :  { %s2038_s1 = inlined_call_operand.vmem [shape: bf16[128,128], index: 1, kind: input, shape index: {}]   ;;  %s2039_s0 = inlined_call_operand.vmem [shape: bf16[512,128], index: 0, kind: input, shape index: {}]   ;;  %s2040_s2 = inlined_call_operand.vmem [shape: bf16[512,128], index: 2, kind: output, shape index: {}]  }
   0x1   :  { %v1767_v0 = vld [vmem:[%s2038_s1] sm:$0xff]   ;;  %v1768_v1 = vld [vmem:[%s2038_s1 + $0x8] sm:$0xff]   ;;  %v1769_v2 = vld [vmem:[%s2038_s1 + $0x10] sm:$0xff]  }
   0x2   :  { %1671 = vmatprep.subr.bf16.mxu0 %v1767_v0  ;;  %1751 = vmatprep.subr.bf16.mxu1 %v1767_v0  ;;  %v1770_v3 = vld [vmem:[%s2038_s1 + $0x18] sm:$0xff]   ;;  %v1775_v4 = vld [vmem:[%s2039_s0] sm:$0xff]   ;;  %v1772_v7 = vld [vmem:[%s2038_s1 + $0x28] sm:$0xff]  }
   0x3   :  { %1672 = vmatpush3.bf16.msra.mxu0 %v1767_v0  ;;  %1759 = vmatpush3.bf16.msra.mxu1 %v1767_v0  ;;  %v1776_v5 = vld [vmem:[%s2039_s0 + $0x80] sm:$0xff]   ;;  %v1773_v8 = vld [vmem:[%s2038_s1 + $0x30] sm:$0xff]   ;;  %v1774_v9 = vld [vmem:[%s2038_s1 + $0x38] sm:$0xff]  }
   0x4   :  { %1673 = vmatprep.subr.bf16.mxu0 %v1768_v1  ;;  %1752 = vmatprep.subr.bf16.mxu1 %v1768_v1  ;;  %v1771_v6 = vld [vmem:[%s2038_s1 + $0x20] sm:$0xff]   ;;  %v1777_v10 = vld [vmem:[%s2039_s0 + $0x8] sm:$0xff]   ;;  %v1779_v12 = vld [vmem:[%s2039_s0 + $0x10] sm:$0xff]  }
   0x5   :  { %1687 = vmatprep.mubr.bf16.mxu0 %v1775_v4  ;;  %1719 = vmatprep.mubr.bf16.mxu1 %v1776_v5  ;;  %v1778_v11 = vld [vmem:[%s2039_s0 + $0x88] sm:$0xff]   ;;  %v1780_v13 = vld [vmem:[%s2039_s0 + $0x90] sm:$0xff]   ;;  %v1781_v14 = vld [vmem:[%s2039_s0 + $0x18] sm:$0xff]  }
   0x6   :  { %v1782_v15 = vld [vmem:[%s2039_s0 + $0x98] sm:$0xff]   ;;  %v1783_v16 = vld [vmem:[%s2039_s0 + $0x20] sm:$0xff]   ;;  %v1785_v18 = vld [vmem:[%s2039_s0 + $0x28] sm:$0xff]  }
   0x7   :  { %1674 = vmatpush3.bf16.msra.mxu0 %v1768_v1  ;;  %1760 = vmatpush3.bf16.msra.mxu1 %v1768_v1  ;;  %v1784_v17 = vld [vmem:[%s2039_s0 + $0xa0] sm:$0xff]   ;;  %v1786_v19 = vld [vmem:[%s2039_s0 + $0xa8] sm:$0xff]   ;;  %v1787_v20 = vld [vmem:[%s2039_s0 + $0x30] sm:$0xff]  }
   0x8   :  { %1675 = vmatprep.subr.bf16.mxu0 %v1769_v2  ;;  %1753 = vmatprep.subr.bf16.mxu1 %v1769_v2  ;;  %v1788_v21 = vld [vmem:[%s2039_s0 + $0xb0] sm:$0xff]   ;;  %v1789_v22 = vld [vmem:[%s2039_s0 + $0x38] sm:$0xff]   ;;  %v1791_v24 = vld [vmem:[%s2039_s0 + $0x40] sm:$0xff]  }
   0x9   :  { %v1790_v23 = vld [vmem:[%s2039_s0 + $0xb8] sm:$0xff]   ;;  %v1792_v25 = vld [vmem:[%s2039_s0 + $0xc0] sm:$0xff]   ;;  %v1793_v26 = vld [vmem:[%s2039_s0 + $0x48] sm:$0xff]  }
   0xa   :  { %v1794_v27 = vld [vmem:[%s2039_s0 + $0xc8] sm:$0xff]   ;;  %v1795_v28 = vld [vmem:[%s2039_s0 + $0x50] sm:$0xff]   ;;  %v1797_v30 = vld [vmem:[%s2039_s0 + $0x58] sm:$0xff]  }
   0xb   :  { %1676 = vmatpush3.bf16.msra.mxu0 %v1769_v2  ;;  %1761 = vmatpush3.bf16.msra.mxu1 %v1769_v2  ;;  %v1796_v29 = vld [vmem:[%s2039_s0 + $0xd0] sm:$0xff]   ;;  %v1798_v31 = vld [vmem:[%s2039_s0 + $0xd8] sm:$0xff]   ;;  %v1799_v32 = vld [vmem:[%s2039_s0 + $0x60] sm:$0xff]  }
   0xc   :  { %1677 = vmatprep.subr.bf16.mxu0 %v1770_v3  ;;  %1754 = vmatprep.subr.bf16.mxu1 %v1770_v3  ;;  %v1800_v33 = vld [vmem:[%s2039_s0 + $0xe0] sm:$0xff]   ;;  %v1801_v34 = vld [vmem:[%s2039_s0 + $0x68] sm:$0xff]   ;;  %v1803_v36 = vld [vmem:[%s2039_s0 + $0x70] sm:$0xff]  }
   0xd   :  { %v1802_v35 = vld [vmem:[%s2039_s0 + $0xe8] sm:$0xff]   ;;  %v1804_v37 = vld [vmem:[%s2039_s0 + $0xf0] sm:$0xff]   ;;  %v1805_v38 = vld [vmem:[%s2039_s0 + $0x78] sm:$0xff]  }
   0xe   :  { %v1806_v39 = vld [vmem:[%s2039_s0 + $0xf8] sm:$0xff]  }
   0xf   :  { %1678 = vmatpush3.bf16.msra.mxu0 %v1770_v3  ;;  %1762 = vmatpush3.bf16.msra.mxu1 %v1770_v3 }
  0x10   :  { %1679 = vmatprep.subr.bf16.mxu0 %v1771_v6  ;;  %1755 = vmatprep.subr.bf16.mxu1 %v1771_v6 }
  0x13   :  { %1680 = vmatpush3.bf16.msra.mxu0 %v1771_v6  ;;  %1763 = vmatpush3.bf16.msra.mxu1 %v1771_v6 }
  0x14   :  { %1681 = vmatprep.subr.bf16.mxu0 %v1772_v7  ;;  %1756 = vmatprep.subr.bf16.mxu1 %v1772_v7 }
  0x17   :  { %1682 = vmatpush3.bf16.msra.mxu0 %v1772_v7  ;;  %1764 = vmatpush3.bf16.msra.mxu1 %v1772_v7 }
  0x18   :  { %1683 = vmatprep.subr.bf16.mxu0 %v1773_v8  ;;  %1757 = vmatprep.subr.bf16.mxu1 %v1773_v8 }
  0x1b   :  { %1684 = vmatpush3.bf16.msra.mxu0 %v1773_v8  ;;  %1765 = vmatpush3.bf16.msra.mxu1 %v1773_v8 }
  0x1c   :  { %1685 = vmatprep.subr.bf16.mxu0 %v1774_v9  ;;  %1758 = vmatprep.subr.bf16.mxu1 %v1774_v9 }
  0x1f   :  { %1686 = vmatpush3.bf16.msra.mxu0 %v1774_v9  ;;  %1766 = vmatpush3.bf16.msra.mxu1 %v1774_v9 }
  0x22   :  { %1688 = vmatmul.mubr.bf16.vlgmr.msra.gmra.mrb[0].mxu0 %v1777_v10  ;;  %1720 = vmatmul.mubr.bf16.vlgmr.msra.gmra.mrb[0].mxu1 %v1778_v11 }
  0x23   :  { %1691 = vmatprep.mubr.bf16.mxu0 %v1779_v12  ;;  %1723 = vmatprep.mubr.bf16.mxu1 %v1780_v13 }
  0x2a   :  { %1692 = vmatmul.mubr.bf16.gmra.mrb[4].mxu0 %v1781_v14  ;;  %1724 = vmatmul.mubr.bf16.gmra.mrb[4].mxu1 %v1782_v15 }
  0x2b   :  { %1695 = vmatprep.mubr.bf16.mxu0 %v1783_v16  ;;  %1727 = vmatprep.mubr.bf16.mxu1 %v1784_v17 }
  0x32   :  { %1696 = vmatmul.mubr.bf16.gmra.mrb[8].mxu0 %v1785_v18  ;;  %1728 = vmatmul.mubr.bf16.gmra.mrb[8].mxu1 %v1786_v19 }
  0x33   :  { %1699 = vmatprep.mubr.bf16.mxu0 %v1787_v20  ;;  %1731 = vmatprep.mubr.bf16.mxu1 %v1788_v21 }
  0x3a   :  { %1700 = vmatmul.mubr.bf16.gmra.mrb[12].mxu0 %v1789_v22  ;;  %1732 = vmatmul.mubr.bf16.gmra.mrb[12].mxu1 %v1790_v23 }
  0x3b   :  { %1703 = vmatprep.mubr.bf16.mxu0 %v1791_v24  ;;  %1735 = vmatprep.mubr.bf16.mxu1 %v1792_v25 }
  0x42   :  { %1704 = vmatmul.mubr.bf16.gmra.mrb[16].mxu0 %v1793_v26  ;;  %1736 = vmatmul.mubr.bf16.gmra.mrb[16].mxu1 %v1794_v27 }
  0x43   :  { %1707 = vmatprep.mubr.bf16.mxu0 %v1795_v28  ;;  %1739 = vmatprep.mubr.bf16.mxu1 %v1796_v29 }
  0x4a   :  { %1708 = vmatmul.mubr.bf16.gmra.mrb[20].mxu0 %v1797_v30  ;;  %1740 = vmatmul.mubr.bf16.gmra.mrb[20].mxu1 %v1798_v31 }
  0x4b   :  { %1711 = vmatprep.mubr.bf16.mxu0 %v1799_v32  ;;  %1743 = vmatprep.mubr.bf16.mxu1 %v1800_v33 }
  0x52   :  { %1712 = vmatmul.mubr.bf16.gmra.mrb[24].mxu0 %v1801_v34  ;;  %1744 = vmatmul.mubr.bf16.gmra.mrb[24].mxu1 %v1802_v35 }
  0x53   :  { %1715 = vmatprep.mubr.bf16.mxu0 %v1803_v36  ;;  %1747 = vmatprep.mubr.bf16.mxu1 %v1804_v37 }
  0x5a   :  { %1716 = vmatmul.mubr.bf16.gmra.mrb[28].mxu0 %v1805_v38  ;;  %1748 = vmatmul.mubr.bf16.gmra.mrb[28].mxu1 %v1806_v39 }
  0xf5   :  { %v1689_v40 = vpop.f32.mrb[0].mxu0  ;;  %v1721_v41 = vpop.f32.mrb[0].mxu1 }
  0xf6   :  { %v498_v42 = vpop.f32.mrb[1].mxu0  ;;  %v626_v43 = vpop.f32.mrb[1].mxu1 }
  0xf7   :  { %v1690_v44 = vpop.f32.mrb[2].mxu0  ;;  %v1722_v45 = vpop.f32.mrb[2].mxu1 }
  0xf8   :  { %v1448_v46 = vpack.c.bf16 %v1690_v44, %v1689_v40  ;;  %v1528_v47 = vpack.c.bf16 %v1722_v45, %v1721_v41  ;;  %v501_v48 = vpop.f32.mrb[3].mxu0  ;;  %v629_v49 = vpop.f32.mrb[3].mxu1 }
  0xf9   :  { %v1443_v50 = vpack.c.bf16 %v501_v48, %v498_v42  ;;  %v1523_v51 = vpack.c.bf16 %v629_v49, %v626_v43 }
  0xfa   :  { %1600 = vst [vmem:[%s2040_s2 + $0x8] sm:$0xff] %v1448_v46   ;;  %1616 = vst [vmem:[%s2040_s2 + $0x88] sm:$0xff] %v1528_v47  }
  0xfb   :  { %1444 = vst [vmem:[%s2040_s2] sm:$0xff] %v1443_v50   ;;  %1615 = vst [vmem:[%s2040_s2 + $0x80] sm:$0xff] %v1523_v51  }
  0xfd   :  { %v1693_v52 = vpop.f32.mrb[4].mxu0  ;;  %v1725_v53 = vpop.f32.mrb[4].mxu1 }
  0xfe   :  { %v514_v54 = vpop.f32.mrb[5].mxu0  ;;  %v642_v55 = vpop.f32.mrb[5].mxu1 }
  0xff   :  { %v1694_v56 = vpop.f32.mrb[6].mxu0  ;;  %v1726_v57 = vpop.f32.mrb[6].mxu1 }
 0x100   :  { %v1458_v58 = vpack.c.bf16 %v1694_v56, %v1693_v52  ;;  %v1538_v59 = vpack.c.bf16 %v1726_v57, %v1725_v53  ;;  %v517_v60 = vpop.f32.mrb[7].mxu0  ;;  %v645_v61 = vpop.f32.mrb[7].mxu1 }
 0x101   :  { %v1453_v62 = vpack.c.bf16 %v517_v60, %v514_v54  ;;  %v1533_v63 = vpack.c.bf16 %v645_v61, %v642_v55 }
 0x102   :  { %1602 = vst [vmem:[%s2040_s2 + $0x18] sm:$0xff] %v1458_v58   ;;  %1618 = vst [vmem:[%s2040_s2 + $0x98] sm:$0xff] %v1538_v59  }
 0x103   :  { %1601 = vst [vmem:[%s2040_s2 + $0x10] sm:$0xff] %v1453_v62   ;;  %1617 = vst [vmem:[%s2040_s2 + $0x90] sm:$0xff] %v1533_v63  }
 0x105   :  { %v1697_v0 = vpop.f32.mrb[8].mxu0  ;;  %v1729_v1 = vpop.f32.mrb[8].mxu1 }
 0x106   :  { %v530_v2 = vpop.f32.mrb[9].mxu0  ;;  %v658_v3 = vpop.f32.mrb[9].mxu1 }
 0x107   :  { %v1698_v4 = vpop.f32.mrb[10].mxu0  ;;  %v1730_v5 = vpop.f32.mrb[10].mxu1 }
 0x108   :  { %v1468_v6 = vpack.c.bf16 %v1698_v4, %v1697_v0  ;;  %v1548_v7 = vpack.c.bf16 %v1730_v5, %v1729_v1  ;;  %v533_v8 = vpop.f32.mrb[11].mxu0  ;;  %v661_v9 = vpop.f32.mrb[11].mxu1 }
 0x109   :  { %v1463_v10 = vpack.c.bf16 %v533_v8, %v530_v2  ;;  %v1543_v11 = vpack.c.bf16 %v661_v9, %v658_v3 }
 0x10a   :  { %1604 = vst [vmem:[%s2040_s2 + $0x28] sm:$0xff] %v1468_v6   ;;  %1620 = vst [vmem:[%s2040_s2 + $0xa8] sm:$0xff] %v1548_v7  }
 0x10b   :  { %1603 = vst [vmem:[%s2040_s2 + $0x20] sm:$0xff] %v1463_v10   ;;  %1619 = vst [vmem:[%s2040_s2 + $0xa0] sm:$0xff] %v1543_v11  }
 0x10d   :  { %v1701_v12 = vpop.f32.mrb[12].mxu0  ;;  %v1733_v13 = vpop.f32.mrb[12].mxu1 }
 0x10e   :  { %v546_v14 = vpop.f32.mrb[13].mxu0  ;;  %v674_v15 = vpop.f32.mrb[13].mxu1 }
 0x10f   :  { %v1702_v16 = vpop.f32.mrb[14].mxu0  ;;  %v1734_v17 = vpop.f32.mrb[14].mxu1 }
 0x110   :  { %v1478_v18 = vpack.c.bf16 %v1702_v16, %v1701_v12  ;;  %v1558_v19 = vpack.c.bf16 %v1734_v17, %v1733_v13  ;;  %v549_v20 = vpop.f32.mrb[15].mxu0  ;;  %v677_v21 = vpop.f32.mrb[15].mxu1 }
 0x111   :  { %v1473_v22 = vpack.c.bf16 %v549_v20, %v546_v14  ;;  %v1553_v23 = vpack.c.bf16 %v677_v21, %v674_v15 }
 0x112   :  { %1606 = vst [vmem:[%s2040_s2 + $0x38] sm:$0xff] %v1478_v18   ;;  %1622 = vst [vmem:[%s2040_s2 + $0xb8] sm:$0xff] %v1558_v19  }
 0x113   :  { %1605 = vst [vmem:[%s2040_s2 + $0x30] sm:$0xff] %v1473_v22   ;;  %1621 = vst [vmem:[%s2040_s2 + $0xb0] sm:$0xff] %v1553_v23  }
 0x115   :  { %v1705_v24 = vpop.f32.mrb[16].mxu0  ;;  %v1737_v25 = vpop.f32.mrb[16].mxu1 }
 0x116   :  { %v562_v26 = vpop.f32.mrb[17].mxu0  ;;  %v690_v27 = vpop.f32.mrb[17].mxu1 }
 0x117   :  { %v1706_v28 = vpop.f32.mrb[18].mxu0  ;;  %v1738_v29 = vpop.f32.mrb[18].mxu1 }
 0x118   :  { %v1488_v30 = vpack.c.bf16 %v1706_v28, %v1705_v24  ;;  %v1568_v31 = vpack.c.bf16 %v1738_v29, %v1737_v25  ;;  %v565_v32 = vpop.f32.mrb[19].mxu0  ;;  %v693_v33 = vpop.f32.mrb[19].mxu1 }
 0x119   :  { %v1483_v34 = vpack.c.bf16 %v565_v32, %v562_v26  ;;  %v1563_v35 = vpack.c.bf16 %v693_v33, %v690_v27 }
 0x11a   :  { %1608 = vst [vmem:[%s2040_s2 + $0x48] sm:$0xff] %v1488_v30   ;;  %1624 = vst [vmem:[%s2040_s2 + $0xc8] sm:$0xff] %v1568_v31  }
 0x11b   :  { %1607 = vst [vmem:[%s2040_s2 + $0x40] sm:$0xff] %v1483_v34   ;;  %1623 = vst [vmem:[%s2040_s2 + $0xc0] sm:$0xff] %v1563_v35  }
 0x11d   :  { %v1709_v36 = vpop.f32.mrb[20].mxu0  ;;  %v1741_v37 = vpop.f32.mrb[20].mxu1 }
 0x11e   :  { %v578_v38 = vpop.f32.mrb[21].mxu0  ;;  %v706_v39 = vpop.f32.mrb[21].mxu1 }
 0x11f   :  { %v1710_v40 = vpop.f32.mrb[22].mxu0  ;;  %v1742_v41 = vpop.f32.mrb[22].mxu1 }
 0x120   :  { %v1498_v42 = vpack.c.bf16 %v1710_v40, %v1709_v36  ;;  %v1578_v43 = vpack.c.bf16 %v1742_v41, %v1741_v37  ;;  %v581_v44 = vpop.f32.mrb[23].mxu0  ;;  %v709_v45 = vpop.f32.mrb[23].mxu1 }
 0x121   :  { %v1493_v46 = vpack.c.bf16 %v581_v44, %v578_v38  ;;  %v1573_v47 = vpack.c.bf16 %v709_v45, %v706_v39 }
 0x122   :  { %1610 = vst [vmem:[%s2040_s2 + $0x58] sm:$0xff] %v1498_v42   ;;  %1626 = vst [vmem:[%s2040_s2 + $0xd8] sm:$0xff] %v1578_v43  }
 0x123   :  { %1609 = vst [vmem:[%s2040_s2 + $0x50] sm:$0xff] %v1493_v46   ;;  %1625 = vst [vmem:[%s2040_s2 + $0xd0] sm:$0xff] %v1573_v47  }
 0x125   :  { %v1713_v48 = vpop.f32.mrb[24].mxu0  ;;  %v1745_v49 = vpop.f32.mrb[24].mxu1 }
 0x126   :  { %v594_v50 = vpop.f32.mrb[25].mxu0  ;;  %v722_v51 = vpop.f32.mrb[25].mxu1 }
 0x127   :  { %v1714_v52 = vpop.f32.mrb[26].mxu0  ;;  %v1746_v53 = vpop.f32.mrb[26].mxu1 }
 0x128   :  { %v1508_v54 = vpack.c.bf16 %v1714_v52, %v1713_v48  ;;  %v1588_v55 = vpack.c.bf16 %v1746_v53, %v1745_v49  ;;  %v597_v56 = vpop.f32.mrb[27].mxu0  ;;  %v725_v57 = vpop.f32.mrb[27].mxu1 }
 0x129   :  { %v1503_v58 = vpack.c.bf16 %v597_v56, %v594_v50  ;;  %v1583_v59 = vpack.c.bf16 %v725_v57, %v722_v51 }
 0x12a   :  { %1612 = vst [vmem:[%s2040_s2 + $0x68] sm:$0xff] %v1508_v54   ;;  %1628 = vst [vmem:[%s2040_s2 + $0xe8] sm:$0xff] %v1588_v55  }
 0x12b   :  { %1611 = vst [vmem:[%s2040_s2 + $0x60] sm:$0xff] %v1503_v58   ;;  %1627 = vst [vmem:[%s2040_s2 + $0xe0] sm:$0xff] %v1583_v59  }
 0x12d   :  { %v1717_v60 = vpop.f32.mrb[28].mxu0  ;;  %v1749_v61 = vpop.f32.mrb[28].mxu1 }
 0x12e   :  { %v610_v62 = vpop.f32.mrb[29].mxu0  ;;  %v738_v63 = vpop.f32.mrb[29].mxu1 }
 0x12f   :  { %v1718_v0 = vpop.f32.mrb[30].mxu0  ;;  %v1750_v1 = vpop.f32.mrb[30].mxu1 }
 0x130   :  { %v1518_v2 = vpack.c.bf16 %v1718_v0, %v1717_v60  ;;  %v1598_v3 = vpack.c.bf16 %v1750_v1, %v1749_v61  ;;  %v613_v4 = vpop.f32.mrb[31].mxu0  ;;  %v741_v5 = vpop.f32.mrb[31].mxu1 }
 0x131   :  { %v1513_v6 = vpack.c.bf16 %v613_v4, %v610_v62  ;;  %v1593_v7 = vpack.c.bf16 %v741_v5, %v738_v63 }
 0x132   :  { %1614 = vst [vmem:[%s2040_s2 + $0x78] sm:$0xff] %v1518_v2   ;;  %1630 = vst [vmem:[%s2040_s2 + $0xf8] sm:$0xff] %v1598_v3  }
 0x133   :  { %1613 = vst [vmem:[%s2040_s2 + $0x70] sm:$0xff] %v1513_v6   ;;  %1629 = vst [vmem:[%s2040_s2 + $0xf0] sm:$0xff] %v1593_v7  }

// kernel: unet_forward.14
= control target key start
LH: loop header
LB: loop body
LE: loop exit
PB: predicated region body
PF: predicated region fallthrough
CT: control target
= control target key end

     0   :  { %s719_s1 = inlined_call_operand.vmem [shape: bf16[128,128], index: 1, kind: input, shape index: {}]   ;;  %s720_s0 = inlined_call_operand.vmem [shape: bf16[128,128], index: 0, kind: input, shape index: {}]   ;;  %s721_s2 = inlined_call_operand.vmem [shape: bf16[128,128], index: 2, kind: output, shape index: {}]  }
   0x1   :  { %v622_v0 = vld [vmem:[%s719_s1] sm:$0xff]   ;;  %v623_v1 = vld [vmem:[%s719_s1 + $0x8] sm:$0xff]   ;;  %v624_v2 = vld [vmem:[%s719_s1 + $0x10] sm:$0xff]  }
   0x2   :  { %574 = vmatprep.subr.bf16.mxu0 %v622_v0  ;;  %606 = vmatprep.subr.bf16.mxu1 %v622_v0  ;;  %v625_v3 = vld [vmem:[%s719_s1 + $0x18] sm:$0xff]   ;;  %v473_v4 = vld [vmem:[%s720_s0] sm:$0xff]   ;;  %v544_v20 = vld [vmem:[%s720_s0 + $0x8] sm:$0xff]  }
   0x3   :  { %575 = vmatpush3.bf16.msra.mxu0 %v622_v0  ;;  %614 = vmatpush3.bf16.msra.mxu1 %v622_v0  ;;  %v547_v5 = vld [vmem:[%s720_s0 + $0x20] sm:$0xff]   ;;  %v474_v6 = vunpack.c.l.bf16 %v473_v4  ;;  %v475_v7 = vunpack.c.h.bf16 %v473_v4  ;;  %v548_v22 = vld [vmem:[%s720_s0 + $0x28] sm:$0xff]   ;;  %v545_v23 = vld [vmem:[%s720_s0 + $0x10] sm:$0xff]   ;;  %v478_v25 = vunpack.c.l.bf16 %v544_v20  ;;  %v479_v26 = vunpack.c.h.bf16 %v544_v20 }
   0x4   :  { %576 = vmatprep.subr.bf16.mxu0 %v623_v1  ;;  %607 = vmatprep.subr.bf16.mxu1 %v623_v1  ;;  %v490_v8 = vunpack.c.l.bf16 %v547_v5  ;;  %v491_v9 = vunpack.c.h.bf16 %v547_v5  ;;  %v626_v10 = vld [vmem:[%s719_s1 + $0x20] sm:$0xff]   ;;  %v627_v24 = vld [vmem:[%s719_s1 + $0x28] sm:$0xff]   ;;  %v549_v27 = vld [vmem:[%s720_s0 + $0x30] sm:$0xff]   ;;  %v494_v28 = vunpack.c.l.bf16 %v548_v22  ;;  %v495_v29 = vunpack.c.h.bf16 %v548_v22 }
   0x5   :  { %vm64_vm0 = vcmp.gt.f32.partialorder %v474_v6, 0.0  ;;  %vm65_vm1 = vcmp.gt.f32.partialorder %v475_v7, 0.0  ;;  %v80_v11 = vmul.f32 0.2, %v474_v6  ;;  %v81_v12 = vmul.f32 0.2, %v475_v7 }
   0x6   :  { %vm72_vm2 = vcmp.gt.f32.partialorder %v490_v8, 0.0  ;;  %vm73_vm3 = vcmp.gt.f32.partialorder %v491_v9, 0.0  ;;  %v88_v13 = vmul.f32 0.2, %v490_v8  ;;  %v89_v14 = vmul.f32 0.2, %v491_v9 }
   0x7   :  { %577 = vmatpush3.bf16.msra.mxu0 %v623_v1  ;;  %615 = vmatpush3.bf16.msra.mxu1 %v623_v1  ;;  %v96_v15 = vsel %vm64_vm0, %v474_v6, %v80_v11  ;;  %v97_v16 = vsel %vm65_vm1, %v475_v7, %v81_v12  ;;  %v482_v30 = vunpack.c.l.bf16 %v545_v23  ;;  %v483_v31 = vunpack.c.h.bf16 %v545_v23  ;;  %v628_v32 = vld [vmem:[%s719_s1 + $0x30] sm:$0xff]   ;;  %v629_v37 = vld [vmem:[%s719_s1 + $0x38] sm:$0xff]  }
   0x8   :  { %578 = vmatprep.subr.bf16.mxu0 %v624_v2  ;;  %608 = vmatprep.subr.bf16.mxu1 %v624_v2  ;;  %v128_v17 = vpack.c.bf16 %v97_v16, %v96_v15  ;;  %v104_v18 = vsel %vm72_vm2, %v490_v8, %v88_v13  ;;  %v105_v19 = vsel %vm73_vm3, %v491_v9, %v89_v14  ;;  %v498_v33 = vunpack.c.l.bf16 %v549_v27  ;;  %v546_v42 = vld [vmem:[%s720_s0 + $0x18] sm:$0xff]  }
   0x9   :  { %v132_v21 = vpack.c.bf16 %v105_v19, %v104_v18  ;;  %v499_v34 = vunpack.c.h.bf16 %v549_v27  ;;  %vm66_vm4 = vcmp.gt.f32.partialorder %v478_v25, 0.0  ;;  %vm67_vm5 = vcmp.gt.f32.partialorder %v479_v26, 0.0  ;;  %v550_v45 = vld [vmem:[%s720_s0 + $0x38] sm:$0xff]  }
   0xa   :  { %590 = vmatprep.mubr.bf16.mxu0 %v128_v17  ;;  %v82_v35 = vmul.f32 0.2, %v478_v25  ;;  %v83_v36 = vmul.f32 0.2, %v479_v26  ;;  %v90_v38 = vmul.f32 0.2, %v494_v28  ;;  %v486_v51 = vunpack.c.l.bf16 %v546_v42 }
   0xb   :  { %579 = vmatpush3.bf16.msra.mxu0 %v624_v2  ;;  %616 = vmatpush3.bf16.msra.mxu1 %v624_v2  ;;  %v91_v39 = vmul.f32 0.2, %v495_v29  ;;  %v84_v40 = vmul.f32 0.2, %v482_v30  ;;  %vm74_vm6 = vcmp.gt.f32.partialorder %v494_v28, 0.0  ;;  %vm75_vm7 = vcmp.gt.f32.partialorder %v495_v29, 0.0 }
   0xc   :  { %580 = vmatprep.subr.bf16.mxu0 %v625_v3  ;;  %609 = vmatprep.subr.bf16.mxu1 %v625_v3  ;;  %vm68_vm8 = vcmp.gt.f32.partialorder %v482_v30, 0.0  ;;  %v85_v41 = vmul.f32 0.2, %v483_v31  ;;  %vm69_vm9 = vcmp.gt.f32.partialorder %v483_v31, 0.0  ;;  %v92_v43 = vmul.f32 0.2, %v498_v33 }
   0xd   :  { %598 = vmatprep.mubr.bf16.mxu1 %v132_v21  ;;  %v93_v44 = vmul.f32 0.2, %v499_v34  ;;  %v98_v46 = vsel %vm66_vm4, %v478_v25, %v82_v35  ;;  %v99_v47 = vsel %vm67_vm5, %v479_v26, %v83_v36  ;;  %vm76_vm10 = vcmp.gt.f32.partialorder %v498_v33, 0.0 }
   0xe   :  { %vm77_vm11 = vcmp.gt.f32.partialorder %v499_v34, 0.0  ;;  %v106_v48 = vsel %vm74_vm6, %v494_v28, %v90_v38  ;;  %v107_v49 = vsel %vm75_vm7, %v495_v29, %v91_v39  ;;  %v100_v50 = vsel %vm68_vm8, %v482_v30, %v84_v40 }
   0xf   :  { %581 = vmatpush3.bf16.msra.mxu0 %v625_v3  ;;  %617 = vmatpush3.bf16.msra.mxu1 %v625_v3  ;;  %v101_v52 = vsel %vm69_vm9, %v483_v31, %v85_v41  ;;  %v487_v53 = vunpack.c.h.bf16 %v546_v42  ;;  %v502_v54 = vunpack.c.l.bf16 %v550_v45  ;;  %v503_v55 = vunpack.c.h.bf16 %v550_v45 }
  0x10   :  { %582 = vmatprep.subr.bf16.mxu0 %v626_v10  ;;  %610 = vmatprep.subr.bf16.mxu1 %v626_v10  ;;  %v108_v56 = vsel %vm76_vm10, %v498_v33, %v92_v43  ;;  %v109_v57 = vsel %vm77_vm11, %v499_v34, %v93_v44  ;;  %v129_v58 = vpack.c.bf16 %v99_v47, %v98_v46  ;;  %vm70_vm12 = vcmp.gt.f32.partialorder %v486_v51, 0.0 }
  0x11   :  { %v133_v59 = vpack.c.bf16 %v107_v49, %v106_v48  ;;  %v130_v60 = vpack.c.bf16 %v101_v52, %v100_v50  ;;  %v86_v61 = vmul.f32 0.2, %v486_v51  ;;  %v134_v62 = vpack.c.bf16 %v109_v57, %v108_v56 }
  0x12   :  { %v87_v63 = vmul.f32 0.2, %v487_v53  ;;  %v94_v0 = vmul.f32 0.2, %v502_v54  ;;  %v95_v1 = vmul.f32 0.2, %v503_v55 }
  0x13   :  { %583 = vmatpush3.bf16.msra.mxu0 %v626_v10  ;;  %618 = vmatpush3.bf16.msra.mxu1 %v626_v10  ;;  %vm71_vm13 = vcmp.gt.f32.partialorder %v487_v53, 0.0  ;;  %vm78_vm14 = vcmp.gt.f32.partialorder %v502_v54, 0.0  ;;  %vm79_vm15 = vcmp.gt.f32.partialorder %v503_v55, 0.0  ;;  %v102_v2 = vsel %vm70_vm12, %v486_v51, %v86_v61 }
  0x14   :  { %584 = vmatprep.subr.bf16.mxu0 %v627_v24  ;;  %611 = vmatprep.subr.bf16.mxu1 %v627_v24  ;;  %v103_v3 = vsel %vm71_vm13, %v487_v53, %v87_v63  ;;  %v110_v4 = vsel %vm78_vm14, %v502_v54, %v94_v0  ;;  %v111_v5 = vsel %vm79_vm15, %v503_v55, %v95_v1 }
  0x15   :  { %v131_v6 = vpack.c.bf16 %v103_v3, %v102_v2  ;;  %v135_v7 = vpack.c.bf16 %v111_v5, %v110_v4 }
  0x17   :  { %585 = vmatpush3.bf16.msra.mxu0 %v627_v24  ;;  %619 = vmatpush3.bf16.msra.mxu1 %v627_v24 }
  0x18   :  { %586 = vmatprep.subr.bf16.mxu0 %v628_v32  ;;  %612 = vmatprep.subr.bf16.mxu1 %v628_v32 }
  0x1b   :  { %587 = vmatpush3.bf16.msra.mxu0 %v628_v32  ;;  %620 = vmatpush3.bf16.msra.mxu1 %v628_v32 }
  0x1c   :  { %588 = vmatprep.subr.bf16.mxu0 %v629_v37  ;;  %613 = vmatprep.subr.bf16.mxu1 %v629_v37 }
  0x1f   :  { %589 = vmatpush3.bf16.msra.mxu0 %v629_v37  ;;  %621 = vmatpush3.bf16.msra.mxu1 %v629_v37 }
  0x22   :  { %591 = vmatmul.mubr.bf16.vlgmr.msra.gmra.mrb[0].mxu0 %v129_v58  ;;  %599 = vmatmul.mubr.bf16.vlgmr.msra.gmra.mrb[0].mxu1 %v133_v59 }
  0x23   :  { %594 = vmatprep.mubr.bf16.mxu0 %v130_v60  ;;  %602 = vmatprep.mubr.bf16.mxu1 %v134_v62 }
  0x2a   :  { %595 = vmatmul.mubr.bf16.gmra.mrb[4].mxu0 %v131_v6  ;;  %603 = vmatmul.mubr.bf16.gmra.mrb[4].mxu1 %v135_v7 }
  0xf5   :  { %v592_v8 = vpop.f32.mrb[0].mxu0  ;;  %v600_v9 = vpop.f32.mrb[0].mxu1 }
  0xf6   :  { %v234_v10 = vpop.f32.mrb[1].mxu0  ;;  %v266_v11 = vpop.f32.mrb[1].mxu1 }
  0xf7   :  { %v593_v12 = vpop.f32.mrb[2].mxu0  ;;  %v601_v13 = vpop.f32.mrb[2].mxu1 }
  0xf8   :  { %v512_v14 = vpack.c.bf16 %v593_v12, %v592_v8  ;;  %v532_v15 = vpack.c.bf16 %v601_v13, %v600_v9  ;;  %v237_v16 = vpop.f32.mrb[3].mxu0  ;;  %v269_v17 = vpop.f32.mrb[3].mxu1 }
  0xf9   :  { %v507_v18 = vpack.c.bf16 %v237_v16, %v234_v10  ;;  %v527_v19 = vpack.c.bf16 %v269_v17, %v266_v11 }
  0xfa   :  { %551 = vst [vmem:[%s721_s2 + $0x8] sm:$0xff] %v512_v14   ;;  %555 = vst [vmem:[%s721_s2 + $0x28] sm:$0xff] %v532_v15  }
  0xfb   :  { %508 = vst [vmem:[%s721_s2] sm:$0xff] %v507_v18   ;;  %554 = vst [vmem:[%s721_s2 + $0x20] sm:$0xff] %v527_v19  }
  0xfd   :  { %v596_v20 = vpop.f32.mrb[4].mxu0  ;;  %v604_v21 = vpop.f32.mrb[4].mxu1 }
  0xfe   :  { %v250_v22 = vpop.f32.mrb[5].mxu0  ;;  %v282_v23 = vpop.f32.mrb[5].mxu1 }
  0xff   :  { %v597_v24 = vpop.f32.mrb[6].mxu0  ;;  %v605_v25 = vpop.f32.mrb[6].mxu1 }
 0x100   :  { %v522_v26 = vpack.c.bf16 %v597_v24, %v596_v20  ;;  %v542_v27 = vpack.c.bf16 %v605_v25, %v604_v21  ;;  %v253_v28 = vpop.f32.mrb[7].mxu0  ;;  %v285_v29 = vpop.f32.mrb[7].mxu1 }
 0x101   :  { %v517_v30 = vpack.c.bf16 %v253_v28, %v250_v22  ;;  %v537_v31 = vpack.c.bf16 %v285_v29, %v282_v23 }
 0x102   :  { %553 = vst [vmem:[%s721_s2 + $0x18] sm:$0xff] %v522_v26   ;;  %557 = vst [vmem:[%s721_s2 + $0x38] sm:$0xff] %v542_v27  }
 0x103   :  { %552 = vst [vmem:[%s721_s2 + $0x10] sm:$0xff] %v517_v30   ;;  %556 = vst [vmem:[%s721_s2 + $0x30] sm:$0xff] %v537_v31  }

// kernel: tile.53
= control target key start
LH: loop header
LB: loop body
LE: loop exit
PB: predicated region body
PF: predicated region fallthrough
CT: control target
= control target key end

     0   :  { %s28_s0 = inlined_call_operand.vmem [shape: f32[16], index: 0, kind: input, shape index: {}]   ;;  %s29_s1 = inlined_call_operand.vmem [shape: f32[16,16], index: 1, kind: output, shape index: {}]  }
   0x1   :  { %v4_v0 = vld [vmem:[%s28_s0] ss:$0 sm:$0xff] }
   0x2   :  { %5 = vst [vmem:[%s29_s1] sm:$0xff] %v4_v0  ;;  %8 = vst [vmem:[%s29_s1 + $0x8] sm:$0xff] %v4_v0 }

// kernel: unet_forward.17
= control target key start
LH: loop header
LB: loop body
LE: loop exit
PB: predicated region body
PF: predicated region fallthrough
CT: control target
= control target key end

     0   :  { %vm14_vm0 = vcmask 253952   ;;  %v88_v0 = vmov 0.0   ;;  %vm26_vm1 = vcmask 261120   ;;  %s130_s0 = inlined_call_operand.vmem [shape: bf16[32,32], index: 0, kind: input, shape index: {}]   ;;  %s131_s1 = inlined_call_operand.vmem [shape: f32[1,32], index: 1, kind: output, shape index: {0}]   ;;  %s132_s2 = inlined_call_operand.vmem [shape: f32[1,32], index: 2, kind: output, shape index: {1}]  }
   0x1   :  { %15 = vst.msk [vmem:[#allocation2] sm:$0x1] %vm14_vm0, %v88_v0  ;;  %16 = vst.msk [vmem:[#allocation3] sm:$0x1] %vm14_vm0, %v88_v0  ;;  %v79_v1 = vld [vmem:[%s130_s0] sm:$0xff]   ;;  %v86_v2 = vld [vmem:[%s130_s0 + $0x8] sm:$0xff]  }
   0x2   :  { %v80_v3 = vunpack.c.l.bf16 %v79_v1  ;;  %v81_v4 = vunpack.c.h.bf16 %v79_v1  ;;  %v84_v5 = vunpack.c.l.bf16 %v86_v2  ;;  %v85_v6 = vunpack.c.h.bf16 %v86_v2 }
   0x4   :  { %v27_v7 = vsel %vm26_vm1, %v80_v3, 0.0  ;;  %v28_v8 = vsel %vm26_vm1, %v81_v4, 0.0  ;;  %v30_v9 = vsel %vm26_vm1, %v84_v5, 0.0  ;;  %v44_v11 = vmul.f32 %v80_v3, %v80_v3 }
   0x5   :  { %v29_v10 = vadd.f32 %v28_v8, %v27_v7  ;;  %v45_v12 = vmul.f32 %v81_v4, %v81_v4  ;;  %v46_v13 = vmul.f32 %v84_v5, %v84_v5  ;;  %v32_v14 = vsel %vm26_vm1, %v85_v6, 0.0 }
   0x6   :  { %v47_v15 = vmul.f32 %v85_v6, %v85_v6  ;;  %v48_v17 = vsel %vm26_vm1, %v44_v11, 0.0 }
   0x7   :  { %v31_v16 = vadd.f32 %v30_v9, %v29_v10  ;;  %v49_v18 = vsel %vm26_vm1, %v45_v12, 0.0  ;;  %v51_v19 = vsel %vm26_vm1, %v46_v13, 0.0 }
   0x8   :  { %v50_v20 = vadd.f32 %v49_v18, %v48_v17  ;;  %v53_v22 = vsel %vm26_vm1, %v47_v15, 0.0  ;;  %v25_v33 = vld [vmem:[#allocation2] sm:$0x1]  ;;  %v43_v38 = vld [vmem:[#allocation3] sm:$0x1] }
   0x9   :  { %v33_v21 = vadd.f32 %v32_v14, %v31_v16 }
   0xa   :  { %v52_v23 = vadd.f32 %v51_v19, %v50_v20 }
   0xb   :  { %v34_v24 = vrot.slane %v33_v21, 4 }
   0xc   :  { %v54_v25 = vadd.f32 %v53_v22, %v52_v23 }
   0xd   :  { %v35_v26 = vadd.f32 %v34_v24, %v33_v21 }
   0xe   :  { %v55_v27 = vrot.slane %v54_v25, 4 }
   0xf   :  { %v36_v28 = vrot.slane %v35_v26, 2 }
  0x10   :  { %v56_v29 = vadd.f32 %v55_v27, %v54_v25 }
  0x11   :  { %v37_v30 = vadd.f32 %v36_v28, %v35_v26 }
  0x12   :  { %v57_v31 = vrot.slane %v56_v29, 2 }
  0x13   :  { %v38_v32 = vrot.slane %v37_v30, 1 }
  0x14   :  { %v58_v34 = vadd.f32 %v57_v31, %v56_v29 }
  0x15   :  { %v39_v35 = vadd.f32 %v38_v32, %v37_v30 }
  0x16   :  { %v59_v36 = vrot.slane %v58_v34, 1 }
  0x17   :  { %v40_v37 = vadd.f32 %v39_v35, %v25_v33 }
  0x18   :  { %v60_v39 = vadd.f32 %v59_v36, %v58_v34 }
  0x19   :  { %42 = vst.msk [vmem:[#allocation2] sm:$0x1] %vm14_vm0, %v40_v37 }
  0x1a   :  { %v61_v40 = vadd.f32 %v60_v39, %v43_v38 }
  0x1c   :  { %62 = vst.msk [vmem:[#allocation3] sm:$0x1] %vm14_vm0, %v61_v40 }
  0x20   :  { %v66_v41 = vld [vmem:[#allocation2] sm:$0x1] }
  0x21   :  { %67 = vst.msk [vmem:[%s131_s1] sm:$0x1] %vm14_vm0, %v66_v41 }
  0x23   :  { %v68_v42 = vld [vmem:[#allocation3] sm:$0x1] }
  0x24   :  { %69 = vst.msk [vmem:[%s132_s2] sm:$0x1] %vm14_vm0, %v68_v42 }

// kernel: unet_forward.16
= control target key start
LH: loop header
LB: loop body
LE: loop exit
PB: predicated region body
PF: predicated region fallthrough
CT: control target
= control target key end

     0   :  { %v40_v5 = vlaneseq  ;;  %s520_s1 = inlined_call_operand.vmem [shape: bf16[256,128], index: 1, kind: input, shape index: {}]   ;;  %s521_s0 = inlined_call_operand.vmem [shape: bf16[32,256], index: 0, kind: input, shape index: {}]   ;;  %s522_s2 = inlined_call_operand.vmem [shape: f32[1,256], index: 2, kind: input, shape index: {}]   ;;  %s523_s3 = inlined_call_operand.vmem [shape: f32[1,256], index: 3, kind: input, shape index: {}]   ;;  %s524_s4 = inlined_call_operand.vmem [shape: bf16[32,128], index: 4, kind: output, shape index: {}]  }
   0x1   :  { %v405_v0 = vld [vmem:[%s520_s1 + $0x40] sm:$0xff]   ;;  %v407_v2 = vld [vmem:[%s520_s1 + $0x48] sm:$0xff]   ;;  %v409_v4 = vld [vmem:[%s520_s1 + $0x50] sm:$0xff]  }
   0x2   :  { %v406_v1 = vld [vmem:[%s520_s1] sm:$0xff]   ;;  %361 = vmatprep.subr.bf16.mxu0 %v405_v0  ;;  %389 = vmatprep.subr.bf16.mxu1 %v405_v0  ;;  %v408_v3 = vld [vmem:[%s520_s1 + $0x8] sm:$0xff]   ;;  %v410_v6 = vld [vmem:[%s520_s1 + $0x10] sm:$0xff]   ;;  %v41_v8 = vshrl.u32 %v40_v5, 7 }
   0x3   :  { %362 = vmatpush3.bf16.msra.mxu0 %v406_v1  ;;  %397 = vmatpush3.bf16.msra.mxu1 %v406_v1  ;;  %v411_v7 = vld [vmem:[%s520_s1 + $0x58] sm:$0xff]   ;;  %v413_v10 = vld [vmem:[%s520_s1 + $0x60] sm:$0xff]   ;;  %v415_v14 = vld [vmem:[%s520_s1 + $0x68] sm:$0xff]  }
   0x4   :  { %363 = vmatprep.subr.bf16.mxu0 %v407_v2  ;;  %390 = vmatprep.subr.bf16.mxu1 %v407_v2  ;;  %v412_v9 = vld [vmem:[%s520_s1 + $0x18] sm:$0xff]   ;;  %v42_v11 = vsub.s32 0, %v41_v8  ;;  %v414_v12 = vld [vmem:[%s520_s1 + $0x20] sm:$0xff]   ;;  %v46_v13 = vsub.s32 1, %v41_v8  ;;  %v27_v16 = vld [vmem:[%s521_s0 + $0x8] sm:$0xff] }
   0x5   :  { %v26_v15 = vld [vmem:[%s521_s0] sm:$0xff]  ;;  %v32_v20 = vunpack.c.l.bf16 %v27_v16  ;;  %v33_v21 = vunpack.c.h.bf16 %v27_v16  ;;  %v28_v23 = vld [vmem:[%s521_s0 + $0x10] sm:$0xff]  ;;  %v29_v24 = vld [vmem:[%s521_s0 + $0x18] sm:$0xff] }
   0x6   :  { %v38_v17 = vld [vmem:[%s522_s2] sm:$0x3]  ;;  %v30_v18 = vunpack.c.l.bf16 %v26_v15  ;;  %v31_v19 = vunpack.c.h.bf16 %v26_v15  ;;  %v416_v29 = vld [vmem:[%s520_s1 + $0x28] sm:$0xff]   ;;  %v34_v30 = vunpack.c.l.bf16 %v28_v23  ;;  %v35_v31 = vunpack.c.h.bf16 %v28_v23  ;;  %v417_v34 = vld [vmem:[%s520_s1 + $0x70] sm:$0xff]  }
   0x7   :  { %364 = vmatpush3.bf16.msra.mxu0 %v408_v3  ;;  %398 = vmatpush3.bf16.msra.mxu1 %v408_v3  ;;  %v58_v22 = vld [vmem:[%s523_s3] sm:$0x3]  ;;  %v43_v25 = vrot.slane %v38_v17, %v42_v11  ;;  %v47_v26 = vrot.slane %v38_v17, %v46_v13  ;;  %v36_v32 = vunpack.c.l.bf16 %v29_v24  ;;  %v37_v33 = vunpack.c.h.bf16 %v29_v24  ;;  %v418_v46 = vld [vmem:[%s520_s1 + $0x30] sm:$0xff]   ;;  %v419_v47 = vld [vmem:[%s520_s1 + $0x78] sm:$0xff]  }
   0x8   :  { %365 = vmatprep.subr.bf16.mxu0 %v409_v4  ;;  %391 = vmatprep.subr.bf16.mxu1 %v409_v4  ;;  %v63_v27 = vrot.slane %v58_v22, %v42_v11  ;;  %v67_v28 = vrot.slane %v58_v22, %v46_v13  ;;  %v420_v57 = vld [vmem:[%s520_s1 + $0x38] sm:$0xff]  }
   0x9   :  { %v51_v35 = vmul.f32 %v47_v26, %v31_v19  ;;  %v53_v36 = vmul.f32 %v47_v26, %v33_v21  ;;  %v50_v37 = vmul.f32 %v43_v25, %v30_v18  ;;  %v55_v38 = vmul.f32 %v47_v26, %v35_v31 }
   0xa   :  { %v57_v39 = vmul.f32 %v47_v26, %v37_v33  ;;  %v52_v40 = vmul.f32 %v43_v25, %v32_v20  ;;  %v54_v41 = vmul.f32 %v43_v25, %v34_v30  ;;  %v56_v45 = vmul.f32 %v43_v25, %v36_v32 }
   0xb   :  { %366 = vmatpush3.bf16.msra.mxu0 %v410_v6  ;;  %399 = vmatpush3.bf16.msra.mxu1 %v410_v6  ;;  %v71_v42 = vadd.f32 %v67_v28, %v51_v35  ;;  %v73_v43 = vadd.f32 %v67_v28, %v53_v36  ;;  %v70_v44 = vadd.f32 %v63_v27, %v50_v37 }
   0xc   :  { %367 = vmatprep.subr.bf16.mxu0 %v411_v7  ;;  %392 = vmatprep.subr.bf16.mxu1 %v411_v7  ;;  %v75_v48 = vadd.f32 %v67_v28, %v55_v38  ;;  %v77_v49 = vadd.f32 %v67_v28, %v57_v39  ;;  %v72_v50 = vadd.f32 %v63_v27, %v52_v40 }
   0xd   :  { %vm79_vm0 = vcmp.gt.f32.partialorder %v71_v42, 0.0  ;;  %vm81_vm1 = vcmp.gt.f32.partialorder %v73_v43, 0.0  ;;  %v87_v51 = vmul.f32 0.2, %v71_v42  ;;  %v89_v52 = vmul.f32 0.2, %v73_v43 }
   0xe   :  { %vm83_vm2 = vcmp.gt.f32.partialorder %v75_v48, 0.0  ;;  %vm85_vm3 = vcmp.gt.f32.partialorder %v77_v49, 0.0  ;;  %v91_v53 = vmul.f32 0.2, %v75_v48  ;;  %v93_v54 = vmul.f32 0.2, %v77_v49 }
   0xf   :  { %368 = vmatpush3.bf16.msra.mxu0 %v412_v9  ;;  %400 = vmatpush3.bf16.msra.mxu1 %v412_v9  ;;  %v95_v55 = vsel %vm79_vm0, %v71_v42, %v87_v51  ;;  %v97_v56 = vsel %vm81_vm1, %v73_v43, %v89_v52  ;;  %vm78_vm4 = vcmp.gt.f32.partialorder %v70_v44, 0.0  ;;  %vm80_vm5 = vcmp.gt.f32.partialorder %v72_v50, 0.0 }
  0x10   :  { %369 = vmatprep.subr.bf16.mxu0 %v413_v10  ;;  %393 = vmatprep.subr.bf16.mxu1 %v413_v10  ;;  %v107_v58 = vpack.c.bf16 %v97_v56, %v95_v55  ;;  %v99_v59 = vsel %vm83_vm2, %v75_v48, %v91_v53  ;;  %v101_v60 = vsel %vm85_vm3, %v77_v49, %v93_v54  ;;  %v86_v61 = vmul.f32 0.2, %v70_v44 }
  0x11   :  { %v109_v62 = vpack.c.bf16 %v101_v60, %v99_v59  ;;  %v88_v63 = vmul.f32 0.2, %v72_v50  ;;  %v74_v0 = vadd.f32 %v63_v27, %v54_v41  ;;  %v76_v1 = vadd.f32 %v63_v27, %v56_v45 }
  0x12   :  { %270 = vmatprep.mubr.bf16.mxu0 %v107_v58  ;;  %v94_v2 = vsel %vm78_vm4, %v70_v44, %v86_v61 }
  0x13   :  { %370 = vmatpush3.bf16.msra.mxu0 %v414_v12  ;;  %401 = vmatpush3.bf16.msra.mxu1 %v414_v12  ;;  %v96_v3 = vsel %vm80_vm5, %v72_v50, %v88_v63  ;;  %vm82_vm6 = vcmp.gt.f32.partialorder %v74_v0, 0.0  ;;  %vm84_vm7 = vcmp.gt.f32.partialorder %v76_v1, 0.0  ;;  %v90_v4 = vmul.f32 0.2, %v74_v0 }
  0x14   :  { %371 = vmatprep.subr.bf16.mxu0 %v415_v14  ;;  %394 = vmatprep.subr.bf16.mxu1 %v415_v14  ;;  %v106_v5 = vpack.c.bf16 %v96_v3, %v94_v2  ;;  %v92_v6 = vmul.f32 0.2, %v76_v1 }
  0x15   :  { %278 = vmatprep.mubr.bf16.mxu1 %v109_v62  ;;  %v98_v7 = vsel %vm82_vm6, %v74_v0, %v90_v4 }
  0x16   :  { %v100_v8 = vsel %vm84_vm7, %v76_v1, %v92_v6 }
  0x17   :  { %372 = vmatpush3.bf16.msra.mxu0 %v416_v29  ;;  %402 = vmatpush3.bf16.msra.mxu1 %v416_v29  ;;  %v108_v9 = vpack.c.bf16 %v100_v8, %v98_v7 }
  0x18   :  { %373 = vmatprep.subr.bf16.mxu0 %v417_v34  ;;  %395 = vmatprep.subr.bf16.mxu1 %v417_v34 }
  0x1b   :  { %374 = vmatpush3.bf16.msra.mxu0 %v418_v46  ;;  %403 = vmatpush3.bf16.msra.mxu1 %v418_v46 }
  0x1c   :  { %375 = vmatprep.subr.bf16.mxu0 %v419_v47  ;;  %396 = vmatprep.subr.bf16.mxu1 %v419_v47 }
  0x1f   :  { %376 = vmatpush3.bf16.msra.mxu0 %v420_v57  ;;  %404 = vmatpush3.bf16.msra.mxu1 %v420_v57 }
  0x22   :  { %271 = vmatmul.mubr.bf16.vlgmr.msra.gmra.mrb[0].mxu0 %v106_v5  ;;  %279 = vmatmul.mubr.bf16.vlgmr.msra.gmra.mrb[0].mxu1 %v108_v9 }
  0xf5   :  { %v377_v10 = vpop.f32.mrb[0].mxu0  ;;  %v383_v12 = vpop.f32.mrb[0].mxu1 }
  0xf6   :  { %v378_v11 = vpop.f32.mrb[1].mxu0  ;;  %v384_v15 = vpop.f32.mrb[1].mxu1 }
  0xf7   :  { %v379_v13 = vadd.f32 %v378_v11, %v377_v10  ;;  %v380_v14 = vpop.f32.mrb[2].mxu0  ;;  %v385_v17 = vadd.f32 %v384_v15, %v383_v12  ;;  %v386_v18 = vpop.f32.mrb[2].mxu1 }
  0xf8   :  { %v381_v16 = vpop.f32.mrb[3].mxu0  ;;  %v387_v20 = vpop.f32.mrb[3].mxu1 }
  0xf9   :  { %v382_v19 = vadd.f32 %v381_v16, %v380_v14  ;;  %v388_v22 = vadd.f32 %v387_v20, %v386_v18 }
  0xfb   :  { %v353_v21 = vpack.c.bf16 %v382_v19, %v379_v13  ;;  %v358_v23 = vpack.c.bf16 %v388_v22, %v385_v17 }
  0xfd   :  { %354 = vst [vmem:[%s524_s4] sm:$0xff] %v353_v21   ;;  %360 = vst [vmem:[%s524_s4 + $0x8] sm:$0xff] %v358_v23  }

// kernel: tile.73
= control target key start
LH: loop header
LB: loop body
LE: loop exit
PB: predicated region body
PF: predicated region fallthrough
CT: control target
= control target key end

     0   :  { %s22_s0 = inlined_call_operand.vmem [shape: f32[32], index: 0, kind: input, shape index: {}]   ;;  %s23_s1 = inlined_call_operand.vmem [shape: f32[4,32], index: 1, kind: output, shape index: {}]  }
   0x1   :  { %v4_v0 = vld [vmem:[%s22_s0] ss:$0 sm:$0xff] }
   0x2   :  { %5 = vst [vmem:[%s23_s1] sm:$0xf] %v4_v0 }

// kernel: unet_forward.19
= control target key start
LH: loop header
LB: loop body
LE: loop exit
PB: predicated region body
PF: predicated region fallthrough
CT: control target
= control target key end

     0   :  { %s338_s1 = inlined_call_operand.vmem [shape: bf16[128,128], index: 1, kind: input, shape index: {}]   ;;  %s339_s0 = inlined_call_operand.vmem [shape: bf16[32,128], index: 0, kind: input, shape index: {}]   ;;  %s340_s2 = inlined_call_operand.vmem [shape: f32[1,128], index: 2, kind: input, shape index: {}]   ;;  %s341_s3 = inlined_call_operand.vmem [shape: bf16[32,128], index: 3, kind: output, shape index: {}]  }
   0x1   :  { %v271_v0 = vld [vmem:[%s338_s1] sm:$0xff]   ;;  %v272_v1 = vld [vmem:[%s338_s1 + $0x8] sm:$0xff]   ;;  %v273_v2 = vld [vmem:[%s338_s1 + $0x10] sm:$0xff]  }
   0x2   :  { %251 = vmatprep.subr.bf16.mxu0 %v271_v0  ;;  %v274_v3 = vld [vmem:[%s338_s1 + $0x18] sm:$0xff]   ;;  %v222_v4 = vld [vmem:[%s339_s0] sm:$0xff]   ;;  %v276_v11 = vld [vmem:[%s338_s1 + $0x28] sm:$0xff]  }
   0x3   :  { %252 = vmatpush3.bf16.msra.mxu0 %v271_v0  ;;  %v223_v5 = vunpack.c.l.bf16 %v222_v4  ;;  %v224_v6 = vunpack.c.h.bf16 %v222_v4  ;;  %v275_v9 = vld [vmem:[%s338_s1 + $0x20] sm:$0xff]   ;;  %v239_v12 = vld [vmem:[%s339_s0 + $0x8] sm:$0xff]   ;;  %v277_v13 = vld [vmem:[%s338_s1 + $0x30] sm:$0xff]  }
   0x4   :  { %253 = vmatprep.subr.bf16.mxu0 %v272_v1  ;;  %v227_v14 = vunpack.c.l.bf16 %v239_v12  ;;  %v228_v15 = vunpack.c.h.bf16 %v239_v12  ;;  %v278_v16 = vld [vmem:[%s338_s1 + $0x38] sm:$0xff]   ;;  %v212_v21 = vld [vmem:[%s340_s2] ss:$0 sm:$0xff] }
   0x5   :  { %v31_v7 = vmax.f32 %v223_v5, 0.0  ;;  %v32_v8 = vmax.f32 %v224_v6, 0.0 }
   0x6   :  { %v33_v17 = vmax.f32 %v227_v14, 0.0  ;;  %v34_v18 = vmax.f32 %v228_v15, 0.0 }
   0x7   :  { %254 = vmatpush3.bf16.msra.mxu0 %v272_v1  ;;  %v39_v10 = vpack.c.bf16 %v32_v8, %v31_v7 }
   0x8   :  { %255 = vmatprep.subr.bf16.mxu0 %v273_v2  ;;  %v40_v19 = vpack.c.bf16 %v34_v18, %v33_v17 }
   0x9   :  { %267 = vmatprep.mubr.bf16.mxu0 %v39_v10 }
   0xb   :  { %256 = vmatpush3.bf16.msra.mxu0 %v273_v2 }
   0xc   :  { %257 = vmatprep.subr.bf16.mxu0 %v274_v3 }
   0xf   :  { %258 = vmatpush3.bf16.msra.mxu0 %v274_v3 }
  0x10   :  { %259 = vmatprep.subr.bf16.mxu0 %v275_v9 }
  0x13   :  { %260 = vmatpush3.bf16.msra.mxu0 %v275_v9 }
  0x14   :  { %261 = vmatprep.subr.bf16.mxu0 %v276_v11 }
  0x17   :  { %262 = vmatpush3.bf16.msra.mxu0 %v276_v11 }
  0x18   :  { %263 = vmatprep.subr.bf16.mxu0 %v277_v13 }
  0x1b   :  { %264 = vmatpush3.bf16.msra.mxu0 %v277_v13 }
  0x1c   :  { %265 = vmatprep.subr.bf16.mxu0 %v278_v16 }
  0x1f   :  { %266 = vmatpush3.bf16.msra.mxu0 %v278_v16 }
  0x22   :  { %268 = vmatmul.mubr.bf16.vlgmr.msra.gmra.mrb[0].mxu0 %v40_v19 }
  0xf5   :  { %v269_v20 = vpop.f32.mrb[0].mxu0 }
  0xf6   :  { %v139_v22 = vpop.f32.mrb[1].mxu0  ;;  %v178_v24 = vadd.f32 %v269_v20, %v212_v21 }
  0xf7   :  { %v270_v23 = vpop.f32.mrb[2].mxu0  ;;  %v176_v27 = vadd.f32 %v212_v21, %v139_v22 }
  0xf8   :  { %v179_v25 = vadd.f32 %v270_v23, %v212_v21  ;;  %v142_v26 = vpop.f32.mrb[3].mxu0 }
  0xf9   :  { %v177_v28 = vadd.f32 %v212_v21, %v142_v26 }
  0xfa   :  { %v237_v29 = vpack.c.bf16 %v179_v25, %v178_v24 }
  0xfb   :  { %v232_v30 = vpack.c.bf16 %v177_v28, %v176_v27 }
  0xfc   :  { %240 = vst [vmem:[%s341_s3 + $0x8] sm:$0xff] %v237_v29  }
  0xfd   :  { %233 = vst [vmem:[%s341_s3] sm:$0xff] %v232_v30  }

// kernel: unet_forward.18
= control target key start
LH: loop header
LB: loop body
LE: loop exit
PB: predicated region body
PF: predicated region fallthrough
CT: control target
= control target key end

     0   :  { %s369_s1 = inlined_call_operand.vmem [shape: bf16[128,128], index: 1, kind: input, shape index: {}]   ;;  %s370_s0 = inlined_call_operand.vmem [shape: bf16[32,128], index: 0, kind: input, shape index: {}]   ;;  %s371_s2 = inlined_call_operand.vmem [shape: f32[1,128], index: 2, kind: input, shape index: {}]   ;;  %s372_s3 = inlined_call_operand.vmem [shape: f32[1,128], index: 3, kind: input, shape index: {}]   ;;  %s373_s4 = inlined_call_operand.vmem [shape: bf16[32,128], index: 4, kind: output, shape index: {}]  }
   0x1   :  { %v294_v0 = vld [vmem:[%s369_s1] sm:$0xff]   ;;  %v295_v1 = vld [vmem:[%s369_s1 + $0x8] sm:$0xff]   ;;  %v296_v2 = vld [vmem:[%s369_s1 + $0x10] sm:$0xff]  }
   0x2   :  { %274 = vmatprep.subr.bf16.mxu0 %v294_v0  ;;  %v297_v3 = vld [vmem:[%s369_s1 + $0x18] sm:$0xff]   ;;  %v245_v4 = vld [vmem:[%s370_s0] sm:$0xff]   ;;  %v262_v5 = vld [vmem:[%s370_s0 + $0x8] sm:$0xff]  }
   0x3   :  { %275 = vmatpush3.bf16.msra.mxu0 %v294_v0  ;;  %v226_v6 = vld [vmem:[%s371_s2] ss:$0 sm:$0xff]  ;;  %v246_v7 = vunpack.c.l.bf16 %v245_v4  ;;  %v247_v8 = vunpack.c.h.bf16 %v245_v4  ;;  %v250_v10 = vunpack.c.l.bf16 %v262_v5  ;;  %v251_v11 = vunpack.c.h.bf16 %v262_v5  ;;  %v299_v21 = vld [vmem:[%s369_s1 + $0x28] sm:$0xff]   ;;  %v300_v27 = vld [vmem:[%s369_s1 + $0x30] sm:$0xff]  }
   0x4   :  { %276 = vmatprep.subr.bf16.mxu0 %v295_v1  ;;  %v227_v9 = vld [vmem:[%s372_s3] ss:$0 sm:$0xff]  ;;  %v301_v30 = vld [vmem:[%s369_s1 + $0x38] sm:$0xff]  }
   0x5   :  { %v41_v12 = vmul.f32 %v246_v7, %v226_v6  ;;  %v42_v13 = vmul.f32 %v247_v8, %v226_v6  ;;  %v298_v14 = vld [vmem:[%s369_s1 + $0x20] sm:$0xff]   ;;  %v43_v17 = vmul.f32 %v250_v10, %v226_v6  ;;  %v44_v18 = vmul.f32 %v251_v11, %v226_v6 }
   0x7   :  { %277 = vmatpush3.bf16.msra.mxu0 %v295_v1  ;;  %v52_v15 = vadd.f32 %v227_v9, %v41_v12  ;;  %v53_v16 = vadd.f32 %v227_v9, %v42_v13  ;;  %v54_v25 = vadd.f32 %v227_v9, %v43_v17  ;;  %v55_v26 = vadd.f32 %v227_v9, %v44_v18 }
   0x8   :  { %278 = vmatprep.subr.bf16.mxu0 %v296_v2 }
   0x9   :  { %vm56_vm0 = vcmp.gt.f32.partialorder %v52_v15, 0.0  ;;  %vm57_vm1 = vcmp.gt.f32.partialorder %v53_v16, 0.0  ;;  %v60_v19 = vmul.f32 0.2, %v52_v15  ;;  %v61_v20 = vmul.f32 0.2, %v53_v16 }
   0xa   :  { %v62_v28 = vmul.f32 0.2, %v54_v25  ;;  %v63_v29 = vmul.f32 0.2, %v55_v26  ;;  %vm58_vm2 = vcmp.gt.f32.partialorder %v54_v25, 0.0  ;;  %vm59_vm3 = vcmp.gt.f32.partialorder %v55_v26, 0.0 }
   0xb   :  { %279 = vmatpush3.bf16.msra.mxu0 %v296_v2  ;;  %v64_v22 = vsel %vm56_vm0, %v52_v15, %v60_v19  ;;  %v65_v23 = vsel %vm57_vm1, %v53_v16, %v61_v20 }
   0xc   :  { %280 = vmatprep.subr.bf16.mxu0 %v297_v3  ;;  %v72_v24 = vpack.c.bf16 %v65_v23, %v64_v22  ;;  %v66_v31 = vsel %vm58_vm2, %v54_v25, %v62_v28  ;;  %v67_v32 = vsel %vm59_vm3, %v55_v26, %v63_v29 }
   0xd   :  { %v73_v33 = vpack.c.bf16 %v67_v32, %v66_v31 }
   0xe   :  { %290 = vmatprep.mubr.bf16.mxu0 %v72_v24 }
   0xf   :  { %281 = vmatpush3.bf16.msra.mxu0 %v297_v3 }
  0x10   :  { %282 = vmatprep.subr.bf16.mxu0 %v298_v14 }
  0x13   :  { %283 = vmatpush3.bf16.msra.mxu0 %v298_v14 }
  0x14   :  { %284 = vmatprep.subr.bf16.mxu0 %v299_v21 }
  0x17   :  { %285 = vmatpush3.bf16.msra.mxu0 %v299_v21 }
  0x18   :  { %286 = vmatprep.subr.bf16.mxu0 %v300_v27 }
  0x1b   :  { %287 = vmatpush3.bf16.msra.mxu0 %v300_v27 }
  0x1c   :  { %288 = vmatprep.subr.bf16.mxu0 %v301_v30 }
  0x1f   :  { %289 = vmatpush3.bf16.msra.mxu0 %v301_v30 }
  0x22   :  { %291 = vmatmul.mubr.bf16.vlgmr.msra.gmra.mrb[0].mxu0 %v73_v33 }
  0xf5   :  { %v292_v34 = vpop.f32.mrb[0].mxu0 }
  0xf6   :  { %v172_v35 = vpop.f32.mrb[1].mxu0 }
  0xf7   :  { %v293_v36 = vpop.f32.mrb[2].mxu0 }
  0xf8   :  { %v260_v37 = vpack.c.bf16 %v293_v36, %v292_v34  ;;  %v175_v38 = vpop.f32.mrb[3].mxu0 }
  0xf9   :  { %v255_v39 = vpack.c.bf16 %v175_v38, %v172_v35 }
  0xfa   :  { %263 = vst [vmem:[%s373_s4 + $0x8] sm:$0xff] %v260_v37  }
  0xfb   :  { %256 = vst [vmem:[%s373_s4] sm:$0xff] %v255_v39  }

// kernel: tile.98
= control target key start
LH: loop header
LB: loop body
LE: loop exit
PB: predicated region body
PF: predicated region fallthrough
CT: control target
= control target key end

     0   :  { %s22_s0 = inlined_call_operand.vmem [shape: f32[16], index: 0, kind: input, shape index: {}]   ;;  %s23_s1 = inlined_call_operand.vmem [shape: f32[4,16], index: 1, kind: output, shape index: {}]  }
   0x1   :  { %v4_v0 = vld [vmem:[%s22_s0] ss:$0 sm:$0xff] }
   0x2   :  { %5 = vst [vmem:[%s23_s1] sm:$0xf] %v4_v0 }

// kernel: tile.99
= control target key start
LH: loop header
LB: loop body
LE: loop exit
PB: predicated region body
PF: predicated region fallthrough
CT: control target
= control target key end

     0   :  { %vm7_vm0 = vcmask 130048   ;;  %s37_s8 = smov 16   ;;  %s38_s9 = smov 32   ;;  %vm13_vm1 = vcmask 523648   ;;  %vm19_vm2 = vcmask 392448   ;;  %vm25_vm3 = vcmask 261248   ;;  %s55_s0 = inlined_call_operand.vmem [shape: f32[4,16], index: 0, kind: input, shape index: {}]   ;;  %s56_s1 = inlined_call_operand.vmem [shape: f32[64], index: 1, kind: output, shape index: {}]  }
   0x1   :  { %v4_v0 = vld [vmem:[%s55_s0] sm:$0xf]  ;;  %s36_s0 = smov 48  }
   0x2   :  { %5 = vst [vmem:[#allocation1] sm:$0xf] %v4_v0 }
   0x9   :  { %v10_v1 = vld [vmem:[#allocation1 + $0x3] sm:$0x1]   ;;  %v22_v2 = vld [vmem:[#allocation1 + $0x1] sm:$0x1]   ;;  %v6_v3 = vld [vmem:[#allocation1] sm:$0x1]  }
   0xa   :  { %11 = vrot.lane.b32.xlu0 %v10_v1, %s36_s0  ;;  %23 = vrot.lane.b32.xlu1 %v22_v2, %s37_s8  ;;  %v16_v4 = vld [vmem:[#allocation1 + $0x2] sm:$0x1]   ;;  %8 = vst.msk [vmem:[#allocation0] sm:$0x1] %vm7_vm0, %v6_v3  }
   0xe   :  { %17 = vrot.lane.b32.xlu0 %v16_v4, %s38_s9 }
  0x7c   :  { %v12_v5 = vpop.permute.xlu0 %11   ;;  %v24_v6 = vpop.permute.xlu1 %23  }
  0x7d   :  { %14 = vst.msk [vmem:[#allocation0] sm:$0x1] %vm13_vm1, %v12_v5  }
  0x80   :  { %v18_v7 = vpop.permute.xlu0 %17  }
  0x81   :  { %20 = vst.msk [vmem:[#allocation0] sm:$0x1] %vm19_vm2, %v18_v7  }
  0x82   :  { %26 = vst.msk [vmem:[#allocation0] sm:$0x1] %vm25_vm3, %v24_v6  }
  0x89   :  { %v30_v8 = vld [vmem:[#allocation0] sm:$0x1] }
  0x8a   :  { %32 = vst [vmem:[%s56_s1] sm:$0x1] %v30_v8 }

// kernel: unet_forward.21
= control target key start
LH: loop header
LB: loop body
LE: loop exit
PB: predicated region body
PF: predicated region fallthrough
CT: control target
= control target key end

     0   :  { %s846_s1 = inlined_call_operand.vmem [shape: bf16[128,128], index: 1, kind: input, shape index: {}]   ;;  %s847_s5 = inlined_call_operand.vmem [shape: bf16[128,128], index: 5, kind: input, shape index: {}]   ;;  %s848_s0 = inlined_call_operand.vmem [shape: bf16[56,128], index: 0, kind: input, shape index: {}]   ;;  %s849_s2 = inlined_call_operand.vmem [shape: f32[1,128], index: 2, kind: input, shape index: {}]   ;;  %s850_s4 = inlined_call_operand.vmem [shape: bf16[56,128], index: 4, kind: input, shape index: {}]   ;;  %s851_s6 = inlined_call_operand.vmem [shape: f32[1,128], index: 6, kind: input, shape index: {}]   ;;  %s852_s3 = inlined_call_operand.vmem [shape: f32[1,128], index: 3, kind: input, shape index: {}]   ;;  %s853_s7 = inlined_call_operand.vmem [shape: f32[1,128], index: 7, kind: input, shape index: {}]   ;;  %s854_s8 = inlined_call_operand.vmem [shape: bf16[56,128], index: 8, kind: output, shape index: {}]  }
   0x1   :  { %v653_v0 = vld [vmem:[%s846_s1] sm:$0xff]   ;;  %v655_v2 = vld [vmem:[%s846_s1 + $0x8] sm:$0xff]   ;;  %v657_v4 = vld [vmem:[%s846_s1 + $0x10] sm:$0xff]  }
   0x2   :  { %v654_v1 = vld [vmem:[%s847_s5] sm:$0xff]   ;;  %598 = vmatprep.subr.bf16.mxu1 %v653_v0  ;;  %v656_v3 = vld [vmem:[%s847_s5 + $0x8] sm:$0xff]   ;;  %v658_v5 = vld [vmem:[%s847_s5 + $0x10] sm:$0xff]  }
   0x3   :  { %622 = vmatprep.subr.bf16.mxu0 %v654_v1  ;;  %599 = vmatpush3.bf16.msra.mxu1 %v653_v0  ;;  %v659_v6 = vld [vmem:[%s846_s1 + $0x18] sm:$0xff]   ;;  %v661_v8 = vld [vmem:[%s846_s1 + $0x20] sm:$0xff]   ;;  %v663_v10 = vld [vmem:[%s846_s1 + $0x28] sm:$0xff]  }
   0x4   :  { %623 = vmatpush3.bf16.msra.mxu0 %v654_v1  ;;  %600 = vmatprep.subr.bf16.mxu1 %v655_v2  ;;  %v660_v7 = vld [vmem:[%s847_s5 + $0x18] sm:$0xff]   ;;  %v662_v9 = vld [vmem:[%s847_s5 + $0x20] sm:$0xff]   ;;  %v664_v13 = vld [vmem:[%s847_s5 + $0x28] sm:$0xff]  }
   0x5   :  { %624 = vmatprep.subr.bf16.mxu0 %v656_v3  ;;  %v530_v11 = vld [vmem:[%s848_s0] sm:$0xff]   ;;  %v568_v21 = vld [vmem:[%s848_s0 + $0x8] sm:$0xff]   ;;  %v665_v28 = vld [vmem:[%s846_s1 + $0x30] sm:$0xff]  }
   0x6   :  { %v753_v12 = vld [vmem:[%s849_s2] ss:$0 sm:$0xff]  ;;  %v531_v14 = vunpack.c.l.bf16 %v530_v11  ;;  %v532_v15 = vunpack.c.h.bf16 %v530_v11  ;;  %v570_v22 = vld [vmem:[%s850_s4 + $0x8] sm:$0xff]   ;;  %v535_v26 = vunpack.c.l.bf16 %v568_v21  ;;  %v536_v27 = vunpack.c.h.bf16 %v568_v21  ;;  %v666_v33 = vld [vmem:[%s847_s5 + $0x30] sm:$0xff]  }
   0x7   :  { %601 = vmatpush3.bf16.msra.mxu1 %v655_v2  ;;  %v542_v16 = vld [vmem:[%s850_s4] sm:$0xff]   ;;  %v547_v31 = vunpack.c.l.bf16 %v570_v22  ;;  %v548_v32 = vunpack.c.h.bf16 %v570_v22  ;;  %v569_v42 = vld [vmem:[%s848_s0 + $0x10] sm:$0xff]   ;;  %v667_v47 = vld [vmem:[%s846_s1 + $0x38] sm:$0xff]  }
   0x8   :  { %625 = vmatpush3.bf16.msra.mxu0 %v656_v3  ;;  %602 = vmatprep.subr.bf16.mxu1 %v657_v4  ;;  %v764_v17 = vld [vmem:[%s851_s6] ss:$0 sm:$0xff]  ;;  %v543_v19 = vunpack.c.l.bf16 %v542_v16  ;;  %v544_v20 = vunpack.c.h.bf16 %v542_v16  ;;  %v62_v23 = vmul.f32 %v531_v14, %v753_v12  ;;  %v63_v24 = vmul.f32 %v532_v15, %v753_v12  ;;  %v571_v52 = vld [vmem:[%s850_s4 + $0x10] sm:$0xff]   ;;  %v668_v53 = vld [vmem:[%s847_s5 + $0x38] sm:$0xff]  }
   0x9   :  { %626 = vmatprep.subr.bf16.mxu0 %v658_v5  ;;  %v769_v18 = vld [vmem:[%s852_s3] ss:$0 sm:$0xff]  ;;  %v64_v36 = vmul.f32 %v535_v26, %v753_v12  ;;  %v65_v37 = vmul.f32 %v536_v27, %v753_v12  ;;  %v266_v40 = vmul.f32 %v547_v31, %v764_v17  ;;  %v267_v41 = vmul.f32 %v548_v32, %v764_v17  ;;  %v47_v57 = vld [vmem:[%s848_s0 + $0x18] sm:$0xf] }
   0xa   :  { %v782_v25 = vld [vmem:[%s853_s7] ss:$0 sm:$0xff]  ;;  %v264_v29 = vmul.f32 %v543_v19, %v764_v17  ;;  %v265_v30 = vmul.f32 %v544_v20, %v764_v17  ;;  %v76_v34 = vadd.f32 %v769_v18, %v62_v23  ;;  %v77_v35 = vadd.f32 %v769_v18, %v63_v24  ;;  %v249_v58 = vld [vmem:[%s850_s4 + $0x18] sm:$0xf] }
   0xb   :  { %603 = vmatpush3.bf16.msra.mxu1 %v657_v4  ;;  %v78_v45 = vadd.f32 %v769_v18, %v64_v36  ;;  %v79_v46 = vadd.f32 %v769_v18, %v65_v37  ;;  %v280_v50 = vadd.f32 %v782_v25, %v266_v40  ;;  %v281_v51 = vadd.f32 %v782_v25, %v267_v41 }
   0xc   :  { %627 = vmatpush3.bf16.msra.mxu0 %v658_v5  ;;  %604 = vmatprep.subr.bf16.mxu1 %v659_v6  ;;  %v278_v38 = vadd.f32 %v782_v25, %v264_v29  ;;  %v279_v39 = vadd.f32 %v782_v25, %v265_v30  ;;  %v83_v43 = vmax.f32 %v76_v34, 0.0  ;;  %v84_v44 = vmax.f32 %v77_v35, 0.0 }
   0xd   :  { %628 = vmatprep.subr.bf16.mxu0 %v660_v7  ;;  %v85_v55 = vmax.f32 %v78_v45, 0.0  ;;  %v539_v56 = vunpack.c.l.bf16 %v569_v42  ;;  %v86_v60 = vmax.f32 %v79_v46, 0.0  ;;  %v287_v61 = vmax.f32 %v280_v50, 0.0 }
   0xe   :  { %v285_v48 = vmax.f32 %v278_v38, 0.0  ;;  %v286_v49 = vmax.f32 %v279_v39, 0.0  ;;  %v97_v54 = vpack.c.bf16 %v84_v44, %v83_v43  ;;  %v540_v62 = vunpack.c.h.bf16 %v569_v42 }
   0xf   :  { %605 = vmatpush3.bf16.msra.mxu1 %v659_v6  ;;  %v288_v63 = vmax.f32 %v281_v51, 0.0  ;;  %v66_v0 = vmul.f32 %v539_v56, %v753_v12  ;;  %v551_v1 = vunpack.c.l.bf16 %v571_v52  ;;  %v552_v2 = vunpack.c.h.bf16 %v571_v52 }
  0x10   :  { %629 = vmatpush3.bf16.msra.mxu0 %v660_v7  ;;  %606 = vmatprep.subr.bf16.mxu1 %v661_v8  ;;  %v299_v59 = vpack.c.bf16 %v286_v49, %v285_v48  ;;  %v67_v3 = vmul.f32 %v540_v62, %v753_v12  ;;  %v54_v4 = vunpack.c.l.bf16 %v47_v57  ;;  %v256_v5 = vunpack.c.l.bf16 %v249_v58 }
  0x11   :  { %630 = vmatprep.subr.bf16.mxu0 %v662_v9  ;;  %614 = vmatprep.mubr.bf16.mxu1 %v97_v54  ;;  %v80_v6 = vadd.f32 %v769_v18, %v66_v0  ;;  %v268_v7 = vmul.f32 %v551_v1, %v764_v17  ;;  %v300_v14 = vpack.c.bf16 %v288_v63, %v287_v61 }
  0x12   :  { %638 = vmatprep.mubr.bf16.mxu0 %v299_v59  ;;  %v68_v11 = vmul.f32 %v753_v12, %v54_v4 }
  0x13   :  { %607 = vmatpush3.bf16.msra.mxu1 %v661_v8  ;;  %v269_v8 = vmul.f32 %v552_v2, %v764_v17  ;;  %v87_v15 = vmax.f32 %v80_v6, 0.0  ;;  %v282_v16 = vadd.f32 %v782_v25, %v268_v7 }
  0x14   :  { %631 = vmatpush3.bf16.msra.mxu0 %v662_v9  ;;  %608 = vmatprep.subr.bf16.mxu1 %v663_v10  ;;  %v98_v9 = vpack.c.bf16 %v86_v60, %v85_v55  ;;  %v82_v21 = vadd.f32 %v769_v18, %v68_v11 }
  0x15   :  { %632 = vmatprep.subr.bf16.mxu0 %v664_v13  ;;  %v283_v19 = vadd.f32 %v782_v25, %v269_v8  ;;  %v289_v23 = vmax.f32 %v282_v16, 0.0 }
  0x16   :  { %v89_v12 = vmax.f32 %v82_v21, 0.0 }
  0x17   :  { %609 = vmatpush3.bf16.msra.mxu1 %v663_v10  ;;  %v81_v10 = vadd.f32 %v769_v18, %v67_v3  ;;  %v290_v24 = vmax.f32 %v283_v19, 0.0 }
  0x18   :  { %633 = vmatpush3.bf16.msra.mxu0 %v664_v13  ;;  %610 = vmatprep.subr.bf16.mxu1 %v665_v28  ;;  %v270_v13 = vmul.f32 %v764_v17, %v256_v5 }
  0x19   :  { %634 = vmatprep.subr.bf16.mxu0 %v666_v33  ;;  %v88_v20 = vmax.f32 %v81_v10, 0.0  ;;  %v301_v17 = vpack.c.bf16 %v290_v24, %v289_v23 }
  0x1a   :  { %v284_v22 = vadd.f32 %v782_v25, %v270_v13 }
  0x1b   :  { %611 = vmatpush3.bf16.msra.mxu1 %v665_v28  ;;  %v99_v26 = vpack.c.bf16 %v88_v20, %v87_v15  ;;  %v100_v28 = vpack.c.bf16 %v89_v12, %v89_v12 }
  0x1c   :  { %635 = vmatpush3.bf16.msra.mxu0 %v666_v33  ;;  %612 = vmatprep.subr.bf16.mxu1 %v667_v47  ;;  %v291_v27 = vmax.f32 %v284_v22, 0.0 }
  0x1d   :  { %636 = vmatprep.subr.bf16.mxu0 %v668_v53 }
  0x1e   :  { %v302_v29 = vpack.c.bf16 %v291_v27, %v291_v27 }
  0x1f   :  { %613 = vmatpush3.bf16.msra.mxu1 %v667_v47 }
  0x20   :  { %637 = vmatpush3.bf16.msra.mxu0 %v668_v53 }
  0x22   :  { %615 = vmatmul.mubr.bf16.vlgmr.msra.gmra.mrb[0].mxu1 %v98_v9 }
  0x23   :  { %639 = vmatmul.mubr.bf16.vlgmr.msra.gmra.mrb[0].mxu0 %v300_v14  ;;  %618 = vmatprep.mubr.bf16.mxu1 %v99_v26 }
  0x24   :  { %642 = vmatprep.mubr.bf16.mxu0 %v301_v17 }
  0x2a   :  { %619 = vmatmul.mubr.bf16.gmra.mrb[4].mxu1 %v100_v28 }
  0x2b   :  { %643 = vmatmul.mubr.bf16.gmra.mrb[4].mxu0 %v302_v29 }
  0xf5   :  { %v616_v30 = vpop.f32.mrb[0].mxu1 }
  0xf6   :  { %v640_v31 = vpop.f32.mrb[0].mxu0  ;;  %v199_v32 = vpop.f32.mrb[1].mxu1 }
  0xf7   :  { %v433_v18 = vadd.f32 %v640_v31, %v616_v30  ;;  %v401_v33 = vpop.f32.mrb[1].mxu0  ;;  %v617_v25 = vpop.f32.mrb[2].mxu1 }
  0xf8   :  { %v431_v34 = vadd.f32 %v401_v33, %v199_v32  ;;  %v641_v35 = vpop.f32.mrb[2].mxu0  ;;  %v202_v36 = vpop.f32.mrb[3].mxu1 }
  0xf9   :  { %v434_v37 = vadd.f32 %v641_v35, %v617_v25  ;;  %v404_v38 = vpop.f32.mrb[3].mxu0 }
  0xfa   :  { %v432_v39 = vadd.f32 %v404_v38, %v202_v36 }
  0xfb   :  { %v561_v40 = vpack.c.bf16 %v434_v37, %v433_v18 }
  0xfc   :  { %v556_v41 = vpack.c.bf16 %v432_v39, %v431_v34 }
  0xfd   :  { %572 = vst [vmem:[%s854_s8 + $0x8] sm:$0xff] %v561_v40   ;;  %v620_v42 = vpop.f32.mrb[4].mxu1 }
  0xfe   :  { %557 = vst [vmem:[%s854_s8] sm:$0xff] %v556_v41   ;;  %v644_v43 = vpop.f32.mrb[4].mxu0  ;;  %v215_v44 = vpop.f32.mrb[5].mxu1 }
  0xff   :  { %v437_v45 = vadd.f32 %v644_v43, %v620_v42  ;;  %v417_v46 = vpop.f32.mrb[5].mxu0  ;;  %v621_v47 = vpop.f32.mrb[6].mxu1 }
 0x100   :  { %v435_v48 = vadd.f32 %v417_v46, %v215_v44  ;;  %v645_v49 = vpop.f32.mrb[6].mxu0  ;;  %v218_v50 = vpop.f32.mrb[7].mxu1 }
 0x101   :  { %v528_v51 = vpack.c.bf16 %v437_v45, %v437_v45  ;;  %v420_v52 = vpop.f32.mrb[7].mxu0 }
 0x102   :  { %v436_v53 = vadd.f32 %v420_v52, %v218_v50 }
 0x103   :  { %490 = vst [vmem:[%s854_s8 + $0x18] sm:$0xf] %v528_v51 }
 0x104   :  { %v566_v54 = vpack.c.bf16 %v436_v53, %v435_v48 }
 0x106   :  { %573 = vst [vmem:[%s854_s8 + $0x10] sm:$0xff] %v566_v54  }

// kernel: unet_forward.23
= control target key start
LH: loop header
LB: loop body
LE: loop exit
PB: predicated region body
PF: predicated region fallthrough
CT: control target
= control target key end

     0   :  { %v1359_v0 = vmov 0.0   ;;  %vm1360_vm0 = vmmov 0   ;;  %s1745_s1 = inlined_call_operand.vmem [shape: bf16[128,128], index: 1, kind: input, shape index: {}]   ;;  %s1746_s5 = inlined_call_operand.vmem [shape: bf16[128,128], index: 5, kind: input, shape index: {}]   ;;  %s1747_s0 = inlined_call_operand.vmem [shape: bf16[168,128], index: 0, kind: input, shape index: {}]   ;;  %s1748_s2 = inlined_call_operand.vmem [shape: f32[1,128], index: 2, kind: input, shape index: {}]   ;;  %s1749_s4 = inlined_call_operand.vmem [shape: bf16[168,128], index: 4, kind: input, shape index: {}]   ;;  %s1750_s6 = inlined_call_operand.vmem [shape: f32[1,128], index: 6, kind: input, shape index: {}]   ;;  %s1751_s3 = inlined_call_operand.vmem [shape: f32[1,128], index: 3, kind: input, shape index: {}]   ;;  %s1752_s7 = inlined_call_operand.vmem [shape: f32[1,128], index: 7, kind: input, shape index: {}]   ;;  %s1753_s8 = inlined_call_operand.vmem [shape: bf16[168,128], index: 8, kind: output, shape index: {}]  }
   0x1   :  { %1200 = vmatprep.subr.bf16.mxu1 %v1359_v0  ;;  %1260 = vmatprep.subr.bf16.mxu0 %v1359_v0  ;;  %v1343_v1 = vld [vmem:[%s1745_s1] sm:$0xff]   ;;  %v1345_v3 = vld [vmem:[%s1745_s1 + $0x8] sm:$0xff]   ;;  %v1347_v5 = vld [vmem:[%s1745_s1 + $0x10] sm:$0xff]  }
   0x2   :  { %v1344_v2 = vld [vmem:[%s1746_s5] sm:$0xff]   ;;  %1216 = vmatprep.mubr.msk.bf16.mxu1 %vm1360_vm0, %v1359_v0  ;;  %1276 = vmatprep.mubr.msk.bf16.mxu0 %vm1360_vm0, %v1359_v0  ;;  %v1346_v4 = vld [vmem:[%s1746_s5 + $0x8] sm:$0xff]   ;;  %v1348_v6 = vld [vmem:[%s1746_s5 + $0x10] sm:$0xff]  }
   0x3   :  { %1201 = vmatpush3.bf16.msra.mxu1 %v1343_v1  ;;  %1261 = vmatpush3.bf16.msra.mxu0 %v1344_v2  ;;  %v1349_v7 = vld [vmem:[%s1745_s1 + $0x18] sm:$0xff]   ;;  %v1351_v9 = vld [vmem:[%s1745_s1 + $0x20] sm:$0xff]   ;;  %v1353_v13 = vld [vmem:[%s1745_s1 + $0x28] sm:$0xff]  }
   0x4   :  { %1202 = vmatprep.subr.bf16.mxu1 %v1359_v0  ;;  %1262 = vmatprep.subr.bf16.mxu0 %v1359_v0  ;;  %v1350_v8 = vld [vmem:[%s1746_s5 + $0x18] sm:$0xff]   ;;  %v1352_v10 = vld [vmem:[%s1746_s5 + $0x20] sm:$0xff]   ;;  %v1135_v21 = vld [vmem:[%s1747_s0 + $0x8] sm:$0xff]  }
   0x5   :  { %v1006_v11 = vld [vmem:[%s1747_s0] sm:$0xff]   ;;  %v1144_v22 = vld [vmem:[%s1749_s4 + $0x8] sm:$0xff]   ;;  %v1011_v27 = vunpack.c.l.bf16 %v1135_v21  ;;  %v1012_v28 = vunpack.c.h.bf16 %v1135_v21  ;;  %v1355_v35 = vld [vmem:[%s1745_s1 + $0x30] sm:$0xff]  }
   0x6   :  { %v1456_v12 = vld [vmem:[%s1748_s2] ss:$0 sm:$0xff]  ;;  %v1007_v14 = vunpack.c.l.bf16 %v1006_v11  ;;  %v1008_v15 = vunpack.c.h.bf16 %v1006_v11  ;;  %v1354_v23 = vld [vmem:[%s1746_s5 + $0x28] sm:$0xff]   ;;  %v1051_v31 = vunpack.c.l.bf16 %v1144_v22  ;;  %v1052_v32 = vunpack.c.h.bf16 %v1144_v22  ;;  %v1356_v38 = vld [vmem:[%s1746_s5 + $0x30] sm:$0xff]  }
   0x7   :  { %1203 = vmatpush3.bf16.msra.mxu1 %v1345_v3  ;;  %1263 = vmatpush3.bf16.msra.mxu0 %v1346_v4  ;;  %v1046_v16 = vld [vmem:[%s1749_s4] sm:$0xff]   ;;  %v106_v39 = vmul.f32 %v1011_v27, %v1456_v12  ;;  %v107_v40 = vmul.f32 %v1012_v28, %v1456_v12  ;;  %v1136_v45 = vld [vmem:[%s1747_s0 + $0x10] sm:$0xff]   ;;  %v1357_v46 = vld [vmem:[%s1745_s1 + $0x38] sm:$0xff]  }
   0x8   :  { %1204 = vmatprep.subr.bf16.mxu1 %v1359_v0  ;;  %1264 = vmatprep.subr.bf16.mxu0 %v1359_v0  ;;  %v1467_v17 = vld [vmem:[%s1750_s6] ss:$0 sm:$0xff]  ;;  %v1047_v19 = vunpack.c.l.bf16 %v1046_v16  ;;  %v1048_v20 = vunpack.c.h.bf16 %v1046_v16  ;;  %v104_v24 = vmul.f32 %v1007_v14, %v1456_v12  ;;  %v105_v25 = vmul.f32 %v1008_v15, %v1456_v12  ;;  %v1358_v49 = vld [vmem:[%s1746_s5 + $0x38] sm:$0xff]   ;;  %v1145_v51 = vld [vmem:[%s1749_s4 + $0x10] sm:$0xff]  }
   0x9   :  { %v1472_v18 = vld [vmem:[%s1751_s3] ss:$0 sm:$0xff]  ;;  %v483_v41 = vmul.f32 %v1051_v31, %v1467_v17  ;;  %v484_v42 = vmul.f32 %v1052_v32, %v1467_v17  ;;  %v1015_v55 = vunpack.c.l.bf16 %v1136_v45  ;;  %v1016_v57 = vunpack.c.h.bf16 %v1136_v45  ;;  %v1137_v61 = vld [vmem:[%s1747_s0 + $0x18] sm:$0xff]  }
   0xa   :  { %v1489_v26 = vld [vmem:[%s1752_s7] ss:$0 sm:$0xff]  ;;  %v481_v29 = vmul.f32 %v1047_v19, %v1467_v17  ;;  %v482_v30 = vmul.f32 %v1048_v20, %v1467_v17  ;;  %v132_v33 = vadd.f32 %v1472_v18, %v104_v24  ;;  %v133_v34 = vadd.f32 %v1472_v18, %v105_v25  ;;  %v1146_v4 = vld [vmem:[%s1749_s4 + $0x18] sm:$0xff]  }
   0xb   :  { %1205 = vmatpush3.bf16.msra.mxu1 %v1347_v5  ;;  %1265 = vmatpush3.bf16.msra.mxu0 %v1348_v6  ;;  %v134_v50 = vadd.f32 %v1472_v18, %v106_v39  ;;  %v135_v52 = vadd.f32 %v1472_v18, %v107_v40  ;;  %v511_v53 = vadd.f32 %v1489_v26, %v483_v41  ;;  %v1055_v59 = vunpack.c.l.bf16 %v1145_v51  ;;  %v1147_v14 = vld [vmem:[%s1749_s4 + $0x20] sm:$0xff]  }
   0xc   :  { %1206 = vmatprep.subr.bf16.mxu1 %v1359_v0  ;;  %1266 = vmatprep.subr.bf16.mxu0 %v1359_v0  ;;  %v509_v36 = vadd.f32 %v1489_v26, %v481_v29  ;;  %v510_v37 = vadd.f32 %v1489_v26, %v482_v30  ;;  %v153_v43 = vmax.f32 %v132_v33, 0.0  ;;  %v154_v44 = vmax.f32 %v133_v34, 0.0 }
   0xd   :  { %v512_v54 = vadd.f32 %v1489_v26, %v484_v42  ;;  %v1056_v60 = vunpack.c.h.bf16 %v1145_v51  ;;  %v155_v62 = vmax.f32 %v134_v50, 0.0  ;;  %v156_v63 = vmax.f32 %v135_v52, 0.0  ;;  %v1148_v42 = vld [vmem:[%s1749_s4 + $0x28] sm:$0xff]  }
   0xe   :  { %v530_v47 = vmax.f32 %v509_v36, 0.0  ;;  %v531_v48 = vmax.f32 %v510_v37, 0.0  ;;  %v195_v56 = vpack.c.bf16 %v154_v44, %v153_v43  ;;  %v532_v1 = vmax.f32 %v511_v53, 0.0  ;;  %v1139_v37 = vld [vmem:[%s1747_s0 + $0x28] sm:$0xff]  }
   0xf   :  { %1207 = vmatpush3.bf16.msra.mxu1 %v1349_v7  ;;  %1267 = vmatpush3.bf16.msra.mxu0 %v1350_v8  ;;  %v533_v2 = vmax.f32 %v512_v54, 0.0  ;;  %v108_v3 = vmul.f32 %v1015_v55, %v1456_v12  ;;  %v109_v5 = vmul.f32 %v1016_v57, %v1456_v12  ;;  %v1019_v6 = vunpack.c.l.bf16 %v1137_v61 }
  0x10   :  { %1208 = vmatprep.subr.bf16.mxu1 %v1359_v0  ;;  %1268 = vmatprep.subr.bf16.mxu0 %v1359_v0  ;;  %v572_v58 = vpack.c.bf16 %v531_v48, %v530_v47  ;;  %v485_v7 = vmul.f32 %v1055_v59, %v1467_v17  ;;  %v486_v8 = vmul.f32 %v1056_v60, %v1467_v17  ;;  %v1059_v11 = vunpack.c.l.bf16 %v1146_v4  ;;  %v1142_v60 = vld [vmem:[%s1747_s0 + $0x40] sm:$0xff]  }
  0x11   :  { %v196_v15 = vpack.c.bf16 %v156_v63, %v155_v62  ;;  %v573_v16 = vpack.c.bf16 %v533_v2, %v532_v1  ;;  %v136_v19 = vadd.f32 %v1472_v18, %v108_v3  ;;  %v137_v20 = vadd.f32 %v1472_v18, %v109_v5  ;;  %v1587_v3 = vld [vmem:[%s1747_s0 + $0x30] sm:$0xff]  }
  0x12   :  { %v110_v21 = vmul.f32 %v1019_v6, %v1456_v12  ;;  %v513_v24 = vadd.f32 %v1489_v26, %v485_v7  ;;  %v514_v25 = vadd.f32 %v1489_v26, %v486_v8  ;;  %v1063_v27 = vunpack.c.l.bf16 %v1147_v14  ;;  %v1151_v7 = vld [vmem:[%s1749_s4 + $0x40] sm:$0xff]  }
  0x13   :  { %1209 = vmatpush3.bf16.msra.mxu1 %v1351_v9  ;;  %1269 = vmatpush3.bf16.msra.mxu0 %v1352_v10  ;;  %v1138_v9 = vld [vmem:[%s1747_s0 + $0x20] sm:$0xff]   ;;  %v1020_v10 = vunpack.c.h.bf16 %v1137_v61  ;;  %v1064_v28 = vunpack.c.h.bf16 %v1147_v14  ;;  %v487_v30 = vmul.f32 %v1059_v11, %v1467_v17  ;;  %v157_v32 = vmax.f32 %v136_v19, 0.0 }
  0x14   :  { %1210 = vmatprep.subr.bf16.mxu1 %v1359_v0  ;;  %1270 = vmatprep.subr.bf16.mxu0 %v1359_v0  ;;  %v1023_v22 = vunpack.c.l.bf16 %v1138_v9  ;;  %v158_v33 = vmax.f32 %v137_v20, 0.0  ;;  %v138_v34 = vadd.f32 %v1472_v18, %v110_v21  ;;  %v535_v39 = vmax.f32 %v514_v25, 0.0 }
  0x15   :  { %v111_v29 = vmul.f32 %v1020_v10, %v1456_v12  ;;  %v489_v40 = vmul.f32 %v1063_v27, %v1467_v17  ;;  %v490_v41 = vmul.f32 %v1064_v28, %v1467_v17  ;;  %v515_v44 = vadd.f32 %v1489_v26, %v487_v30  ;;  %v1149_v27 = vld [vmem:[%s1749_s4 + $0x30] sm:$0xff]  }
  0x16   :  { %v1028_v47 = vunpack.c.h.bf16 %v1139_v37  ;;  %v197_v48 = vpack.c.bf16 %v158_v33, %v157_v32  ;;  %v1067_v51 = vunpack.c.l.bf16 %v1148_v42  ;;  %v159_v53 = vmax.f32 %v138_v34, 0.0 }
  0x17   :  { %1211 = vmatpush3.bf16.msra.mxu1 %v1353_v13  ;;  %1271 = vmatpush3.bf16.msra.mxu0 %v1354_v23  ;;  %v1060_v13 = vunpack.c.h.bf16 %v1146_v4  ;;  %v1024_v23 = vunpack.c.h.bf16 %v1138_v9  ;;  %v139_v43 = vadd.f32 %v1472_v18, %v111_v29  ;;  %v517_v54 = vadd.f32 %v1489_v26, %v489_v40 }
  0x18   :  { %1212 = vmatprep.subr.bf16.mxu1 %v1359_v0  ;;  %1272 = vmatprep.subr.bf16.mxu0 %v1359_v0  ;;  %v518_v55 = vadd.f32 %v1489_v26, %v490_v41  ;;  %v536_v57 = vmax.f32 %v515_v44, 0.0  ;;  %v1068_v59 = vunpack.c.h.bf16 %v1148_v42  ;;  %v115_v62 = vmul.f32 %v1028_v47, %v1456_v12  ;;  %v452_v47 = vld [vmem:[%s1749_s4 + $0x50] sm:$0xf] }
  0x19   :  { %v488_v31 = vmul.f32 %v1060_v13, %v1467_v17  ;;  %v113_v36 = vmul.f32 %v1024_v23, %v1456_v12  ;;  %v491_v2 = vmul.f32 %v1067_v51, %v1467_v17  ;;  %v538_v4 = vmax.f32 %v517_v54, 0.0  ;;  %v1152_v23 = vld [vmem:[%s1749_s4 + $0x48] sm:$0xff]  }
  0x1a   :  { %v539_v5 = vmax.f32 %v518_v55, 0.0  ;;  %v1039_v6 = vunpack.c.l.bf16 %v1142_v60  ;;  %v492_v10 = vmul.f32 %v1068_v59, %v1467_v17  ;;  %v1601_v13 = vadd.f32 %v1472_v18, %v115_v62 }
  0x1b   :  { %1213 = vmatpush3.bf16.msra.mxu1 %v1355_v35  ;;  %1273 = vmatpush3.bf16.msra.mxu0 %v1356_v38  ;;  %v112_v35 = vmul.f32 %v1023_v22, %v1456_v12  ;;  %v534_v38 = vmax.f32 %v513_v24, 0.0  ;;  %v516_v45 = vadd.f32 %v1489_v26, %v488_v31  ;;  %v141_v50 = vadd.f32 %v1472_v18, %v113_v36 }
  0x1c   :  { %1214 = vmatprep.subr.bf16.mxu1 %v1359_v0  ;;  %1274 = vmatprep.subr.bf16.mxu0 %v1359_v0  ;;  %v1031_v14 = vunpack.c.l.bf16 %v1587_v3  ;;  %v1608_v20 = vadd.f32 %v1489_v26, %v491_v2  ;;  %v120_v21 = vmul.f32 %v1039_v6, %v1456_v12  ;;  %v1079_v22 = vunpack.c.l.bf16 %v1151_v7 }
  0x1d   :  { %v574_v52 = vpack.c.bf16 %v535_v39, %v534_v38  ;;  %v162_v1 = vmax.f32 %v141_v50, 0.0  ;;  %v576_v24 = vpack.c.bf16 %v539_v5, %v538_v4  ;;  %v1032_v25 = vunpack.c.h.bf16 %v1587_v3  ;;  %v75_v38 = vld [vmem:[%s1747_s0 + $0x50] sm:$0xf] }
  0x1e   :  { %v1080_v29 = vunpack.c.h.bf16 %v1151_v7  ;;  %v1620_v30 = vadd.f32 %v1489_v26, %v492_v10  ;;  %v148_v31 = vadd.f32 %v1472_v18, %v120_v21  ;;  %v497_v32 = vmul.f32 %v1079_v22, %v1467_v17 }
  0x1f   :  { %1215 = vmatpush3.bf16.msra.mxu1 %v1357_v46  ;;  %1275 = vmatpush3.bf16.msra.mxu0 %v1358_v49  ;;  %v1027_v46 = vunpack.c.l.bf16 %v1139_v37  ;;  %v140_v49 = vadd.f32 %v1472_v18, %v112_v35  ;;  %v1083_v37 = vunpack.c.l.bf16 %v1152_v23  ;;  %v1071_v39 = vunpack.c.l.bf16 %v1149_v27 }
  0x20   :  { %v498_v35 = vmul.f32 %v1080_v29, %v1467_v17  ;;  %v169_v40 = vmax.f32 %v148_v31, 0.0  ;;  %v525_v41 = vadd.f32 %v1489_v26, %v497_v32  ;;  %v96_v51 = vunpack.c.l.bf16 %v75_v38 }
  0x21   :  { %v114_v61 = vmul.f32 %v1027_v46, %v1456_v12  ;;  %v161_v63 = vmax.f32 %v140_v49, 0.0  ;;  %v1084_v46 = vunpack.c.h.bf16 %v1152_v23  ;;  %v499_v50 = vmul.f32 %v1083_v37, %v1467_v17 }
  0x22   :  { %1217 = vmatmul.mubr.bf16.vlgmr.msra.gmra.mrb[0].mxu1 %v195_v56  ;;  %1277 = vmatmul.mubr.bf16.vlgmr.msra.gmra.mrb[0].mxu0 %v572_v58  ;;  %v160_v56 = vmax.f32 %v139_v43, 0.0  ;;  %v537_v58 = vmax.f32 %v516_v45, 0.0  ;;  %v526_v44 = vadd.f32 %v1489_v26, %v498_v35  ;;  %v473_v59 = vunpack.c.l.bf16 %v452_v47 }
  0x23   :  { %1220 = vmatprep.mubr.msk.bf16.mxu1 %vm1360_vm0, %v1359_v0  ;;  %1280 = vmatprep.mubr.msk.bf16.mxu0 %vm1360_vm0, %v1359_v0  ;;  %v1598_v11 = vadd.f32 %v1472_v18, %v114_v61  ;;  %v199_v19 = vpack.c.bf16 %v162_v1, %v161_v63  ;;  %v500_v55 = vmul.f32 %v1084_v46, %v1467_v17  ;;  %v164_v5 = vmax.f32 %v1601_v13, 0.0 }
  0x24   :  { %v198_v8 = vpack.c.bf16 %v160_v56, %v159_v53  ;;  %v575_v9 = vpack.c.bf16 %v537_v58, %v536_v57  ;;  %v547_v53 = vmax.f32 %v526_v44, 0.0  ;;  %v527_v57 = vadd.f32 %v1489_v26, %v499_v50 }
  0x25   :  { %v124_v58 = vmul.f32 %v1456_v12, %v96_v51  ;;  %v528_v63 = vadd.f32 %v1489_v26, %v500_v55  ;;  %v163_v1 = vmax.f32 %v1598_v11, 0.0  ;;  %v501_v4 = vmul.f32 %v1467_v17, %v473_v59 }
  0x26   :  { %v548_v2 = vmax.f32 %v527_v57, 0.0  ;;  %v116_v6 = vmul.f32 %v1031_v14, %v1456_v12  ;;  %v117_v10 = vmul.f32 %v1032_v25, %v1456_v12  ;;  %v541_v11 = vmax.f32 %v1620_v30, 0.0 }
  0x27   :  { %v1653_v3 = vadd.f32 %v1472_v18, %v124_v58  ;;  %v493_v13 = vmul.f32 %v1071_v39, %v1467_v17  ;;  %v200_v21 = vpack.c.bf16 %v164_v5, %v163_v1 }
  0x28   :  { %v144_v22 = vadd.f32 %v1472_v18, %v116_v6  ;;  %v145_v23 = vadd.f32 %v1472_v18, %v117_v10 }
  0x29   :  { %v521_v29 = vadd.f32 %v1489_v26, %v493_v13 }
  0x2a   :  { %1221 = vmatmul.mubr.bf16.gmra.mrb[4].mxu1 %v196_v15  ;;  %1281 = vmatmul.mubr.bf16.gmra.mrb[4].mxu0 %v573_v16  ;;  %v1040_v15 = vunpack.c.h.bf16 %v1142_v60  ;;  %v1143_v16 = vld [vmem:[%s1747_s0 + $0x48] sm:$0xff]   ;;  %v1072_v60 = vunpack.c.h.bf16 %v1149_v27  ;;  %v165_v32 = vmax.f32 %v144_v22, 0.0 }
  0x2b   :  { %1224 = vmatprep.mubr.msk.bf16.mxu1 %vm1360_vm0, %v1359_v0  ;;  %1284 = vmatprep.mubr.msk.bf16.mxu0 %vm1360_vm0, %v1359_v0  ;;  %v1043_v33 = vunpack.c.l.bf16 %v1143_v16  ;;  %v1044_v36 = vunpack.c.h.bf16 %v1143_v16  ;;  %v1141_v16 = vld [vmem:[%s1747_s0 + $0x38] sm:$0xff]  }
  0x2c   :  { %v121_v28 = vmul.f32 %v1040_v15, %v1456_v12  ;;  %v1661_v15 = vadd.f32 %v1489_v26, %v501_v4  ;;  %v494_v14 = vmul.f32 %v1072_v60, %v1467_v17  ;;  %v1036_v25 = vunpack.c.h.bf16 %v1141_v16 }
  0x2d   :  { %v122_v42 = vmul.f32 %v1043_v33, %v1456_v12  ;;  %v123_v45 = vmul.f32 %v1044_v36, %v1456_v12  ;;  %v166_v33 = vmax.f32 %v145_v23, 0.0  ;;  %v542_v36 = vmax.f32 %v521_v29, 0.0 }
  0x2e   :  { %v149_v34 = vadd.f32 %v1472_v18, %v121_v28  ;;  %v522_v30 = vadd.f32 %v1489_v26, %v494_v14  ;;  %v119_v35 = vmul.f32 %v1036_v25, %v1456_v12 }
  0x2f   :  { %v150_v49 = vadd.f32 %v1472_v18, %v122_v42  ;;  %v151_v54 = vadd.f32 %v1472_v18, %v123_v45 }
  0x30   :  { %v170_v43 = vmax.f32 %v149_v34, 0.0  ;;  %v543_v37 = vmax.f32 %v522_v30, 0.0  ;;  %v147_v42 = vadd.f32 %v1472_v18, %v119_v35 }
  0x31   :  { %v171_v56 = vmax.f32 %v150_v49, 0.0  ;;  %v172_v62 = vmax.f32 %v151_v54, 0.0 }
  0x32   :  { %1225 = vmatmul.mubr.bf16.gmra.mrb[8].mxu1 %v197_v48  ;;  %1285 = vmatmul.mubr.bf16.gmra.mrb[8].mxu0 %v574_v52  ;;  %v546_v48 = vmax.f32 %v525_v41, 0.0  ;;  %v1642_v52 = vpack.c.bf16 %v170_v43, %v169_v40  ;;  %v201_v40 = vpack.c.bf16 %v166_v33, %v165_v32  ;;  %v578_v43 = vpack.c.bf16 %v543_v37, %v542_v36 }
  0x33   :  { %1228 = vmatprep.mubr.msk.bf16.mxu1 %vm1360_vm0, %v1359_v0  ;;  %1288 = vmatprep.mubr.msk.bf16.mxu0 %vm1360_vm0, %v1359_v0  ;;  %v204_v7 = vpack.c.bf16 %v172_v62, %v171_v56  ;;  %v168_v46 = vmax.f32 %v147_v42, 0.0 }
  0x34   :  { %v1648_v61 = vpack.c.bf16 %v547_v53, %v546_v48 }
  0x3a   :  { %1229 = vmatmul.mubr.bf16.gmra.mrb[12].mxu1 %v198_v8  ;;  %1289 = vmatmul.mubr.bf16.gmra.mrb[12].mxu0 %v575_v9  ;;  %v549_v8 = vmax.f32 %v528_v63, 0.0  ;;  %v540_v9 = vmax.f32 %v1608_v20, 0.0 }
  0x3b   :  { %1232 = vmatprep.mubr.msk.bf16.mxu1 %vm1360_vm0, %v1359_v0  ;;  %1292 = vmatprep.mubr.msk.bf16.mxu0 %vm1360_vm0, %v1359_v0 }
  0x3c   :  { %v581_v20 = vpack.c.bf16 %v549_v8, %v548_v2  ;;  %v577_v28 = vpack.c.bf16 %v541_v11, %v540_v9 }
  0x42   :  { %1233 = vmatmul.mubr.bf16.gmra.mrb[16].mxu1 %v199_v19  ;;  %1293 = vmatmul.mubr.bf16.gmra.mrb[16].mxu0 %v576_v24  ;;  %v1150_v19 = vld [vmem:[%s1749_s4 + $0x38] sm:$0xff]   ;;  %v1035_v24 = vunpack.c.l.bf16 %v1141_v16 }
  0x43   :  { %1236 = vmatprep.mubr.msk.bf16.mxu1 %vm1360_vm0, %v1359_v0  ;;  %1296 = vmatprep.mubr.msk.bf16.mxu0 %vm1360_vm0, %v1359_v0  ;;  %v1075_v27 = vunpack.c.l.bf16 %v1150_v19  ;;  %v1076_v31 = vunpack.c.h.bf16 %v1150_v19 }
  0x44   :  { %v118_v34 = vmul.f32 %v1035_v24, %v1456_v12 }
  0x45   :  { %v495_v38 = vmul.f32 %v1075_v27, %v1467_v17  ;;  %v496_v39 = vmul.f32 %v1076_v31, %v1467_v17 }
  0x46   :  { %v146_v41 = vadd.f32 %v1472_v18, %v118_v34  ;;  %v173_v18 = vmax.f32 %v1653_v3, 0.0 }
  0x47   :  { %v523_v12 = vadd.f32 %v1489_v26, %v495_v38  ;;  %v524_v44 = vadd.f32 %v1489_v26, %v496_v39  ;;  %v550_v26 = vmax.f32 %v1661_v15, 0.0 }
  0x48   :  { %v167_v45 = vmax.f32 %v146_v41, 0.0  ;;  %v205_v50 = vpack.c.bf16 %v173_v18, %v173_v18 }
  0x49   :  { %v544_v17 = vmax.f32 %v523_v12, 0.0  ;;  %v545_v47 = vmax.f32 %v524_v44, 0.0  ;;  %v582_v51 = vpack.c.bf16 %v550_v26, %v550_v26 }
  0x4a   :  { %1237 = vmatmul.mubr.bf16.gmra.mrb[20].mxu1 %v200_v21  ;;  %1297 = vmatmul.mubr.bf16.gmra.mrb[20].mxu0 %v577_v28  ;;  %v202_v48 = vpack.c.bf16 %v168_v46, %v167_v45 }
  0x4b   :  { %1240 = vmatprep.mubr.msk.bf16.mxu1 %vm1360_vm0, %v1359_v0  ;;  %1300 = vmatprep.mubr.msk.bf16.mxu0 %vm1360_vm0, %v1359_v0  ;;  %v579_v49 = vpack.c.bf16 %v545_v47, %v544_v17 }
  0x52   :  { %1241 = vmatmul.mubr.bf16.gmra.mrb[24].mxu1 %v201_v40  ;;  %1301 = vmatmul.mubr.bf16.gmra.mrb[24].mxu0 %v578_v43 }
  0x53   :  { %1244 = vmatprep.mubr.msk.bf16.mxu1 %vm1360_vm0, %v1359_v0  ;;  %1304 = vmatprep.mubr.msk.bf16.mxu0 %vm1360_vm0, %v1359_v0 }
  0x5a   :  { %1245 = vmatmul.mubr.bf16.gmra.mrb[28].mxu1 %v202_v48  ;;  %1305 = vmatmul.mubr.bf16.gmra.mrb[28].mxu0 %v579_v49 }
  0x5b   :  { %1248 = vmatprep.mubr.msk.bf16.mxu1 %vm1360_vm0, %v1359_v0  ;;  %1308 = vmatprep.mubr.msk.bf16.mxu0 %vm1360_vm0, %v1359_v0 }
  0x62   :  { %1249 = vmatmul.mubr.bf16.gmra.mrb[32].mxu1 %v1642_v52  ;;  %1309 = vmatmul.mubr.bf16.gmra.mrb[32].mxu0 %v1648_v61 }
  0x63   :  { %1252 = vmatprep.mubr.msk.bf16.mxu1 %vm1360_vm0, %v1359_v0  ;;  %1312 = vmatprep.mubr.msk.bf16.mxu0 %vm1360_vm0, %v1359_v0 }
  0x6a   :  { %1253 = vmatmul.mubr.bf16.gmra.mrb[36].mxu1 %v204_v7  ;;  %1313 = vmatmul.mubr.bf16.gmra.mrb[36].mxu0 %v581_v20 }
  0x6b   :  { %1256 = vmatprep.mubr.msk.bf16.mxu1 %vm1360_vm0, %v1359_v0  ;;  %1316 = vmatprep.mubr.msk.bf16.mxu0 %vm1360_vm0, %v1359_v0 }
  0x72   :  { %1257 = vmatmul.mubr.bf16.gmra.mrb[40].mxu1 %v205_v50  ;;  %1317 = vmatmul.mubr.bf16.gmra.mrb[40].mxu0 %v582_v51 }
  0xf5   :  { %v304_v52 = vpop.f32.mrb[0].mxu1  ;;  %v681_v53 = vpop.f32.mrb[0].mxu0 }
  0xf6   :  { %v1218_v54 = vpop.f32.mrb[1].mxu1  ;;  %v767_v55 = vadd.f32 %v681_v53, %v304_v52  ;;  %v1278_v56 = vpop.f32.mrb[1].mxu0 }
  0xf7   :  { %v307_v57 = vpop.f32.mrb[2].mxu1  ;;  %v684_v58 = vpop.f32.mrb[2].mxu0 }
  0xf8   :  { %v1219_v59 = vpop.f32.mrb[3].mxu1  ;;  %v768_v60 = vadd.f32 %v684_v58, %v307_v57  ;;  %v1279_v61 = vpop.f32.mrb[3].mxu0 }
  0xfa   :  { %v1088_v62 = vpack.c.bf16 %v768_v60, %v767_v55 }
  0xfc   :  { %1089 = vst [vmem:[%s1753_s8] sm:$0xff] %v1088_v62  }
  0xfd   :  { %v312_v0 = vpop.f32.mrb[4].mxu1  ;;  %v689_v63 = vpop.f32.mrb[4].mxu0 }
  0xfe   :  { %v1222_v1 = vpop.f32.mrb[5].mxu1  ;;  %v769_v2 = vadd.f32 %v689_v63, %v312_v0  ;;  %v1282_v3 = vpop.f32.mrb[5].mxu0 }
  0xff   :  { %v315_v4 = vpop.f32.mrb[6].mxu1  ;;  %v692_v5 = vpop.f32.mrb[6].mxu0 }
 0x100   :  { %v1223_v6 = vpop.f32.mrb[7].mxu1  ;;  %v770_v7 = vadd.f32 %v692_v5, %v315_v4  ;;  %v1283_v8 = vpop.f32.mrb[7].mxu0 }
 0x102   :  { %v1093_v9 = vpack.c.bf16 %v770_v7, %v769_v2 }
 0x104   :  { %1153 = vst [vmem:[%s1753_s8 + $0x8] sm:$0xff] %v1093_v9  }
 0x105   :  { %v320_v10 = vpop.f32.mrb[8].mxu1  ;;  %v697_v15 = vpop.f32.mrb[8].mxu0 }
 0x106   :  { %v1226_v11 = vpop.f32.mrb[9].mxu1  ;;  %v771_v13 = vadd.f32 %v697_v15, %v320_v10  ;;  %v1286_v14 = vpop.f32.mrb[9].mxu0 }
 0x107   :  { %v323_v16 = vpop.f32.mrb[10].mxu1  ;;  %v700_v19 = vpop.f32.mrb[10].mxu0 }
 0x108   :  { %v1227_v20 = vpop.f32.mrb[11].mxu1  ;;  %v772_v21 = vadd.f32 %v700_v19, %v323_v16  ;;  %v1287_v22 = vpop.f32.mrb[11].mxu0 }
 0x10a   :  { %v1098_v23 = vpack.c.bf16 %v772_v21, %v771_v13 }
 0x10c   :  { %1154 = vst [vmem:[%s1753_s8 + $0x10] sm:$0xff] %v1098_v23  }
 0x10d   :  { %v328_v24 = vpop.f32.mrb[12].mxu1  ;;  %v705_v25 = vpop.f32.mrb[12].mxu0 }
 0x10e   :  { %v1230_v27 = vpop.f32.mrb[13].mxu1  ;;  %v773_v28 = vadd.f32 %v705_v25, %v328_v24  ;;  %v1290_v29 = vpop.f32.mrb[13].mxu0 }
 0x10f   :  { %v331_v30 = vpop.f32.mrb[14].mxu1  ;;  %v708_v31 = vpop.f32.mrb[14].mxu0 }
 0x110   :  { %v1231_v32 = vpop.f32.mrb[15].mxu1  ;;  %v774_v33 = vadd.f32 %v708_v31, %v331_v30  ;;  %v1291_v34 = vpop.f32.mrb[15].mxu0 }
 0x112   :  { %v1103_v35 = vpack.c.bf16 %v774_v33, %v773_v28 }
 0x114   :  { %1155 = vst [vmem:[%s1753_s8 + $0x18] sm:$0xff] %v1103_v35  }
 0x115   :  { %v336_v36 = vpop.f32.mrb[16].mxu1  ;;  %v713_v37 = vpop.f32.mrb[16].mxu0 }
 0x116   :  { %v1234_v38 = vpop.f32.mrb[17].mxu1  ;;  %v775_v39 = vadd.f32 %v713_v37, %v336_v36  ;;  %v1294_v40 = vpop.f32.mrb[17].mxu0 }
 0x117   :  { %v339_v41 = vpop.f32.mrb[18].mxu1  ;;  %v716_v42 = vpop.f32.mrb[18].mxu0 }
 0x118   :  { %v1235_v43 = vpop.f32.mrb[19].mxu1  ;;  %v776_v12 = vadd.f32 %v716_v42, %v339_v41  ;;  %v1295_v44 = vpop.f32.mrb[19].mxu0 }
 0x11a   :  { %v1108_v45 = vpack.c.bf16 %v776_v12, %v775_v39 }
 0x11c   :  { %1156 = vst [vmem:[%s1753_s8 + $0x20] sm:$0xff] %v1108_v45  }
 0x11d   :  { %v344_v46 = vpop.f32.mrb[20].mxu1  ;;  %v721_v17 = vpop.f32.mrb[20].mxu0 }
 0x11e   :  { %v1238_v47 = vpop.f32.mrb[21].mxu1  ;;  %v777_v48 = vadd.f32 %v721_v17, %v344_v46  ;;  %v1298_v49 = vpop.f32.mrb[21].mxu0 }
 0x11f   :  { %v347_v18 = vpop.f32.mrb[22].mxu1  ;;  %v724_v26 = vpop.f32.mrb[22].mxu0 }
 0x120   :  { %v1239_v50 = vpop.f32.mrb[23].mxu1  ;;  %v778_v51 = vadd.f32 %v724_v26, %v347_v18  ;;  %v1299_v52 = vpop.f32.mrb[23].mxu0 }
 0x122   :  { %v1113_v53 = vpack.c.bf16 %v778_v51, %v777_v48 }
 0x124   :  { %1157 = vst [vmem:[%s1753_s8 + $0x28] sm:$0xff] %v1113_v53  }
 0x125   :  { %v352_v54 = vpop.f32.mrb[24].mxu1  ;;  %v729_v55 = vpop.f32.mrb[24].mxu0 }
 0x126   :  { %v1242_v56 = vpop.f32.mrb[25].mxu1  ;;  %v779_v57 = vadd.f32 %v729_v55, %v352_v54  ;;  %v1302_v58 = vpop.f32.mrb[25].mxu0 }
 0x127   :  { %v355_v59 = vpop.f32.mrb[26].mxu1  ;;  %v732_v60 = vpop.f32.mrb[26].mxu0 }
 0x128   :  { %v1243_v61 = vpop.f32.mrb[27].mxu1  ;;  %v780_v62 = vadd.f32 %v732_v60, %v355_v59  ;;  %v1303_v0 = vpop.f32.mrb[27].mxu0 }
 0x12a   :  { %v1118_v63 = vpack.c.bf16 %v780_v62, %v779_v57 }
 0x12c   :  { %1158 = vst [vmem:[%s1753_s8 + $0x30] sm:$0xff] %v1118_v63  }
 0x12d   :  { %v360_v1 = vpop.f32.mrb[28].mxu1  ;;  %v737_v2 = vpop.f32.mrb[28].mxu0 }
 0x12e   :  { %v1246_v3 = vpop.f32.mrb[29].mxu1  ;;  %v781_v4 = vadd.f32 %v737_v2, %v360_v1  ;;  %v1306_v5 = vpop.f32.mrb[29].mxu0 }
 0x12f   :  { %v363_v6 = vpop.f32.mrb[30].mxu1  ;;  %v740_v7 = vpop.f32.mrb[30].mxu0 }
 0x130   :  { %v1247_v8 = vpop.f32.mrb[31].mxu1  ;;  %v782_v9 = vadd.f32 %v740_v7, %v363_v6  ;;  %v1307_v10 = vpop.f32.mrb[31].mxu0 }
 0x132   :  { %v1123_v15 = vpack.c.bf16 %v782_v9, %v781_v4 }
 0x134   :  { %1159 = vst [vmem:[%s1753_s8 + $0x38] sm:$0xff] %v1123_v15  }
 0x135   :  { %v368_v11 = vpop.f32.mrb[32].mxu1  ;;  %v745_v13 = vpop.f32.mrb[32].mxu0 }
 0x136   :  { %v1250_v14 = vpop.f32.mrb[33].mxu1  ;;  %v783_v16 = vadd.f32 %v745_v13, %v368_v11  ;;  %v1310_v19 = vpop.f32.mrb[33].mxu0 }
 0x137   :  { %v371_v20 = vpop.f32.mrb[34].mxu1  ;;  %v748_v21 = vpop.f32.mrb[34].mxu0 }
 0x138   :  { %v1251_v22 = vpop.f32.mrb[35].mxu1  ;;  %v784_v23 = vadd.f32 %v748_v21, %v371_v20  ;;  %v1311_v24 = vpop.f32.mrb[35].mxu0 }
 0x13a   :  { %v1128_v25 = vpack.c.bf16 %v784_v23, %v783_v16 }
 0x13c   :  { %1160 = vst [vmem:[%s1753_s8 + $0x40] sm:$0xff] %v1128_v25  }
 0x13d   :  { %v376_v27 = vpop.f32.mrb[36].mxu1  ;;  %v753_v28 = vpop.f32.mrb[36].mxu0 }
 0x13e   :  { %v1254_v29 = vpop.f32.mrb[37].mxu1  ;;  %v785_v30 = vadd.f32 %v753_v28, %v376_v27  ;;  %v1314_v31 = vpop.f32.mrb[37].mxu0 }
 0x13f   :  { %v379_v32 = vpop.f32.mrb[38].mxu1  ;;  %v756_v33 = vpop.f32.mrb[38].mxu0 }
 0x140   :  { %v1255_v34 = vpop.f32.mrb[39].mxu1  ;;  %v786_v35 = vadd.f32 %v756_v33, %v379_v32  ;;  %v1315_v36 = vpop.f32.mrb[39].mxu0 }
 0x142   :  { %v1133_v37 = vpack.c.bf16 %v786_v35, %v785_v30 }
 0x144   :  { %1161 = vst [vmem:[%s1753_s8 + $0x48] sm:$0xff] %v1133_v37  }
 0x145   :  { %v384_v38 = vpop.f32.mrb[40].mxu1  ;;  %v761_v39 = vpop.f32.mrb[40].mxu0 }
 0x146   :  { %v1258_v40 = vpop.f32.mrb[41].mxu1  ;;  %v787_v41 = vadd.f32 %v761_v39, %v384_v38  ;;  %v1318_v42 = vpop.f32.mrb[41].mxu0 }
 0x147   :  { %v387_v43 = vpop.f32.mrb[42].mxu1  ;;  %v764_v12 = vpop.f32.mrb[42].mxu0 }
 0x148   :  { %v1259_v44 = vpop.f32.mrb[43].mxu1  ;;  %v1004_v45 = vpack.c.bf16 %v787_v41, %v787_v41  ;;  %v1319_v46 = vpop.f32.mrb[43].mxu0 }
 0x14a   :  { %938 = vst [vmem:[%s1753_s8 + $0x50] sm:$0xf] %v1004_v45 }

// kernel: unet_forward.24
= control target key start
LH: loop header
LB: loop body
LE: loop exit
PB: predicated region body
PF: predicated region fallthrough
CT: control target
= control target key end

     0   :  { %vm14_vm0 = vcmask 57344   ;;  %v658_v0 = vmov 0.0   ;;  %vm146_vm1 = vcmask 64512   ;;  %s1443_s0 = inlined_call_operand.vmem [shape: bf16[512,8], index: 0, kind: input, shape index: {}]   ;;  %s1444_s1 = inlined_call_operand.vmem [shape: f32[1,8], index: 1, kind: output, shape index: {0}]   ;;  %s1445_s2 = inlined_call_operand.vmem [shape: f32[1,8], index: 2, kind: output, shape index: {1}]  }
   0x1   :  { %15 = vst.msk [vmem:[#allocation2] sm:$0x1] %vm14_vm0, %v658_v0  ;;  %16 = vst.msk [vmem:[#allocation3] sm:$0x1] %vm14_vm0, %v658_v0  ;;  %v499_v1 = vld [vmem:[%s1443_s0] sm:$0xff]   ;;  %v626_v2 = vld [vmem:[%s1443_s0 + $0x8] sm:$0xff]  }
   0x2   :  { %v627_v3 = vld [vmem:[%s1443_s0 + $0x10] sm:$0xff]   ;;  %v628_v4 = vld [vmem:[%s1443_s0 + $0x18] sm:$0xff]   ;;  %v629_v5 = vld [vmem:[%s1443_s0 + $0x20] sm:$0xff]   ;;  %v694_v7 = vunpack.c.l.bf16 %v499_v1  ;;  %v696_v8 = vunpack.c.h.bf16 %v499_v1  ;;  %v698_v9 = vunpack.c.l.bf16 %v626_v2  ;;  %v706_v12 = vunpack.c.h.bf16 %v626_v2 }
   0x3   :  { %v630_v6 = vld [vmem:[%s1443_s0 + $0x28] sm:$0xff]   ;;  %v643_v11 = vld [vmem:[%s1443_s0 + $0x90] sm:$0xff]   ;;  %v708_v13 = vunpack.c.l.bf16 %v627_v3  ;;  %v710_v14 = vunpack.c.h.bf16 %v627_v3  ;;  %v712_v15 = vunpack.c.l.bf16 %v628_v4  ;;  %v644_v16 = vld [vmem:[%s1443_s0 + $0x98] sm:$0xff]   ;;  %v720_v18 = vunpack.c.h.bf16 %v628_v4 }
   0x4   :  { %v642_v10 = vld [vmem:[%s1443_s0 + $0x88] sm:$0xff]   ;;  %v645_v17 = vld [vmem:[%s1443_s0 + $0xa0] sm:$0xff]   ;;  %v722_v19 = vunpack.c.l.bf16 %v629_v5  ;;  %v724_v20 = vunpack.c.h.bf16 %v629_v5  ;;  %v726_v21 = vunpack.c.l.bf16 %v630_v6  ;;  %v728_v22 = vunpack.c.h.bf16 %v630_v6  ;;  %v647_v27 = vld [vmem:[%s1443_s0 + $0xb0] sm:$0xff]  }
   0x5   :  { %v730_v23 = vunpack.c.l.bf16 %v642_v10  ;;  %v732_v24 = vunpack.c.h.bf16 %v642_v10  ;;  %v734_v25 = vunpack.c.l.bf16 %v643_v11  ;;  %v646_v26 = vld [vmem:[%s1443_s0 + $0xa8] sm:$0xff]   ;;  %v742_v28 = vunpack.c.h.bf16 %v643_v11  ;;  %v648_v32 = vld [vmem:[%s1443_s0 + $0xb8] sm:$0xff]   ;;  %v649_v34 = vld [vmem:[%s1443_s0 + $0xc0] sm:$0xff]  }
   0x6   :  { %v744_v29 = vunpack.c.l.bf16 %v644_v16  ;;  %v746_v30 = vunpack.c.h.bf16 %v644_v16  ;;  %v748_v31 = vunpack.c.l.bf16 %v645_v17  ;;  %v753_v33 = vunpack.c.h.bf16 %v645_v17  ;;  %v650_v35 = vld [vmem:[%s1443_s0 + $0xc8] sm:$0xff]   ;;  %v651_v42 = vld [vmem:[%s1443_s0 + $0xd0] sm:$0xff]   ;;  %v652_v47 = vld [vmem:[%s1443_s0 + $0xd8] sm:$0xff]  }
   0x7   :  { %v147_v36 = vsel %vm146_vm1, %v694_v7, 0.0  ;;  %v148_v37 = vsel %vm146_vm1, %v696_v8, 0.0  ;;  %v150_v38 = vsel %vm146_vm1, %v698_v9, 0.0  ;;  %v767_v39 = vunpack.c.l.bf16 %v646_v26  ;;  %v653_v48 = vld [vmem:[%s1443_s0 + $0xe0] sm:$0xff]   ;;  %v654_v53 = vld [vmem:[%s1443_s0 + $0xe8] sm:$0xff]   ;;  %v655_v58 = vld [vmem:[%s1443_s0 + $0xf0] sm:$0xff]  }
   0x8   :  { %v769_v40 = vunpack.c.h.bf16 %v646_v26  ;;  %v771_v41 = vunpack.c.l.bf16 %v647_v27  ;;  %v149_v43 = vadd.f32 %v148_v37, %v147_v36  ;;  %v776_v44 = vunpack.c.h.bf16 %v647_v27  ;;  %v656_v59 = vld [vmem:[%s1443_s0 + $0xf8] sm:$0xff]  }
   0x9   :  { %v778_v45 = vunpack.c.l.bf16 %v648_v32  ;;  %v780_v46 = vunpack.c.h.bf16 %v648_v32  ;;  %v152_v49 = vsel %vm146_vm1, %v706_v12, 0.0  ;;  %v790_v50 = vunpack.c.l.bf16 %v649_v34 }
   0xa   :  { %v792_v51 = vunpack.c.h.bf16 %v649_v34  ;;  %v794_v52 = vunpack.c.l.bf16 %v650_v35  ;;  %v151_v54 = vadd.f32 %v150_v38, %v149_v43  ;;  %v799_v55 = vunpack.c.h.bf16 %v650_v35 }
   0xb   :  { %v801_v56 = vunpack.c.l.bf16 %v651_v42  ;;  %v803_v57 = vunpack.c.h.bf16 %v651_v42  ;;  %v154_v60 = vsel %vm146_vm1, %v708_v13, 0.0  ;;  %v813_v61 = vunpack.c.l.bf16 %v652_v47 }
   0xc   :  { %v815_v62 = vunpack.c.h.bf16 %v652_v47  ;;  %v817_v63 = vunpack.c.l.bf16 %v653_v48  ;;  %v153_v0 = vadd.f32 %v152_v49, %v151_v54  ;;  %v819_v1 = vunpack.c.h.bf16 %v653_v48 }
   0xd   :  { %v821_v2 = vunpack.c.l.bf16 %v654_v53  ;;  %v823_v3 = vunpack.c.h.bf16 %v654_v53  ;;  %v156_v4 = vsel %vm146_vm1, %v710_v14, 0.0  ;;  %v827_v5 = vunpack.c.l.bf16 %v655_v58 }
   0xe   :  { %1468 = vst [vmem:[#allocation4_spill] sm:$0xff] %v815_v62  ;;  %1469 = vst [vmem:[#allocation5_spill] sm:$0xff] %v817_v63  ;;  %v829_v6 = vunpack.c.h.bf16 %v655_v58  ;;  %v831_v10 = vunpack.c.l.bf16 %v656_v59  ;;  %v155_v11 = vadd.f32 %v154_v60, %v153_v0  ;;  %v833_v16 = vunpack.c.h.bf16 %v656_v59 }
   0xf   :  { %1470 = vst [vmem:[#allocation6_spill] sm:$0xff] %v819_v1  ;;  %1471 = vst [vmem:[#allocation7_spill] sm:$0xff] %v821_v2  ;;  %v158_v17 = vsel %vm146_vm1, %v712_v15, 0.0  ;;  %v160_v26 = vsel %vm146_vm1, %v720_v18, 0.0  ;;  %v162_v27 = vsel %vm146_vm1, %v722_v19, 0.0  ;;  %v164_v34 = vsel %vm146_vm1, %v724_v20, 0.0 }
  0x10   :  { %1472 = vst [vmem:[#allocation8_spill] sm:$0xff] %v823_v3  ;;  %1473 = vst [vmem:[#allocation9_spill] sm:$0xff] %v827_v5  ;;  %v157_v32 = vadd.f32 %v156_v4, %v155_v11  ;;  %v166_v35 = vsel %vm146_vm1, %v726_v21, 0.0  ;;  %v847_v36 = vsel %vm146_vm1, %v730_v23, 0.0  ;;  %v851_v37 = vsel %vm146_vm1, %v732_v24, 0.0 }
  0x11   :  { %1474 = vst [vmem:[#allocation10_spill] sm:$0xff] %v829_v6  ;;  %1475 = vst [vmem:[#allocation11_spill] sm:$0xff] %v831_v10  ;;  %v855_v38 = vsel %vm146_vm1, %v734_v25, 0.0  ;;  %v859_v42 = vsel %vm146_vm1, %v742_v28, 0.0  ;;  %v863_v43 = vsel %vm146_vm1, %v744_v29, 0.0  ;;  %v867_v48 = vsel %vm146_vm1, %v746_v30, 0.0 }
  0x12   :  { %1476 = vst [vmem:[#allocation12_spill] sm:$0xff] %v833_v16  ;;  %1477 = vst [vmem:[#allocation13_spill] sm:$0xff] %v847_v36  ;;  %v159_v47 = vadd.f32 %v158_v17, %v157_v32  ;;  %v871_v49 = vsel %vm146_vm1, %v748_v31, 0.0  ;;  %v875_v53 = vsel %vm146_vm1, %v753_v33, 0.0  ;;  %v879_v54 = vsel %vm146_vm1, %v767_v39, 0.0 }
  0x13   :  { %1478 = vst [vmem:[#allocation14_spill] sm:$0xff] %v851_v37  ;;  %1479 = vst [vmem:[#allocation15_spill] sm:$0xff] %v855_v38  ;;  %v883_v58 = vsel %vm146_vm1, %v769_v40, 0.0  ;;  %v887_v59 = vsel %vm146_vm1, %v771_v41, 0.0  ;;  %v891_v60 = vsel %vm146_vm1, %v776_v44, 0.0  ;;  %v895_v4 = vsel %vm146_vm1, %v778_v45, 0.0 }
  0x14   :  { %1480 = vst [vmem:[#allocation16_spill] sm:$0xff] %v859_v42  ;;  %1481 = vst [vmem:[#allocation17_spill] sm:$0xff] %v863_v43  ;;  %v161_v0 = vadd.f32 %v160_v26, %v159_v47  ;;  %v899_v11 = vsel %vm146_vm1, %v780_v46, 0.0  ;;  %v903_v17 = vsel %vm146_vm1, %v790_v50, 0.0  ;;  %v907_v32 = vsel %vm146_vm1, %v792_v51, 0.0 }
  0x15   :  { %1482 = vst [vmem:[#allocation18_spill] sm:$0xff] %v867_v48  ;;  %1483 = vst [vmem:[#allocation19_spill] sm:$0xff] %v871_v49  ;;  %v915_v26 = vsel %vm146_vm1, %v799_v55, 0.0  ;;  %v919_v47 = vsel %vm146_vm1, %v801_v56, 0.0 }
  0x16   :  { %1484 = vst [vmem:[#allocation20_spill] sm:$0xff] %v875_v53  ;;  %1485 = vst [vmem:[#allocation21_spill] sm:$0xff] %v879_v54  ;;  %v637_v53 = vld [vmem:[%s1443_s0 + $0x60] sm:$0xff]  }
  0x17   :  { %1486 = vst [vmem:[#allocation22_spill] sm:$0xff] %v883_v58  ;;  %1487 = vst [vmem:[#allocation23_spill] sm:$0xff] %v887_v59 }
  0x18   :  { %1488 = vst [vmem:[#allocation24_spill] sm:$0xff] %v891_v60  ;;  %1489 = vst [vmem:[#allocation25_spill] sm:$0xff] %v895_v4  ;;  %v911_v60 = vsel %vm146_vm1, %v794_v52, 0.0  ;;  %v634_v4 = vld [vmem:[%s1443_s0 + $0x48] sm:$0xff]  }
  0x19   :  { %1490 = vst [vmem:[#allocation26_spill] sm:$0xff] %v899_v11  ;;  %1491 = vst [vmem:[#allocation27_spill] sm:$0xff] %v903_v17  ;;  %v631_v17 = vld [vmem:[%s1443_s0 + $0x30] sm:$0xff]   ;;  %v163_v11 = vadd.f32 %v162_v27, %v161_v0  ;;  %v633_v27 = vld [vmem:[%s1443_s0 + $0x40] sm:$0xff]   ;;  %v944_v0 = vsel %vm146_vm1, %v817_v63, 0.0  ;;  %v1000_v43 = vunpack.c.l.bf16 %v634_v4  ;;  %v1002_v42 = vunpack.c.h.bf16 %v634_v4 }
  0x1a   :  { %1492 = vst [vmem:[#allocation28_spill] sm:$0xff] %v907_v32  ;;  %1493 = vst [vmem:[#allocation29_spill] sm:$0xff] %v911_v60  ;;  %v926_v32 = vsel %vm146_vm1, %v803_v57, 0.0  ;;  %v930_v60 = vsel %vm146_vm1, %v813_v61, 0.0  ;;  %v973_v58 = vunpack.c.l.bf16 %v631_v17  ;;  %v998_v48 = vunpack.c.h.bf16 %v633_v27  ;;  %v640_v4 = vld [vmem:[%s1443_s0 + $0x78] sm:$0xff]  }
  0x1b   :  { %1494 = vst [vmem:[#allocation30_spill] sm:$0xff] %v915_v26  ;;  %1495 = vst [vmem:[#allocation31_spill] sm:$0xff] %v919_v47  ;;  %v934_v26 = vsel %vm146_vm1, %v815_v62, 0.0  ;;  %v632_v47 = vld [vmem:[%s1443_s0 + $0x38] sm:$0xff]   ;;  %v165_v59 = vadd.f32 %v164_v34, %v163_v11  ;;  %v635_v34 = vld [vmem:[%s1443_s0 + $0x50] sm:$0xff]   ;;  %v1037_v63 = vunpack.c.l.bf16 %v640_v4 }
  0x1c   :  { %1496 = vst [vmem:[#allocation32_spill] sm:$0xff] %v926_v32  ;;  %1497 = vst [vmem:[#allocation33_spill] sm:$0xff] %v930_v60  ;;  %v948_v32 = vsel %vm146_vm1, %v819_v1, 0.0  ;;  %v952_v60 = vsel %vm146_vm1, %v821_v2, 0.0  ;;  %v636_v11 = vld [vmem:[%s1443_s0 + $0x58] sm:$0xff]   ;;  %v991_v54 = vunpack.c.h.bf16 %v632_v47  ;;  %v170_v38 = vsel %vm146_vm1, %v973_v58, 0.0 }
  0x1d   :  { %1498 = vst [vmem:[#allocation34_spill] sm:$0xff] %v934_v26  ;;  %1499 = vst [vmem:[#allocation35_spill] sm:$0xff] %v944_v0  ;;  %v956_v26 = vsel %vm146_vm1, %v823_v3, 0.0  ;;  %v963_v0 = vsel %vm146_vm1, %v827_v5, 0.0  ;;  %v167_v49 = vadd.f32 %v166_v35, %v165_v59  ;;  %v1012_v37 = vunpack.c.l.bf16 %v635_v34 }
  0x1e   :  { %1500 = vst [vmem:[#allocation36_spill] sm:$0xff] %v948_v32  ;;  %1501 = vst [vmem:[#allocation37_spill] sm:$0xff] %v952_v60  ;;  %v967_v32 = vsel %vm146_vm1, %v829_v6, 0.0  ;;  %v971_v60 = vsel %vm146_vm1, %v831_v10, 0.0  ;;  %v1014_v35 = vunpack.c.h.bf16 %v635_v34  ;;  %v1016_v59 = vunpack.c.l.bf16 %v636_v11 }
  0x1f   :  { %1502 = vst [vmem:[#allocation38_spill] sm:$0xff] %v956_v26  ;;  %1503 = vst [vmem:[#allocation39_spill] sm:$0xff] %v963_v0  ;;  %v975_v26 = vunpack.c.h.bf16 %v631_v17  ;;  %v168_v0 = vsel %vm146_vm1, %v728_v22, 0.0  ;;  %v993_v17 = vunpack.c.l.bf16 %v633_v27  ;;  %v1021_v36 = vunpack.c.h.bf16 %v636_v11 }
  0x20   :  { %1504 = vst [vmem:[#allocation40_spill] sm:$0xff] %v967_v32  ;;  %1505 = vst [vmem:[#allocation41_spill] sm:$0xff] %v971_v60  ;;  %v987_v32 = vsel %vm146_vm1, %v833_v16, 0.0  ;;  %v989_v60 = vunpack.c.l.bf16 %v632_v47  ;;  %v639_v47 = vld [vmem:[%s1443_s0 + $0x70] sm:$0xff]   ;;  %v169_v27 = vadd.f32 %v168_v0, %v167_v49  ;;  %v1023_v16 = vunpack.c.l.bf16 %v637_v53 }
  0x21   :  { %1506 = vst [vmem:[#allocation42_spill] sm:$0xff] %v987_v32  ;;  %1507 = vst [vmem:[#allocation43_spill] sm:$0xff] %v998_v48  ;;  %v638_v32 = vld [vmem:[%s1443_s0 + $0x68] sm:$0xff]   ;;  %v1025_v10 = vunpack.c.h.bf16 %v637_v53  ;;  %v172_v6 = vsel %vm146_vm1, %v975_v26, 0.0  ;;  %v1033_v3 = vunpack.c.l.bf16 %v639_v47  ;;  %v1035_v1 = vunpack.c.h.bf16 %v639_v47 }
  0x22   :  { %1508 = vst [vmem:[#allocation44_spill] sm:$0xff] %v1000_v43  ;;  %1509 = vst [vmem:[#allocation45_spill] sm:$0xff] %v1002_v42  ;;  %v1029_v5 = vunpack.c.l.bf16 %v638_v32  ;;  %v1031_v34 = vunpack.c.h.bf16 %v638_v32  ;;  %v171_v2 = vadd.f32 %v170_v38, %v169_v27  ;;  %v1039_v49 = vunpack.c.h.bf16 %v640_v4 }
  0x23   :  { %1510 = vst [vmem:[#allocation46_spill] sm:$0xff] %v1014_v35  ;;  %1511 = vst [vmem:[#allocation47_spill] sm:$0xff] %v1016_v59  ;;  %v174_v53 = vsel %vm146_vm1, %v989_v60, 0.0  ;;  %v176_v11 = vsel %vm146_vm1, %v991_v54, 0.0  ;;  %v178_v32 = vsel %vm146_vm1, %v993_v17, 0.0  ;;  %v180_v62 = vsel %vm146_vm1, %v998_v48, 0.0 }
  0x24   :  { %1512 = vst [vmem:[#allocation48_spill] sm:$0xff] %v1021_v36  ;;  %1513 = vst [vmem:[#allocation49_spill] sm:$0xff] %v1023_v16  ;;  %v173_v0 = vadd.f32 %v172_v6, %v171_v2  ;;  %v182_v38 = vsel %vm146_vm1, %v1000_v43, 0.0  ;;  %v184_v47 = vsel %vm146_vm1, %v1002_v42, 0.0  ;;  %v186_v4 = vsel %vm146_vm1, %v1012_v37, 0.0 }
  0x25   :  { %1514 = vst [vmem:[#allocation50_spill] sm:$0xff] %v1025_v10  ;;  %1515 = vst [vmem:[#allocation51_spill] sm:$0xff] %v1029_v5  ;;  %v188_v2 = vsel %vm146_vm1, %v1014_v35, 0.0  ;;  %v1059_v27 = vsel %vm146_vm1, %v1016_v59, 0.0  ;;  %v1063_v48 = vsel %vm146_vm1, %v1021_v36, 0.0  ;;  %v1067_v43 = vsel %vm146_vm1, %v1023_v16, 0.0 }
  0x26   :  { %1516 = vst [vmem:[#allocation52_spill] sm:$0xff] %v1031_v34  ;;  %1517 = vst [vmem:[#allocation53_spill] sm:$0xff] %v1033_v3  ;;  %v175_v6 = vadd.f32 %v174_v53, %v173_v0  ;;  %v1071_v42 = vsel %vm146_vm1, %v1025_v10, 0.0  ;;  %v1075_v35 = vsel %vm146_vm1, %v1029_v5, 0.0  ;;  %v1079_v53 = vsel %vm146_vm1, %v1031_v34, 0.0 }
  0x27   :  { %1518 = vst [vmem:[#allocation54_spill] sm:$0xff] %v1035_v1  ;;  %1519 = vst [vmem:[#allocation55_spill] sm:$0xff] %v1037_v63  ;;  %v1083_v0 = vsel %vm146_vm1, %v1033_v3, 0.0  ;;  %v1087_v16 = vsel %vm146_vm1, %v1035_v1, 0.0  ;;  %v1091_v10 = vsel %vm146_vm1, %v1037_v63, 0.0  ;;  %v284_v5 = vmul.f32 %v694_v7, %v694_v7 }
  0x28   :  { %v177_v36 = vadd.f32 %v176_v11, %v175_v6  ;;  %v285_v34 = vmul.f32 %v696_v8, %v696_v8  ;;  %v286_v59 = vmul.f32 %v698_v9, %v698_v9  ;;  %v287_v11 = vmul.f32 %v706_v12, %v706_v12 }
  0x29   :  { %v288_v6 = vmul.f32 %v708_v13, %v708_v13  ;;  %v289_v63 = vmul.f32 %v710_v14, %v710_v14  ;;  %v290_v3 = vmul.f32 %v712_v15, %v712_v15  ;;  %v291_v7 = vmul.f32 %v720_v18, %v720_v18 }
  0x2a   :  { %v179_v1 = vadd.f32 %v178_v32, %v177_v36  ;;  %v292_v8 = vmul.f32 %v722_v19, %v722_v19  ;;  %v293_v9 = vmul.f32 %v724_v20, %v724_v20  ;;  %v294_v12 = vmul.f32 %v726_v21, %v726_v21 }
  0x2b   :  { %v295_v13 = vmul.f32 %v728_v22, %v728_v22  ;;  %v296_v14 = vmul.f32 %v973_v58, %v973_v58  ;;  %v1121_v15 = vmul.f32 %v975_v26, %v975_v26  ;;  %v1125_v18 = vmul.f32 %v989_v60, %v989_v60 }
  0x2c   :  { %v181_v36 = vadd.f32 %v180_v62, %v179_v1  ;;  %v318_v19 = vmul.f32 %v730_v23, %v730_v23  ;;  %v319_v20 = vmul.f32 %v732_v24, %v732_v24  ;;  %v320_v21 = vmul.f32 %v734_v25, %v734_v25 }
  0x2d   :  { %v321_v22 = vmul.f32 %v742_v28, %v742_v28  ;;  %v322_v1 = vmul.f32 %v744_v29, %v744_v29  ;;  %v323_v58 = vmul.f32 %v746_v30, %v746_v30  ;;  %v324_v60 = vmul.f32 %v748_v31, %v748_v31 }
  0x2e   :  { %v183_v62 = vadd.f32 %v182_v38, %v181_v36  ;;  %v325_v23 = vmul.f32 %v753_v33, %v753_v33  ;;  %v326_v24 = vmul.f32 %v767_v39, %v767_v39  ;;  %v348_v25 = vsel %vm146_vm1, %v284_v5, 0.0 }
  0x2f   :  { %v349_v28 = vsel %vm146_vm1, %v285_v34, 0.0  ;;  %v327_v29 = vmul.f32 %v769_v40, %v769_v40  ;;  %v351_v30 = vsel %vm146_vm1, %v286_v59, 0.0  ;;  %v328_v31 = vmul.f32 %v771_v41, %v771_v41 }
  0x30   :  { %v185_v26 = vadd.f32 %v184_v47, %v183_v62  ;;  %v350_v32 = vadd.f32 %v349_v28, %v348_v25  ;;  %v329_v33 = vmul.f32 %v776_v44, %v776_v44  ;;  %v330_v39 = vmul.f32 %v778_v45, %v778_v45  ;;  %v1523_v28 = vld [vmem:[#allocation7_spill] sm:$0xff] }
  0x31   :  { %v353_v5 = vsel %vm146_vm1, %v287_v11, 0.0  ;;  %v331_v34 = vmul.f32 %v780_v46, %v780_v46  ;;  %v332_v40 = vmul.f32 %v790_v50, %v790_v50  ;;  %v333_v59 = vmul.f32 %v792_v51, %v792_v51  ;;  %v1520_v51 = vld [vmem:[#allocation4_spill] sm:$0xff] }
  0x32   :  { %v187_v38 = vadd.f32 %v186_v4, %v185_v26  ;;  %v352_v47 = vadd.f32 %v351_v30, %v350_v32  ;;  %v334_v41 = vmul.f32 %v794_v52, %v794_v52  ;;  %v335_v44 = vmul.f32 %v799_v55, %v799_v55  ;;  %v1521_v52 = vld [vmem:[#allocation5_spill] sm:$0xff]  ;;  %v1524_v32 = vld [vmem:[#allocation8_spill] sm:$0xff] }
  0x33   :  { %v355_v45 = vsel %vm146_vm1, %v288_v6, 0.0  ;;  %v336_v4 = vmul.f32 %v801_v56, %v801_v56  ;;  %v337_v46 = vmul.f32 %v803_v57, %v803_v57  ;;  %v338_v36 = vmul.f32 %v813_v61, %v813_v61  ;;  %v1522_v6 = vld [vmem:[#allocation6_spill] sm:$0xff]  ;;  %v1525_v30 = vld [vmem:[#allocation9_spill] sm:$0xff] }
  0x34   :  { %v189_v11 = vadd.f32 %v188_v2, %v187_v38  ;;  %v354_v50 = vadd.f32 %v353_v5, %v352_v47  ;;  %v339_v62 = vmul.f32 %v1520_v51, %v1520_v51  ;;  %v340_v25 = vmul.f32 %v1521_v52, %v1521_v52  ;;  %v1526_v38 = vld [vmem:[#allocation10_spill] sm:$0xff]  ;;  %v1528_v52 = vld [vmem:[#allocation12_spill] sm:$0xff] }
  0x35   :  { %v357_v55 = vsel %vm146_vm1, %v289_v63, 0.0  ;;  %v341_v56 = vmul.f32 %v1522_v6, %v1522_v6  ;;  %v342_v57 = vmul.f32 %v1523_v28, %v1523_v28  ;;  %v343_v61 = vmul.f32 %v1524_v32, %v1524_v32 }
  0x36   :  { %v191_v2 = vadd.f32 %v1059_v27, %v189_v11  ;;  %v356_v26 = vadd.f32 %v355_v45, %v354_v50  ;;  %v344_v5 = vmul.f32 %v1525_v30, %v1525_v30  ;;  %v345_v47 = vmul.f32 %v1526_v38, %v1526_v38  ;;  %v1527_v11 = vld [vmem:[#allocation11_spill] sm:$0xff] }
  0x37   :  { %v359_v63 = vsel %vm146_vm1, %v290_v3, 0.0  ;;  %v346_v51 = vmul.f32 %v1527_v11, %v1527_v11  ;;  %v347_v6 = vmul.f32 %v1528_v52, %v1528_v52  ;;  %v361_v50 = vsel %vm146_vm1, %v291_v7, 0.0 }
  0x38   :  { %v193_v27 = vadd.f32 %v1063_v48, %v191_v2  ;;  %v358_v45 = vadd.f32 %v357_v55, %v356_v26  ;;  %v363_v28 = vsel %vm146_vm1, %v292_v8, 0.0  ;;  %v365_v32 = vsel %vm146_vm1, %v293_v9, 0.0 }
  0x39   :  { %v367_v30 = vsel %vm146_vm1, %v294_v12, 0.0  ;;  %v369_v48 = vsel %vm146_vm1, %v295_v13, 0.0  ;;  %v371_v2 = vsel %vm146_vm1, %v296_v14, 0.0  ;;  %v1204_v11 = vsel %vm146_vm1, %v318_v19, 0.0 }
  0x3a   :  { %v195_v38 = vadd.f32 %v1067_v43, %v193_v27  ;;  %v360_v3 = vadd.f32 %v359_v63, %v358_v45  ;;  %v1207_v55 = vsel %vm146_vm1, %v319_v20, 0.0  ;;  %v1210_v7 = vsel %vm146_vm1, %v320_v21, 0.0 }
  0x3b   :  { %v1213_v8 = vsel %vm146_vm1, %v321_v22, 0.0  ;;  %v1217_v12 = vsel %vm146_vm1, %v322_v1, 0.0  ;;  %v1220_v13 = vsel %vm146_vm1, %v323_v58, 0.0  ;;  %v1223_v14 = vsel %vm146_vm1, %v324_v60, 0.0 }
  0x3c   :  { %v197_v9 = vadd.f32 %v1071_v42, %v195_v38  ;;  %v362_v43 = vadd.f32 %v361_v50, %v360_v3  ;;  %v1226_v19 = vsel %vm146_vm1, %v325_v23, 0.0  ;;  %v1229_v20 = vsel %vm146_vm1, %v326_v24, 0.0 }
  0x3d   :  { %v1232_v21 = vsel %vm146_vm1, %v327_v29, 0.0  ;;  %v1236_v1 = vsel %vm146_vm1, %v328_v31, 0.0  ;;  %v1239_v58 = vsel %vm146_vm1, %v329_v33, 0.0  ;;  %v1242_v60 = vsel %vm146_vm1, %v330_v39, 0.0 }
  0x3e   :  { %v199_v42 = vadd.f32 %v1075_v35, %v197_v9  ;;  %v364_v22 = vadd.f32 %v363_v28, %v362_v43  ;;  %v1245_v23 = vsel %vm146_vm1, %v331_v34, 0.0  ;;  %v1248_v24 = vsel %vm146_vm1, %v332_v40, 0.0 }
  0x3f   :  { %v1251_v29 = vsel %vm146_vm1, %v333_v59, 0.0  ;;  %v1255_v31 = vsel %vm146_vm1, %v334_v41, 0.0  ;;  %v1258_v33 = vsel %vm146_vm1, %v335_v44, 0.0  ;;  %v1261_v39 = vsel %vm146_vm1, %v336_v4, 0.0 }
  0x40   :  { %v201_v35 = vadd.f32 %v1079_v53, %v199_v42  ;;  %v366_v26 = vadd.f32 %v365_v32, %v364_v22  ;;  %v1264_v34 = vsel %vm146_vm1, %v337_v46, 0.0  ;;  %v1267_v40 = vsel %vm146_vm1, %v338_v36, 0.0  ;;  %v641_v53 = vld [vmem:[%s1443_s0 + $0x80] sm:$0xff]  }
  0x41   :  { %v1270_v59 = vsel %vm146_vm1, %v339_v62, 0.0  ;;  %v1277_v63 = vsel %vm146_vm1, %v340_v25, 0.0  ;;  %v1280_v4 = vsel %vm146_vm1, %v341_v56, 0.0  ;;  %v1283_v46 = vsel %vm146_vm1, %v342_v57, 0.0 }
  0x42   :  { %v203_v41 = vadd.f32 %v1083_v0, %v201_v35  ;;  %v368_v44 = vadd.f32 %v367_v30, %v366_v26  ;;  %v1286_v36 = vsel %vm146_vm1, %v343_v61, 0.0  ;;  %v1289_v62 = vsel %vm146_vm1, %v344_v5, 0.0  ;;  %v1532_v26 = vld [vmem:[#allocation13_spill] sm:$0xff] }
  0x43   :  { %v1292_v27 = vsel %vm146_vm1, %v345_v47, 0.0  ;;  %v1296_v25 = vsel %vm146_vm1, %v346_v51, 0.0  ;;  %v1299_v56 = vsel %vm146_vm1, %v347_v6, 0.0  ;;  %v1301_v57 = vunpack.c.l.bf16 %v641_v53 }
  0x44   :  { %v205_v0 = vadd.f32 %v1087_v16, %v203_v41  ;;  %v370_v52 = vadd.f32 %v369_v48, %v368_v44  ;;  %v208_v61 = vsel %vm146_vm1, %v1039_v49, 0.0  ;;  %v299_v5 = vmul.f32 %v991_v54, %v991_v54 }
  0x45   :  { %v373_v47 = vsel %vm146_vm1, %v1121_v15, 0.0  ;;  %v1310_v50 = vunpack.c.h.bf16 %v641_v53  ;;  %v210_v51 = vsel %vm146_vm1, %v1301_v57, 0.0  ;;  %v300_v6 = vmul.f32 %v993_v17, %v993_v17  ;;  %v1529_v15 = vld [vmem:[#allocation43_spill] sm:$0xff] }
  0x46   :  { %v207_v16 = vadd.f32 %v1091_v10, %v205_v0  ;;  %v372_v45 = vadd.f32 %v371_v2, %v370_v52  ;;  %v375_v28 = vsel %vm146_vm1, %v1125_v18, 0.0  ;;  %v301_v10 = vmul.f32 %v1529_v15, %v1529_v15  ;;  %v1530_v2 = vld [vmem:[#allocation44_spill] sm:$0xff]  ;;  %v1531_v18 = vld [vmem:[#allocation45_spill] sm:$0xff]  ;;  %v1533_v52 = vld [vmem:[#allocation14_spill] sm:$0xff] }
  0x47   :  { %v212_v54 = vsel %vm146_vm1, %v1310_v50, 0.0  ;;  %v377_v38 = vsel %vm146_vm1, %v299_v5, 0.0  ;;  %v302_v9 = vmul.f32 %v1530_v2, %v1530_v2  ;;  %v379_v17 = vsel %vm146_vm1, %v300_v6, 0.0  ;;  %v1537_v15 = vld [vmem:[#allocation16_spill] sm:$0xff]  ;;  %v1539_v2 = vld [vmem:[#allocation17_spill] sm:$0xff] }
  0x48   :  { %v209_v32 = vadd.f32 %v208_v61, %v207_v16  ;;  %v374_v30 = vadd.f32 %v373_v47, %v372_v45  ;;  %v303_v22 = vmul.f32 %v1531_v18, %v1531_v18  ;;  %v381_v35 = vsel %vm146_vm1, %v301_v10, 0.0  ;;  %v1534_v47 = vld [vmem:[#allocation46_spill] sm:$0xff] }
  0x49   :  { %v304_v44 = vmul.f32 %v1012_v37, %v1012_v37  ;;  %v383_v0 = vsel %vm146_vm1, %v302_v9, 0.0  ;;  %v305_v16 = vmul.f32 %v1534_v47, %v1534_v47 }
  0x4a   :  { %v211_v3 = vadd.f32 %v210_v51, %v209_v32  ;;  %v376_v48 = vadd.f32 %v375_v28, %v374_v30  ;;  %v385_v45 = vsel %vm146_vm1, %v303_v22, 0.0  ;;  %v1535_v51 = vld [vmem:[#allocation15_spill] sm:$0xff]  ;;  %v1541_v22 = vld [vmem:[#allocation18_spill] sm:$0xff] }
  0x4b   :  { %v1536_v32 = vld [vmem:[#allocation47_spill] sm:$0xff] }
  0x4c   :  { %v213_v43 = vadd.f32 %v212_v54, %v211_v3  ;;  %v378_v42 = vadd.f32 %v377_v38, %v376_v48  ;;  %v306_v30 = vmul.f32 %v1536_v32, %v1536_v32  ;;  %v387_v54 = vsel %vm146_vm1, %v304_v44, 0.0  ;;  %v1538_v38 = vld [vmem:[#allocation48_spill] sm:$0xff] }
  0x4d   :  { %v307_v3 = vmul.f32 %v1538_v38, %v1538_v38  ;;  %v389_v48 = vsel %vm146_vm1, %v305_v16, 0.0 }
  0x4e   :  { %v215_v53 = vadd.f32 %v1532_v26, %v213_v43  ;;  %v380_v41 = vadd.f32 %v379_v17, %v378_v42  ;;  %v1540_v43 = vld [vmem:[#allocation49_spill] sm:$0xff]  ;;  %v391_v18 = vsel %vm146_vm1, %v306_v30, 0.0 }
  0x4f   :  { %v308_v42 = vmul.f32 %v1540_v43, %v1540_v43  ;;  %v393_v44 = vsel %vm146_vm1, %v307_v3, 0.0 }
  0x50   :  { %v217_v61 = vadd.f32 %v1533_v52, %v215_v53  ;;  %v382_v5 = vadd.f32 %v381_v35, %v380_v41  ;;  %v1542_v53 = vld [vmem:[#allocation50_spill] sm:$0xff] }
  0x51   :  { %v309_v41 = vmul.f32 %v1542_v53, %v1542_v53  ;;  %v395_v16 = vsel %vm146_vm1, %v308_v42, 0.0 }
  0x52   :  { %v219_v6 = vadd.f32 %v1535_v51, %v217_v61  ;;  %v384_v28 = vadd.f32 %v383_v0, %v382_v5  ;;  %v1543_v0 = vld [vmem:[#allocation19_spill] sm:$0xff] }
  0x53   :  { %v1544_v5 = vld [vmem:[#allocation51_spill] sm:$0xff]  ;;  %v397_v30 = vsel %vm146_vm1, %v309_v41, 0.0 }
  0x54   :  { %v221_v37 = vadd.f32 %v1537_v15, %v219_v6  ;;  %v386_v10 = vadd.f32 %v385_v45, %v384_v28  ;;  %v310_v47 = vmul.f32 %v1544_v5, %v1544_v5  ;;  %v1545_v45 = vld [vmem:[#allocation20_spill] sm:$0xff] }
  0x55   :  { %v1546_v28 = vld [vmem:[#allocation52_spill] sm:$0xff] }
  0x56   :  { %v223_v9 = vadd.f32 %v1539_v2, %v221_v37  ;;  %v388_v17 = vadd.f32 %v387_v54, %v386_v10  ;;  %v311_v32 = vmul.f32 %v1546_v28, %v1546_v28  ;;  %v1547_v54 = vld [vmem:[#allocation21_spill] sm:$0xff]  ;;  %v399_v3 = vsel %vm146_vm1, %v310_v47, 0.0  ;;  %v1555_v28 = vld [vmem:[#allocation26_spill] sm:$0xff] }
  0x57   :  { %v1548_v10 = vld [vmem:[#allocation53_spill] sm:$0xff] }
  0x58   :  { %v225_v35 = vadd.f32 %v1541_v22, %v223_v9  ;;  %v390_v26 = vadd.f32 %v389_v48, %v388_v17  ;;  %v312_v38 = vmul.f32 %v1548_v10, %v1548_v10  ;;  %v1549_v48 = vld [vmem:[#allocation22_spill] sm:$0xff]  ;;  %v401_v42 = vsel %vm146_vm1, %v311_v32, 0.0  ;;  %v1554_v47 = vld [vmem:[#allocation25_spill] sm:$0xff] }
  0x59   :  { %v1550_v17 = vld [vmem:[#allocation54_spill] sm:$0xff] }
  0x5a   :  { %v227_v52 = vadd.f32 %v1543_v0, %v225_v35  ;;  %v392_v61 = vadd.f32 %v391_v18, %v390_v26  ;;  %v313_v43 = vmul.f32 %v1550_v17, %v1550_v17  ;;  %v1551_v18 = vld [vmem:[#allocation23_spill] sm:$0xff]  ;;  %v403_v41 = vsel %vm146_vm1, %v312_v38, 0.0 }
  0x5b   :  { %v1552_v26 = vld [vmem:[#allocation55_spill] sm:$0xff] }
  0x5c   :  { %v229_v51 = vadd.f32 %v1545_v45, %v227_v52  ;;  %v394_v6 = vadd.f32 %v393_v44, %v392_v61  ;;  %v314_v53 = vmul.f32 %v1552_v26, %v1552_v26  ;;  %v1553_v44 = vld [vmem:[#allocation24_spill] sm:$0xff]  ;;  %v315_v61 = vmul.f32 %v1039_v49, %v1039_v49 }
  0x5d   :  { %v405_v5 = vsel %vm146_vm1, %v313_v43, 0.0 }
  0x5e   :  { %v231_v15 = vadd.f32 %v1547_v54, %v229_v51  ;;  %v396_v37 = vadd.f32 %v395_v16, %v394_v6  ;;  %v316_v51 = vmul.f32 %v1301_v57, %v1301_v57  ;;  %v407_v6 = vsel %vm146_vm1, %v314_v53, 0.0  ;;  %v1561_v53 = vld [vmem:[#allocation32_spill] sm:$0xff] }
  0x5f   :  { %v317_v54 = vmul.f32 %v1310_v50, %v1310_v50 }
  0x60   :  { %v233_v2 = vadd.f32 %v1549_v48, %v231_v15  ;;  %v398_v9 = vadd.f32 %v397_v30, %v396_v37  ;;  %v409_v15 = vsel %vm146_vm1, %v315_v61, 0.0  ;;  %v1556_v37 = vld [vmem:[#allocation27_spill] sm:$0xff]  ;;  %v411_v38 = vsel %vm146_vm1, %v316_v51, 0.0 }
  0x61   :  { %v413_v57 = vsel %vm146_vm1, %v317_v54, 0.0 }
  0x62   :  { %v235_v22 = vadd.f32 %v1551_v18, %v233_v2  ;;  %v400_v35 = vadd.f32 %v399_v3, %v398_v9  ;;  %v1557_v3 = vld [vmem:[#allocation28_spill] sm:$0xff]  ;;  %v1558_v9 = vld [vmem:[#allocation29_spill] sm:$0xff] }
  0x64   :  { %v237_v0 = vadd.f32 %v1553_v44, %v235_v22  ;;  %v402_v52 = vadd.f32 %v401_v42, %v400_v35  ;;  %v1559_v42 = vld [vmem:[#allocation30_spill] sm:$0xff]  ;;  %v1560_v35 = vld [vmem:[#allocation31_spill] sm:$0xff] }
  0x66   :  { %v239_v16 = vadd.f32 %v1554_v47, %v237_v0  ;;  %v404_v45 = vadd.f32 %v403_v41, %v402_v52  ;;  %v1562_v0 = vld [vmem:[#allocation33_spill] sm:$0xff] }
  0x68   :  { %v241_v32 = vadd.f32 %v1555_v28, %v239_v16  ;;  %v406_v30 = vadd.f32 %v405_v5, %v404_v45  ;;  %v1563_v5 = vld [vmem:[#allocation34_spill] sm:$0xff]  ;;  %v1564_v45 = vld [vmem:[#allocation35_spill] sm:$0xff]  ;;  %v1565_v28 = vld [vmem:[#allocation36_spill] sm:$0xff] }
  0x6a   :  { %v243_v49 = vadd.f32 %v1556_v37, %v241_v32  ;;  %v408_v10 = vadd.f32 %v407_v6, %v406_v30  ;;  %v1566_v30 = vld [vmem:[#allocation37_spill] sm:$0xff] }
  0x6c   :  { %v245_v48 = vadd.f32 %v1557_v3, %v243_v49  ;;  %v410_v2 = vadd.f32 %v409_v15, %v408_v10  ;;  %v1567_v15 = vld [vmem:[#allocation38_spill] sm:$0xff]  ;;  %v1568_v49 = vld [vmem:[#allocation39_spill] sm:$0xff] }
  0x6e   :  { %v247_v17 = vadd.f32 %v1558_v9, %v245_v48  ;;  %v412_v43 = vadd.f32 %v411_v38, %v410_v2  ;;  %v1569_v38 = vld [vmem:[#allocation40_spill] sm:$0xff]  ;;  %v1570_v48 = vld [vmem:[#allocation41_spill] sm:$0xff] }
  0x70   :  { %v249_v18 = vadd.f32 %v1559_v42, %v247_v17  ;;  %v414_v22 = vadd.f32 %v413_v57, %v412_v43  ;;  %v1571_v57 = vld [vmem:[#allocation42_spill] sm:$0xff] }
  0x72   :  { %v251_v50 = vadd.f32 %v1560_v35, %v249_v18  ;;  %v416_v26 = vadd.f32 %v1204_v11, %v414_v22 }
  0x74   :  { %v253_v41 = vadd.f32 %v1561_v53, %v251_v50  ;;  %v418_v44 = vadd.f32 %v1207_v55, %v416_v26 }
  0x76   :  { %v255_v52 = vadd.f32 %v1562_v0, %v253_v41  ;;  %v420_v61 = vadd.f32 %v1210_v7, %v418_v44 }
  0x78   :  { %v257_v47 = vadd.f32 %v1563_v5, %v255_v52  ;;  %v422_v16 = vadd.f32 %v1213_v8, %v420_v61 }
  0x7a   :  { %v259_v51 = vadd.f32 %v1564_v45, %v257_v47  ;;  %v424_v6 = vadd.f32 %v1217_v12, %v422_v16  ;;  %v283_v47 = vld [vmem:[#allocation3] sm:$0x1] }
  0x7c   :  { %v261_v32 = vadd.f32 %v1565_v28, %v259_v51  ;;  %v426_v11 = vadd.f32 %v1220_v13, %v424_v6 }
  0x7e   :  { %v263_v54 = vadd.f32 %v1566_v30, %v261_v32  ;;  %v428_v55 = vadd.f32 %v1223_v14, %v426_v11 }
  0x80   :  { %v265_v37 = vadd.f32 %v1567_v15, %v263_v54  ;;  %v430_v7 = vadd.f32 %v1226_v19, %v428_v55 }
  0x82   :  { %v267_v10 = vadd.f32 %v1568_v49, %v265_v37  ;;  %v432_v8 = vadd.f32 %v1229_v20, %v430_v7 }
  0x84   :  { %v269_v3 = vadd.f32 %v1569_v38, %v267_v10  ;;  %v434_v12 = vadd.f32 %v1232_v21, %v432_v8 }
  0x86   :  { %v271_v2 = vadd.f32 %v1570_v48, %v269_v3  ;;  %v436_v13 = vadd.f32 %v1236_v1, %v434_v12  ;;  %v145_v1 = vld [vmem:[#allocation2] sm:$0x1] }
  0x88   :  { %v273_v9 = vadd.f32 %v1571_v57, %v271_v2  ;;  %v438_v14 = vadd.f32 %v1239_v58, %v436_v13 }
  0x8a   :  { %v274_v17 = vrot.slane %v273_v9, 4  ;;  %v440_v43 = vadd.f32 %v1242_v60, %v438_v14 }
  0x8c   :  { %v275_v19 = vadd.f32 %v274_v17, %v273_v9  ;;  %v442_v42 = vadd.f32 %v1245_v23, %v440_v43 }
  0x8e   :  { %v276_v18 = vrot.slane %v275_v19, 2  ;;  %v444_v20 = vadd.f32 %v1248_v24, %v442_v42 }
  0x90   :  { %v277_v22 = vadd.f32 %v276_v18, %v275_v19  ;;  %v446_v21 = vadd.f32 %v1251_v29, %v444_v20 }
  0x92   :  { %v278_v35 = vrot.slane %v277_v22, 1  ;;  %v448_v50 = vadd.f32 %v1255_v31, %v446_v21 }
  0x94   :  { %v279_v26 = vadd.f32 %v278_v35, %v277_v22  ;;  %v450_v53 = vadd.f32 %v1258_v33, %v448_v50 }
  0x96   :  { %v280_v58 = vadd.f32 %v279_v26, %v145_v1  ;;  %v452_v41 = vadd.f32 %v1261_v39, %v450_v53 }
  0x98   :  { %282 = vst.msk [vmem:[#allocation2] sm:$0x1] %vm14_vm0, %v280_v58  ;;  %v454_v60 = vadd.f32 %v1264_v34, %v452_v41 }
  0x9a   :  { %v456_v23 = vadd.f32 %v1267_v40, %v454_v60 }
  0x9c   :  { %v458_v24 = vadd.f32 %v1270_v59, %v456_v23 }
  0x9e   :  { %v460_v29 = vadd.f32 %v1277_v63, %v458_v24 }
  0x9f   :  { %v486_v44 = vld [vmem:[#allocation2] sm:$0x1] }
  0xa0   :  { %v462_v31 = vadd.f32 %v1280_v4, %v460_v29  ;;  %487 = vst.msk [vmem:[%s1444_s1] sm:$0x1] %vm14_vm0, %v486_v44 }
  0xa2   :  { %v464_v33 = vadd.f32 %v1283_v46, %v462_v31 }
  0xa4   :  { %v466_v39 = vadd.f32 %v1286_v36, %v464_v33 }
  0xa6   :  { %v468_v34 = vadd.f32 %v1289_v62, %v466_v39 }
  0xa8   :  { %v470_v40 = vadd.f32 %v1292_v27, %v468_v34 }
  0xaa   :  { %v472_v59 = vadd.f32 %v1296_v25, %v470_v40 }
  0xac   :  { %v474_v63 = vadd.f32 %v1299_v56, %v472_v59 }
  0xae   :  { %v475_v0 = vrot.slane %v474_v63, 4 }
  0xb0   :  { %v476_v52 = vadd.f32 %v475_v0, %v474_v63 }
  0xb2   :  { %v477_v4 = vrot.slane %v476_v52, 2 }
  0xb4   :  { %v478_v61 = vadd.f32 %v477_v4, %v476_v52 }
  0xb6   :  { %v479_v5 = vrot.slane %v478_v61, 1 }
  0xb8   :  { %v480_v16 = vadd.f32 %v479_v5, %v478_v61 }
  0xba   :  { %v481_v45 = vadd.f32 %v480_v16, %v283_v47 }
  0xbc   :  { %482 = vst.msk [vmem:[#allocation3] sm:$0x1] %vm14_vm0, %v481_v45 }
  0xc3   :  { %v488_v46 = vld [vmem:[#allocation3] sm:$0x1] }
  0xc4   :  { %489 = vst.msk [vmem:[%s1445_s2] sm:$0x1] %vm14_vm0, %v488_v46 }

// kernel: unet_forward.25
= control target key start
LH: loop header
LB: loop body
LE: loop exit
PB: predicated region body
PF: predicated region fallthrough
CT: control target
= control target key end

     0   :  { %s3957_s1 = inlined_call_operand.vmem [shape: bf16[128,128], index: 1, kind: input, shape index: {}]   ;;  %s3958_s3 = inlined_call_operand.vmem [shape: bf16[128,128], index: 3, kind: input, shape index: {}]   ;;  %s3959_s0 = inlined_call_operand.vmem [shape: bf16[512,128], index: 0, kind: input, shape index: {}]   ;;  %s3960_s2 = inlined_call_operand.vmem [shape: bf16[512,128], index: 2, kind: input, shape index: {}]   ;;  %s3961_s4 = inlined_call_operand.vmem [shape: f32[1,128], index: 4, kind: input, shape index: {}]   ;;  %s3962_s5 = inlined_call_operand.vmem [shape: f32[1,128], index: 5, kind: input, shape index: {}]   ;;  %s3963_s6 = inlined_call_operand.vmem [shape: f32[1,128], index: 6, kind: input, shape index: {}]   ;;  %s3964_s7 = inlined_call_operand.vmem [shape: f32[512,128], index: 7, kind: output, shape index: {}]  }
   0x1   :  { %v3006_v0 = vld [vmem:[%s3957_s1] sm:$0xff]   ;;  %v3008_v2 = vld [vmem:[%s3957_s1 + $0x8] sm:$0xff]   ;;  %v3010_v4 = vld [vmem:[%s3957_s1 + $0x10] sm:$0xff]  }
   0x2   :  { %v3007_v1 = vld [vmem:[%s3958_s3] sm:$0xff]   ;;  %2782 = vmatprep.subr.bf16.mxu1 %v3006_v0  ;;  %v3009_v3 = vld [vmem:[%s3958_s3 + $0x8] sm:$0xff]   ;;  %v3011_v5 = vld [vmem:[%s3958_s3 + $0x10] sm:$0xff]  }
   0x3   :  { %2862 = vmatprep.subr.bf16.mxu0 %v3007_v1  ;;  %2783 = vmatpush3.bf16.msra.mxu1 %v3006_v0  ;;  %v3012_v6 = vld [vmem:[%s3957_s1 + $0x18] sm:$0xff]   ;;  %v3014_v8 = vld [vmem:[%s3957_s1 + $0x20] sm:$0xff]   ;;  %v3016_v10 = vld [vmem:[%s3957_s1 + $0x28] sm:$0xff]  }
   0x4   :  { %2863 = vmatpush3.bf16.msra.mxu0 %v3007_v1  ;;  %2784 = vmatprep.subr.bf16.mxu1 %v3008_v2  ;;  %v3013_v7 = vld [vmem:[%s3958_s3 + $0x18] sm:$0xff]   ;;  %v3015_v9 = vld [vmem:[%s3958_s3 + $0x20] sm:$0xff]   ;;  %v3017_v14 = vld [vmem:[%s3958_s3 + $0x28] sm:$0xff]  }
   0x5   :  { %2864 = vmatprep.subr.bf16.mxu0 %v3009_v3  ;;  %v2385_v11 = vld [vmem:[%s3959_s0] sm:$0xff]   ;;  %v2640_v19 = vld [vmem:[%s3959_s0 + $0x8] sm:$0xff]   ;;  %v2641_v24 = vld [vmem:[%s3959_s0 + $0x10] sm:$0xff]  }
   0x6   :  { %v2513_v12 = vld [vmem:[%s3960_s2] sm:$0xff]   ;;  %v2386_v15 = vunpack.c.l.bf16 %v2385_v11  ;;  %v2387_v16 = vunpack.c.h.bf16 %v2385_v11  ;;  %v2671_v20 = vld [vmem:[%s3960_s2 + $0x8] sm:$0xff]   ;;  %v3018_v29 = vld [vmem:[%s3957_s1 + $0x30] sm:$0xff]   ;;  %v2390_v30 = vunpack.c.l.bf16 %v2640_v19  ;;  %v2391_v31 = vunpack.c.h.bf16 %v2640_v19 }
   0x7   :  { %2785 = vmatpush3.bf16.msra.mxu1 %v3008_v2  ;;  %v3363_v13 = vld [vmem:[%s3961_s4] ss:$0 sm:$0xff]  ;;  %v2514_v17 = vunpack.c.l.bf16 %v2513_v12  ;;  %v2515_v18 = vunpack.c.h.bf16 %v2513_v12  ;;  %v2518_v22 = vunpack.c.l.bf16 %v2671_v20  ;;  %v2519_v23 = vunpack.c.h.bf16 %v2671_v20  ;;  %v2672_v34 = vld [vmem:[%s3960_s2 + $0x10] sm:$0xff]   ;;  %v2673_v46 = vld [vmem:[%s3960_s2 + $0x18] sm:$0xff]  }
   0x8   :  { %2865 = vmatpush3.bf16.msra.mxu0 %v3009_v3  ;;  %2786 = vmatprep.subr.bf16.mxu1 %v3010_v4  ;;  %v3377_v21 = vld [vmem:[%s3962_s5] ss:$0 sm:$0xff]  ;;  %v223_v25 = vmax.f32 %v2386_v15, 0.0  ;;  %v224_v26 = vmax.f32 %v2387_v16, 0.0  ;;  %v3019_v35 = vld [vmem:[%s3958_s3 + $0x30] sm:$0xff]   ;;  %v2394_v39 = vunpack.c.l.bf16 %v2641_v24  ;;  %v2395_v42 = vunpack.c.h.bf16 %v2641_v24  ;;  %v3020_v47 = vld [vmem:[%s3957_s1 + $0x38] sm:$0xff]  }
   0x9   :  { %2866 = vmatprep.subr.bf16.mxu0 %v3011_v5  ;;  %v999_v27 = vmul.f32 %v2514_v17, %v3363_v13  ;;  %v1000_v28 = vmul.f32 %v2515_v18, %v3363_v13  ;;  %v1001_v32 = vmul.f32 %v2518_v22, %v3363_v13  ;;  %v1002_v33 = vmul.f32 %v2519_v23, %v3363_v13  ;;  %v2642_v51 = vld [vmem:[%s3959_s0 + $0x18] sm:$0xff]   ;;  %v2643_v57 = vld [vmem:[%s3959_s0 + $0x20] sm:$0xff]   ;;  %v2644_v16 = vld [vmem:[%s3959_s0 + $0x28] sm:$0xff]  }
   0xa   :  { %v351_v36 = vpack.c.bf16 %v224_v26, %v223_v25  ;;  %v2522_v45 = vunpack.c.l.bf16 %v2672_v34  ;;  %v225_v48 = vmax.f32 %v2390_v30, 0.0  ;;  %v226_v49 = vmax.f32 %v2391_v31, 0.0  ;;  %v3021_v52 = vld [vmem:[%s3958_s3 + $0x38] sm:$0xff]   ;;  %v2674_v62 = vld [vmem:[%s3960_s2 + $0x20] sm:$0xff]   ;;  %v2675_v22 = vld [vmem:[%s3960_s2 + $0x28] sm:$0xff]  }
   0xb   :  { %2787 = vmatpush3.bf16.msra.mxu1 %v3010_v4  ;;  %v1070_v37 = vadd.f32 %v3377_v21, %v999_v27  ;;  %v1071_v38 = vadd.f32 %v3377_v21, %v1000_v28  ;;  %v1072_v40 = vadd.f32 %v3377_v21, %v1001_v32  ;;  %v1073_v41 = vadd.f32 %v3377_v21, %v1002_v33  ;;  %v2645_v27 = vld [vmem:[%s3959_s0 + $0x30] sm:$0xff]  }
   0xc   :  { %2867 = vmatpush3.bf16.msra.mxu0 %v3011_v5  ;;  %2788 = vmatprep.subr.bf16.mxu1 %v3012_v6  ;;  %v2523_v50 = vunpack.c.h.bf16 %v2672_v34  ;;  %v227_v55 = vmax.f32 %v2394_v39, 0.0  ;;  %v1003_v56 = vmul.f32 %v2522_v45, %v3363_v13  ;;  %v228_v59 = vmax.f32 %v2395_v42, 0.0 }
   0xd   :  { %2868 = vmatprep.subr.bf16.mxu0 %v3013_v7  ;;  %2798 = vmatprep.mubr.bf16.mxu1 %v351_v36  ;;  %v1134_v43 = vmax.f32 %v1070_v37, 0.0  ;;  %v1135_v44 = vmax.f32 %v1071_v38, 0.0  ;;  %v1136_v54 = vmax.f32 %v1072_v40, 0.0  ;;  %v1137_v58 = vmax.f32 %v1073_v41, 0.0  ;;  %v2676_v36 = vld [vmem:[%s3960_s2 + $0x30] sm:$0xff]  }
   0xe   :  { %v1004_v60 = vmul.f32 %v2523_v50, %v3363_v13  ;;  %v2526_v61 = vunpack.c.l.bf16 %v2673_v46  ;;  %v1074_v63 = vadd.f32 %v3377_v21, %v1003_v56  ;;  %v2398_v0 = vunpack.c.l.bf16 %v2642_v51 }
   0xf   :  { %2789 = vmatpush3.bf16.msra.mxu1 %v3012_v6  ;;  %v1262_v53 = vpack.c.bf16 %v1135_v44, %v1134_v43  ;;  %v2399_v1 = vunpack.c.h.bf16 %v2642_v51  ;;  %v2527_v2 = vunpack.c.h.bf16 %v2673_v46  ;;  %v2402_v5 = vunpack.c.l.bf16 %v2643_v57 }
  0x10   :  { %2869 = vmatpush3.bf16.msra.mxu0 %v3013_v7  ;;  %2790 = vmatprep.subr.bf16.mxu1 %v3014_v8  ;;  %v1075_v3 = vadd.f32 %v3377_v21, %v1004_v60  ;;  %v1005_v4 = vmul.f32 %v2526_v61, %v3363_v13  ;;  %v2403_v6 = vunpack.c.h.bf16 %v2643_v57  ;;  %v352_v7 = vpack.c.bf16 %v226_v49, %v225_v48 }
  0x11   :  { %2870 = vmatprep.subr.bf16.mxu0 %v3015_v9  ;;  %2878 = vmatprep.mubr.bf16.mxu0 %v1262_v53  ;;  %v1263_v11 = vpack.c.bf16 %v1137_v58, %v1136_v54  ;;  %v353_v12 = vpack.c.bf16 %v228_v59, %v227_v55  ;;  %v229_v17 = vmax.f32 %v2398_v0, 0.0  ;;  %v2531_v19 = vunpack.c.h.bf16 %v2674_v62 }
  0x12   :  { %v1076_v15 = vadd.f32 %v3377_v21, %v1005_v4  ;;  %v230_v24 = vmax.f32 %v2399_v1, 0.0  ;;  %v231_v25 = vmax.f32 %v2402_v5, 0.0  ;;  %v232_v26 = vmax.f32 %v2403_v6, 0.0  ;;  %v2678_v1 = vld [vmem:[%s3960_s2 + $0x40] sm:$0xff]  }
  0x13   :  { %2791 = vmatpush3.bf16.msra.mxu1 %v3014_v8  ;;  %v1138_v8 = vmax.f32 %v1074_v63, 0.0  ;;  %v2406_v31 = vunpack.c.l.bf16 %v2644_v16  ;;  %v2407_v33 = vunpack.c.h.bf16 %v2644_v16  ;;  %v2534_v34 = vunpack.c.l.bf16 %v2675_v22 }
  0x14   :  { %2871 = vmatpush3.bf16.msra.mxu0 %v3015_v9  ;;  %2792 = vmatprep.subr.bf16.mxu1 %v3016_v10  ;;  %v1006_v9 = vmul.f32 %v2527_v2, %v3363_v13  ;;  %v1140_v28 = vmax.f32 %v1076_v15, 0.0  ;;  %v2410_v38 = vunpack.c.l.bf16 %v2645_v27  ;;  %v2411_v42 = vunpack.c.h.bf16 %v2645_v27 }
  0x15   :  { %2872 = vmatprep.subr.bf16.mxu0 %v3017_v14  ;;  %v1009_v40 = vmul.f32 %v2534_v34, %v3363_v13  ;;  %v354_v43 = vpack.c.bf16 %v230_v24, %v229_v17  ;;  %v2538_v45 = vunpack.c.l.bf16 %v2676_v36  ;;  %v2539_v46 = vunpack.c.h.bf16 %v2676_v36  ;;  %v2649_v36 = vld [vmem:[%s3959_s0 + $0x50] sm:$0xff]  }
  0x16   :  { %v1077_v18 = vadd.f32 %v3377_v21, %v1006_v9  ;;  %v355_v49 = vpack.c.bf16 %v232_v26, %v231_v25  ;;  %v233_v50 = vmax.f32 %v2406_v31, 0.0  ;;  %v234_v51 = vmax.f32 %v2407_v33, 0.0  ;;  %v2680_v31 = vld [vmem:[%s3960_s2 + $0x50] sm:$0xff]  }
  0x17   :  { %2793 = vmatpush3.bf16.msra.mxu1 %v3016_v10  ;;  %v2530_v10 = vunpack.c.l.bf16 %v2674_v62  ;;  %v1080_v53 = vadd.f32 %v3377_v21, %v1009_v40  ;;  %v1011_v55 = vmul.f32 %v2538_v45, %v3363_v13  ;;  %v1012_v56 = vmul.f32 %v2539_v46, %v3363_v13 }
  0x18   :  { %2873 = vmatpush3.bf16.msra.mxu0 %v3017_v14  ;;  %2794 = vmatprep.subr.bf16.mxu1 %v3018_v29  ;;  %v1139_v14 = vmax.f32 %v1075_v3, 0.0  ;;  %v1141_v32 = vmax.f32 %v1077_v18, 0.0  ;;  %v235_v58 = vmax.f32 %v2410_v38, 0.0  ;;  %v236_v59 = vmax.f32 %v2411_v42, 0.0  ;;  %v2647_v3 = vld [vmem:[%s3959_s0 + $0x40] sm:$0xff]  }
  0x19   :  { %2874 = vmatprep.subr.bf16.mxu0 %v3019_v35  ;;  %v1007_v20 = vmul.f32 %v2530_v10, %v3363_v13  ;;  %v1082_v61 = vadd.f32 %v3377_v21, %v1011_v55  ;;  %v1083_v62 = vadd.f32 %v3377_v21, %v1012_v56  ;;  %v1144_v4 = vmax.f32 %v1080_v53, 0.0 }
  0x1a   :  { %v1264_v23 = vpack.c.bf16 %v1139_v14, %v1138_v8  ;;  %v1265_v48 = vpack.c.bf16 %v1141_v32, %v1140_v28  ;;  %v2546_v10 = vunpack.c.l.bf16 %v2678_v1  ;;  %v356_v14 = vpack.c.bf16 %v234_v51, %v233_v50 }
  0x1b   :  { %2795 = vmatpush3.bf16.msra.mxu1 %v3018_v29  ;;  %v1008_v29 = vmul.f32 %v2531_v19, %v3363_v13  ;;  %v1078_v30 = vadd.f32 %v3377_v21, %v1007_v20  ;;  %v1146_v8 = vmax.f32 %v1082_v61, 0.0  ;;  %v1147_v9 = vmax.f32 %v1083_v62, 0.0  ;;  %v2650_v62 = vld [vmem:[%s3959_s0 + $0x58] sm:$0xff]  }
  0x1c   :  { %2875 = vmatpush3.bf16.msra.mxu0 %v3019_v35  ;;  %2796 = vmatprep.subr.bf16.mxu1 %v3020_v47  ;;  %v2535_v35 = vunpack.c.h.bf16 %v2675_v22  ;;  %v357_v15 = vpack.c.bf16 %v236_v59, %v235_v58  ;;  %v2418_v17 = vunpack.c.l.bf16 %v2647_v3  ;;  %v2419_v19 = vunpack.c.h.bf16 %v2647_v3  ;;  %v2682_v58 = vld [vmem:[%s3960_s2 + $0x60] sm:$0xff]  }
  0x1d   :  { %2876 = vmatprep.subr.bf16.mxu0 %v3021_v52  ;;  %v1079_v37 = vadd.f32 %v3377_v21, %v1008_v29  ;;  %v1142_v39 = vmax.f32 %v1078_v30, 0.0  ;;  %v1015_v20 = vmul.f32 %v2546_v10, %v3363_v13  ;;  %v1268_v27 = vpack.c.bf16 %v1147_v9, %v1146_v8 }
  0x1e   :  { %v1010_v41 = vmul.f32 %v2535_v35, %v3363_v13  ;;  %v239_v33 = vmax.f32 %v2418_v17, 0.0  ;;  %v240_v34 = vmax.f32 %v2419_v19, 0.0  ;;  %v2648_v35 = vld [vmem:[%s3959_s0 + $0x48] sm:$0xff]   ;;  %v2554_v40 = vunpack.c.l.bf16 %v2680_v31 }
  0x1f   :  { %2797 = vmatpush3.bf16.msra.mxu1 %v3020_v47  ;;  %v1143_v44 = vmax.f32 %v1079_v37, 0.0  ;;  %v2646_v47 = vld [vmem:[%s3959_s0 + $0x38] sm:$0xff]   ;;  %v1086_v28 = vadd.f32 %v3377_v21, %v1015_v20  ;;  %v2555_v45 = vunpack.c.h.bf16 %v2680_v31  ;;  %v2422_v46 = vunpack.c.l.bf16 %v2648_v35 }
  0x20   :  { %2877 = vmatpush3.bf16.msra.mxu0 %v3021_v52  ;;  %v2677_v52 = vld [vmem:[%s3960_s2 + $0x38] sm:$0xff]   ;;  %v1081_v54 = vadd.f32 %v3377_v21, %v1010_v41  ;;  %v2414_v60 = vunpack.c.l.bf16 %v2646_v47  ;;  %v2415_v2 = vunpack.c.h.bf16 %v2646_v47  ;;  %v2423_v47 = vunpack.c.h.bf16 %v2648_v35 }
  0x21   :  { %v1266_v57 = vpack.c.bf16 %v1143_v44, %v1142_v39  ;;  %v2542_v63 = vunpack.c.l.bf16 %v2677_v52  ;;  %v2543_v0 = vunpack.c.h.bf16 %v2677_v52  ;;  %v2681_v41 = vld [vmem:[%s3960_s2 + $0x58] sm:$0xff]   ;;  %v359_v50 = vpack.c.bf16 %v240_v34, %v239_v33 }
  0x22   :  { %2799 = vmatmul.mubr.bf16.vlgmr.msra.gmra.mrb[0].mxu1 %v352_v7  ;;  %v1145_v5 = vmax.f32 %v1081_v54, 0.0  ;;  %v237_v16 = vmax.f32 %v2414_v60, 0.0  ;;  %v238_v24 = vmax.f32 %v2415_v2, 0.0  ;;  %v2427_v51 = vunpack.c.h.bf16 %v2649_v36 }
  0x23   :  { %2879 = vmatmul.mubr.bf16.vlgmr.msra.gmra.mrb[0].mxu0 %v1263_v11  ;;  %2802 = vmatprep.mubr.bf16.mxu1 %v353_v12  ;;  %v1013_v6 = vmul.f32 %v2542_v63, %v3363_v13  ;;  %v1014_v7 = vmul.f32 %v2543_v0, %v3363_v13  ;;  %v2547_v11 = vunpack.c.h.bf16 %v2678_v1  ;;  %v2679_v12 = vld [vmem:[%s3960_s2 + $0x48] sm:$0xff]   ;;  %v1020_v52 = vmul.f32 %v2555_v45, %v3363_v13 }
  0x24   :  { %2882 = vmatprep.mubr.bf16.mxu0 %v1264_v23  ;;  %v1267_v23 = vpack.c.bf16 %v1145_v5, %v1144_v4  ;;  %v2550_v26 = vunpack.c.l.bf16 %v2679_v12  ;;  %v2551_v30 = vunpack.c.h.bf16 %v2679_v12  ;;  %v358_v42 = vpack.c.bf16 %v238_v24, %v237_v16  ;;  %v2651_v5 = vld [vmem:[%s3959_s0 + $0x60] sm:$0xff]  }
  0x25   :  { %v1084_v18 = vadd.f32 %v3377_v21, %v1013_v6  ;;  %v1016_v22 = vmul.f32 %v2547_v11, %v3363_v13  ;;  %v1085_v25 = vadd.f32 %v3377_v21, %v1014_v7  ;;  %v2558_v53 = vunpack.c.l.bf16 %v2681_v41  ;;  %v2683_v11 = vld [vmem:[%s3960_s2 + $0x68] sm:$0xff]  }
  0x26   :  { %v1017_v38 = vmul.f32 %v2550_v26, %v3363_v13  ;;  %v1018_v39 = vmul.f32 %v2551_v30, %v3363_v13  ;;  %v1091_v61 = vadd.f32 %v3377_v21, %v1020_v52  ;;  %v241_v63 = vmax.f32 %v2422_v46, 0.0  ;;  %v2684_v26 = vld [vmem:[%s3960_s2 + $0x70] sm:$0xff]  }
  0x27   :  { %v1087_v29 = vadd.f32 %v3377_v21, %v1016_v22  ;;  %v1148_v32 = vmax.f32 %v1084_v18, 0.0  ;;  %v1149_v37 = vmax.f32 %v1085_v25, 0.0  ;;  %v242_v0 = vmax.f32 %v2423_v47, 0.0 }
  0x28   :  { %v1088_v55 = vadd.f32 %v3377_v21, %v1017_v38  ;;  %v1089_v56 = vadd.f32 %v3377_v21, %v1018_v39  ;;  %v244_v2 = vmax.f32 %v2427_v51, 0.0  ;;  %v1021_v3 = vmul.f32 %v2558_v53, %v3363_v13 }
  0x29   :  { %v1151_v44 = vmax.f32 %v1087_v29, 0.0  ;;  %v1269_v54 = vpack.c.bf16 %v1149_v37, %v1148_v32  ;;  %v2562_v6 = vunpack.c.l.bf16 %v2682_v58  ;;  %v2430_v9 = vunpack.c.l.bf16 %v2650_v62 }
  0x2a   :  { %2803 = vmatmul.mubr.bf16.gmra.mrb[4].mxu1 %v354_v43  ;;  %v1150_v43 = vmax.f32 %v1086_v28, 0.0  ;;  %v1152_v7 = vmax.f32 %v1088_v55, 0.0  ;;  %v1153_v8 = vmax.f32 %v1089_v56, 0.0  ;;  %v2563_v10 = vunpack.c.h.bf16 %v2682_v58 }
  0x2b   :  { %2883 = vmatmul.mubr.bf16.gmra.mrb[4].mxu0 %v1265_v48  ;;  %2806 = vmatprep.mubr.bf16.mxu1 %v355_v49  ;;  %v2426_v48 = vunpack.c.l.bf16 %v2649_v36  ;;  %v1019_v49 = vmul.f32 %v2554_v40, %v3363_v13  ;;  %v1023_v16 = vmul.f32 %v2562_v6, %v3363_v13  ;;  %v360_v17 = vpack.c.bf16 %v242_v0, %v241_v63  ;;  %v2652_v40 = vld [vmem:[%s3959_s0 + $0x68] sm:$0xff]  }
  0x2c   :  { %2886 = vmatprep.mubr.bf16.mxu0 %v1266_v57  ;;  %v2559_v57 = vunpack.c.h.bf16 %v2681_v41  ;;  %v1270_v59 = vpack.c.bf16 %v1151_v44, %v1150_v43  ;;  %v2434_v18 = vunpack.c.l.bf16 %v2651_v5  ;;  %v2435_v19 = vunpack.c.h.bf16 %v2651_v5  ;;  %v2653_v43 = vld [vmem:[%s3959_s0 + $0x70] sm:$0xff]  }
  0x2d   :  { %v1090_v60 = vadd.f32 %v3377_v21, %v1019_v49  ;;  %v243_v1 = vmax.f32 %v2426_v48, 0.0  ;;  %v1024_v20 = vmul.f32 %v2563_v10, %v3363_v13  ;;  %v1092_v22 = vadd.f32 %v3377_v21, %v1021_v3  ;;  %v2685_v49 = vld [vmem:[%s3960_s2 + $0x78] sm:$0xff]  }
  0x2e   :  { %v1022_v4 = vmul.f32 %v2559_v57, %v3363_v13  ;;  %v2566_v24 = vunpack.c.l.bf16 %v2683_v11  ;;  %v2567_v25 = vunpack.c.h.bf16 %v2683_v11  ;;  %v245_v29 = vmax.f32 %v2430_v9, 0.0  ;;  %v2655_v9 = vld [vmem:[%s3959_s0 + $0x80] sm:$0xff]  }
  0x2f   :  { %v1154_v12 = vmax.f32 %v1090_v60, 0.0  ;;  %v361_v28 = vpack.c.bf16 %v244_v2, %v243_v1  ;;  %v1094_v32 = vadd.f32 %v3377_v21, %v1023_v16  ;;  %v1095_v33 = vadd.f32 %v3377_v21, %v1024_v20 }
  0x30   :  { %v247_v34 = vmax.f32 %v2434_v18, 0.0  ;;  %v248_v35 = vmax.f32 %v2435_v19, 0.0  ;;  %v2570_v36 = vunpack.c.l.bf16 %v2684_v26  ;;  %v2571_v37 = vunpack.c.h.bf16 %v2684_v26 }
  0x31   :  { %v1156_v38 = vmax.f32 %v1092_v22, 0.0  ;;  %v1025_v41 = vmul.f32 %v2566_v24, %v3363_v13  ;;  %v1158_v46 = vmax.f32 %v1094_v32, 0.0  ;;  %v1159_v47 = vmax.f32 %v1095_v33, 0.0 }
  0x32   :  { %2807 = vmatmul.mubr.bf16.gmra.mrb[8].mxu1 %v356_v14  ;;  %v1155_v14 = vmax.f32 %v1091_v61, 0.0  ;;  %v1027_v44 = vmul.f32 %v2570_v36, %v3363_v13  ;;  %v1028_v48 = vmul.f32 %v2571_v37, %v3363_v13  ;;  %v2438_v51 = vunpack.c.l.bf16 %v2652_v40 }
  0x33   :  { %2887 = vmatmul.mubr.bf16.gmra.mrb[8].mxu0 %v1267_v23  ;;  %2810 = vmatprep.mubr.bf16.mxu1 %v357_v15  ;;  %v2431_v15 = vunpack.c.h.bf16 %v2650_v62  ;;  %v1093_v23 = vadd.f32 %v3377_v21, %v1022_v4  ;;  %v2439_v52 = vunpack.c.h.bf16 %v2652_v40  ;;  %v2442_v53 = vunpack.c.l.bf16 %v2653_v43 }
  0x34   :  { %2890 = vmatprep.mubr.bf16.mxu0 %v1268_v27  ;;  %v1271_v27 = vpack.c.bf16 %v1153_v8, %v1152_v7  ;;  %v1272_v30 = vpack.c.bf16 %v1155_v14, %v1154_v12  ;;  %v1096_v56 = vadd.f32 %v3377_v21, %v1025_v41  ;;  %v2443_v58 = vunpack.c.h.bf16 %v2653_v43  ;;  %v2654_v8 = vld [vmem:[%s3959_s0 + $0x78] sm:$0xff]   ;;  %v2657_v43 = vld [vmem:[%s3959_s0 + $0x90] sm:$0xff]  }
  0x35   :  { %v246_v31 = vmax.f32 %v2431_v15, 0.0  ;;  %v1157_v39 = vmax.f32 %v1093_v23, 0.0  ;;  %v1099_v60 = vadd.f32 %v3377_v21, %v1028_v48  ;;  %v2574_v61 = vunpack.c.l.bf16 %v2685_v49  ;;  %v2687_v15 = vld [vmem:[%s3960_s2 + $0x88] sm:$0xff]   ;;  %v2688_v23 = vld [vmem:[%s3960_s2 + $0x90] sm:$0xff]   ;;  %v2689_v48 = vld [vmem:[%s3960_s2 + $0x98] sm:$0xff]  }
  0x36   :  { %v2575_v62 = vunpack.c.h.bf16 %v2685_v49  ;;  %v1274_v63 = vpack.c.bf16 %v1159_v47, %v1158_v46  ;;  %v249_v1 = vmax.f32 %v2438_v51, 0.0  ;;  %v250_v2 = vmax.f32 %v2439_v52, 0.0 }
  0x37   :  { %v362_v45 = vpack.c.bf16 %v246_v31, %v245_v29  ;;  %v1273_v55 = vpack.c.bf16 %v1157_v39, %v1156_v38  ;;  %v1160_v4 = vmax.f32 %v1096_v56, 0.0  ;;  %v251_v6 = vmax.f32 %v2442_v53, 0.0  ;;  %v2690_v53 = vld [vmem:[%s3960_s2 + $0xa0] sm:$0xff]  }
  0x38   :  { %v252_v7 = vmax.f32 %v2443_v58, 0.0  ;;  %v1163_v11 = vmax.f32 %v1099_v60, 0.0  ;;  %v1029_v12 = vmul.f32 %v2574_v61, %v3363_v13  ;;  %v1030_v14 = vmul.f32 %v2575_v62, %v3363_v13 }
  0x39   :  { %v2446_v18 = vunpack.c.l.bf16 %v2654_v8  ;;  %v2447_v19 = vunpack.c.h.bf16 %v2654_v8  ;;  %v2450_v20 = vunpack.c.l.bf16 %v2655_v9  ;;  %v2451_v22 = vunpack.c.h.bf16 %v2655_v9 }
  0x3a   :  { %2811 = vmatmul.mubr.bf16.gmra.mrb[12].mxu1 %v358_v42  ;;  %v1026_v42 = vmul.f32 %v2567_v25, %v3363_v13  ;;  %v364_v24 = vpack.c.bf16 %v250_v2, %v249_v1  ;;  %v365_v25 = vpack.c.bf16 %v252_v7, %v251_v6  ;;  %v2582_v26 = vunpack.c.l.bf16 %v2687_v15 }
  0x3b   :  { %2891 = vmatmul.mubr.bf16.gmra.mrb[12].mxu0 %v1269_v54  ;;  %2814 = vmatprep.mubr.bf16.mxu1 %v359_v50  ;;  %v363_v50 = vpack.c.bf16 %v248_v35, %v247_v34  ;;  %v2686_v54 = vld [vmem:[%s3960_s2 + $0x80] sm:$0xff]   ;;  %v1101_v31 = vadd.f32 %v3377_v21, %v1030_v14  ;;  %v2656_v34 = vld [vmem:[%s3959_s0 + $0x88] sm:$0xff]   ;;  %v2586_v35 = vunpack.c.l.bf16 %v2688_v23  ;;  %v2587_v36 = vunpack.c.h.bf16 %v2688_v23 }
  0x3c   :  { %2894 = vmatprep.mubr.bf16.mxu0 %v1270_v59  ;;  %v1097_v57 = vadd.f32 %v3377_v21, %v1026_v42  ;;  %v1098_v59 = vadd.f32 %v3377_v21, %v1027_v44  ;;  %v2578_v0 = vunpack.c.l.bf16 %v2686_v54  ;;  %v2579_v3 = vunpack.c.h.bf16 %v2686_v54  ;;  %v2659_v14 = vld [vmem:[%s3959_s0 + $0xa0] sm:$0xff]  }
  0x3d   :  { %v253_v37 = vmax.f32 %v2446_v18, 0.0  ;;  %v254_v38 = vmax.f32 %v2447_v19, 0.0  ;;  %v255_v39 = vmax.f32 %v2450_v20, 0.0  ;;  %v256_v40 = vmax.f32 %v2451_v22, 0.0  ;;  %v2691_v20 = vld [vmem:[%s3960_s2 + $0xa8] sm:$0xff]  }
  0x3e   :  { %v1161_v5 = vmax.f32 %v1097_v57, 0.0  ;;  %v1162_v10 = vmax.f32 %v1098_v59, 0.0  ;;  %v1031_v16 = vmul.f32 %v2578_v0, %v3363_v13  ;;  %v1033_v41 = vmul.f32 %v2582_v26, %v3363_v13  ;;  %v2692_v26 = vld [vmem:[%s3960_s2 + $0xb0] sm:$0xff]  }
  0x3f   :  { %v2454_v46 = vunpack.c.l.bf16 %v2656_v34  ;;  %v2455_v47 = vunpack.c.h.bf16 %v2656_v34  ;;  %v1035_v51 = vmul.f32 %v2586_v35, %v3363_v13  ;;  %v1036_v52 = vmul.f32 %v2587_v36, %v3363_v13 }
  0x40   :  { %v1276_v29 = vpack.c.bf16 %v1163_v11, %v1162_v10  ;;  %v1102_v32 = vadd.f32 %v3377_v21, %v1031_v16  ;;  %v366_v54 = vpack.c.bf16 %v254_v38, %v253_v37  ;;  %v2458_v56 = vunpack.c.l.bf16 %v2657_v43  ;;  %v2658_v10 = vld [vmem:[%s3959_s0 + $0x98] sm:$0xff]  }
  0x41   :  { %v2459_v57 = vunpack.c.h.bf16 %v2657_v43  ;;  %v1104_v58 = vadd.f32 %v3377_v21, %v1033_v41  ;;  %v2590_v60 = vunpack.c.l.bf16 %v2689_v48  ;;  %v2591_v61 = vunpack.c.h.bf16 %v2689_v48 }
  0x42   :  { %2815 = vmatmul.mubr.bf16.gmra.mrb[16].mxu1 %v360_v17  ;;  %v1032_v17 = vmul.f32 %v2579_v3, %v3363_v13  ;;  %v1166_v49 = vmax.f32 %v1102_v32, 0.0  ;;  %v2594_v0 = vunpack.c.l.bf16 %v2690_v53  ;;  %v2595_v1 = vunpack.c.h.bf16 %v2690_v53 }
  0x43   :  { %2895 = vmatmul.mubr.bf16.gmra.mrb[16].mxu0 %v1271_v27  ;;  %2818 = vmatprep.mubr.bf16.mxu1 %v361_v28  ;;  %v2583_v27 = vunpack.c.h.bf16 %v2687_v15  ;;  %v1275_v28 = vpack.c.bf16 %v1161_v5, %v1160_v4  ;;  %v258_v3 = vmax.f32 %v2455_v47, 0.0  ;;  %v1106_v4 = vadd.f32 %v3377_v21, %v1035_v51  ;;  %v2693_v51 = vld [vmem:[%s3960_s2 + $0xb8] sm:$0xff]  }
  0x44   :  { %2898 = vmatprep.mubr.bf16.mxu0 %v1272_v30  ;;  %v1100_v30 = vadd.f32 %v3377_v21, %v1029_v12  ;;  %v1103_v33 = vadd.f32 %v3377_v21, %v1032_v17  ;;  %v1107_v5 = vadd.f32 %v3377_v21, %v1036_v52  ;;  %v259_v6 = vmax.f32 %v2458_v56, 0.0 }
  0x45   :  { %v1034_v42 = vmul.f32 %v2583_v27, %v3363_v13  ;;  %v260_v7 = vmax.f32 %v2459_v57, 0.0  ;;  %v1168_v8 = vmax.f32 %v1104_v58, 0.0  ;;  %v1037_v11 = vmul.f32 %v2590_v60, %v3363_v13  ;;  %v2694_v58 = vld [vmem:[%s3960_s2 + $0xc0] sm:$0xff]  }
  0x46   :  { %v1164_v44 = vmax.f32 %v1100_v30, 0.0  ;;  %v1038_v12 = vmul.f32 %v2591_v61, %v3363_v13  ;;  %v1039_v15 = vmul.f32 %v2594_v0, %v3363_v13  ;;  %v1040_v16 = vmul.f32 %v2595_v1, %v3363_v13  ;;  %v2662_v61 = vld [vmem:[%s3959_s0 + $0xb8] sm:$0xff]  }
  0x47   :  { %v1105_v59 = vadd.f32 %v3377_v21, %v1034_v42  ;;  %v1170_v18 = vmax.f32 %v1106_v4, 0.0  ;;  %v1171_v19 = vmax.f32 %v1107_v5, 0.0  ;;  %v369_v22 = vpack.c.bf16 %v260_v7, %v259_v6 }
  0x48   :  { %v2462_v23 = vunpack.c.l.bf16 %v2658_v10  ;;  %v2467_v30 = vunpack.c.h.bf16 %v2659_v14  ;;  %v1111_v32 = vadd.f32 %v3377_v21, %v1040_v16  ;;  %v2598_v34 = vunpack.c.l.bf16 %v2691_v20 }
  0x49   :  { %v1169_v9 = vmax.f32 %v1105_v59, 0.0  ;;  %v2599_v35 = vunpack.c.h.bf16 %v2691_v20  ;;  %v1280_v36 = vpack.c.bf16 %v1171_v19, %v1170_v18  ;;  %v2602_v37 = vunpack.c.l.bf16 %v2692_v26  ;;  %v2695_v19 = vld [vmem:[%s3960_s2 + $0xc8] sm:$0xff]  }
  0x4a   :  { %2819 = vmatmul.mubr.bf16.gmra.mrb[20].mxu1 %v362_v45  ;;  %v1165_v45 = vmax.f32 %v1101_v31, 0.0  ;;  %v1110_v31 = vadd.f32 %v3377_v21, %v1039_v15  ;;  %v2603_v38 = vunpack.c.h.bf16 %v2692_v26  ;;  %v1175_v48 = vmax.f32 %v1111_v32, 0.0  ;;  %v2663_v15 = vld [vmem:[%s3959_s0 + $0xc0] sm:$0xff]  }
  0x4b   :  { %2899 = vmatmul.mubr.bf16.gmra.mrb[20].mxu0 %v1273_v55  ;;  %2822 = vmatprep.mubr.bf16.mxu1 %v363_v50  ;;  %v1167_v50 = vmax.f32 %v1103_v33, 0.0  ;;  %v367_v55 = vpack.c.bf16 %v256_v40, %v255_v39  ;;  %v1279_v27 = vpack.c.bf16 %v1169_v9, %v1168_v8  ;;  %v2660_v33 = vld [vmem:[%s3959_s0 + $0xa8] sm:$0xff]   ;;  %v261_v39 = vmax.f32 %v2462_v23, 0.0 }
  0x4c   :  { %2902 = vmatprep.mubr.bf16.mxu0 %v1274_v63  ;;  %v1277_v62 = vpack.c.bf16 %v1165_v45, %v1164_v44  ;;  %v257_v63 = vmax.f32 %v2454_v46, 0.0  ;;  %v264_v44 = vmax.f32 %v2467_v30, 0.0  ;;  %v2470_v45 = vunpack.c.l.bf16 %v2660_v33  ;;  %v2661_v46 = vld [vmem:[%s3959_s0 + $0xb0] sm:$0xff]  }
  0x4d   :  { %v1278_v2 = vpack.c.bf16 %v1167_v50, %v1166_v49  ;;  %v1174_v47 = vmax.f32 %v1110_v31, 0.0  ;;  %v1041_v49 = vmul.f32 %v2598_v34, %v3363_v13  ;;  %v1042_v50 = vmul.f32 %v2599_v35, %v3363_v13 }
  0x4e   :  { %v368_v17 = vpack.c.bf16 %v258_v3, %v257_v63  ;;  %v1043_v52 = vmul.f32 %v2602_v37, %v3363_v13  ;;  %v1044_v53 = vmul.f32 %v2603_v38, %v3363_v13  ;;  %v2474_v56 = vunpack.c.l.bf16 %v2661_v46 }
  0x4f   :  { %v2475_v57 = vunpack.c.h.bf16 %v2661_v46  ;;  %v265_v60 = vmax.f32 %v2470_v45, 0.0  ;;  %v2607_v63 = vunpack.c.h.bf16 %v2693_v51  ;;  %v1282_v1 = vpack.c.bf16 %v1175_v48, %v1174_v47  ;;  %v2664_v46 = vld [vmem:[%s3959_s0 + $0xc8] sm:$0xff]   ;;  %v2665_v48 = vld [vmem:[%s3959_s0 + $0xd0] sm:$0xff]  }
  0x50   :  { %v1113_v3 = vadd.f32 %v3377_v21, %v1042_v50  ;;  %v1114_v4 = vadd.f32 %v3377_v21, %v1043_v52  ;;  %v1115_v5 = vadd.f32 %v3377_v21, %v1044_v53  ;;  %v2610_v6 = vunpack.c.l.bf16 %v2694_v58  ;;  %v2697_v52 = vld [vmem:[%s3960_s2 + $0xd8] sm:$0xff]  }
  0x51   :  { %v2611_v7 = vunpack.c.h.bf16 %v2694_v58  ;;  %v267_v9 = vmax.f32 %v2474_v56, 0.0  ;;  %v2479_v18 = vunpack.c.h.bf16 %v2662_v61  ;;  %v2483_v32 = vunpack.c.h.bf16 %v2663_v15 }
  0x52   :  { %2823 = vmatmul.mubr.bf16.gmra.mrb[24].mxu1 %v364_v24  ;;  %v2463_v24 = vunpack.c.h.bf16 %v2658_v10  ;;  %v268_v10 = vmax.f32 %v2475_v57, 0.0  ;;  %v1178_v20 = vmax.f32 %v1114_v4, 0.0  ;;  %v1047_v23 = vmul.f32 %v2610_v6, %v3363_v13 }
  0x53   :  { %2903 = vmatmul.mubr.bf16.gmra.mrb[24].mxu0 %v1275_v28  ;;  %2826 = vmatprep.mubr.bf16.mxu1 %v365_v25  ;;  %v2466_v25 = vunpack.c.l.bf16 %v2659_v14  ;;  %v1108_v28 = vadd.f32 %v3377_v21, %v1037_v11  ;;  %v2478_v11 = vunpack.c.l.bf16 %v2662_v61  ;;  %v1046_v14 = vmul.f32 %v2607_v63, %v3363_v13 }
  0x54   :  { %2906 = vmatprep.mubr.bf16.mxu0 %v1276_v29  ;;  %v1109_v29 = vadd.f32 %v3377_v21, %v1038_v12  ;;  %v262_v40 = vmax.f32 %v2463_v24, 0.0  ;;  %v1048_v24 = vmul.f32 %v2611_v7, %v3363_v13  ;;  %v2615_v35 = vunpack.c.h.bf16 %v2695_v19 }
  0x55   :  { %v263_v41 = vmax.f32 %v2466_v25, 0.0  ;;  %v1172_v42 = vmax.f32 %v1108_v28, 0.0  ;;  %v2696_v25 = vld [vmem:[%s3960_s2 + $0xd0] sm:$0xff]   ;;  %v269_v28 = vmax.f32 %v2478_v11, 0.0  ;;  %v1117_v31 = vadd.f32 %v3377_v21, %v1046_v14 }
  0x56   :  { %v1173_v43 = vmax.f32 %v1109_v29, 0.0  ;;  %v2482_v29 = vunpack.c.l.bf16 %v2663_v15  ;;  %v2619_v37 = vunpack.c.h.bf16 %v2696_v25  ;;  %v272_v45 = vmax.f32 %v2483_v32, 0.0 }
  0x57   :  { %v371_v59 = vpack.c.bf16 %v264_v44, %v263_v41  ;;  %v1119_v41 = vadd.f32 %v3377_v21, %v1048_v24  ;;  %v1181_v44 = vmax.f32 %v1117_v31, 0.0  ;;  %v2486_v56 = vunpack.c.l.bf16 %v2664_v46  ;;  %v2699_v24 = vld [vmem:[%s3960_s2 + $0xe8] sm:$0xff]  }
  0x58   :  { %v1281_v0 = vpack.c.bf16 %v1173_v43, %v1172_v42  ;;  %v271_v42 = vmax.f32 %v2482_v29, 0.0  ;;  %v2487_v57 = vunpack.c.h.bf16 %v2664_v46  ;;  %v2490_v58 = vunpack.c.l.bf16 %v2665_v48  ;;  %v2700_v29 = vld [vmem:[%s3960_s2 + $0xf0] sm:$0xff]  }
  0x59   :  { %v2622_v63 = vunpack.c.l.bf16 %v2697_v52 }
  0x5a   :  { %2827 = vmatmul.mubr.bf16.gmra.mrb[28].mxu1 %v366_v54  ;;  %v370_v54 = vpack.c.bf16 %v262_v40, %v261_v39  ;;  %v270_v39 = vmax.f32 %v2479_v18, 0.0  ;;  %v1118_v40 = vadd.f32 %v3377_v21, %v1047_v23 }
  0x5b   :  { %2907 = vmatmul.mubr.bf16.gmra.mrb[28].mxu0 %v1277_v62  ;;  %2830 = vmatprep.mubr.bf16.mxu1 %v367_v55  ;;  %v2471_v55 = vunpack.c.h.bf16 %v2660_v33  ;;  %v2606_v62 = vunpack.c.l.bf16 %v2693_v51  ;;  %v2614_v33 = vunpack.c.l.bf16 %v2695_v19  ;;  %v1052_v51 = vmul.f32 %v2619_v37, %v3363_v13  ;;  %v3278_v37 = vld [vmem:[%s3962_s5] ss:$0 sm:$0xff] }
  0x5c   :  { %2910 = vmatprep.mubr.bf16.mxu0 %v1278_v2  ;;  %v1112_v2 = vadd.f32 %v3377_v21, %v1041_v49  ;;  %v1050_v49 = vmul.f32 %v2615_v35, %v3363_v13  ;;  %v374_v53 = vpack.c.bf16 %v270_v39, %v269_v28  ;;  %v1053_v14 = vmul.f32 %v2622_v63, %v3363_v13 }
  0x5d   :  { %v266_v8 = vmax.f32 %v2471_v55, 0.0  ;;  %v1045_v12 = vmul.f32 %v2606_v62, %v3363_v13  ;;  %v1049_v47 = vmul.f32 %v2614_v33, %v3363_v13  ;;  %v1183_v55 = vmax.f32 %v1119_v41, 0.0 }
  0x5e   :  { %v1176_v16 = vmax.f32 %v1112_v2, 0.0  ;;  %v375_v62 = vpack.c.bf16 %v272_v45, %v271_v42  ;;  %v1121_v2 = vadd.f32 %v3377_v21, %v1050_v49  ;;  %v1123_v4 = vadd.f32 %v3377_v21, %v1052_v51  ;;  %v2669_v51 = vld [vmem:[%s3959_s0 + $0xf0] sm:$0xff]  }
  0x5f   :  { %v372_v26 = vpack.c.bf16 %v266_v8, %v265_v60  ;;  %v1116_v30 = vadd.f32 %v3377_v21, %v1045_v12  ;;  %v2698_v60 = vld [vmem:[%s3960_s2 + $0xe0] sm:$0xff]   ;;  %v273_v8 = vmax.f32 %v2486_v56, 0.0  ;;  %v2666_v12 = vld [vmem:[%s3959_s0 + $0xd8] sm:$0xff]   ;;  %v2630_v35 = vunpack.c.l.bf16 %v2699_v24 }
  0x60   :  { %v2626_v6 = vunpack.c.l.bf16 %v2698_v60  ;;  %v2627_v7 = vunpack.c.h.bf16 %v2698_v60  ;;  %v1187_v19 = vmax.f32 %v1123_v4, 0.0  ;;  %v2495_v28 = vunpack.c.h.bf16 %v2666_v12  ;;  %v2701_v56 = vld [vmem:[%s3960_s2 + $0xf8] sm:$0xff]  }
  0x61   :  { %v1180_v43 = vmax.f32 %v1116_v30, 0.0  ;;  %v1124_v30 = vadd.f32 %v3377_v21, %v1053_v14  ;;  %v2635_v41 = vunpack.c.h.bf16 %v2700_v29  ;;  %v2507_v63 = vunpack.c.h.bf16 %v2669_v51  ;;  %v2670_v14 = vld [vmem:[%s3959_s0 + $0xf8] sm:$0xff]  }
  0x62   :  { %2831 = vmatmul.mubr.bf16.gmra.mrb[32].mxu1 %v368_v17  ;;  %v1177_v17 = vmax.f32 %v1113_v3, 0.0  ;;  %v1056_v23 = vmul.f32 %v2627_v7, %v3363_v13 }
  0x63   :  { %2911 = vmatmul.mubr.bf16.gmra.mrb[32].mxu0 %v1279_v27  ;;  %2834 = vmatprep.mubr.bf16.mxu1 %v369_v22  ;;  %v1179_v22 = vmax.f32 %v1115_v5, 0.0  ;;  %v373_v27 = vpack.c.bf16 %v268_v10, %v267_v9  ;;  %v1285_v61 = vpack.c.bf16 %v1181_v44, %v1180_v43  ;;  %v274_v9 = vmax.f32 %v2487_v57, 0.0 }
  0x64   :  { %2914 = vmatprep.mubr.bf16.mxu0 %v1280_v36  ;;  %v1283_v34 = vpack.c.bf16 %v1177_v17, %v1176_v16  ;;  %v2618_v36 = vunpack.c.l.bf16 %v2696_v25  ;;  %v275_v10 = vmax.f32 %v2490_v58, 0.0  ;;  %v1185_v17 = vmax.f32 %v1121_v2, 0.0 }
  0x65   :  { %v1284_v38 = vpack.c.bf16 %v1179_v22, %v1178_v20  ;;  %v2667_v20 = vld [vmem:[%s3959_s0 + $0xe0] sm:$0xff]   ;;  %v1055_v22 = vmul.f32 %v2626_v6, %v3363_v13  ;;  %v376_v25 = vpack.c.bf16 %v274_v9, %v273_v8  ;;  %v1127_v39 = vadd.f32 %v3278_v37, %v1056_v23 }
  0x66   :  { %v1051_v50 = vmul.f32 %v2618_v36, %v3363_v13  ;;  %v2498_v32 = vunpack.c.l.bf16 %v2667_v20  ;;  %v2499_v33 = vunpack.c.h.bf16 %v2667_v20  ;;  %v2631_v36 = vunpack.c.h.bf16 %v2699_v24 }
  0x67   :  { %v278_v43 = vmax.f32 %v2495_v28, 0.0  ;;  %v1188_v44 = vmax.f32 %v1124_v30, 0.0  ;;  %v2638_v2 = vunpack.c.l.bf16 %v2701_v56  ;;  %v2510_v20 = vunpack.c.l.bf16 %v2670_v14 }
  0x68   :  { %v1122_v3 = vadd.f32 %v3377_v21, %v1051_v50  ;;  %v280_v46 = vmax.f32 %v2499_v33, 0.0 }
  0x69   :  { %v285_v28 = vmax.f32 %v2510_v20, 0.0 }
  0x6a   :  { %2835 = vmatmul.mubr.bf16.gmra.mrb[36].mxu1 %v370_v54  ;;  %v1182_v54 = vmax.f32 %v1118_v40, 0.0  ;;  %v1186_v18 = vmax.f32 %v1122_v3, 0.0  ;;  %v2634_v40 = vunpack.c.l.bf16 %v2700_v29  ;;  %v2639_v3 = vunpack.c.h.bf16 %v2701_v56 }
  0x6b   :  { %2915 = vmatmul.mubr.bf16.gmra.mrb[36].mxu0 %v1281_v0  ;;  %2838 = vmatprep.mubr.bf16.mxu1 %v371_v59  ;;  %v2491_v59 = vunpack.c.h.bf16 %v2665_v48  ;;  %v2623_v0 = vunpack.c.h.bf16 %v2697_v52  ;;  %v3279_v48 = vld [vmem:[%s3961_s4] ss:$0 sm:$0xff] }
  0x6c   :  { %2918 = vmatprep.mubr.bf16.mxu0 %v1282_v1  ;;  %v1120_v1 = vadd.f32 %v3377_v21, %v1049_v47  ;;  %v1286_v5 = vpack.c.bf16 %v1183_v55, %v1182_v54  ;;  %v2668_v47 = vld [vmem:[%s3959_s0 + $0xe8] sm:$0xff]   ;;  %v1057_v49 = vmul.f32 %v3279_v48, %v2630_v35  ;;  %v1058_v50 = vmul.f32 %v3279_v48, %v2631_v36  ;;  %v3694_v35 = vld [vmem:[%s3963_s6] ss:$0 sm:$0xff] }
  0x6d   :  { %v276_v11 = vmax.f32 %v2491_v59, 0.0  ;;  %v1054_v15 = vmul.f32 %v2623_v0, %v3363_v13  ;;  %v1288_v13 = vpack.c.bf16 %v1187_v19, %v1186_v18  ;;  %v1059_v54 = vmul.f32 %v3279_v48, %v2634_v40 }
  0x6e   :  { %v1184_v16 = vmax.f32 %v1120_v1, 0.0  ;;  %v1060_v55 = vmul.f32 %v3279_v48, %v2635_v41  ;;  %v2502_v58 = vunpack.c.l.bf16 %v2668_v47  ;;  %v2503_v59 = vunpack.c.h.bf16 %v2668_v47 }
  0x6f   :  { %v1125_v31 = vadd.f32 %v3377_v21, %v1054_v15  ;;  %v279_v21 = vmax.f32 %v2498_v32, 0.0  ;;  %v1128_v0 = vadd.f32 %v3278_v37, %v1057_v49  ;;  %v1129_v1 = vadd.f32 %v3278_v37, %v1058_v50 }
  0x70   :  { %v1131_v6 = vadd.f32 %v3278_v37, %v1060_v55  ;;  %v281_v7 = vmax.f32 %v2502_v58, 0.0  ;;  %v282_v8 = vmax.f32 %v2503_v59, 0.0  ;;  %v1061_v15 = vmul.f32 %v3279_v48, %v2638_v2 }
  0x71   :  { %v1189_v45 = vmax.f32 %v1125_v31, 0.0 }
  0x72   :  { %2839 = vmatmul.mubr.bf16.gmra.mrb[40].mxu1 %v372_v26  ;;  %v377_v26 = vpack.c.bf16 %v276_v11, %v275_v10  ;;  %v284_v10 = vmax.f32 %v2507_v63, 0.0  ;;  %v1192_v11 = vmax.f32 %v1128_v0, 0.0  ;;  %v1195_v18 = vmax.f32 %v1131_v6, 0.0 }
  0x73   :  { %2919 = vmatmul.mubr.bf16.gmra.mrb[40].mxu0 %v1283_v34  ;;  %2842 = vmatprep.mubr.bf16.mxu1 %v373_v27  ;;  %v2494_v27 = vunpack.c.l.bf16 %v2666_v12  ;;  %v1287_v34 = vpack.c.bf16 %v1185_v17, %v1184_v16  ;;  %v1289_v60 = vpack.c.bf16 %v1189_v45, %v1188_v44  ;;  %v1193_v12 = vmax.f32 %v1129_v1, 0.0 }
  0x74   :  { %2922 = vmatprep.mubr.bf16.mxu0 %v1284_v38  ;;  %v1126_v38 = vadd.f32 %v3278_v37, %v1055_v22  ;;  %v1062_v16 = vmul.f32 %v3279_v48, %v2639_v3  ;;  %v380_v19 = vpack.c.bf16 %v282_v8, %v281_v7  ;;  %v2511_v22 = vunpack.c.h.bf16 %v2670_v14 }
  0x75   :  { %v277_v42 = vmax.f32 %v2494_v27, 0.0  ;;  %v1291_v23 = vpack.c.bf16 %v1193_v12, %v1192_v11 }
  0x76   :  { %v1190_v52 = vmax.f32 %v1126_v38, 0.0  ;;  %v286_v29 = vmax.f32 %v2511_v22, 0.0 }
  0x77   :  { %v378_v57 = vpack.c.bf16 %v278_v43, %v277_v42 }
  0x78   :  { %v382_v32 = vpack.c.bf16 %v286_v29, %v285_v28 }
  0x7a   :  { %2843 = vmatmul.mubr.bf16.gmra.mrb[44].mxu1 %v374_v53  ;;  %v1191_v53 = vmax.f32 %v1127_v39, 0.0 }
  0x7b   :  { %2923 = vmatmul.mubr.bf16.gmra.mrb[44].mxu0 %v1285_v61  ;;  %2846 = vmatprep.mubr.bf16.mxu1 %v375_v62  ;;  %v379_v61 = vpack.c.bf16 %v280_v46, %v279_v21  ;;  %v2506_v62 = vunpack.c.l.bf16 %v2669_v51 }
  0x7c   :  { %2926 = vmatprep.mubr.bf16.mxu0 %v1286_v5  ;;  %v1290_v4 = vpack.c.bf16 %v1191_v53, %v1190_v52  ;;  %v1130_v5 = vadd.f32 %v3278_v37, %v1059_v54 }
  0x7d   :  { %v283_v9 = vmax.f32 %v2506_v62, 0.0 }
  0x7e   :  { %v1194_v17 = vmax.f32 %v1130_v5, 0.0 }
  0x7f   :  { %v381_v24 = vpack.c.bf16 %v284_v10, %v283_v9 }
  0x80   :  { %v1292_v27 = vpack.c.bf16 %v1195_v18, %v1194_v17 }
  0x82   :  { %2847 = vmatmul.mubr.bf16.gmra.mrb[48].mxu1 %v376_v25  ;;  %v1132_v25 = vadd.f32 %v3278_v37, %v1061_v15 }
  0x83   :  { %2927 = vmatmul.mubr.bf16.gmra.mrb[48].mxu0 %v1287_v34  ;;  %2850 = vmatprep.mubr.bf16.mxu1 %v377_v26  ;;  %v1133_v26 = vadd.f32 %v3278_v37, %v1062_v16 }
  0x84   :  { %2930 = vmatprep.mubr.bf16.mxu0 %v1288_v13  ;;  %v1196_v30 = vmax.f32 %v1132_v25, 0.0 }
  0x85   :  { %v1197_v31 = vmax.f32 %v1133_v26, 0.0 }
  0x87   :  { %v1293_v33 = vpack.c.bf16 %v1197_v31, %v1196_v30 }
  0x8a   :  { %2851 = vmatmul.mubr.bf16.gmra.mrb[52].mxu1 %v378_v57 }
  0x8b   :  { %2931 = vmatmul.mubr.bf16.gmra.mrb[52].mxu0 %v1289_v60  ;;  %2854 = vmatprep.mubr.bf16.mxu1 %v379_v61 }
  0x8c   :  { %2934 = vmatprep.mubr.bf16.mxu0 %v1290_v4 }
  0x92   :  { %2855 = vmatmul.mubr.bf16.gmra.mrb[56].mxu1 %v380_v19 }
  0x93   :  { %2935 = vmatmul.mubr.bf16.gmra.mrb[56].mxu0 %v1291_v23  ;;  %2858 = vmatprep.mubr.bf16.mxu1 %v381_v24 }
  0x94   :  { %2938 = vmatprep.mubr.bf16.mxu0 %v1292_v27 }
  0x9a   :  { %2859 = vmatmul.mubr.bf16.gmra.mrb[60].mxu1 %v382_v32 }
  0x9b   :  { %2939 = vmatmul.mubr.bf16.gmra.mrb[60].mxu0 %v1293_v33 }
  0xf5   :  { %v2800_v34 = vpop.f32.mrb[0].mxu1 }
  0xf6   :  { %v2880_v13 = vpop.f32.mrb[0].mxu0  ;;  %v481_v36 = vpop.f32.mrb[1].mxu1 }
  0xf7   :  { %v1649_v37 = vadd.f32 %v2880_v13, %v2800_v34  ;;  %v1392_v38 = vpop.f32.mrb[1].mxu0  ;;  %v2801_v39 = vpop.f32.mrb[2].mxu1 }
  0xf8   :  { %v1647_v40 = vadd.f32 %v1392_v38, %v481_v36  ;;  %v2881_v41 = vpop.f32.mrb[2].mxu0  ;;  %v484_v42 = vpop.f32.mrb[3].mxu1 }
  0xf9   :  { %v1851_v43 = vadd.f32 %v3694_v35, %v1649_v37  ;;  %v1650_v44 = vadd.f32 %v2881_v41, %v2801_v39  ;;  %v1395_v45 = vpop.f32.mrb[3].mxu0 }
  0xfa   :  { %v1849_v21 = vadd.f32 %v3694_v35, %v1647_v40  ;;  %v1648_v46 = vadd.f32 %v1395_v45, %v484_v42 }
  0xfb   :  { %v1915_v47 = vsub.f32 0.0, %v1851_v43  ;;  %v1852_v48 = vadd.f32 %v3694_v35, %v1650_v44 }
  0xfc   :  { %v1913_v49 = vsub.f32 0.0, %v1849_v21  ;;  %v1850_v50 = vadd.f32 %v3694_v35, %v1648_v46 }
  0xfd   :  { %v1981_v51 = vmul.f32 1.442695, %v1915_v47  ;;  %v1916_v52 = vsub.f32 0.0, %v1852_v48  ;;  %v2804_v53 = vpop.f32.mrb[4].mxu1 }
  0xfe   :  { %v1977_v54 = vmul.f32 1.442695, %v1913_v49  ;;  %v1914_v55 = vsub.f32 0.0, %v1850_v50  ;;  %v2884_v56 = vpop.f32.mrb[4].mxu0  ;;  %v497_v57 = vpop.f32.mrb[5].mxu1 }
  0xff   :  { %3022 = vpow2.f32 %v1981_v51  ;;  %v1983_v58 = vmul.f32 1.442695, %v1916_v52  ;;  %v1653_v59 = vadd.f32 %v2884_v56, %v2804_v53  ;;  %v1408_v60 = vpop.f32.mrb[5].mxu0  ;;  %v2805_v61 = vpop.f32.mrb[6].mxu1 }
 0x100   :  { %3024 = vpow2.f32 %v1977_v54  ;;  %v1979_v62 = vmul.f32 1.442695, %v1914_v55  ;;  %v1651_v63 = vadd.f32 %v1408_v60, %v497_v57  ;;  %v2885_v0 = vpop.f32.mrb[6].mxu0  ;;  %v500_v1 = vpop.f32.mrb[7].mxu1 }
 0x101   :  { %3026 = vpow2.f32 %v1983_v58  ;;  %v1855_v2 = vadd.f32 %v3694_v35, %v1653_v59  ;;  %v1654_v3 = vadd.f32 %v2885_v0, %v2805_v61  ;;  %v1411_v4 = vpop.f32.mrb[7].mxu0 }
 0x102   :  { %3028 = vpow2.f32 %v1979_v62  ;;  %v1853_v5 = vadd.f32 %v3694_v35, %v1651_v63  ;;  %v1652_v6 = vadd.f32 %v1411_v4, %v500_v1 }
 0x103   :  { %v1919_v7 = vsub.f32 0.0, %v1855_v2  ;;  %v1856_v8 = vadd.f32 %v3694_v35, %v1654_v3 }
 0x104   :  { %v1917_v9 = vsub.f32 0.0, %v1853_v5  ;;  %v1854_v10 = vadd.f32 %v3694_v35, %v1652_v6 }
 0x105   :  { %v1989_v11 = vmul.f32 1.442695, %v1919_v7  ;;  %v1920_v12 = vsub.f32 0.0, %v1856_v8  ;;  %v2808_v14 = vpop.f32.mrb[8].mxu1 }
 0x106   :  { %v1985_v15 = vmul.f32 1.442695, %v1917_v9  ;;  %v1918_v16 = vsub.f32 0.0, %v1854_v10  ;;  %v2888_v17 = vpop.f32.mrb[8].mxu0  ;;  %v513_v18 = vpop.f32.mrb[9].mxu1 }
 0x107   :  { %3030 = vpow2.f32 %v1989_v11  ;;  %v1991_v19 = vmul.f32 1.442695, %v1920_v12  ;;  %v1657_v20 = vadd.f32 %v2888_v17, %v2808_v14  ;;  %v1424_v22 = vpop.f32.mrb[9].mxu0  ;;  %v2809_v23 = vpop.f32.mrb[10].mxu1 }
 0x108   :  { %3032 = vpow2.f32 %v1985_v15  ;;  %v1987_v24 = vmul.f32 1.442695, %v1918_v16  ;;  %v1655_v25 = vadd.f32 %v1424_v22, %v513_v18  ;;  %v2889_v26 = vpop.f32.mrb[10].mxu0  ;;  %v516_v27 = vpop.f32.mrb[11].mxu1 }
 0x109   :  { %v3023_v28 = vpop.eup %3022  ;;  %3034 = vpow2.f32 %v1991_v19  ;;  %v1859_v29 = vadd.f32 %v3694_v35, %v1657_v20  ;;  %v1658_v30 = vadd.f32 %v2889_v26, %v2809_v23  ;;  %v1427_v31 = vpop.f32.mrb[11].mxu0 }
 0x10a   :  { %v3025_v32 = vpop.eup %3024  ;;  %v2107_v33 = vadd.f32 1.0, %v3023_v28  ;;  %3036 = vpow2.f32 %v1987_v24  ;;  %v1857_v34 = vadd.f32 %v3694_v35, %v1655_v25  ;;  %v1656_v13 = vadd.f32 %v1427_v31, %v516_v27 }
 0x10b   :  { %v3027_v36 = vpop.eup %3026  ;;  %v2105_v37 = vadd.f32 1.0, %v3025_v32  ;;  %v1923_v38 = vsub.f32 0.0, %v1859_v29  ;;  %v1860_v39 = vadd.f32 %v3694_v35, %v1658_v30 }
 0x10c   :  { %v3029_v40 = vpop.eup %3028  ;;  %3038 = vrcp.f32 %v2107_v33  ;;  %v2108_v41 = vadd.f32 1.0, %v3027_v36  ;;  %v1921_v42 = vsub.f32 0.0, %v1857_v34  ;;  %v1858_v43 = vadd.f32 %v3694_v35, %v1656_v13 }
 0x10d   :  { %3040 = vrcp.f32 %v2105_v37  ;;  %v2106_v44 = vadd.f32 1.0, %v3029_v40  ;;  %v1997_v45 = vmul.f32 1.442695, %v1923_v38  ;;  %v1924_v21 = vsub.f32 0.0, %v1860_v39  ;;  %v2812_v46 = vpop.f32.mrb[12].mxu1 }
 0x10e   :  { %3042 = vrcp.f32 %v2108_v41  ;;  %v1993_v47 = vmul.f32 1.442695, %v1921_v42  ;;  %v1922_v48 = vsub.f32 0.0, %v1858_v43  ;;  %v2892_v49 = vpop.f32.mrb[12].mxu0  ;;  %v529_v50 = vpop.f32.mrb[13].mxu1 }
 0x10f   :  { %3044 = vrcp.f32 %v2106_v44  ;;  %v1999_v51 = vmul.f32 1.442695, %v1924_v21  ;;  %v1661_v52 = vadd.f32 %v2892_v49, %v2812_v46  ;;  %v1440_v53 = vpop.f32.mrb[13].mxu0  ;;  %v2813_v54 = vpop.f32.mrb[14].mxu1 }
 0x110   :  { %3046 = vpow2.f32 %v1997_v45  ;;  %v1995_v55 = vmul.f32 1.442695, %v1922_v48  ;;  %v1659_v56 = vadd.f32 %v1440_v53, %v529_v50  ;;  %v2893_v57 = vpop.f32.mrb[14].mxu0  ;;  %v532_v58 = vpop.f32.mrb[15].mxu1 }
 0x111   :  { %v3031_v59 = vpop.eup %3030  ;;  %3048 = vpow2.f32 %v1993_v47  ;;  %v1863_v60 = vadd.f32 %v3694_v35, %v1661_v52  ;;  %v1662_v61 = vadd.f32 %v2893_v57, %v2813_v54  ;;  %v1443_v62 = vpop.f32.mrb[15].mxu0 }
 0x112   :  { %v3033_v63 = vpop.eup %3032  ;;  %v2111_v0 = vadd.f32 1.0, %v3031_v59  ;;  %3050 = vpow2.f32 %v1999_v51  ;;  %v1861_v1 = vadd.f32 %v3694_v35, %v1659_v56  ;;  %v1660_v2 = vadd.f32 %v1443_v62, %v532_v58 }
 0x113   :  { %v3035_v3 = vpop.eup %3034  ;;  %v2109_v4 = vadd.f32 1.0, %v3033_v63  ;;  %3052 = vpow2.f32 %v1995_v55  ;;  %v1927_v5 = vsub.f32 0.0, %v1863_v60  ;;  %v1864_v6 = vadd.f32 %v3694_v35, %v1662_v61 }
 0x114   :  { %v3037_v7 = vpop.eup %3036  ;;  %3054 = vrcp.f32 %v2111_v0  ;;  %v2112_v8 = vadd.f32 1.0, %v3035_v3  ;;  %v1925_v9 = vsub.f32 0.0, %v1861_v1  ;;  %v1862_v10 = vadd.f32 %v3694_v35, %v1660_v2 }
 0x115   :  { %3056 = vrcp.f32 %v2109_v4  ;;  %v2110_v11 = vadd.f32 1.0, %v3037_v7  ;;  %v2005_v12 = vmul.f32 1.442695, %v1927_v5  ;;  %v1928_v14 = vsub.f32 0.0, %v1864_v6  ;;  %v2816_v15 = vpop.f32.mrb[16].mxu1 }
 0x116   :  { %v3039_v16 = vpop.eup %3038  ;;  %3058 = vrcp.f32 %v2112_v8  ;;  %v2001_v17 = vmul.f32 1.442695, %v1925_v9  ;;  %v1926_v18 = vsub.f32 0.0, %v1862_v10  ;;  %v2896_v19 = vpop.f32.mrb[16].mxu0 }
 0x117   :  { %v545_v20 = vpop.f32.mrb[17].mxu1  ;;  %v3041_v22 = vpop.eup %3040  ;;  %2299 = vst [vmem:[%s3964_s7 + $0x10] sm:$0xff] %v3039_v16  ;;  %3060 = vrcp.f32 %v2110_v11  ;;  %v2007_v23 = vmul.f32 1.442695, %v1928_v14  ;;  %v1665_v24 = vadd.f32 %v2896_v19, %v2816_v15 }
 0x118   :  { %v1456_v25 = vpop.f32.mrb[17].mxu0  ;;  %v2817_v26 = vpop.f32.mrb[18].mxu1  ;;  %2297 = vst [vmem:[%s3964_s7] sm:$0xff] %v3041_v22  ;;  %3062 = vpow2.f32 %v2005_v12  ;;  %v2003_v28 = vmul.f32 1.442695, %v1926_v18 }
 0x119   :  { %v3043_v27 = vpop.eup %3042  ;;  %v1663_v29 = vadd.f32 %v1456_v25, %v545_v20  ;;  %v2897_v30 = vpop.f32.mrb[18].mxu0  ;;  %3064 = vpow2.f32 %v2001_v17  ;;  %v1867_v33 = vadd.f32 %v3694_v35, %v1665_v24 }
 0x11a   :  { %v548_v31 = vpop.f32.mrb[19].mxu1  ;;  %v3045_v32 = vpop.eup %3044  ;;  %2300 = vst [vmem:[%s3964_s7 + $0x18] sm:$0xff] %v3043_v27  ;;  %v1666_v34 = vadd.f32 %v2897_v30, %v2817_v26  ;;  %3066 = vpow2.f32 %v2007_v23 }
 0x11b   :  { %v1459_v13 = vpop.f32.mrb[19].mxu0  ;;  %v3047_v36 = vpop.eup %3046  ;;  %2298 = vst [vmem:[%s3964_s7 + $0x8] sm:$0xff] %v3045_v32  ;;  %v1865_v37 = vadd.f32 %v3694_v35, %v1663_v29  ;;  %3068 = vpow2.f32 %v2003_v28  ;;  %v1931_v41 = vsub.f32 0.0, %v1867_v33 }
 0x11c   :  { %v1664_v38 = vadd.f32 %v1459_v13, %v548_v31  ;;  %v3049_v39 = vpop.eup %3048  ;;  %v2115_v40 = vadd.f32 1.0, %v3047_v36  ;;  %v1868_v42 = vadd.f32 %v3694_v35, %v1666_v34 }
 0x11d   :  { %v3051_v43 = vpop.eup %3050  ;;  %v2113_v44 = vadd.f32 1.0, %v3049_v39  ;;  %v1929_v45 = vsub.f32 0.0, %v1865_v37  ;;  %v2013_v48 = vmul.f32 1.442695, %v1931_v41  ;;  %v2820_v50 = vpop.f32.mrb[20].mxu1 }
 0x11e   :  { %v1866_v21 = vadd.f32 %v3694_v35, %v1664_v38  ;;  %v3053_v46 = vpop.eup %3052  ;;  %3070 = vrcp.f32 %v2115_v40  ;;  %v2116_v47 = vadd.f32 1.0, %v3051_v43  ;;  %v1932_v49 = vsub.f32 0.0, %v1868_v42  ;;  %v2900_v55 = vpop.f32.mrb[20].mxu0 }
 0x11f   :  { %v3055_v51 = vpop.eup %3054  ;;  %3072 = vrcp.f32 %v2113_v44  ;;  %v2114_v52 = vadd.f32 1.0, %v3053_v46  ;;  %v2009_v53 = vmul.f32 1.442695, %v1929_v45  ;;  %v561_v56 = vpop.f32.mrb[21].mxu1  ;;  %v1669_v59 = vadd.f32 %v2900_v55, %v2820_v50 }
 0x120   :  { %v1930_v54 = vsub.f32 0.0, %v1866_v21  ;;  %v3057_v57 = vpop.eup %3056  ;;  %2303 = vst [vmem:[%s3964_s7 + $0x30] sm:$0xff] %v3055_v51  ;;  %3074 = vrcp.f32 %v2116_v47  ;;  %v2015_v58 = vmul.f32 1.442695, %v1932_v49  ;;  %v1472_v60 = vpop.f32.mrb[21].mxu0 }
 0x121   :  { %v2821_v61 = vpop.f32.mrb[22].mxu1  ;;  %v3059_v62 = vpop.eup %3058  ;;  %2301 = vst [vmem:[%s3964_s7 + $0x20] sm:$0xff] %v3057_v57  ;;  %3076 = vrcp.f32 %v2114_v52  ;;  %v1667_v0 = vadd.f32 %v1472_v60, %v561_v56  ;;  %v1871_v4 = vadd.f32 %v3694_v35, %v1669_v59 }
 0x122   :  { %v2011_v63 = vmul.f32 1.442695, %v1930_v54  ;;  %v2901_v1 = vpop.f32.mrb[22].mxu0  ;;  %v564_v2 = vpop.f32.mrb[23].mxu1  ;;  %2304 = vst [vmem:[%s3964_s7 + $0x38] sm:$0xff] %v3059_v62  ;;  %3078 = vpow2.f32 %v2013_v48 }
 0x123   :  { %v3061_v3 = vpop.eup %3060  ;;  %v1670_v5 = vadd.f32 %v2901_v1, %v2821_v61  ;;  %v1475_v6 = vpop.f32.mrb[23].mxu0  ;;  %3080 = vpow2.f32 %v2009_v53  ;;  %v1869_v8 = vadd.f32 %v3694_v35, %v1667_v0  ;;  %v1935_v12 = vsub.f32 0.0, %v1871_v4 }
 0x124   :  { %v3063_v7 = vpop.eup %3062  ;;  %2302 = vst [vmem:[%s3964_s7 + $0x28] sm:$0xff] %v3061_v3  ;;  %v1668_v9 = vadd.f32 %v1475_v6, %v564_v2  ;;  %3082 = vpow2.f32 %v2015_v58 }
 0x125   :  { %v3065_v10 = vpop.eup %3064  ;;  %v2119_v11 = vadd.f32 1.0, %v3063_v7  ;;  %v1872_v14 = vadd.f32 %v3694_v35, %v1670_v5  ;;  %3084 = vpow2.f32 %v2011_v63  ;;  %v1933_v17 = vsub.f32 0.0, %v1869_v8  ;;  %v2824_v24 = vpop.f32.mrb[24].mxu1 }
 0x126   :  { %v3067_v15 = vpop.eup %3066  ;;  %v2117_v16 = vadd.f32 1.0, %v3065_v10  ;;  %v1870_v18 = vadd.f32 %v3694_v35, %v1668_v9  ;;  %v2021_v22 = vmul.f32 1.442695, %v1935_v12  ;;  %v2904_v28 = vpop.f32.mrb[24].mxu0 }
 0x127   :  { %v3069_v19 = vpop.eup %3068  ;;  %3086 = vrcp.f32 %v2119_v11  ;;  %v2120_v20 = vadd.f32 1.0, %v3067_v15  ;;  %v1936_v23 = vsub.f32 0.0, %v1872_v14  ;;  %v2017_v26 = vmul.f32 1.442695, %v1933_v17  ;;  %v577_v29 = vpop.f32.mrb[25].mxu1 }
 0x128   :  { %3088 = vrcp.f32 %v2117_v16  ;;  %v2118_v25 = vadd.f32 1.0, %v3069_v19  ;;  %v1934_v27 = vsub.f32 0.0, %v1870_v18  ;;  %v3071_v30 = vpop.eup %3070  ;;  %v1673_v32 = vadd.f32 %v2904_v28, %v2824_v24  ;;  %v1488_v33 = vpop.f32.mrb[25].mxu0 }
 0x129   :  { %3090 = vrcp.f32 %v2120_v20  ;;  %v2023_v31 = vmul.f32 1.442695, %v1936_v23  ;;  %v2825_v34 = vpop.f32.mrb[26].mxu1  ;;  %v3073_v13 = vpop.eup %3072  ;;  %2307 = vst [vmem:[%s3964_s7 + $0x50] sm:$0xff] %v3071_v30  ;;  %v1671_v37 = vadd.f32 %v1488_v33, %v577_v29 }
 0x12a   :  { %3092 = vrcp.f32 %v2118_v25  ;;  %v2019_v36 = vmul.f32 1.442695, %v1934_v27  ;;  %v2905_v38 = vpop.f32.mrb[26].mxu0  ;;  %v580_v39 = vpop.f32.mrb[27].mxu1  ;;  %2305 = vst [vmem:[%s3964_s7 + $0x40] sm:$0xff] %v3073_v13  ;;  %v1875_v41 = vadd.f32 %v3694_v35, %v1673_v32 }
 0x12b   :  { %v3075_v40 = vpop.eup %3074  ;;  %3094 = vpow2.f32 %v2021_v22  ;;  %v1674_v42 = vadd.f32 %v2905_v38, %v2825_v34  ;;  %v1491_v43 = vpop.f32.mrb[27].mxu0  ;;  %v1873_v45 = vadd.f32 %v3694_v35, %v1671_v37 }
 0x12c   :  { %v3077_v44 = vpop.eup %3076  ;;  %2308 = vst [vmem:[%s3964_s7 + $0x58] sm:$0xff] %v3075_v40  ;;  %3096 = vpow2.f32 %v2017_v26  ;;  %v1672_v21 = vadd.f32 %v1491_v43, %v580_v39  ;;  %v1939_v47 = vsub.f32 0.0, %v1875_v41 }
 0x12d   :  { %v3079_v46 = vpop.eup %3078  ;;  %2306 = vst [vmem:[%s3964_s7 + $0x48] sm:$0xff] %v3077_v44  ;;  %3098 = vpow2.f32 %v2023_v31  ;;  %v1876_v48 = vadd.f32 %v3694_v35, %v1674_v42  ;;  %v1937_v51 = vsub.f32 0.0, %v1873_v45  ;;  %v2828_v56 = vpop.f32.mrb[28].mxu1 }
 0x12e   :  { %v3081_v49 = vpop.eup %3080  ;;  %v2123_v50 = vadd.f32 1.0, %v3079_v46  ;;  %3100 = vpow2.f32 %v2019_v36  ;;  %v1874_v52 = vadd.f32 %v3694_v35, %v1672_v21  ;;  %v2029_v59 = vmul.f32 1.442695, %v1939_v47  ;;  %v2908_v61 = vpop.f32.mrb[28].mxu0 }
 0x12f   :  { %v3083_v53 = vpop.eup %3082  ;;  %v2121_v54 = vadd.f32 1.0, %v3081_v49  ;;  %v1940_v55 = vsub.f32 0.0, %v1876_v48  ;;  %v593_v62 = vpop.f32.mrb[29].mxu1  ;;  %v2025_v1 = vmul.f32 1.442695, %v1937_v51  ;;  %v1677_v2 = vadd.f32 %v2908_v61, %v2828_v56 }
 0x130   :  { %v3085_v57 = vpop.eup %3084  ;;  %3102 = vrcp.f32 %v2123_v50  ;;  %v2124_v58 = vadd.f32 1.0, %v3083_v53  ;;  %v1938_v60 = vsub.f32 0.0, %v1874_v52  ;;  %v1504_v3 = vpop.f32.mrb[29].mxu0 }
 0x131   :  { %v3087_v63 = vpop.eup %3086  ;;  %3104 = vrcp.f32 %v2121_v54  ;;  %v2122_v0 = vadd.f32 1.0, %v3085_v57  ;;  %v2829_v4 = vpop.f32.mrb[30].mxu1  ;;  %v2031_v6 = vmul.f32 1.442695, %v1940_v55  ;;  %v1675_v7 = vadd.f32 %v1504_v3, %v593_v62 }
 0x132   :  { %v3089_v5 = vpop.eup %3088  ;;  %2311 = vst [vmem:[%s3964_s7 + $0x70] sm:$0xff] %v3087_v63  ;;  %3106 = vrcp.f32 %v2124_v58  ;;  %v2909_v8 = vpop.f32.mrb[30].mxu0  ;;  %v2027_v11 = vmul.f32 1.442695, %v1938_v60  ;;  %v1879_v12 = vadd.f32 %v3694_v35, %v1677_v2 }
 0x133   :  { %v596_v9 = vpop.f32.mrb[31].mxu1  ;;  %v3091_v10 = vpop.eup %3090  ;;  %2309 = vst [vmem:[%s3964_s7 + $0x60] sm:$0xff] %v3089_v5  ;;  %3108 = vrcp.f32 %v2122_v0  ;;  %v1678_v14 = vadd.f32 %v2909_v8, %v2829_v4  ;;  %v1877_v17 = vadd.f32 %v3694_v35, %v1675_v7 }
 0x134   :  { %v1507_v15 = vpop.f32.mrb[31].mxu0  ;;  %v3093_v16 = vpop.eup %3092  ;;  %2312 = vst [vmem:[%s3964_s7 + $0x78] sm:$0xff] %v3091_v10  ;;  %3110 = vpow2.f32 %v2029_v59  ;;  %v1943_v20 = vsub.f32 0.0, %v1879_v12 }
 0x135   :  { %v1676_v18 = vadd.f32 %v1507_v15, %v596_v9  ;;  %v3095_v19 = vpop.eup %3094  ;;  %2310 = vst [vmem:[%s3964_s7 + $0x68] sm:$0xff] %v3093_v16  ;;  %3112 = vpow2.f32 %v2025_v1  ;;  %v1880_v22 = vadd.f32 %v3694_v35, %v1678_v14  ;;  %v1941_v25 = vsub.f32 0.0, %v1877_v17  ;;  %v2832_v30 = vpop.f32.mrb[32].mxu1 }
 0x136   :  { %v3097_v23 = vpop.eup %3096  ;;  %v2127_v24 = vadd.f32 1.0, %v3095_v19  ;;  %3114 = vpow2.f32 %v2031_v6  ;;  %v2037_v33 = vmul.f32 1.442695, %v1943_v20  ;;  %v2912_v13 = vpop.f32.mrb[32].mxu0 }
 0x137   :  { %v1878_v26 = vadd.f32 %v3694_v35, %v1676_v18  ;;  %v3099_v27 = vpop.eup %3098  ;;  %v2125_v28 = vadd.f32 1.0, %v3097_v23  ;;  %3116 = vpow2.f32 %v2027_v11  ;;  %v1944_v29 = vsub.f32 0.0, %v1880_v22  ;;  %v609_v36 = vpop.f32.mrb[33].mxu1 }
 0x138   :  { %v3101_v31 = vpop.eup %3100  ;;  %3118 = vrcp.f32 %v2127_v24  ;;  %v2128_v32 = vadd.f32 1.0, %v3099_v27  ;;  %v2033_v38 = vmul.f32 1.442695, %v1941_v25  ;;  %v1681_v39 = vadd.f32 %v2912_v13, %v2832_v30  ;;  %v1520_v40 = vpop.f32.mrb[33].mxu0 }
 0x139   :  { %v1942_v34 = vsub.f32 0.0, %v1878_v26  ;;  %3120 = vrcp.f32 %v2125_v28  ;;  %v2126_v37 = vadd.f32 1.0, %v3101_v31  ;;  %v2833_v41 = vpop.f32.mrb[34].mxu1  ;;  %v2039_v43 = vmul.f32 1.442695, %v1944_v29  ;;  %v2913_v45 = vpop.f32.mrb[34].mxu0 }
 0x13a   :  { %v3103_v42 = vpop.eup %3102  ;;  %3122 = vrcp.f32 %v2128_v32  ;;  %v1679_v44 = vadd.f32 %v1520_v40, %v609_v36  ;;  %v612_v21 = vpop.f32.mrb[35].mxu1  ;;  %v1883_v48 = vadd.f32 %v3694_v35, %v1681_v39  ;;  %v1682_v49 = vadd.f32 %v2913_v45, %v2833_v41 }
 0x13b   :  { %v3105_v46 = vpop.eup %3104  ;;  %2315 = vst [vmem:[%s3964_s7 + $0x90] sm:$0xff] %v3103_v42  ;;  %3124 = vrcp.f32 %v2126_v37  ;;  %v2035_v47 = vmul.f32 1.442695, %v1942_v34  ;;  %v1523_v50 = vpop.f32.mrb[35].mxu0 }
 0x13c   :  { %v3107_v51 = vpop.eup %3106  ;;  %2313 = vst [vmem:[%s3964_s7 + $0x80] sm:$0xff] %v3105_v46  ;;  %3126 = vpow2.f32 %v2037_v33  ;;  %v1881_v52 = vadd.f32 %v3694_v35, %v1679_v44  ;;  %v1680_v53 = vadd.f32 %v1523_v50, %v612_v21  ;;  %v1947_v55 = vsub.f32 0.0, %v1883_v48 }
 0x13d   :  { %v3109_v54 = vpop.eup %3108  ;;  %2316 = vst [vmem:[%s3964_s7 + $0x98] sm:$0xff] %v3107_v51  ;;  %3128 = vpow2.f32 %v2033_v38  ;;  %v1884_v56 = vadd.f32 %v3694_v35, %v1682_v49  ;;  %v2836_v63 = vpop.f32.mrb[36].mxu1 }
 0x13e   :  { %v3111_v57 = vpop.eup %3110  ;;  %2314 = vst [vmem:[%s3964_s7 + $0x88] sm:$0xff] %v3109_v54  ;;  %3130 = vpow2.f32 %v2039_v43  ;;  %v1945_v58 = vsub.f32 0.0, %v1881_v52  ;;  %v1882_v59 = vadd.f32 %v3694_v35, %v1680_v53  ;;  %v2916_v3 = vpop.f32.mrb[36].mxu0  ;;  %v2045_v7 = vmul.f32 1.442695, %v1947_v55 }
 0x13f   :  { %v3113_v60 = vpop.eup %3112  ;;  %v2131_v61 = vadd.f32 1.0, %v3111_v57  ;;  %3132 = vpow2.f32 %v2035_v47  ;;  %v1948_v62 = vsub.f32 0.0, %v1884_v56  ;;  %v625_v4 = vpop.f32.mrb[37].mxu1  ;;  %v1685_v8 = vadd.f32 %v2916_v3, %v2836_v63 }
 0x140   :  { %v3115_v0 = vpop.eup %3114  ;;  %v2129_v1 = vadd.f32 1.0, %v3113_v60  ;;  %v1946_v2 = vsub.f32 0.0, %v1882_v59  ;;  %v1536_v9 = vpop.f32.mrb[37].mxu0  ;;  %v2041_v14 = vmul.f32 1.442695, %v1945_v58 }
 0x141   :  { %v3117_v5 = vpop.eup %3116  ;;  %3134 = vrcp.f32 %v2131_v61  ;;  %v2132_v6 = vadd.f32 1.0, %v3115_v0  ;;  %v2837_v10 = vpop.f32.mrb[38].mxu1  ;;  %v1683_v15 = vadd.f32 %v1536_v9, %v625_v4  ;;  %v2047_v19 = vmul.f32 1.442695, %v1948_v62 }
 0x142   :  { %v3119_v11 = vpop.eup %3118  ;;  %3136 = vrcp.f32 %v2129_v1  ;;  %v2130_v12 = vadd.f32 1.0, %v3117_v5  ;;  %v2917_v16 = vpop.f32.mrb[38].mxu0  ;;  %v1887_v20 = vadd.f32 %v3694_v35, %v1685_v8  ;;  %v2043_v25 = vmul.f32 1.442695, %v1946_v2 }
 0x143   :  { %v628_v17 = vpop.f32.mrb[39].mxu1  ;;  %v3121_v18 = vpop.eup %3120  ;;  %2319 = vst [vmem:[%s3964_s7 + $0xb0] sm:$0xff] %v3119_v11  ;;  %3138 = vrcp.f32 %v2132_v6  ;;  %v1686_v22 = vadd.f32 %v2917_v16, %v2837_v10  ;;  %v1885_v26 = vadd.f32 %v3694_v35, %v1683_v15 }
 0x144   :  { %v1539_v23 = vpop.f32.mrb[39].mxu0  ;;  %v3123_v24 = vpop.eup %3122  ;;  %2317 = vst [vmem:[%s3964_s7 + $0xa0] sm:$0xff] %v3121_v18  ;;  %3140 = vrcp.f32 %v2130_v12  ;;  %v1951_v29 = vsub.f32 0.0, %v1887_v20 }
 0x145   :  { %v1684_v27 = vadd.f32 %v1539_v23, %v628_v17  ;;  %v3125_v28 = vpop.eup %3124  ;;  %2320 = vst [vmem:[%s3964_s7 + $0xb8] sm:$0xff] %v3123_v24  ;;  %3142 = vpow2.f32 %v2045_v7  ;;  %v1888_v30 = vadd.f32 %v3694_v35, %v1686_v22  ;;  %v1949_v32 = vsub.f32 0.0, %v1885_v26  ;;  %v2840_v37 = vpop.f32.mrb[40].mxu1 }
 0x146   :  { %v3127_v31 = vpop.eup %3126  ;;  %2318 = vst [vmem:[%s3964_s7 + $0xa8] sm:$0xff] %v3125_v28  ;;  %3144 = vpow2.f32 %v2041_v14  ;;  %v2920_v41 = vpop.f32.mrb[40].mxu0  ;;  %v2053_v45 = vmul.f32 1.442695, %v1951_v29 }
 0x147   :  { %v1886_v33 = vadd.f32 %v3694_v35, %v1684_v27  ;;  %v3129_v34 = vpop.eup %3128  ;;  %v2135_v13 = vadd.f32 1.0, %v3127_v31  ;;  %3146 = vpow2.f32 %v2047_v19  ;;  %v1952_v36 = vsub.f32 0.0, %v1888_v30  ;;  %v641_v42 = vpop.f32.mrb[41].mxu1 }
 0x148   :  { %v3131_v38 = vpop.eup %3130  ;;  %v2133_v39 = vadd.f32 1.0, %v3129_v34  ;;  %3148 = vpow2.f32 %v2043_v25  ;;  %v1689_v21 = vadd.f32 %v2920_v41, %v2840_v37  ;;  %v1552_v46 = vpop.f32.mrb[41].mxu0  ;;  %v2049_v49 = vmul.f32 1.442695, %v1949_v32 }
 0x149   :  { %v1950_v40 = vsub.f32 0.0, %v1886_v33  ;;  %v3133_v43 = vpop.eup %3132  ;;  %3150 = vrcp.f32 %v2135_v13  ;;  %v2136_v44 = vadd.f32 1.0, %v3131_v38  ;;  %v2841_v47 = vpop.f32.mrb[42].mxu1  ;;  %v1687_v50 = vadd.f32 %v1552_v46, %v641_v42 }
 0x14a   :  { %3152 = vrcp.f32 %v2133_v39  ;;  %v2134_v48 = vadd.f32 1.0, %v3133_v43  ;;  %v2921_v51 = vpop.f32.mrb[42].mxu0  ;;  %v644_v52 = vpop.f32.mrb[43].mxu1  ;;  %v2055_v54 = vmul.f32 1.442695, %v1952_v36  ;;  %v1891_v55 = vadd.f32 %v3694_v35, %v1689_v21 }
 0x14b   :  { %v3135_v53 = vpop.eup %3134  ;;  %3154 = vrcp.f32 %v2136_v44  ;;  %v1690_v56 = vadd.f32 %v2921_v51, %v2841_v47  ;;  %v1555_v57 = vpop.f32.mrb[43].mxu0  ;;  %v2051_v59 = vmul.f32 1.442695, %v1950_v40  ;;  %v1889_v60 = vadd.f32 %v3694_v35, %v1687_v50 }
 0x14c   :  { %v3137_v58 = vpop.eup %3136  ;;  %2323 = vst [vmem:[%s3964_s7 + $0xd0] sm:$0xff] %v3135_v53  ;;  %3156 = vrcp.f32 %v2134_v48  ;;  %v1688_v61 = vadd.f32 %v1555_v57, %v644_v52  ;;  %v1955_v63 = vsub.f32 0.0, %v1891_v55 }
 0x14d   :  { %v3139_v62 = vpop.eup %3138  ;;  %2321 = vst [vmem:[%s3964_s7 + $0xc0] sm:$0xff] %v3137_v58  ;;  %3158 = vpow2.f32 %v2053_v45  ;;  %v1892_v0 = vadd.f32 %v3694_v35, %v1690_v56  ;;  %v1953_v2 = vsub.f32 0.0, %v1889_v60  ;;  %v2844_v7 = vpop.f32.mrb[44].mxu1 }
 0x14e   :  { %v3141_v1 = vpop.eup %3140  ;;  %2324 = vst [vmem:[%s3964_s7 + $0xd8] sm:$0xff] %v3139_v62  ;;  %3160 = vpow2.f32 %v2049_v49  ;;  %v1890_v3 = vadd.f32 %v3694_v35, %v1688_v61  ;;  %v2061_v5 = vmul.f32 1.442695, %v1955_v63  ;;  %v2924_v11 = vpop.f32.mrb[44].mxu0  ;;  %v3843_v63 = vld [vmem:[%s3963_s6] ss:$0 sm:$0xff] }
 0x14f   :  { %v3143_v4 = vpop.eup %3142  ;;  %2322 = vst [vmem:[%s3964_s7 + $0xc8] sm:$0xff] %v3141_v1  ;;  %3162 = vpow2.f32 %v2055_v54  ;;  %v1956_v6 = vsub.f32 0.0, %v1892_v0  ;;  %v657_v12 = vpop.f32.mrb[45].mxu1  ;;  %v2057_v16 = vmul.f32 1.442695, %v1953_v2  ;;  %v1693_v17 = vadd.f32 %v2924_v11, %v2844_v7 }
 0x150   :  { %v3145_v8 = vpop.eup %3144  ;;  %v2139_v9 = vadd.f32 1.0, %v3143_v4  ;;  %3164 = vpow2.f32 %v2051_v59  ;;  %v1954_v10 = vsub.f32 0.0, %v1890_v3  ;;  %v1568_v18 = vpop.f32.mrb[45].mxu0 }
 0x151   :  { %v3147_v14 = vpop.eup %3146  ;;  %v2137_v15 = vadd.f32 1.0, %v3145_v8  ;;  %3166 = vpow2.f32 %v2061_v5  ;;  %v2845_v19 = vpop.f32.mrb[46].mxu1  ;;  %v2063_v23 = vmul.f32 1.442695, %v1956_v6  ;;  %v1691_v24 = vadd.f32 %v1568_v18, %v657_v12 }
 0x152   :  { %v3149_v20 = vpop.eup %3148  ;;  %3168 = vrcp.f32 %v2139_v9  ;;  %v2140_v22 = vadd.f32 1.0, %v3147_v14  ;;  %v2925_v25 = vpop.f32.mrb[46].mxu0  ;;  %v1895_v29 = vadd.f32 %v3694_v35, %v1693_v17  ;;  %v2059_v33 = vmul.f32 1.442695, %v1954_v10 }
 0x153   :  { %v660_v26 = vpop.f32.mrb[47].mxu1  ;;  %v3151_v27 = vpop.eup %3150  ;;  %3170 = vrcp.f32 %v2137_v15  ;;  %v2138_v28 = vadd.f32 1.0, %v3149_v20  ;;  %v1694_v30 = vadd.f32 %v2925_v25, %v2845_v19  ;;  %v1893_v34 = vadd.f32 %v3694_v35, %v1691_v24 }
 0x154   :  { %v1571_v31 = vpop.f32.mrb[47].mxu0  ;;  %v3153_v32 = vpop.eup %3152  ;;  %2327 = vst [vmem:[%s3964_s7 + $0xf0] sm:$0xff] %v3151_v27  ;;  %3172 = vrcp.f32 %v2140_v22  ;;  %v1959_v37 = vsub.f32 0.0, %v1895_v29 }
 0x155   :  { %v1692_v13 = vadd.f32 %v1571_v31, %v660_v26  ;;  %v3155_v36 = vpop.eup %3154  ;;  %2325 = vst [vmem:[%s3964_s7 + $0xe0] sm:$0xff] %v3153_v32  ;;  %3174 = vrcp.f32 %v2138_v28  ;;  %v1896_v38 = vadd.f32 %v3694_v35, %v1694_v30  ;;  %v1957_v40 = vsub.f32 0.0, %v1893_v34  ;;  %v2848_v45 = vpop.f32.mrb[48].mxu1 }
 0x156   :  { %v3157_v39 = vpop.eup %3156  ;;  %2328 = vst [vmem:[%s3964_s7 + $0xf8] sm:$0xff] %v3155_v36  ;;  %3176 = vpow2.f32 %v2057_v16  ;;  %v2069_v43 = vmul.f32 1.442695, %v1959_v37  ;;  %v2928_v48 = vpop.f32.mrb[48].mxu0 }
 0x157   :  { %v1894_v41 = vadd.f32 %v3694_v35, %v1692_v13  ;;  %v3159_v42 = vpop.eup %3158  ;;  %2326 = vst [vmem:[%s3964_s7 + $0xe8] sm:$0xff] %v3157_v39  ;;  %3178 = vpow2.f32 %v2063_v23  ;;  %v1960_v44 = vsub.f32 0.0, %v1896_v38  ;;  %v2065_v47 = vmul.f32 1.442695, %v1957_v40  ;;  %v673_v49 = vpop.f32.mrb[49].mxu1 }
 0x158   :  { %v3161_v21 = vpop.eup %3160  ;;  %v2143_v46 = vadd.f32 1.0, %v3159_v42  ;;  %3180 = vpow2.f32 %v2059_v33  ;;  %v1697_v35 = vadd.f32 %v2928_v48, %v2848_v45  ;;  %v1584_v53 = vpop.f32.mrb[49].mxu0 }
 0x159   :  { %v3163_v50 = vpop.eup %3162  ;;  %v2141_v51 = vadd.f32 1.0, %v3161_v21  ;;  %3182 = vpow2.f32 %v2069_v43  ;;  %v1958_v52 = vsub.f32 0.0, %v1894_v41  ;;  %v2849_v54 = vpop.f32.mrb[50].mxu1  ;;  %v2071_v57 = vmul.f32 1.442695, %v1960_v44 }
 0x15a   :  { %v3165_v55 = vpop.eup %3164  ;;  %3184 = vrcp.f32 %v2143_v46  ;;  %v2144_v56 = vadd.f32 1.0, %v3163_v50  ;;  %v1695_v58 = vadd.f32 %v1584_v53, %v673_v49  ;;  %v2929_v59 = vpop.f32.mrb[50].mxu0  ;;  %v1899_v0 = vadd.f32 %v3843_v63, %v1697_v35 }
 0x15b   :  { %v676_v60 = vpop.f32.mrb[51].mxu1  ;;  %v3167_v61 = vpop.eup %3166  ;;  %3186 = vrcp.f32 %v2141_v51  ;;  %v2142_v62 = vadd.f32 1.0, %v3165_v55  ;;  %v1698_v1 = vadd.f32 %v2929_v59, %v2849_v54  ;;  %v2067_v8 = vmul.f32 1.442695, %v1958_v52 }
 0x15c   :  { %v1587_v2 = vpop.f32.mrb[51].mxu0  ;;  %v3169_v3 = vpop.eup %3168  ;;  %3188 = vrcp.f32 %v2144_v56  ;;  %v2147_v4 = vadd.f32 1.0, %v3167_v61  ;;  %v1897_v5 = vadd.f32 %v3843_v63, %v1695_v58  ;;  %v1963_v9 = vsub.f32 0.0, %v1899_v0 }
 0x15d   :  { %v1696_v6 = vadd.f32 %v1587_v2, %v676_v60  ;;  %v3171_v7 = vpop.eup %3170  ;;  %2331 = vst [vmem:[%s3964_s7 + $0x110] sm:$0xff] %v3169_v3  ;;  %3190 = vrcp.f32 %v2142_v62  ;;  %v1900_v10 = vadd.f32 %v3843_v63, %v1698_v1  ;;  %v2852_v18 = vpop.f32.mrb[52].mxu1 }
 0x15e   :  { %v3173_v11 = vpop.eup %3172  ;;  %2329 = vst [vmem:[%s3964_s7 + $0x100] sm:$0xff] %v3171_v7  ;;  %3192 = vrcp.f32 %v2147_v4  ;;  %v1961_v12 = vsub.f32 0.0, %v1897_v5  ;;  %v2077_v16 = vmul.f32 1.442695, %v1963_v9  ;;  %v2932_v22 = vpop.f32.mrb[52].mxu0 }
 0x15f   :  { %v1898_v14 = vadd.f32 %v3843_v63, %v1696_v6  ;;  %v3175_v15 = vpop.eup %3174  ;;  %2332 = vst [vmem:[%s3964_s7 + $0x118] sm:$0xff] %v3173_v11  ;;  %3194 = vpow2.f32 %v2065_v47  ;;  %v1964_v17 = vsub.f32 0.0, %v1900_v10  ;;  %v689_v23 = vpop.f32.mrb[53].mxu1  ;;  %v1701_v27 = vadd.f32 %v2932_v22, %v2852_v18 }
 0x160   :  { %v3177_v19 = vpop.eup %3176  ;;  %2330 = vst [vmem:[%s3964_s7 + $0x108] sm:$0xff] %v3175_v15  ;;  %3196 = vpow2.f32 %v2071_v57  ;;  %v2073_v20 = vmul.f32 1.442695, %v1961_v12  ;;  %v1600_v28 = vpop.f32.mrb[53].mxu0 }
 0x161   :  { %v3179_v24 = vpop.eup %3178  ;;  %v2145_v25 = vadd.f32 1.0, %v3177_v19  ;;  %3198 = vpow2.f32 %v2067_v8  ;;  %v1962_v26 = vsub.f32 0.0, %v1898_v14  ;;  %v2853_v29 = vpop.f32.mrb[54].mxu1  ;;  %v2079_v32 = vmul.f32 1.442695, %v1964_v17 }
 0x162   :  { %v3181_v30 = vpop.eup %3180  ;;  %v2148_v31 = vadd.f32 1.0, %v3179_v24  ;;  %3200 = vpow2.f32 %v2077_v16  ;;  %v1699_v33 = vadd.f32 %v1600_v28, %v689_v23  ;;  %v2933_v34 = vpop.f32.mrb[54].mxu0  ;;  %v1903_v38 = vadd.f32 %v3843_v63, %v1701_v27 }
 0x163   :  { %v692_v13 = vpop.f32.mrb[55].mxu1  ;;  %v3183_v36 = vpop.eup %3182  ;;  %3202 = vrcp.f32 %v2145_v25  ;;  %v2146_v37 = vadd.f32 1.0, %v3181_v30  ;;  %v1702_v39 = vadd.f32 %v2933_v34, %v2853_v29  ;;  %v2075_v21 = vmul.f32 1.442695, %v1962_v26 }
 0x164   :  { %v1603_v40 = vpop.f32.mrb[55].mxu0  ;;  %v3185_v41 = vpop.eup %3184  ;;  %3204 = vrcp.f32 %v2148_v31  ;;  %v2151_v42 = vadd.f32 1.0, %v3183_v36  ;;  %v1901_v43 = vadd.f32 %v3843_v63, %v1699_v33  ;;  %v1967_v46 = vsub.f32 0.0, %v1903_v38 }
 0x165   :  { %v1700_v44 = vadd.f32 %v1603_v40, %v692_v13  ;;  %v3187_v45 = vpop.eup %3186  ;;  %2335 = vst [vmem:[%s3964_s7 + $0x130] sm:$0xff] %v3185_v41  ;;  %3206 = vrcp.f32 %v2146_v37  ;;  %v1904_v47 = vadd.f32 %v3843_v63, %v1702_v39  ;;  %v2856_v53 = vpop.f32.mrb[56].mxu1 }
 0x166   :  { %v3189_v48 = vpop.eup %3188  ;;  %2333 = vst [vmem:[%s3964_s7 + $0x120] sm:$0xff] %v3187_v45  ;;  %3208 = vrcp.f32 %v2151_v42  ;;  %v1965_v49 = vsub.f32 0.0, %v1901_v43  ;;  %v2085_v52 = vmul.f32 1.442695, %v1967_v46  ;;  %v2936_v57 = vpop.f32.mrb[56].mxu0 }
 0x167   :  { %v1902_v50 = vadd.f32 %v3843_v63, %v1700_v44  ;;  %v3191_v51 = vpop.eup %3190  ;;  %2336 = vst [vmem:[%s3964_s7 + $0x138] sm:$0xff] %v3189_v48  ;;  %3210 = vpow2.f32 %v2073_v20  ;;  %v1968_v35 = vsub.f32 0.0, %v1904_v47  ;;  %v705_v58 = vpop.f32.mrb[57].mxu1  ;;  %v1705_v61 = vadd.f32 %v2936_v57, %v2856_v53 }
 0x168   :  { %v3193_v54 = vpop.eup %3192  ;;  %2334 = vst [vmem:[%s3964_s7 + $0x128] sm:$0xff] %v3191_v51  ;;  %3212 = vpow2.f32 %v2079_v32  ;;  %v2081_v55 = vmul.f32 1.442695, %v1965_v49  ;;  %v1616_v62 = vpop.f32.mrb[57].mxu0 }
 0x169   :  { %v1966_v56 = vsub.f32 0.0, %v1902_v50  ;;  %v3195_v59 = vpop.eup %3194  ;;  %2339 = vst [vmem:[%s3964_s7 + $0x150] sm:$0xff] %v3193_v54  ;;  %3214 = vpow2.f32 %v2075_v21  ;;  %v2087_v60 = vmul.f32 1.442695, %v1968_v35  ;;  %v2857_v0 = vpop.f32.mrb[58].mxu1  ;;  %v1703_v4 = vadd.f32 %v1616_v62, %v705_v58 }
 0x16a   :  { %v3197_v1 = vpop.eup %3196  ;;  %v2149_v2 = vadd.f32 1.0, %v3195_v59  ;;  %3216 = vpow2.f32 %v2085_v52  ;;  %v2937_v5 = vpop.f32.mrb[58].mxu0  ;;  %v1907_v9 = vadd.f32 %v3843_v63, %v1705_v61 }
 0x16b   :  { %v2083_v3 = vmul.f32 1.442695, %v1966_v56  ;;  %v708_v6 = vpop.f32.mrb[59].mxu1  ;;  %v3199_v7 = vpop.eup %3198  ;;  %v2152_v8 = vadd.f32 1.0, %v3197_v1  ;;  %3218 = vpow2.f32 %v2081_v55  ;;  %v1706_v10 = vadd.f32 %v2937_v5, %v2857_v0 }
 0x16c   :  { %v1619_v11 = vpop.f32.mrb[59].mxu0  ;;  %v3201_v12 = vpop.eup %3200  ;;  %3220 = vrcp.f32 %v2149_v2  ;;  %v2150_v14 = vadd.f32 1.0, %v3199_v7  ;;  %v1905_v15 = vadd.f32 %v3843_v63, %v1703_v4  ;;  %v1971_v19 = vsub.f32 0.0, %v1907_v9 }
 0x16d   :  { %v1704_v16 = vadd.f32 %v1619_v11, %v708_v6  ;;  %v3203_v17 = vpop.eup %3202  ;;  %3222 = vrcp.f32 %v2152_v8  ;;  %v2155_v18 = vadd.f32 1.0, %v3201_v12  ;;  %v1908_v20 = vadd.f32 %v3843_v63, %v1706_v10  ;;  %v2860_v28 = vpop.f32.mrb[60].mxu1 }
 0x16e   :  { %v3205_v22 = vpop.eup %3204  ;;  %2337 = vst [vmem:[%s3964_s7 + $0x140] sm:$0xff] %v3203_v17  ;;  %3224 = vrcp.f32 %v2150_v14  ;;  %v1969_v23 = vsub.f32 0.0, %v1905_v15  ;;  %v2093_v26 = vmul.f32 1.442695, %v1971_v19  ;;  %v2940_v32 = vpop.f32.mrb[60].mxu0 }
 0x16f   :  { %v1906_v24 = vadd.f32 %v3843_v63, %v1704_v16  ;;  %v3207_v25 = vpop.eup %3206  ;;  %2340 = vst [vmem:[%s3964_s7 + $0x158] sm:$0xff] %v3205_v22  ;;  %3226 = vrcp.f32 %v2155_v18  ;;  %v1972_v27 = vsub.f32 0.0, %v1908_v20  ;;  %v721_v33 = vpop.f32.mrb[61].mxu1  ;;  %v1709_v36 = vadd.f32 %v2940_v32, %v2860_v28 }
 0x170   :  { %v3209_v29 = vpop.eup %3208  ;;  %2338 = vst [vmem:[%s3964_s7 + $0x148] sm:$0xff] %v3207_v25  ;;  %3228 = vpow2.f32 %v2087_v60  ;;  %v2089_v30 = vmul.f32 1.442695, %v1969_v23  ;;  %v1632_v37 = vpop.f32.mrb[61].mxu0 }
 0x171   :  { %v1970_v31 = vsub.f32 0.0, %v1906_v24  ;;  %v3211_v34 = vpop.eup %3210  ;;  %2343 = vst [vmem:[%s3964_s7 + $0x170] sm:$0xff] %v3209_v29  ;;  %3230 = vpow2.f32 %v2083_v3  ;;  %v2095_v13 = vmul.f32 1.442695, %v1972_v27  ;;  %v2861_v38 = vpop.f32.mrb[62].mxu1  ;;  %v1707_v42 = vadd.f32 %v1632_v37, %v721_v33 }
 0x172   :  { %v3213_v39 = vpop.eup %3212  ;;  %v2153_v40 = vadd.f32 1.0, %v3211_v34  ;;  %3232 = vpow2.f32 %v2093_v26  ;;  %v2941_v43 = vpop.f32.mrb[62].mxu0  ;;  %v1911_v46 = vadd.f32 %v3843_v63, %v1709_v36 }
 0x173   :  { %v2091_v41 = vmul.f32 1.442695, %v1970_v31  ;;  %v724_v44 = vpop.f32.mrb[63].mxu1  ;;  %v3215_v45 = vpop.eup %3214  ;;  %v2156_v21 = vadd.f32 1.0, %v3213_v39  ;;  %3234 = vpow2.f32 %v2089_v30  ;;  %v1710_v47 = vadd.f32 %v2941_v43, %v2861_v38 }
 0x174   :  { %v1635_v48 = vpop.f32.mrb[63].mxu0  ;;  %v3217_v49 = vpop.eup %3216  ;;  %3236 = vrcp.f32 %v2153_v40  ;;  %v2154_v50 = vadd.f32 1.0, %v3215_v45  ;;  %v1909_v51 = vadd.f32 %v3843_v63, %v1707_v42  ;;  %v1975_v54 = vsub.f32 0.0, %v1911_v46 }
 0x175   :  { %v1708_v52 = vadd.f32 %v1635_v48, %v724_v44  ;;  %v3219_v35 = vpop.eup %3218  ;;  %3238 = vrcp.f32 %v2156_v21  ;;  %v2159_v53 = vadd.f32 1.0, %v3217_v49  ;;  %v1912_v55 = vadd.f32 %v3843_v63, %v1710_v47 }
 0x176   :  { %v3221_v56 = vpop.eup %3220  ;;  %3240 = vrcp.f32 %v2154_v50  ;;  %v2157_v57 = vadd.f32 1.0, %v3219_v35  ;;  %v1973_v58 = vsub.f32 0.0, %v1909_v51  ;;  %v2101_v61 = vmul.f32 1.442695, %v1975_v54 }
 0x177   :  { %v1910_v59 = vadd.f32 %v3843_v63, %v1708_v52  ;;  %v3223_v60 = vpop.eup %3222  ;;  %2341 = vst [vmem:[%s3964_s7 + $0x160] sm:$0xff] %v3221_v56  ;;  %3242 = vrcp.f32 %v2159_v53  ;;  %v1976_v63 = vsub.f32 0.0, %v1912_v55 }
 0x178   :  { %v3225_v62 = vpop.eup %3224  ;;  %2344 = vst [vmem:[%s3964_s7 + $0x178] sm:$0xff] %v3223_v60  ;;  %3244 = vrcp.f32 %v2157_v57  ;;  %v2097_v0 = vmul.f32 1.442695, %v1973_v58 }
 0x179   :  { %v3227_v1 = vpop.eup %3226  ;;  %2342 = vst [vmem:[%s3964_s7 + $0x168] sm:$0xff] %v3225_v62  ;;  %3246 = vpow2.f32 %v2095_v13  ;;  %v1974_v3 = vsub.f32 0.0, %v1910_v59  ;;  %v2103_v10 = vmul.f32 1.442695, %v1976_v63 }
 0x17a   :  { %v3229_v2 = vpop.eup %3228  ;;  %2347 = vst [vmem:[%s3964_s7 + $0x190] sm:$0xff] %v3227_v1  ;;  %3248 = vpow2.f32 %v2091_v41 }
 0x17b   :  { %v3231_v4 = vpop.eup %3230  ;;  %v2160_v5 = vadd.f32 1.0, %v3229_v2  ;;  %3250 = vpow2.f32 %v2101_v61  ;;  %v2099_v14 = vmul.f32 1.442695, %v1974_v3 }
 0x17c   :  { %v3233_v6 = vpop.eup %3232  ;;  %v2158_v7 = vadd.f32 1.0, %v3231_v4  ;;  %3252 = vpow2.f32 %v2097_v0 }
 0x17d   :  { %v3235_v8 = vpop.eup %3234  ;;  %3254 = vrcp.f32 %v2160_v5  ;;  %v2163_v9 = vadd.f32 1.0, %v3233_v6 }
 0x17e   :  { %v3237_v11 = vpop.eup %3236  ;;  %3256 = vrcp.f32 %v2158_v7  ;;  %v2161_v12 = vadd.f32 1.0, %v3235_v8 }
 0x17f   :  { %v3239_v15 = vpop.eup %3238  ;;  %2345 = vst [vmem:[%s3964_s7 + $0x180] sm:$0xff] %v3237_v11  ;;  %3258 = vrcp.f32 %v2163_v9 }
 0x180   :  { %v3241_v16 = vpop.eup %3240  ;;  %2348 = vst [vmem:[%s3964_s7 + $0x198] sm:$0xff] %v3239_v15  ;;  %3260 = vrcp.f32 %v2161_v12 }
 0x181   :  { %v3243_v17 = vpop.eup %3242  ;;  %2346 = vst [vmem:[%s3964_s7 + $0x188] sm:$0xff] %v3241_v16  ;;  %3262 = vpow2.f32 %v2103_v10 }
 0x182   :  { %v3245_v18 = vpop.eup %3244  ;;  %2351 = vst [vmem:[%s3964_s7 + $0x1b0] sm:$0xff] %v3243_v17  ;;  %3264 = vpow2.f32 %v2099_v14 }
 0x183   :  { %v3247_v19 = vpop.eup %3246  ;;  %2349 = vst [vmem:[%s3964_s7 + $0x1a0] sm:$0xff] %v3245_v18 }
 0x184   :  { %v3249_v20 = vpop.eup %3248  ;;  %v2164_v22 = vadd.f32 1.0, %v3247_v19 }
 0x185   :  { %v3251_v23 = vpop.eup %3250  ;;  %v2162_v24 = vadd.f32 1.0, %v3249_v20 }
 0x186   :  { %v3253_v25 = vpop.eup %3252  ;;  %3266 = vrcp.f32 %v2164_v22  ;;  %v2167_v26 = vadd.f32 1.0, %v3251_v23 }
 0x187   :  { %v3255_v27 = vpop.eup %3254  ;;  %3268 = vrcp.f32 %v2162_v24  ;;  %v2165_v28 = vadd.f32 1.0, %v3253_v25 }
 0x188   :  { %v3257_v29 = vpop.eup %3256  ;;  %2352 = vst [vmem:[%s3964_s7 + $0x1b8] sm:$0xff] %v3255_v27  ;;  %3270 = vrcp.f32 %v2167_v26 }
 0x189   :  { %v3259_v30 = vpop.eup %3258  ;;  %2350 = vst [vmem:[%s3964_s7 + $0x1a8] sm:$0xff] %v3257_v29  ;;  %3272 = vrcp.f32 %v2165_v28 }
 0x18a   :  { %v3261_v31 = vpop.eup %3260  ;;  %2355 = vst [vmem:[%s3964_s7 + $0x1d0] sm:$0xff] %v3259_v30 }
 0x18b   :  { %v3263_v32 = vpop.eup %3262  ;;  %2353 = vst [vmem:[%s3964_s7 + $0x1c0] sm:$0xff] %v3261_v31 }
 0x18c   :  { %v3265_v33 = vpop.eup %3264  ;;  %v2168_v34 = vadd.f32 1.0, %v3263_v32 }
 0x18d   :  { %v2166_v13 = vadd.f32 1.0, %v3265_v33 }
 0x18e   :  { %3274 = vrcp.f32 %v2168_v34 }
 0x18f   :  { %3276 = vrcp.f32 %v2166_v13 }
 0x190   :  { %v3267_v36 = vpop.eup %3266 }
 0x191   :  { %v3269_v37 = vpop.eup %3268  ;;  %2356 = vst [vmem:[%s3964_s7 + $0x1d8] sm:$0xff] %v3267_v36 }
 0x192   :  { %v3271_v38 = vpop.eup %3270  ;;  %2354 = vst [vmem:[%s3964_s7 + $0x1c8] sm:$0xff] %v3269_v37 }
 0x193   :  { %v3273_v39 = vpop.eup %3272  ;;  %2359 = vst [vmem:[%s3964_s7 + $0x1f0] sm:$0xff] %v3271_v38 }
 0x194   :  { %2357 = vst [vmem:[%s3964_s7 + $0x1e0] sm:$0xff] %v3273_v39 }
 0x198   :  { %v3275_v40 = vpop.eup %3274 }
 0x199   :  { %v3277_v41 = vpop.eup %3276  ;;  %2360 = vst [vmem:[%s3964_s7 + $0x1f8] sm:$0xff] %v3275_v40 }
 0x19a   :  { %2358 = vst [vmem:[%s3964_s7 + $0x1e8] sm:$0xff] %v3277_v41 }

</bundles_post_ra>
